<compile_context>
chip_gen: v7x
topology: tpu7x:2x2x1
jax: 0.10.0
libtpu: 0.0.40
codegen_flags: <defaults>
</compile_context>

<pallas_src>
import functools

import jax
import jax.numpy as jnp
from jax import lax
from jax.experimental import pallas as pl
from jax.experimental.pallas import tpu as pltpu

NEG_SLOPE = 0.01  # torch.nn.functional.leaky_relu default


def _leaky_relu(x):
    return jnp.where(x >= 0, x, NEG_SLOPE * x)


def _round_up(x, m):
    return ((x + m - 1) // m) * m


def _lane_pad(n):
    return _round_up(max(int(n), 1), 128)


def _vmem_capacity_bytes():
    try:
        info = pltpu.get_tpu_info()
        cap = getattr(info, "vmem_capacity_bytes", None)
        if cap:
            return int(cap)
    except Exception:
        pass
    return 64 * 1024 * 1024  # v7x floor; only used for budgeting


def _lane_tile(v, reps):
    """Tile v (bb, w) -> (bb, w*reps) along lanes.

    When possible, first build a single 128-lane tile (the only step that needs
    sub-vreg lane shifts) and then replicate it with vreg-aligned concatenation.
    """
    if reps <= 1:
        return v
    w = v.shape[-1]
    if w < 128 and 128 % w == 0 and (w * reps) % 128 == 0:
        v = jnp.concatenate([v] * (128 // w), axis=-1)            # (bb, 128)
        reps = (w * reps) // 128
        if reps == 1:
            return v
    return jnp.concatenate([v] * reps, axis=-1)


def _lane_tile_to(v, reps, target):
    t = _lane_tile(v, reps)
    if t.shape[-1] < target:
        t = jnp.concatenate(
            [t, jnp.zeros((t.shape[0], target - t.shape[-1]), t.dtype)], axis=-1)
    return t


def _segment_sum_matrix(k_padded, seg_width, n_seg, dtype):
    # S[m, j] = 1  iff  j*seg_width <= m < (j+1)*seg_width   (rows >= n_seg*seg_width are 0)
    m = jnp.arange(k_padded, dtype=jnp.int32)[:, None]
    j = jnp.arange(n_seg, dtype=jnp.int32)[None, :]
    return ((m >= j * seg_width) & (m < (j + 1) * seg_width)).astype(dtype)


# ---------------------------------------------------------------------------
# Kernels
# ---------------------------------------------------------------------------

def _kernel_mxu(x_ref, w0_ref, b0_ref, w1_ref, b1_ref, s0_ref, s1_ref, out_ref,
                *, h_dim, d_out):
    """Lane-dense path: VPU broadcast-multiply + MXU segmented-sum per layer."""
    f32 = jnp.float32
    k0p = w0_ref.shape[-1]
    k1p = w1_ref.shape[-1]
    dn = (((1,), (0,)), ((), ()))  # contract lhs dim 1 with rhs dim 0

    # Layer 0: h[b, j] = sum_d w0[b, j, d] * x[b, d]
    x = x_ref[...].astype(f32)                                  # (bb, d_in)
    x_rep = _lane_tile_to(x, h_dim, k0p)                        # (bb, k0p)
    p0 = w0_ref[...].astype(f32) * x_rep                        # (bb, k0p)
    h = lax.dot_general(p0, s0_ref[...], dn,
                        preferred_element_type=f32,
                        precision=lax.Precision.HIGHEST)        # (bb, h_dim)
    h = _leaky_relu(h + b0_ref[...].astype(f32))

    # Layer 1: y[b, o] = sum_j w1[b, o, j] * h[b, j]
    h_rep = _lane_tile_to(h, d_out, k1p)                        # (bb, k1p)
    p1 = w1_ref[...].astype(f32) * h_rep                        # (bb, k1p)
    y = lax.dot_general(p1, s1_ref[...], dn,
                        preferred_element_type=f32,
                        precision=lax.Precision.HIGHEST)        # (bb, d_out)
    y = _leaky_relu(y + b1_ref[...].astype(f32))

    out_ref[...] = y.astype(out_ref.dtype)


def _kernel_vpu(x_ref, w0_ref, b0_ref, w1_ref, b1_ref, out_ref):
    """Fallback path: broadcast multiply + lane reduce (no per-output unrolling)."""
    f32 = jnp.float32
    x = x_ref[...].astype(f32)                                  # (bb, 1, d_in)
    h = jnp.sum(w0_ref[...].astype(f32) * x, axis=-1)           # (bb, h)
    h = _leaky_relu(h + b0_ref[...].astype(f32))
    y = jnp.sum(w1_ref[...].astype(f32) * h[:, None, :], axis=-1)   # (bb, d_out)
    y = _leaky_relu(y + b1_ref[...].astype(f32))
    out_ref[...] = y.astype(out_ref.dtype)


# ---------------------------------------------------------------------------
# Block / VMEM sizing
# ---------------------------------------------------------------------------

def _per_sample_bytes_mxu(d_in, h_dim, d_out, k0p, k1p):
    pipe = 4 * (_lane_pad(d_in) + k0p + _lane_pad(h_dim) + k1p + 2 * _lane_pad(d_out))
    temps = 4 * 2 * (k0p + k1p)          # x_rep/p0 and h_rep/p1 materialised in VMEM
    return 2 * pipe + temps              # pipeline buffers are double-buffered


def _per_sample_bytes_vpu(d_in, h_dim, d_out):
    pipe = 4 * (8 * _lane_pad(d_in) + h_dim * _lane_pad(d_in) + _lane_pad(h_dim)
                + d_out * _lane_pad(h_dim) + 2 * _lane_pad(d_out))
    temps = 4 * (h_dim * _lane_pad(d_in) + d_out * _lane_pad(h_dim))
    return 2 * pipe + temps


def _choose_block(batch, block_b, per_sample_bytes, fixed_bytes, vmem_cap):
    """Pick (batch tile, padded batch): VMEM-aware, prefers >=2 balanced blocks
    (v7x megacore) and a split that needs no batch padding (padding forces an
    extra HBM copy of the flattened weights)."""
    b8 = _round_up(batch, 8)
    budget = max(vmem_cap // 2 - fixed_bytes - (4 << 20), per_sample_bytes * 8)
    bb_cap = max(8, min((budget // per_sample_bytes) // 8 * 8, _round_up(block_b, 8)))
    nb_min = max(1, -(-b8 // bb_cap))
    if b8 >= 16 and nb_min < 2:
        nb_min = 2                        # keep both v7x TensorCores busy
    best = None
    for nb in range(nb_min, nb_min + 65):
        bb = _round_up(-(-b8 // nb), 8)
        pad = nb * bb - b8
        bal = (nb % 2) if nb > 1 else 0   # prefer an even number of blocks
        key = (pad != 0, bal, nb, pad)
        if best is None or key < best[0]:
            best = (key, bb, nb)
        if pad == 0 and bal == 0:
            break
    _, bb, nb = best
    return bb, nb * bb


# ---------------------------------------------------------------------------
# Wrapper
# ---------------------------------------------------------------------------

def param_predictor(pred_input, w0, b0, w1, b1, *, block_b=512, force_fallback=False):
    """pred_input (B, D_in); w0 (B, H, D_in); b0 (B, H, 1); w1 (B, D_out, H); b1 (B, D_out, 1)."""
    B, D_in = pred_input.shape
    H = w0.shape[1]
    D_out = w1.shape[1]
    out_dtype = pred_input.dtype

    K0, K1 = H * D_in, D_out * H
    K0p, K1p = _round_up(K0, 128), _round_up(K1, 128)
    vmem_cap = _vmem_capacity_bytes()

    # Resident segment-sum matrices (fetched once, constant index map).
    s_bytes = 4 * (_round_up(K0p, 8) * _lane_pad(H) + _round_up(K1p, 8) * _lane_pad(D_out))
    use_mxu = (not force_fallback) and (2 * s_bytes <= 16 * 1024 * 1024)

    b0f = b0.reshape(B, H)
    b1f = b1.reshape(B, D_out)

    if use_mxu:
        per_sample = _per_sample_bytes_mxu(D_in, H, D_out, K0p, K1p)
        bb, Bp = _choose_block(B, block_b, per_sample, 2 * s_bytes, vmem_cap)

        w0f = w0.reshape(B, K0)            # free, contiguous reshape
        w1f = w1.reshape(B, K1)
        if K0p != K0:                      # only for dims not multiple of 128
            w0f = jnp.pad(w0f, ((0, 0), (0, K0p - K0)))
        if K1p != K1:
            w1f = jnp.pad(w1f, ((0, 0), (0, K1p - K1)))
        x = pred_input
        if Bp != B:                        # note: padding copies the flat weights once
            pad = Bp - B
            x = jnp.pad(x, ((0, pad), (0, 0)))
            w0f = jnp.pad(w0f, ((0, pad), (0, 0)))
            b0f = jnp.pad(b0f, ((0, pad), (0, 0)))
            w1f = jnp.pad(w1f, ((0, pad), (0, 0)))
            b1f = jnp.pad(b1f, ((0, pad), (0, 0)))

        s0 = _segment_sum_matrix(K0p, D_in, H, jnp.float32)
        s1 = _segment_sum_matrix(K1p, H, D_out, jnp.float32)

        grid_spec = pltpu.PrefetchScalarGridSpec(
            num_scalar_prefetch=0,
            grid=(Bp // bb,),
            in_specs=[
                pl.BlockSpec((bb, D_in), lambda i: (i, 0)),
                pl.BlockSpec((bb, K0p), lambda i: (i, 0)),
                pl.BlockSpec((bb, H), lambda i: (i, 0)),
                pl.BlockSpec((bb, K1p), lambda i: (i, 0)),
                pl.BlockSpec((bb, D_out), lambda i: (i, 0)),
                pl.BlockSpec((K0p, H), lambda i: (0, 0)),       # resident
                pl.BlockSpec((K1p, D_out), lambda i: (0, 0)),   # resident
            ],
            out_specs=pl.BlockSpec((bb, D_out), lambda i: (i, 0)),
        )
        kernel = functools.partial(_kernel_mxu, h_dim=H, d_out=D_out)
        args = (x, w0f, b0f, w1f, b1f, s0, s1)
    else:
        per_sample = _per_sample_bytes_vpu(D_in, H, D_out)
        bb, Bp = _choose_block(B, block_b, per_sample, 0, vmem_cap)

        x3 = pred_input.reshape(B, 1, D_in)
        w0a, w1a = w0, w1
        if Bp != B:
            pad = Bp - B
            x3 = jnp.pad(x3, ((0, pad), (0, 0), (0, 0)))
            w0a = jnp.pad(w0a, ((0, pad), (0, 0), (0, 0)))
            b0f = jnp.pad(b0f, ((0, pad), (0, 0)))
            w1a = jnp.pad(w1a, ((0, pad), (0, 0), (0, 0)))
            b1f = jnp.pad(b1f, ((0, pad), (0, 0)))

        grid_spec = pltpu.PrefetchScalarGridSpec(
            num_scalar_prefetch=0,
            grid=(Bp // bb,),
            in_specs=[
                pl.BlockSpec((bb, 1, D_in), lambda i: (i, 0, 0)),
                pl.BlockSpec((bb, H, D_in), lambda i: (i, 0, 0)),
                pl.BlockSpec((bb, H), lambda i: (i, 0)),
                pl.BlockSpec((bb, D_out, H), lambda i: (i, 0, 0)),
                pl.BlockSpec((bb, D_out), lambda i: (i, 0)),
            ],
            out_specs=pl.BlockSpec((bb, D_out), lambda i: (i, 0)),
        )
        kernel = _kernel_vpu
        args = (x3, w0a, b0f, w1a, b1f)

    out = pl.pallas_call(
        kernel,
        out_shape=jax.ShapeDtypeStruct((Bp, D_out), out_dtype),
        grid_spec=grid_spec,
        compiler_params=pltpu.CompilerParams(
            dimension_semantics=("parallel",),          # batch blocks across TCs
            vmem_limit_bytes=int(vmem_cap * 0.85),      # budget from device capacity
        ),
    )(*args)

    return out[:B] if Bp != B else out


# ---------------------------------------------------------------------------
# Reference + demo
# ---------------------------------------------------------------------------

def param_predictor_ref(pred_input, w0, b0, w1, b1):
    hp = lax.Precision.HIGHEST
    x0 = jnp.einsum("bhd,bd->bh", w0, pred_input, precision=hp) + b0[..., 0]
    x0 = _leaky_relu(x0)
    x1 = jnp.einsum("boh,bh->bo", w1, x0, precision=hp) + b1[..., 0]
    x1 = _leaky_relu(x1)
    return x1


def _make_inputs(key, B, D_in, H, D_out):
    ks = jax.random.split(key, 5)
    pred_input = jax.random.normal(ks[0], (B, D_in), dtype=jnp.float32)
    w0 = jax.random.normal(ks[1], (B, H, D_in), dtype=jnp.float32) * 0.1
    b0 = jax.random.normal(ks[2], (B, H, 1), dtype=jnp.float32) * 0.1
    w1 = jax.random.normal(ks[3], (B, D_out, H), dtype=jnp.float32) * 0.1
    b1 = jax.random.normal(ks[4], (B, D_out, 1), dtype=jnp.float32) * 0.1
    return pred_input, w0, b0, w1, b1


if __name__ == "__main__":
    # Case 1: module-consistent demo dims (dims = (D_in, H, D_out)), MXU path.
    args = _make_inputs(jax.random.PRNGKey(0), 2, 32, 64, 16)
    out = jax.block_until_ready(param_predictor(*args))
    ref = param_predictor_ref(*args)
    assert out.shape == (2, 16)
    assert jnp.allclose(out, ref, atol=1e-5, rtol=1e-4), "mismatch vs reference (case 1)"

    # Case 2: multi-block grid + batch padding, different dims, MXU path.
    args2 = _make_inputs(jax.random.PRNGKey(1), 20, 16, 32, 8)
    out2 = jax.block_until_ready(param_predictor(*args2))
    ref2 = param_predictor_ref(*args2)
    assert out2.shape == (20, 8)
    assert jnp.allclose(out2, ref2, atol=1e-5, rtol=1e-4), "mismatch vs reference (case 2)"

    # Case 3: VPU fallback path (used when the segment-sum matrices would not fit VMEM).
    out3 = jax.block_until_ready(param_predictor(*args, force_fallback=True))
    assert jnp.allclose(out3, ref, atol=1e-5, rtol=1e-4), "mismatch vs reference (case 3)"

    print("KERNEL_OK")
</pallas_src>

<mosaic_0001>
module attributes {stable_mosaic.version = 11 : i64} {
  func.func @_kernel_mxu(%arg0: i32, %arg1: memref<8x32xf32, #tpu.memory_space<vmem>>, %arg2: memref<8x2048xf32, #tpu.memory_space<vmem>>, %arg3: memref<8x64xf32, #tpu.memory_space<vmem>>, %arg4: memref<8x1024xf32, #tpu.memory_space<vmem>>, %arg5: memref<8x16xf32, #tpu.memory_space<vmem>>, %arg6: memref<2048x64xf32, #tpu.memory_space<vmem>>, %arg7: memref<1024x16xf32, #tpu.memory_space<vmem>>, %arg8: memref<8x16xf32, #tpu.memory_space<vmem>>) attributes {dimension_semantics = [#tpu.dimension_semantics<parallel>], iteration_bounds = array<i64: 1>, scalar_prefetch = 0 : i64, scratch_operands = 0 : i64, tpu.core_type = #tpu.core_type<tc>, window_params = [{transform_indices = @transform_0, window_bounds = array<i64: 8, 32>}, {transform_indices = @transform_1, window_bounds = array<i64: 8, 2048>}, {transform_indices = @transform_2, window_bounds = array<i64: 8, 64>}, {transform_indices = @transform_3, window_bounds = array<i64: 8, 1024>}, {transform_indices = @transform_4, window_bounds = array<i64: 8, 16>}, {pipeline_mode = #tpu.pipeline_mode<synchronous>, transform_indices = @transform_5, window_bounds = array<i64: 2048, 64>}, {pipeline_mode = #tpu.pipeline_mode<synchronous>, transform_indices = @transform_6, window_bounds = array<i64: 1024, 16>}, {transform_indices = @transform_7, window_bounds = array<i64: 8, 16>}]} {
    %c0 = arith.constant 0 : index
    %c0_0 = arith.constant 0 : index
    %0 = vector.load %arg1[%c0, %c0_0] : memref<8x32xf32, #tpu.memory_space<vmem>>, vector<8x32xf32>
    %1 = tpu.concatenate %0, %0, %0, %0 in 1 : vector<8x32xf32>, vector<8x32xf32>, vector<8x32xf32>, vector<8x32xf32> -> vector<8x128xf32>
    %2 = tpu.concatenate %1, %1, %1, %1, %1, %1, %1, %1, %1, %1, %1, %1, %1, %1, %1, %1 in 1 : vector<8x128xf32>, vector<8x128xf32>, vector<8x128xf32>, vector<8x128xf32>, vector<8x128xf32>, vector<8x128xf32>, vector<8x128xf32>, vector<8x128xf32>, vector<8x128xf32>, vector<8x128xf32>, vector<8x128xf32>, vector<8x128xf32>, vector<8x128xf32>, vector<8x128xf32>, vector<8x128xf32>, vector<8x128xf32> -> vector<8x2048xf32>
    %c0_1 = arith.constant 0 : index
    %c0_2 = arith.constant 0 : index
    %3 = vector.load %arg2[%c0_1, %c0_2] : memref<8x2048xf32, #tpu.memory_space<vmem>>, vector<8x2048xf32>
    %4 = arith.mulf %3, %2 : vector<8x2048xf32>
    %c0_3 = arith.constant 0 : index
    %c0_4 = arith.constant 0 : index
    %5 = vector.load %arg6[%c0_3, %c0_4] : memref<2048x64xf32, #tpu.memory_space<vmem>>, vector<2048x64xf32>
    %cst = arith.constant dense<0.000000e+00> : vector<8x64xf32>
    %6 = tpu.matmul %4, %5, %cst {dimension_numbers = #tpu.dot_dimension_numbers<[1], [0], [0], [1], [0, 0, 1, 1], [], []>, precision = #tpu.contract_precision<fp32>} : vector<8x2048xf32>, vector<2048x64xf32>, vector<8x64xf32> -> vector<8x64xf32>
    %c0_5 = arith.constant 0 : index
    %c0_6 = arith.constant 0 : index
    %7 = vector.load %arg3[%c0_5, %c0_6] : memref<8x64xf32, #tpu.memory_space<vmem>>, vector<8x64xf32>
    %8 = arith.addf %6, %7 : vector<8x64xf32>
    %cst_7 = arith.constant 0.000000e+00 : f32
    %9 = vector.broadcast %cst_7 : f32 to vector<8x64xf32>
    %10 = arith.cmpf oge, %8, %9 : vector<8x64xf32>
    %cst_8 = arith.constant 0.00999999977 : f32
    %11 = vector.broadcast %cst_8 : f32 to vector<8x64xf32>
    %12 = arith.mulf %11, %8 : vector<8x64xf32>
    %13 = arith.select %10, %8, %12 : vector<8x64xi1>, vector<8x64xf32>
    %14 = tpu.concatenate %13, %13 in 1 : vector<8x64xf32>, vector<8x64xf32> -> vector<8x128xf32>
    %15 = tpu.concatenate %14, %14, %14, %14, %14, %14, %14, %14 in 1 : vector<8x128xf32>, vector<8x128xf32>, vector<8x128xf32>, vector<8x128xf32>, vector<8x128xf32>, vector<8x128xf32>, vector<8x128xf32>, vector<8x128xf32> -> vector<8x1024xf32>
    %c0_9 = arith.constant 0 : index
    %c0_10 = arith.constant 0 : index
    %16 = vector.load %arg4[%c0_9, %c0_10] : memref<8x1024xf32, #tpu.memory_space<vmem>>, vector<8x1024xf32>
    %17 = arith.mulf %16, %15 : vector<8x1024xf32>
    %c0_11 = arith.constant 0 : index
    %c0_12 = arith.constant 0 : index
    %18 = vector.load %arg7[%c0_11, %c0_12] : memref<1024x16xf32, #tpu.memory_space<vmem>>, vector<1024x16xf32>
    %cst_13 = arith.constant dense<0.000000e+00> : vector<8x16xf32>
    %19 = tpu.matmul %17, %18, %cst_13 {dimension_numbers = #tpu.dot_dimension_numbers<[1], [0], [0], [1], [0, 0, 1, 1], [], []>, precision = #tpu.contract_precision<fp32>} : vector<8x1024xf32>, vector<1024x16xf32>, vector<8x16xf32> -> vector<8x16xf32>
    %c0_14 = arith.constant 0 : index
    %c0_15 = arith.constant 0 : index
    %20 = vector.load %arg5[%c0_14, %c0_15] : memref<8x16xf32, #tpu.memory_space<vmem>>, vector<8x16xf32>
    %21 = arith.addf %19, %20 : vector<8x16xf32>
    %cst_16 = arith.constant 0.000000e+00 : f32
    %22 = vector.broadcast %cst_16 : f32 to vector<8x16xf32>
    %23 = arith.cmpf oge, %21, %22 : vector<8x16xf32>
    %cst_17 = arith.constant 0.00999999977 : f32
    %24 = vector.broadcast %cst_17 : f32 to vector<8x16xf32>
    %25 = arith.mulf %24, %21 : vector<8x16xf32>
    %26 = arith.select %23, %21, %25 : vector<8x16xi1>, vector<8x16xf32>
    %c0_18 = arith.constant 0 : index
    %c0_19 = arith.constant 0 : index
    %27 = vector.load %arg8[%c0_18, %c0_19] : memref<8x16xf32, #tpu.memory_space<vmem>>, vector<8x16xf32>
    tpu.vector_store %arg8[%c0_18, %c0_19], %26 {strides = array<i32>} : memref<8x16xf32, #tpu.memory_space<vmem>>, vector<8x16xf32>,
    return
  }
  func.func @transform_0(%arg0: i32) -> (i32, i32) {
    %c0_i32 = arith.constant 0 : i32
    %c0_i32_0 = arith.constant 0 : i32
    return %arg0, %c0_i32 : i32, i32
  }
  func.func @transform_1(%arg0: i32) -> (i32, i32) {
    %c0_i32 = arith.constant 0 : i32
    %c0_i32_0 = arith.constant 0 : i32
    return %arg0, %c0_i32 : i32, i32
  }
  func.func @transform_2(%arg0: i32) -> (i32, i32) {
    %c0_i32 = arith.constant 0 : i32
    %c0_i32_0 = arith.constant 0 : i32
    return %arg0, %c0_i32 : i32, i32
  }
  func.func @transform_3(%arg0: i32) -> (i32, i32) {
    %c0_i32 = arith.constant 0 : i32
    %c0_i32_0 = arith.constant 0 : i32
    return %arg0, %c0_i32 : i32, i32
  }
  func.func @transform_4(%arg0: i32) -> (i32, i32) {
    %c0_i32 = arith.constant 0 : i32
    %c0_i32_0 = arith.constant 0 : i32
    return %arg0, %c0_i32 : i32, i32
  }
  func.func @transform_5(%arg0: i32) -> (i32, i32) {
    %c0_i32 = arith.constant 0 : i32
    %c0_i32_0 = arith.constant 0 : i32
    %c0_i32_1 = arith.constant 0 : i32
    return %c0_i32, %c0_i32_0 : i32, i32
  }
  func.func @transform_6(%arg0: i32) -> (i32, i32) {
    %c0_i32 = arith.constant 0 : i32
    %c0_i32_0 = arith.constant 0 : i32
    %c0_i32_1 = arith.constant 0 : i32
    return %c0_i32, %c0_i32_0 : i32, i32
  }
  func.func @transform_7(%arg0: i32) -> (i32, i32) {
    %c0_i32 = arith.constant 0 : i32
    %c0_i32_0 = arith.constant 0 : i32
    return %arg0, %c0_i32 : i32, i32
  }
}

</mosaic_0001>

<bundles_post_ra>
// kernel: tpu_custom_call.1
= control target key start
LH: loop header
LB: loop body
LE: loop exit
PB: predicated region body
PF: predicated region fallthrough
CT: control target
= control target key end

     0   :  { %s15701_s30 = smov 32   ;;  %s15702_s13 = smov 96   ;;  %s25144_s0 = inlined_call_operand.vmem [shape: f32[8,32], index: 0, kind: input, shape index: {}]   ;;  %s25145_s1 = inlined_call_operand.vmem [shape: f32[8,2048], index: 1, kind: input, shape index: {}]   ;;  %s25146_s2 = inlined_call_operand.vmem [shape: f32[8,64], index: 2, kind: input, shape index: {}]   ;;  %s25147_s3 = inlined_call_operand.vmem [shape: f32[8,1024], index: 3, kind: input, shape index: {}]   ;;  %s25148_s4 = inlined_call_operand.vmem [shape: f32[8,16], index: 4, kind: input, shape index: {}]   ;;  %s25149_s5 = inlined_call_operand.vmem [shape: f32[2048,64], index: 5, kind: input, shape index: {}]   ;;  %s25150_s6 = inlined_call_operand.vmem [shape: f32[1024,16], index: 6, kind: input, shape index: {}]   ;;  %s25151_s7 = inlined_call_operand.hbm [shape: f32[8,16], index: 7, kind: output, shape index: {}]  }
   0x1   :  { %v15748_v0 = vld [vmem:[%s25144_s0] sm:$0xff]  ;;  %v93_v2 = vld [vmem:[%s25149_s5 + $0x88] sm:$0xff]  ;;  %v15768_v7 = vld [vmem:[%s25149_s5 + $0x90] sm:$0xff]  ;;  %s15703_s20 = smov 64  }
   0x2   :  { %v92_v1 = vld [vmem:[%s25149_s5 + $0x80] sm:$0xff]  ;;  %29 = vrot.lane.b32.xlu0 %v15748_v0, %s15701_s30  ;;  %v385_v4 = vand.u32 4294901760, %v93_v2  ;;  %v77_v6 = vld [vmem:[%s25149_s5 + $0x8] sm:$0xff]  ;;  %35 = vrot.lane.b32.xlu1 %v15748_v0, %s15702_s13  ;;  %v388_v11 = vand.u32 4294901760, %v15768_v7 }
   0x3   :  { %v382_v3 = vand.u32 4294901760, %v92_v1  ;;  %v15760_v5 = vld [vmem:[%s25149_s5] sm:$0xff]  ;;  %v337_v9 = vand.u32 4294901760, %v77_v6  ;;  %v15775_v10 = vld [vmem:[%s25149_s5 + $0x98] sm:$0xff]  ;;  %v15781_v12 = vld [vmem:[%s25149_s5 + $0x10] sm:$0xff] }
   0x4   :  { %v334_v8 = vand.u32 4294901760, %v15760_v5  ;;  %v15786_v13 = vld [vmem:[%s25149_s5 + $0x18] sm:$0xff]  ;;  %v15790_v15 = vsub.f32 %v93_v2, %v385_v4  ;;  %v391_v16 = vand.u32 4294901760, %v15775_v10  ;;  %v340_v17 = vand.u32 4294901760, %v15781_v12  ;;  %v15850_v42 = vld [vmem:[%s25149_s5 + $0xa0] sm:$0xff]  ;;  %v15855_v43 = vld [vmem:[%s25149_s5 + $0xa8] sm:$0xff] }
   0x5   :  { %v15788_v14 = vsub.f32 %v92_v1, %v382_v3  ;;  %v15797_v19 = vsub.f32 %v77_v6, %v337_v9  ;;  %v15800_v20 = vsub.f32 %v15768_v7, %v388_v11  ;;  %v343_v21 = vand.u32 4294901760, %v15786_v13  ;;  %v15863_v48 = vld [vmem:[%s25149_s5 + $0x20] sm:$0xff]  ;;  %v15868_v49 = vld [vmem:[%s25149_s5 + $0x28] sm:$0xff]  ;;  %v15877_v58 = vld [vmem:[%s25149_s5 + $0xb0] sm:$0xff] }
   0x6   :  { %v15795_v18 = vsub.f32 %v15760_v5, %v334_v8  ;;  %32 = vrot.lane.b32.xlu0 %v15748_v0, %s15703_s20  ;;  %v25173_v23 = vand.u32 4294901760, %v15790_v15  ;;  %v15808_v24 = vsub.f32 %v15775_v10, %v391_v16  ;;  %v15813_v25 = vsub.f32 %v15781_v12, %v340_v17  ;;  %v15882_v59 = vld [vmem:[%s25149_s5 + $0xb8] sm:$0xff]  ;;  %v15892_v1 = vld [vmem:[%s25149_s5 + $0x30] sm:$0xff] }
   0x7   :  { %v25177_v22 = vand.u32 4294901760, %v15788_v14  ;;  %v25169_v27 = vand.u32 4294901760, %v15797_v19  ;;  %v25168_v28 = vand.u32 4294901760, %v15800_v20  ;;  %v15821_v29 = vsub.f32 %v15786_v13, %v343_v21  ;;  %v15914_v10 = vld [vmem:[%s25149_s5 + $0x38] sm:$0xff] }
   0x8   :  { %v25172_v26 = vand.u32 4294901760, %v15795_v18  ;;  %v568_v31 = vsub.f32 %v15790_v15, %v25173_v23  ;;  %v25167_v32 = vand.u32 4294901760, %v15808_v24  ;;  %v25166_v33 = vand.u32 4294901760, %v15813_v25 }
   0x9   :  { %v561_v30 = vsub.f32 %v15788_v14, %v25177_v22  ;;  %v456_v35 = vsub.f32 %v15797_v19, %v25169_v27  ;;  %v575_v36 = vsub.f32 %v15800_v20, %v25168_v28  ;;  %v25165_v37 = vand.u32 4294901760, %v15821_v29 }
   0xa   :  { %v449_v34 = vsub.f32 %v15795_v18, %v25172_v26  ;;  %v569_v39 = vand.u32 4294901760, %v568_v31  ;;  %v582_v40 = vsub.f32 %v15808_v24, %v25167_v32  ;;  %v463_v41 = vsub.f32 %v15813_v25, %v25166_v33 }
   0xb   :  { %v562_v38 = vand.u32 4294901760, %v561_v30  ;;  %v457_v45 = vand.u32 4294901760, %v456_v35  ;;  %v576_v46 = vand.u32 4294901760, %v575_v36  ;;  %v470_v47 = vsub.f32 %v15821_v29, %v25165_v37 }
   0xc   :  { %v450_v44 = vand.u32 4294901760, %v449_v34  ;;  %v583_v51 = vand.u32 4294901760, %v582_v40  ;;  %v464_v52 = vand.u32 4294901760, %v463_v41  ;;  %v15870_v53 = vpack.c.bf16 %v385_v4, %v382_v3 }
   0xd   :  { %v13401_v50 = vpack.c.bf16 %v569_v39, %v562_v38  ;;  %v471_v55 = vand.u32 4294901760, %v470_v47  ;;  %v394_v56 = vand.u32 4294901760, %v15850_v42  ;;  %v397_v57 = vand.u32 4294901760, %v15855_v43 }
   0xe   :  { %v13403_v54 = vpack.c.bf16 %v457_v45, %v450_v44  ;;  %v13405_v60 = vpack.c.bf16 %v583_v51, %v576_v46  ;;  %13370 = vmatprep.subr.bf16.mxu0 %v15870_v53  ;;  %v15885_v61 = vpack.c.bf16 %v337_v9, %v334_v8  ;;  %v346_v62 = vand.u32 4294901760, %v15863_v48 }
   0xf   :  { %13402 = vmatprep.subr.bf16.mxu1 %v13401_v50  ;;  %v349_v63 = vand.u32 4294901760, %v15868_v49  ;;  %v13407_v2 = vpack.c.bf16 %v471_v55, %v464_v52  ;;  %v15895_v3 = vsub.f32 %v15850_v42, %v394_v56  ;;  %v15898_v4 = vsub.f32 %v15855_v43, %v397_v57 }
  0x10   :  { %13404 = vmatpush3.bf16.msra.mxu1 %v13403_v54  ;;  %v15900_v5 = vpack.c.bf16 %v391_v16, %v388_v11  ;;  %13372 = vmatpush3.bf16.msra.mxu0 %v15885_v61  ;;  %v15904_v6 = vsub.f32 %v15863_v48, %v346_v62  ;;  %v400_v8 = vand.u32 4294901760, %v15877_v58  ;;  %v403_v9 = vand.u32 4294901760, %v15882_v59 }
  0x11   :  { %13406 = vmatprep.subr.bf16.mxu1 %v13405_v60  ;;  %v15907_v7 = vsub.f32 %v15868_v49, %v349_v63  ;;  %v25163_v11 = vand.u32 4294901760, %v15895_v3  ;;  %v25160_v16 = vand.u32 4294901760, %v15898_v4  ;;  %v15923_v30 = vpack.c.bf16 %v343_v21, %v340_v17 }
  0x12   :  { %13374 = vmatprep.subr.bf16.mxu0 %v15900_v5  ;;  %v352_v31 = vand.u32 4294901760, %v15892_v1 }
  0x13   :  { %12 = vsyncpa [#allocation3], 0  ;;  %v25159_v34 = vand.u32 4294901760, %v15904_v6  ;;  %v25157_v35 = vand.u32 4294901760, %v15907_v7  ;;  %v15929_v36 = vsub.f32 %v15877_v58, %v400_v8  ;;  %v15932_v38 = vsub.f32 %v15882_v59, %v403_v9  ;;  %v15962_v47 = vld [vmem:[%s25149_s5 + $0xc0] sm:$0xff]  ;;  %v15973_v52 = vld [vmem:[%s25149_s5 + $0xc8] sm:$0xff] }
  0x14   :  { %13408 = vmatpush3.bf16.msra.mxu1 %v13407_v2  ;;  %v589_v12 = vsub.f32 %v15895_v3, %v25163_v11  ;;  %v596_v13 = vsub.f32 %v15898_v4, %v25160_v16  ;;  %v355_v17 = vand.u32 4294901760, %v15914_v10  ;;  %v15944_v21 = vsub.f32 %v15892_v1, %v352_v31  ;;  %13376 = vmatpush3.bf16.msra.mxu0 %v15923_v30  ;;  %v15984_v60 = vld [vmem:[%s25149_s5 + $0x40] sm:$0xff]  ;;  %v15989_v2 = vld [vmem:[%s25149_s5 + $0x48] sm:$0xff] }
  0x15   :  { %v477_v39 = vsub.f32 %v15904_v6, %v25159_v34  ;;  %v484_v40 = vsub.f32 %v15907_v7, %v25157_v35  ;;  %v25156_v41 = vand.u32 4294901760, %v15929_v36  ;;  %v25155_v42 = vand.u32 4294901760, %v15932_v38 }
  0x16   :  { %v590_v43 = vand.u32 4294901760, %v589_v12  ;;  %v597_v44 = vand.u32 4294901760, %v596_v13  ;;  %v25153_v45 = vand.u32 4294901760, %v15944_v21  ;;  %v15957_v46 = vsub.f32 %v15914_v10, %v355_v17 }
  0x17   :  { %v478_v48 = vand.u32 4294901760, %v477_v39  ;;  %v485_v49 = vand.u32 4294901760, %v484_v40  ;;  %v603_v50 = vsub.f32 %v15929_v36, %v25156_v41  ;;  %v610_v51 = vsub.f32 %v15932_v38, %v25155_v42 }
  0x18   :  { %v13409_v54 = vpack.c.bf16 %v597_v44, %v590_v43  ;;  %v491_v55 = vsub.f32 %v15944_v21, %v25153_v45  ;;  %v25152_v58 = vand.u32 4294901760, %v15957_v46  ;;  %v15979_v59 = vpack.c.bf16 %v397_v57, %v394_v56  ;;  %v15995_v56 = vld [vmem:[%s25149_s5 + $0xd0] sm:$0xff] }
  0x19   :  { %v13411_v10 = vpack.c.bf16 %v485_v49, %v478_v48  ;;  %v604_v12 = vand.u32 4294901760, %v603_v50  ;;  %v611_v13 = vand.u32 4294901760, %v610_v51  ;;  %v406_v39 = vand.u32 4294901760, %v15962_v47  ;;  %v16007_v48 = vld [vmem:[%s25149_s5 + $0xd8] sm:$0xff] }
  0x1a   :  { %13410 = vmatprep.subr.bf16.mxu1 %v13409_v54  ;;  %v492_v57 = vand.u32 4294901760, %v491_v55  ;;  %v498_v40 = vsub.f32 %v15957_v46, %v25152_v58  ;;  %13378 = vmatprep.subr.bf16.mxu0 %v15979_v59  ;;  %v409_v43 = vand.u32 4294901760, %v15973_v52  ;;  %v16002_v44 = vpack.c.bf16 %v349_v63, %v346_v62 }
  0x1b   :  { %13412 = vmatpush3.bf16.msra.mxu1 %v13411_v10  ;;  %v13413_v49 = vpack.c.bf16 %v611_v13, %v604_v12  ;;  %v16010_v50 = vsub.f32 %v15962_v47, %v406_v39  ;;  %v358_v51 = vand.u32 4294901760, %v15984_v60  ;;  %v361_v54 = vand.u32 4294901760, %v15989_v2 }
  0x1c   :  { %v499_v55 = vand.u32 4294901760, %v498_v40  ;;  %v16015_v58 = vsub.f32 %v15973_v52, %v409_v43  ;;  %13380 = vmatpush3.bf16.msra.mxu0 %v16002_v44  ;;  %v16018_v62 = vpack.c.bf16 %v403_v9, %v400_v8  ;;  %v412_v63 = vand.u32 4294901760, %v15995_v56  ;;  %v16032_v52 = vld [vmem:[%s25149_s5 + $0x50] sm:$0xff]  ;;  %v16037_v8 = vld [vmem:[%s25149_s5 + $0x58] sm:$0xff] }
  0x1d   :  { %13414 = vmatprep.subr.bf16.mxu1 %v13413_v49  ;;  %v25154_v10 = vand.u32 4294901760, %v16010_v50  ;;  %v16023_v47 = vsub.f32 %v15984_v60, %v358_v51  ;;  %v16026_v12 = vsub.f32 %v15989_v2, %v361_v54  ;;  %v415_v13 = vand.u32 4294901760, %v16007_v48 }
  0x1e   :  { %v13415_v9 = vpack.c.bf16 %v499_v55, %v492_v57  ;;  %v25158_v40 = vand.u32 4294901760, %v16015_v58  ;;  %13382 = vmatprep.subr.bf16.mxu0 %v16018_v62  ;;  %v16044_v60 = vsub.f32 %v15995_v56, %v412_v63  ;;  %v16048_v2 = vpack.c.bf16 %v355_v17, %v352_v31 }
  0x1f   :  { %v617_v49 = vsub.f32 %v16010_v50, %v25154_v10  ;;  %v25161_v45 = vand.u32 4294901760, %v16023_v47  ;;  %v25162_v57 = vand.u32 4294901760, %v16026_v12  ;;  %v16058_v55 = vsub.f32 %v16007_v48, %v415_v13 }
  0x20   :  { %13416 = vmatpush3.bf16.msra.mxu1 %v13415_v9  ;;  %v624_v1 = vsub.f32 %v16015_v58, %v25158_v40  ;;  %v25164_v31 = vand.u32 4294901760, %v16044_v60  ;;  %13384 = vmatpush3.bf16.msra.mxu0 %v16048_v2  ;;  %v364_v17 = vand.u32 4294901760, %v16032_v52  ;;  %v367_v10 = vand.u32 4294901760, %v16037_v8 }
  0x21   :  { %v618_v42 = vand.u32 4294901760, %v617_v49  ;;  %v505_v41 = vsub.f32 %v16023_v47, %v25161_v45  ;;  %v512_v9 = vsub.f32 %v16026_v12, %v25162_v57  ;;  %v25170_v35 = vand.u32 4294901760, %v16058_v55  ;;  %v16086_v45 = vld [vmem:[%s25149_s5 + $0xe0] sm:$0xff]  ;;  %v16091_v57 = vld [vmem:[%s25149_s5 + $0xe8] sm:$0xff] }
  0x22   :  { %v625_v40 = vand.u32 4294901760, %v624_v1  ;;  %v631_v34 = vsub.f32 %v16044_v60, %v25164_v31  ;;  %v16078_v16 = vsub.f32 %v16032_v52, %v364_v17  ;;  %v16081_v49 = vsub.f32 %v16037_v8, %v367_v10  ;;  %v16101_v8 = vld [vmem:[%s25149_s5 + $0x60] sm:$0xff] }
  0x23   :  { %v506_v1 = vand.u32 4294901760, %v505_v41  ;;  %v513_v11 = vand.u32 4294901760, %v512_v9  ;;  %v638_v52 = vsub.f32 %v16058_v55, %v25170_v35  ;;  %v16096_v31 = vpack.c.bf16 %v409_v43, %v406_v39  ;;  %v89_v41 = vld [vmem:[%s25149_s5 + $0x68] sm:$0xff] }
  0x24   :  { %v13417_v37 = vpack.c.bf16 %v625_v40, %v618_v42  ;;  %v632_v33 = vand.u32 4294901760, %v631_v34  ;;  %v25171_v32 = vand.u32 4294901760, %v16078_v16  ;;  %v25174_v28 = vand.u32 4294901760, %v16081_v49 }
  0x25   :  { %25966 = vst [vmem:[#allocation5_spill] sm:$0xff] %v16096_v31  ;;  %v13419_v9 = vpack.c.bf16 %v513_v11, %v506_v1  ;;  %v639_v27 = vand.u32 4294901760, %v638_v52  ;;  %13386 = vmatprep.subr.bf16.mxu0 %v16096_v31  ;;  %v418_v39 = vand.u32 4294901760, %v16086_v45  ;;  %v421_v43 = vand.u32 4294901760, %v16091_v57 }
  0x26   :  { %13418 = vmatprep.subr.bf16.mxu1 %v13417_v37  ;;  %v519_v34 = vsub.f32 %v16078_v16, %v25171_v32  ;;  %v526_v42 = vsub.f32 %v16081_v49, %v25174_v28  ;;  %v16117_v40 = vpack.c.bf16 %v361_v54, %v358_v51  ;;  %v370_v11 = vand.u32 4294901760, %v16101_v8  ;;  %v106_v32 = vld [vmem:[%s25149_s5 + $0xf0] sm:$0xff] }
  0x27   :  { %13420 = vmatpush3.bf16.msra.mxu1 %v13419_v9  ;;  %v13421_v1 = vpack.c.bf16 %v639_v27, %v632_v33  ;;  %v16121_v52 = vsub.f32 %v16086_v45, %v418_v39  ;;  %v16124_v35 = vsub.f32 %v16091_v57, %v421_v43  ;;  %v373_v37 = vand.u32 4294901760, %v89_v41  ;;  %v107_v27 = vld [vmem:[%s25149_s5 + $0xf8] sm:$0xff]  ;;  %v90_v57 = vld [vmem:[%s25149_s5 + $0x70] sm:$0xff] }
  0x28   :  { %25967 = vst [vmem:[#allocation6_spill] sm:$0xff] %v16117_v40  ;;  %v520_v26 = vand.u32 4294901760, %v519_v34  ;;  %v527_v23 = vand.u32 4294901760, %v526_v42  ;;  %13388 = vmatpush3.bf16.msra.mxu0 %v16117_v40  ;;  %v16131_v51 = vsub.f32 %v16101_v8, %v370_v11  ;;  %v16148_v8 = vpack.c.bf16 %v415_v13, %v412_v63 }
  0x29   :  { %13422 = vmatprep.subr.bf16.mxu1 %v13421_v1  ;;  %v25176_v33 = vand.u32 4294901760, %v16121_v52  ;;  %v25175_v45 = vand.u32 4294901760, %v16124_v35  ;;  %v16138_v54 = vsub.f32 %v89_v41, %v373_v37  ;;  %v424_v42 = vand.u32 4294901760, %v106_v32 }
  0x2a   :  { %v13423_v9 = vpack.c.bf16 %v527_v23, %v520_v26  ;;  %v25182_v34 = vand.u32 4294901760, %v16131_v51  ;;  %25968 = vst [vmem:[#allocation7_spill] sm:$0xff] %v16148_v8  ;;  %v427_v23 = vand.u32 4294901760, %v107_v27  ;;  %v91_v26 = vld [vmem:[%s25149_s5 + $0x78] sm:$0xff]  ;;  %13390 = vmatprep.subr.bf16.mxu0 %v16148_v8  ;;  %v16166_v63 = vpack.c.bf16 %v367_v10, %v364_v17 }
  0x2b   :  { %v645_v1 = vsub.f32 %v16121_v52, %v25176_v33  ;;  %v652_v41 = vsub.f32 %v16124_v35, %v25175_v45  ;;  %v25185_v28 = vand.u32 4294901760, %v16138_v54  ;;  %v16164_v48 = vsub.f32 %v106_v32, %v424_v42 }
  0x2c   :  { %13424 = vmatpush3.bf16.msra.mxu1 %v13423_v9  ;;  %v533_v56 = vsub.f32 %v16131_v51, %v25182_v34  ;;  %25969 = vst [vmem:[#allocation8_spill] sm:$0xff] %v16166_v63  ;;  %v376_v13 = vand.u32 4294901760, %v90_v57  ;;  %v16171_v40 = vsub.f32 %v107_v27, %v427_v23  ;;  %13392 = vmatpush3.bf16.msra.mxu0 %v16166_v63  ;;  %v379_v34 = vand.u32 4294901760, %v91_v26 }
  0x2d   :  { %v646_v45 = vand.u32 4294901760, %v645_v1  ;;  %v653_v33 = vand.u32 4294901760, %v652_v41  ;;  %v540_v22 = vsub.f32 %v16138_v54, %v25185_v28  ;;  %v25188_v31 = vand.u32 4294901760, %v16164_v48 }
  0x2e   :  { %v534_v9 = vand.u32 4294901760, %v533_v56  ;;  %v16175_v8 = vsub.f32 %v90_v57, %v376_v13  ;;  %v665_v17 = vand.u32 4294901760, %v16171_v40  ;;  %v16178_v1 = vpack.c.bf16 %v421_v43, %v418_v39 }
  0x2f   :  { %v13425_v32 = vpack.c.bf16 %v653_v33, %v646_v45  ;;  %v541_v10 = vand.u32 4294901760, %v540_v22  ;;  %v659_v41 = vsub.f32 %v16164_v48, %v25188_v31  ;;  %v16184_v56 = vsub.f32 %v91_v26, %v379_v34 }
  0x30   :  { %v546_v27 = vand.u32 4294901760, %v16175_v8  ;;  %v16186_v28 = vpack.c.bf16 %v373_v37, %v370_v11  ;;  %v666_v57 = vsub.f32 %v16171_v40, %v665_v17  ;;  %13394 = vmatprep.subr.bf16.mxu0 %v16178_v1  ;;  %v16190_v22 = vpack.c.bf16 %v427_v23, %v424_v42 }
  0x31   :  { %13426 = vmatprep.subr.bf16.mxu1 %v13425_v32  ;;  %v13427_v63 = vpack.c.bf16 %v541_v10, %v534_v9  ;;  %v660_v39 = vand.u32 4294901760, %v659_v41  ;;  %v553_v33 = vand.u32 4294901760, %v16184_v56  ;;  %v16195_v45 = vpack.c.bf16 %v379_v34, %v376_v13 }
  0x32   :  { %v547_v43 = vsub.f32 %v16175_v8, %v546_v27  ;;  %13396 = vmatpush3.bf16.msra.mxu0 %v16186_v28  ;;  %v667_v11 = vand.u32 4294901760, %v666_v57  ;;  %v13433_v37 = vpack.c.bf16 %v15790_v15, %v15788_v14  ;;  %v25973_v41 = vand.u32 4294901760, %v15797_v19 }
  0x33   :  { %13428 = vmatpush3.bf16.msra.mxu1 %v13427_v63  ;;  %13398 = vmatprep.subr.bf16.mxu0 %v16190_v22  ;;  %v554_v9 = vsub.f32 %v16184_v56, %v553_v33  ;;  %v25976_v34 = vand.u32 4294901760, %v15813_v25  ;;  %v25995_v31 = vand.u32 4294901760, %v16058_v55  ;;  %vm38_vm0 = vcmask 261120  }
  0x34   :  { %v548_v26 = vand.u32 4294901760, %v547_v43  ;;  %v13429_v13 = vpack.c.bf16 %v667_v11, %v660_v39  ;;  %v25970_v39 = vand.u32 4294901760, %v15788_v14  ;;  %v25972_v11 = vand.u32 4294901760, %v15795_v18 }
  0x35   :  { %v555_v57 = vand.u32 4294901760, %v554_v9  ;;  %v25977_v14 = vand.u32 4294901760, %v15821_v29  ;;  %vm40_vm1 = vcmask 523264   ;;  %vm42_vm2 = vcmask 785408  }
  0x36   :  { %13400 = vmatpush3.bf16.msra.mxu0 %v16195_v45  ;;  %13430 = vmatprep.subr.bf16.mxu1 %v13429_v13  ;;  %v16242_v32 = vpack.c.bf16 %v25973_v41, %v25972_v11  ;;  %v25980_v41 = vand.u32 4294901760, %v15904_v6  ;;  %v25981_v11 = vand.u32 4294901760, %v15907_v7  ;;  %vm10833_vm5 = vcmask 130048  }
  0x37   :  { %13434 = vmatprep.subr.bf16.mxu0 %v13433_v37  ;;  %v13431_v10 = vpack.c.bf16 %v555_v57, %v548_v26  ;;  %v25971_v37 = vand.u32 4294901760, %v15790_v15  ;;  %v25974_v26 = vand.u32 4294901760, %v15800_v20  ;;  %v25975_v57 = vand.u32 4294901760, %v15808_v24 }
  0x38   :  { %v16254_v9 = vpack.c.bf16 %v25977_v14, %v25976_v34  ;;  %v25978_v15 = vand.u32 4294901760, %v15895_v3  ;;  %v16266_v63 = vpack.c.bf16 %v25981_v11, %v25980_v41  ;;  %v25985_v34 = vand.u32 4294901760, %v15944_v21 }
  0x39   :  { %v16236_v13 = vpack.c.bf16 %v25971_v37, %v25970_v39  ;;  %v16248_v43 = vpack.c.bf16 %v25975_v57, %v25974_v26  ;;  %v25979_v39 = vand.u32 4294901760, %v15898_v4  ;;  %13432 = vmatpush3.bf16.msra.mxu1 %v13431_v10  ;;  %v25982_v26 = vand.u32 4294901760, %v15929_v36 }
  0x3a   :  { %v25983_v57 = vand.u32 4294901760, %v15932_v38  ;;  %v25986_v14 = vand.u32 4294901760, %v15957_v46  ;;  %v25988_v10 = vand.u32 4294901760, %v16010_v50  ;;  %13466 = vmatprep.subr.bf16.mxu1 %v15870_v53  ;;  %v25991_v41 = vand.u32 4294901760, %v16023_v47 }
  0x3b   :  { %v16260_v37 = vpack.c.bf16 %v25979_v39, %v25978_v15  ;;  %v25989_v15 = vand.u32 4294901760, %v16015_v58  ;;  %v25992_v11 = vand.u32 4294901760, %v16026_v12 }
  0x3c   :  { %v16272_v23 = vpack.c.bf16 %v25983_v57, %v25982_v26  ;;  %v16278_v42 = vpack.c.bf16 %v25986_v14, %v25985_v34  ;;  %v25994_v57 = vand.u32 4294901760, %v16044_v60  ;;  %v25997_v14 = vand.u32 4294901760, %v16078_v16 }
  0x3d   :  { %v16284_v39 = vpack.c.bf16 %v25989_v15, %v25988_v10  ;;  %v16291_v26 = vpack.c.bf16 %v25992_v11, %v25991_v41  ;;  %v25999_v15 = vand.u32 4294901760, %v16121_v52  ;;  %v26002_v41 = vand.u32 4294901760, %v16131_v51 }
  0x3e   :  { %25984 = vst [vmem:[#allocation9_spill] sm:$0xff] %v16272_v23  ;;  %25987 = vst [vmem:[#allocation10_spill] sm:$0xff] %v16278_v42  ;;  %v16297_v34 = vpack.c.bf16 %v25995_v31, %v25994_v57  ;;  %v25998_v42 = vand.u32 4294901760, %v16081_v49  ;;  %v26003_v11 = vand.u32 4294901760, %v16138_v54  ;;  %v26005_v31 = vand.u32 4294901760, %v16164_v48 }
  0x3f   :  { %25990 = vst [vmem:[#allocation11_spill] sm:$0xff] %v16284_v39  ;;  %25993 = vst [vmem:[#allocation12_spill] sm:$0xff] %v16291_v26  ;;  %v26000_v39 = vand.u32 4294901760, %v16124_v35 }
  0x40   :  { %25996 = vst [vmem:[#allocation13_spill] sm:$0xff] %v16297_v34  ;;  %v16303_v10 = vpack.c.bf16 %v25998_v42, %v25997_v14  ;;  %v16315_v26 = vpack.c.bf16 %v26003_v11, %v26002_v41  ;;  %v16319_v57 = vpack.c.bf16 %v665_v17, %v26005_v31  ;;  %v16321_v34 = vpack.c.bf16 %v553_v33, %v546_v27  ;;  %v44_v41 = vld [vmem:[%s25145_s1] sm:$0xff] }
  0x41   :  { %v16309_v23 = vpack.c.bf16 %v26000_v39, %v25999_v15 }
  0x42   :  { %26004 = vst [vmem:[#allocation15_spill] sm:$0xff] %v16315_v26  ;;  %26006 = vst [vmem:[#allocation16_spill] sm:$0xff] %v16319_v57 }
  0x43   :  { %26001 = vst [vmem:[#allocation14_spill] sm:$0xff] %v16309_v23  ;;  %26007 = vst [vmem:[#allocation17_spill] sm:$0xff] %v16321_v34  ;;  %v45_v23 = vld [vmem:[%s25145_s1 + $0x8] sm:$0xff] }
  0x74   :  { %v30_v42 = vpop.permute.xlu0 %29  ;;  %v36_v14 = vpop.permute.xlu1 %35 }
  0x75   :  { %v39_v39 = vsel %vm38_vm0, %v15748_v0, %v30_v42 }
  0x78   :  { %v33_v15 = vpop.permute.xlu0 %32 }
  0x79   :  { %v41_v17 = vsel %vm40_vm1, %v39_v39, %v33_v15 }
  0x7a   :  { %v16331_v27 = vsel %vm42_vm2, %v41_v17, %v36_v14 }
  0x7b   :  { %26008 = vst [vmem:[#allocation18_spill] sm:$0xff] %v16331_v27  ;;  %v61_v33 = vmul.f32 %v45_v23, %v16331_v27  ;;  %v60_v11 = vmul.f32 %v44_v41, %v16331_v27 }
  0x7d   :  { %v16335_v31 = vand.u32 4294901760, %v61_v33  ;;  %v16337_v0 = vand.u32 4294901760, %v60_v11 }
  0x7f   :  { %670 = vmatprep.mubr.f32.mxu1 %v16335_v31  ;;  %v430_v42 = vsub.f32 %v61_v33, %v16335_v31  ;;  %v16342_v34 = vsub.f32 %v60_v11, %v16337_v0  ;;  %v26009_v33 = vpack.c.bf16 %v15797_v19, %v15795_v18  ;;  %v26010_v11 = vpack.c.bf16 %v15808_v24, %v15800_v20  ;;  %v16374_v18 = vld [vmem:[%s25149_s5 + $0x1d0] sm:$0xff]  ;;  %v16379_v19 = vld [vmem:[%s25149_s5 + $0x1d8] sm:$0xff] }
  0x80   :  { %672 = vmatmul.mubr.f32.vlgmr.msra.gmra.mrb[0].mxu1 %v16337_v0  ;;  %26013 = vst [vmem:[#allocation21_spill] sm:$0xff] %v16374_v18  ;;  %26014 = vst [vmem:[#allocation22_spill] sm:$0xff] %v16379_v19  ;;  %v26015_v20 = vpack.c.bf16 %v15821_v29, %v15813_v25  ;;  %v16399_v25 = vld [vmem:[%s25149_s5 + $0x158] sm:$0xff]  ;;  %v25192_v29 = vand.u32 4294901760, %v16374_v18 }
  0x81   :  { %13468 = vmatpush3.bf16.msra.mxu1 %v15885_v61  ;;  %v431_v14 = vand.u32 4294901760, %v430_v42  ;;  %v25189_v23 = vand.u32 4294901760, %v16342_v34  ;;  %26019 = vst [vmem:[#allocation23_spill] sm:$0xff] %v16399_v25  ;;  %v26032_v57 = vand.u32 4294901760, %v16399_v25 }
  0x82   :  { %13470 = vmatprep.subr.bf16.mxu1 %v15900_v5 }
  0x83   :  { %914 = vmatprep.mubr.f32.mxu1 %v431_v14  ;;  %v432_v39 = vsub.f32 %v430_v42, %v431_v14  ;;  %v438_v15 = vsub.f32 %v16342_v34, %v25189_v23  ;;  %v16363_v14 = vld [vmem:[%s25149_s5 + $0x140] sm:$0xff] }
  0x84   :  { %26011 = vst [vmem:[#allocation19_spill] sm:$0xff] %v16363_v14  ;;  %v25191_v24 = vand.u32 4294901760, %v16363_v14 }
  0x85   :  { %13472 = vmatpush3.bf16.msra.mxu1 %v15923_v30  ;;  %v433_v41 = vand.u32 4294901760, %v432_v39  ;;  %v439_v17 = vand.u32 4294901760, %v438_v15  ;;  %v16368_v39 = vld [vmem:[%s25149_s5 + $0x148] sm:$0xff]  ;;  %v26016_v15 = vpack.c.bf16 %v15898_v4, %v15895_v3  ;;  %v26020_v3 = vpack.c.bf16 %v15907_v7, %v15904_v6  ;;  %v26021_v4 = vld [vmem:[#allocation6_spill] sm:$0xff]  ;;  %v16422_v6 = vld [vmem:[%s25149_s5 + $0x1e0] sm:$0xff] }
  0x86   :  { %13474 = vmatprep.subr.bf16.mxu1 %v15979_v59  ;;  %26012 = vst [vmem:[#allocation20_spill] sm:$0xff] %v16368_v39  ;;  %26023 = vst [vmem:[#allocation24_spill] sm:$0xff] %v16422_v6  ;;  %v16427_v7 = vld [vmem:[%s25149_s5 + $0x1e8] sm:$0xff] }
  0x87   :  { %434 = vmatprep.mubr.f32.mxu0 %v433_v41  ;;  %v26017_v41 = vld [vmem:[#allocation5_spill] sm:$0xff]  ;;  %26024 = vst [vmem:[#allocation25_spill] sm:$0xff] %v16427_v7 }
  0x88   :  { %440 = vmatmul.mubr.f32.vlgmr.msra.gmra.mrb[0].mxu0 %v439_v17  ;;  %v16394_v17 = vld [vmem:[%s25149_s5 + $0x150] sm:$0xff] }
  0x89   :  { %13436 = vmatpush3.bf16.msra.mxu0 %v26009_v33  ;;  %13476 = vmatpush3.bf16.msra.mxu1 %v16002_v44  ;;  %26018 = vst [vmem:[#allocation5_spill] sm:$0xff] %v16394_v17  ;;  %v25193_v33 = vand.u32 4294901760, %v16379_v19 }
  0x8a   :  { %807 = vmatprep.mubr.f32.mxu0 %v430_v42  ;;  %13438 = vmatprep.subr.bf16.mxu0 %v26010_v11  ;;  %v25190_v42 = vand.u32 4294901760, %v16368_v39  ;;  %v16410_v11 = vsub.f32 %v16363_v14, %v25191_v24  ;;  %v16436_v24 = vsub.f32 %v16374_v18, %v25192_v29  ;;  %v26029_v29 = vpack.c.bf16 %v15957_v46, %v15944_v21  ;;  %v16474_v21 = vld [vmem:[%s25149_s5 + $0x1f0] sm:$0xff]  ;;  %v16479_v46 = vld [vmem:[%s25149_s5 + $0x1f8] sm:$0xff] }
  0x8b   :  { %13478 = vmatprep.subr.bf16.mxu1 %v16018_v62  ;;  %v16441_v23 = vsub.f32 %v16379_v19, %v25193_v33  ;;  %v26030_v33 = vld [vmem:[#allocation8_spill] sm:$0xff]  ;;  %26034 = vst [vmem:[#allocation27_spill] sm:$0xff] %v16479_v46  ;;  %v16495_v18 = vld [vmem:[%s25149_s5 + $0x178] sm:$0xff] }
  0x8c   :  { %26022 = vst [vmem:[#allocation6_spill] sm:$0xff] %v16410_v11  ;;  %26033 = vst [vmem:[#allocation8_spill] sm:$0xff] %v16474_v21 }
  0x8d   :  { %13440 = vmatpush3.bf16.msra.mxu0 %v26015_v20  ;;  %13480 = vmatpush3.bf16.msra.mxu1 %v16048_v2  ;;  %v16415_v20 = vsub.f32 %v16368_v39, %v25190_v42  ;;  %v26026_v42 = vld [vmem:[#allocation7_spill] sm:$0xff]  ;;  %v26031_v39 = vand.u32 4294901760, %v16394_v17  ;;  %26037 = vst [vmem:[#allocation29_spill] sm:$0xff] %v16495_v18 }
  0x8e   :  { %13442 = vmatprep.subr.bf16.mxu0 %v26016_v15  ;;  %13482 = vmatprep.subr.bf16.mxu1 %v26017_v41  ;;  %v16446_v15 = vld [vmem:[%s25149_s5 + $0x160] sm:$0xff] }
  0x8f   :  { %26027 = vst [vmem:[#allocation7_spill] sm:$0xff] %v16446_v15  ;;  %v16464_v14 = vsub.f32 %v16394_v17, %v26031_v39  ;;  %v26042_v17 = vand.u32 4294901760, %v16427_v7 }
  0x91   :  { %13444 = vmatpush3.bf16.msra.mxu0 %v26020_v3  ;;  %13484 = vmatpush3.bf16.msra.mxu1 %v26021_v4  ;;  %v26025_v3 = vpack.c.bf16 %v15932_v38, %v15929_v36  ;;  %v16451_v36 = vld [vmem:[%s25149_s5 + $0x168] sm:$0xff]  ;;  %v16469_v38 = vsub.f32 %v16399_v25, %v26032_v57  ;;  %v26041_v57 = vand.u32 4294901760, %v16422_v6  ;;  %v16513_v26 = vsub.f32 %v16427_v7, %v26042_v17  ;;  %v26091_v7 = vld [vmem:[#allocation12_spill] sm:$0xff] }
  0x92   :  { %13486 = vmatprep.subr.bf16.mxu1 %v26026_v42  ;;  %26028 = vst [vmem:[#allocation26_spill] sm:$0xff] %v16451_v36  ;;  %v26044_v17 = vpack.c.bf16 %v16058_v55, %v16044_v60 }
  0x93   :  { %13446 = vmatprep.subr.bf16.mxu0 %v26025_v3  ;;  %v16490_v3 = vld [vmem:[%s25149_s5 + $0x170] sm:$0xff]  ;;  %v16508_v25 = vsub.f32 %v16422_v6, %v26041_v57  ;;  %v25203_v57 = vand.u32 4294901760, %v16469_v38 }
  0x94   :  { %26036 = vst [vmem:[#allocation28_spill] sm:$0xff] %v16490_v3 }
  0x95   :  { %13448 = vmatpush3.bf16.msra.mxu0 %v26029_v29  ;;  %13488 = vmatpush3.bf16.msra.mxu1 %v26030_v33  ;;  %v26035_v29 = vpack.c.bf16 %v16015_v58, %v16010_v50  ;;  %v26038_v50 = vand.u32 4294901760, %v16410_v11  ;;  %v26043_v11 = vpack.c.bf16 %v16026_v12, %v16023_v47  ;;  %v26045_v58 = vand.u32 4294901760, %v16446_v15 }
  0x96   :  { %13490 = vmatprep.subr.bf16.mxu1 %v16178_v1  ;;  %v26046_v12 = vand.u32 4294901760, %v16451_v36  ;;  %v25205_v55 = vand.u32 4294901760, %v16508_v25 }
  0x97   :  { %13450 = vmatprep.subr.bf16.mxu0 %v26035_v29  ;;  %v26039_v29 = vand.u32 4294901760, %v16415_v20  ;;  %v16532_v47 = vsub.f32 %v16446_v15, %v26045_v58  ;;  %v26055_v58 = vand.u32 4294901760, %v16495_v18 }
  0x99   :  { %v16503_v39 = vpack.c.bf16 %v26039_v29, %v26038_v50  ;;  %13452 = vmatpush3.bf16.msra.mxu0 %v26043_v11  ;;  %13492 = vmatpush3.bf16.msra.mxu1 %v16186_v28  ;;  %v25204_v50 = vand.u32 4294901760, %v16464_v14  ;;  %v16537_v11 = vsub.f32 %v16451_v36, %v26046_v12  ;;  %v26047_v29 = vand.u32 4294901760, %v16436_v24 }
  0x9a   :  { %13454 = vmatprep.subr.bf16.mxu0 %v26044_v17  ;;  %13494 = vmatprep.subr.bf16.mxu1 %v16190_v22  ;;  %v26051_v17 = vand.u32 4294901760, %v16474_v21  ;;  %v26052_v36 = vand.u32 4294901760, %v16479_v46 }
  0x9b   :  { %26040 = vst [vmem:[#allocation30_spill] sm:$0xff] %v16503_v39  ;;  %v26048_v39 = vand.u32 4294901760, %v16441_v23  ;;  %v16549_v60 = vpack.c.bf16 %v25203_v57, %v25204_v50  ;;  %v26054_v57 = vand.u32 4294901760, %v16490_v3 }
  0x9c   :  { %v16556_v12 = vsub.f32 %v16474_v21, %v26051_v17  ;;  %v16575_v17 = vsub.f32 %v16495_v18, %v26055_v58  ;;  %v26057_v58 = vand.u32 4294901760, %v16513_v26 }
  0x9d   :  { %v16543_v19 = vpack.c.bf16 %v26048_v39, %v26047_v29  ;;  %26050 = vst [vmem:[#allocation32_spill] sm:$0xff] %v16549_v60  ;;  %v16561_v39 = vsub.f32 %v16479_v46, %v26052_v36  ;;  %v26053_v29 = vpack.c.bf16 %v16081_v49, %v16078_v16  ;;  %13496 = vmatpush3.bf16.msra.mxu1 %v16195_v45  ;;  %v16584_v16 = vld [vmem:[%s25149_s5 + $0x180] sm:$0xff]  ;;  %v25207_v49 = vand.u32 4294901760, %v16532_v47 }
  0x9e   :  { %v16570_v50 = vsub.f32 %v16490_v3, %v26054_v57  ;;  %v26056_v36 = vpack.c.bf16 %v16124_v35, %v16121_v52  ;;  %13530 = vmatprep.subr.bf16.mxu1 %v15870_v53  ;;  %v25206_v57 = vand.u32 4294901760, %v16537_v11  ;;  %v26059_v35 = vand.u32 4294901760, %v16342_v34 }
  0x9f   :  { %26049 = vst [vmem:[#allocation31_spill] sm:$0xff] %v16543_v19  ;;  %13456 = vmatpush3.bf16.msra.mxu0 %v26053_v29  ;;  %v16592_v29 = vpack.c.bf16 %v26057_v58, %v25205_v55  ;;  %v25211_v53 = vand.u32 4294901760, %v16556_v12  ;;  %v25210_v52 = vand.u32 4294901760, %v16561_v39  ;;  %v26061_v60 = vpack.c.bf16 %v16138_v54, %v16131_v51  ;;  %v16611_v58 = vld [vmem:[%s25149_s5 + $0x188] sm:$0xff]  ;;  %v16617_v55 = vld [vmem:[%s25149_s5 + $0x100] sm:$0xff] }
  0xa0   :  { %13458 = vmatprep.subr.bf16.mxu0 %v26056_v36  ;;  %918 = vmatmul.mubr.f32.vlgmr.msra.gmra.mrb[2].mxu1 %v26059_v35  ;;  %v16602_v36 = vpack.c.bf16 %v25206_v57, %v25207_v49  ;;  %v16622_v57 = vld [vmem:[%s25149_s5 + $0x108] sm:$0xff]  ;;  %v25209_v51 = vand.u32 4294901760, %v16570_v50  ;;  %v26062_v54 = vpack.c.bf16 %v16171_v40, %v16164_v48  ;;  %v25215_v35 = vand.u32 4294901760, %v16611_v58  ;;  %v16649_v48 = vld [vmem:[%s25149_s5 + $0x190] sm:$0xff] }
  0xa1   :  { %26058 = vst [vmem:[#allocation33_spill] sm:$0xff] %v16592_v29  ;;  %13532 = vmatpush3.bf16.msra.mxu1 %v15885_v61  ;;  %v25208_v61 = vand.u32 4294901760, %v16575_v17  ;;  %1188 = vmatprep.mubr.f32.mxu1 %v16335_v31  ;;  %v25213_v40 = vand.u32 4294901760, %v16622_v57 }
  0xa2   :  { %26060 = vst [vmem:[#allocation34_spill] sm:$0xff] %v16602_v36  ;;  %13534 = vmatprep.subr.bf16.mxu1 %v15900_v5  ;;  %v25214_v36 = vand.u32 4294901760, %v16617_v55  ;;  %v26065_v5 = vpack.c.bf16 %v16184_v56, %v16175_v8 }
  0xa3   :  { %13460 = vmatpush3.bf16.msra.mxu0 %v26061_v60  ;;  %v16634_v60 = vpack.c.bf16 %v25210_v52, %v25211_v53  ;;  %v16641_v49 = vpack.c.bf16 %v25208_v61, %v25209_v51  ;;  %v16663_v51 = vld [vmem:[%s25149_s5 + $0x198] sm:$0xff]  ;;  %v25212_v52 = vand.u32 4294901760, %v16649_v48  ;;  %v16682_v56 = vsub.f32 %v16622_v57, %v25213_v40 }
  0xa4   :  { %13462 = vmatprep.subr.bf16.mxu0 %v26062_v54  ;;  %v26066_v54 = vand.u32 4294901760, %v16584_v16  ;;  %v16677_v8 = vsub.f32 %v16617_v55, %v25214_v36 }
  0xa5   :  { %26063 = vst [vmem:[#allocation35_spill] sm:$0xff] %v16634_v60  ;;  %26064 = vst [vmem:[#allocation36_spill] sm:$0xff] %v16641_v49  ;;  %13536 = vmatpush3.bf16.msra.mxu1 %v15923_v30  ;;  %v16672_v30 = vsub.f32 %v16611_v58, %v25215_v35 }
  0xa6   :  { %v16658_v61 = vsub.f32 %v16584_v16, %v26066_v54  ;;  %13538 = vmatprep.subr.bf16.mxu1 %v15979_v59  ;;  %26069 = vst [vmem:[#allocation39_spill] sm:$0xff] %v16677_v8  ;;  %26070 = vst [vmem:[#allocation40_spill] sm:$0xff] %v16682_v56  ;;  %v25216_v59 = vand.u32 4294901760, %v16663_v51  ;;  %v16704_v54 = vld [vmem:[%s25149_s5 + $0x118] sm:$0xff] }
  0xa7   :  { %13464 = vmatpush3.bf16.msra.mxu0 %v26065_v5  ;;  %26068 = vst [vmem:[#allocation38_spill] sm:$0xff] %v16672_v30  ;;  %v16699_v5 = vsub.f32 %v16649_v48, %v25212_v52  ;;  %v26075_v29 = vand.u32 4294901760, %v16704_v54 }
  0xa8   :  { %26067 = vst [vmem:[#allocation37_spill] sm:$0xff] %v16658_v61  ;;  %13498 = vmatprep.subr.bf16.mxu0 %v16236_v13  ;;  %v16688_v13 = vld [vmem:[%s25149_s5 + $0x110] sm:$0xff]  ;;  %v16723_v52 = vsub.f32 %v16663_v51, %v25216_v59  ;;  %v16737_v59 = vld [vmem:[%s25149_s5 + $0x120] sm:$0xff] }
  0xa9   :  { %13540 = vmatpush3.bf16.msra.mxu1 %v16002_v44  ;;  %26071 = vst [vmem:[#allocation41_spill] sm:$0xff] %v16699_v5  ;;  %v16710_v44 = vld [vmem:[%s25149_s5 + $0x1a0] sm:$0xff]  ;;  %v16786_v36 = vsub.f32 %v16704_v54, %v26075_v29  ;;  %v16807_v29 = vld [vmem:[%s25149_s5 + $0x138] sm:$0xff] }
  0xaa   :  { %810 = vmatmul.mubr.f32.vlgmr.msra.gmra.mrb[2].mxu0 %v16342_v34  ;;  %v25217_v34 = vand.u32 4294901760, %v16658_v61  ;;  %13542 = vmatprep.subr.bf16.mxu1 %v16018_v62  ;;  %v16715_v62 = vld [vmem:[%s25149_s5 + $0x1a8] sm:$0xff]  ;;  %26072 = vst [vmem:[#allocation42_spill] sm:$0xff] %v16723_v52  ;;  %v26077_v19 = vand.u32 4294901760, %v16710_v44  ;;  %v26082_v18 = vand.u32 4294901760, %v16723_v52 }
  0xab   :  { %13500 = vmatpush3.bf16.msra.mxu0 %v16242_v32  ;;  %1084 = vmatprep.mubr.f32.mxu0 %v16335_v31  ;;  %v25218_v32 = vand.u32 4294901760, %v16688_v13  ;;  %v25220_v31 = vand.u32 4294901760, %v16677_v8 }
  0xac   :  { %13502 = vmatprep.subr.bf16.mxu0 %v16248_v43  ;;  %v25219_v43 = vand.u32 4294901760, %v16672_v30  ;;  %v1423_v40 = vsub.f32 %v16658_v61, %v25217_v34  ;;  %v16754_v34 = vld [vmem:[%s25149_s5 + $0x1b0] sm:$0xff]  ;;  %v1444_v3 = vsub.f32 %v16723_v52, %v26082_v18  ;;  %v26086_v52 = vld [vmem:[#allocation11_spill] sm:$0xff] }
  0xad   :  { %13544 = vmatpush3.bf16.msra.mxu1 %v16048_v2  ;;  %v26073_v2 = vand.u32 4294901760, %v16682_v56  ;;  %v26087_v46 = vand.u32 4294901760, %v16754_v34 }
  0xae   :  { %13546 = vmatprep.subr.bf16.mxu1 %v26017_v41  ;;  %v1430_v53 = vsub.f32 %v16672_v30, %v25219_v43  ;;  %v16762_v41 = vsub.f32 %v16677_v8, %v25220_v31  ;;  %v16776_v43 = vld [vmem:[%s25149_s5 + $0x1b8] sm:$0xff]  ;;  %v1424_v31 = vand.u32 4294901760, %v1423_v40  ;;  %v1445_v60 = vand.u32 4294901760, %v1444_v3  ;;  %v26095_v3 = vld [vmem:[#allocation13_spill] sm:$0xff] }
  0xaf   :  { %13504 = vmatpush3.bf16.msra.mxu0 %v16254_v9  ;;  %v16742_v9 = vld [vmem:[%s25149_s5 + $0x128] sm:$0xff]  ;;  %v16767_v35 = vsub.f32 %v16682_v56, %v26073_v2  ;;  %v16791_v56 = vsub.f32 %v16710_v44, %v26077_v19  ;;  %v16852_v21 = vsub.f32 %v16754_v34, %v26087_v46  ;;  %v26089_v49 = vand.u32 4294901760, %v16776_v43 }
  0xb0   :  { %13506 = vmatprep.subr.bf16.mxu0 %v16260_v37  ;;  %v16749_v37 = vsub.f32 %v16688_v13, %v25218_v32  ;;  %v47_v32 = vld [vmem:[%s25145_s1 + $0x18] sm:$0xff]  ;;  %v26074_v2 = vld [vmem:[#allocation9_spill] sm:$0xff]  ;;  %v1431_v8 = vand.u32 4294901760, %v1430_v53  ;;  %v1312_v30 = vand.u32 4294901760, %v16762_v41  ;;  %v26084_v53 = vand.u32 4294901760, %v16737_v59 }
  0xb1   :  { %13548 = vmatpush3.bf16.msra.mxu1 %v26021_v4  ;;  %26076 = vst [vmem:[#allocation9_spill] sm:$0xff] %v16786_v36  ;;  %26078 = vst [vmem:[#allocation43_spill] sm:$0xff] %v16791_v56  ;;  %v16802_v4 = vld [vmem:[%s25149_s5 + $0x130] sm:$0xff]  ;;  %v63_v19 = vmul.f32 %v47_v32, %v16331_v27  ;;  %v1319_v61 = vand.u32 4294901760, %v16767_v35  ;;  %v16829_v32 = vld [vmem:[%s25149_s5 + $0x1c8] sm:$0xff]  ;;  %v26085_v41 = vand.u32 4294901760, %v16742_v9 }
  0xb2   :  { %13550 = vmatprep.subr.bf16.mxu1 %v26026_v42  ;;  %v16824_v42 = vld [vmem:[%s25149_s5 + $0x1c0] sm:$0xff]  ;;  %v16835_v35 = vsub.f32 %v16737_v59, %v26084_v53  ;;  %v26090_v15 = vand.u32 4294901760, %v16749_v37 }
  0xb3   :  { %13508 = vmatpush3.bf16.msra.mxu0 %v16266_v63  ;;  %v26079_v63 = vand.u32 4294901760, %v16715_v62  ;;  %v16840_v18 = vsub.f32 %v16742_v9, %v26085_v41  ;;  %v16855_v41 = vand.u32 4294901760, %v63_v19 }
  0xb4   :  { %13510 = vmatprep.subr.bf16.mxu0 %v26074_v2  ;;  %v26081_v2 = vand.u32 4294901760, %v16699_v5  ;;  %v1325_v46 = vsub.f32 %v16749_v37, %v26090_v15  ;;  %v26096_v15 = vand.u32 4294901760, %v16786_v36 }
  0xb5   :  { %v16796_v40 = vsub.f32 %v16715_v62, %v26079_v63  ;;  %13552 = vmatpush3.bf16.msra.mxu1 %v26030_v33  ;;  %v16860_v33 = vsub.f32 %v16776_v43, %v26089_v49  ;;  %v26092_v49 = vand.u32 4294901760, %v16802_v4 }
  0xb6   :  { %v1437_v63 = vsub.f32 %v16699_v5, %v26081_v2  ;;  %v26083_v2 = vld [vmem:[#allocation10_spill] sm:$0xff]  ;;  %13554 = vmatprep.subr.bf16.mxu1 %v16178_v1  ;;  %v26094_v5 = vand.u32 4294901760, %v16807_v29  ;;  %v1326_v1 = vand.u32 4294901760, %v1325_v46 }
  0xb7   :  { %26080 = vst [vmem:[#allocation44_spill] sm:$0xff] %v16796_v40  ;;  %13512 = vmatpush3.bf16.msra.mxu0 %v26083_v2  ;;  %26088 = vst [vmem:[#allocation10_spill] sm:$0xff] %v16855_v41  ;;  %v13593_v2 = vpack.c.bf16 %v1431_v8, %v1424_v31  ;;  %v16873_v27 = vsub.f32 %v16802_v4, %v26092_v49  ;;  %v26097_v31 = vand.u32 4294901760, %v16791_v56  ;;  %v26098_v49 = vand.u32 4294901760, %v16796_v40 }
  0xb8   :  { %13514 = vmatprep.subr.bf16.mxu0 %v26086_v52  ;;  %v25246_v52 = vand.u32 4294901760, %v16824_v42  ;;  %v1438_v53 = vand.u32 4294901760, %v1437_v63  ;;  %v16878_v8 = vsub.f32 %v16807_v29, %v26094_v5  ;;  %v26101_v5 = vand.u32 4294901760, %v16840_v18 }
  0xb9   :  { %26093 = vst [vmem:[#allocation11_spill] sm:$0xff] %v16873_v27  ;;  %13556 = vmatpush3.bf16.msra.mxu1 %v16186_v28  ;;  %v1451_v63 = vsub.f32 %v16791_v56, %v26097_v31  ;;  %v1458_v6 = vsub.f32 %v16796_v40, %v26098_v49  ;;  %v16894_v28 = vsub.f32 %v63_v19, %v16855_v41 }
  0xba   :  { %13558 = vmatprep.subr.bf16.mxu1 %v16190_v22  ;;  %v13595_v49 = vpack.c.bf16 %v1319_v61, %v1312_v30  ;;  %v13597_v40 = vpack.c.bf16 %v1445_v60, %v1438_v53  ;;  %v26100_v22 = vand.u32 4294901760, %v16835_v35  ;;  %v1346_v56 = vsub.f32 %v16840_v18, %v26101_v5 }
  0xbb   :  { %13516 = vmatpush3.bf16.msra.mxu0 %v26091_v7  ;;  %v1332_v7 = vsub.f32 %v16786_v36, %v26096_v15  ;;  %v26099_v15 = vand.u32 4294901760, %v16829_v32  ;;  %v1452_v60 = vand.u32 4294901760, %v1451_v63  ;;  %v1459_v30 = vand.u32 4294901760, %v1458_v6 }
  0xbc   :  { %13518 = vmatprep.subr.bf16.mxu0 %v26095_v3  ;;  %v16900_v3 = vsub.f32 %v16824_v42, %v25246_v52  ;;  %v1339_v19 = vsub.f32 %v16835_v35, %v26100_v22  ;;  %v25249_v52 = vand.u32 4294901760, %v16873_v27  ;;  %v26104_v5 = vand.u32 4294901760, %v16860_v33 }
  0xbd   :  { %v16905_v31 = vsub.f32 %v16829_v32, %v26099_v15  ;;  %13560 = vmatpush3.bf16.msra.mxu1 %v16195_v45  ;;  %v26102_v15 = vld [vmem:[#allocation14_spill] sm:$0xff]  ;;  %v1333_v61 = vand.u32 4294901760, %v1332_v7  ;;  %v26105_v7 = vld [vmem:[#allocation15_spill] sm:$0xff]  ;;  %v1347_v63 = vand.u32 4294901760, %v1346_v56  ;;  %v26107_v45 = vand.u32 4294901760, %v16584_v16 }
  0xbe   :  { %13594 = vmatprep.subr.bf16.mxu1 %v13593_v2  ;;  %v1472_v22 = vsub.f32 %v16860_v33, %v26104_v5  ;;  %v1340_v6 = vand.u32 4294901760, %v1339_v19  ;;  %v1353_v2 = vsub.f32 %v16873_v27, %v25249_v52  ;;  %v26108_v36 = vand.u32 4294901760, %v16611_v58 }
  0xbf   :  { %13520 = vmatpush3.bf16.msra.mxu0 %v16303_v10  ;;  %v26103_v10 = vand.u32 4294901760, %v16852_v21  ;;  %v13599_v5 = vpack.c.bf16 %v1333_v61, %v1326_v1  ;;  %v13601_v19 = vpack.c.bf16 %v1459_v30, %v1452_v60  ;;  %v26110_v52 = vand.u32 4294901760, %v16894_v28 }
  0xc0   :  { %13522 = vmatprep.subr.bf16.mxu0 %v26102_v15  ;;  %1190 = vmatmul.mubr.f32.vlgmr.msra.gmra.mrb[4].mxu1 %v16337_v0  ;;  %v26106_v15 = vand.u32 4294901760, %v16878_v8  ;;  %v16940_v46 = vpack.c.bf16 %v26108_v36, %v26107_v45  ;;  %v26112_v16 = vand.u32 4294901760, %v16905_v31  ;;  %v26113_v36 = vand.u32 4294901760, %v16617_v55 }
  0xc1   :  { %v1465_v53 = vsub.f32 %v16852_v21, %v26103_v10  ;;  %13596 = vmatpush3.bf16.msra.mxu1 %v13595_v49  ;;  %1532 = vmatprep.mubr.f32.mxu1 %v16855_v41  ;;  %v1294_v27 = vsub.f32 %v16894_v28, %v26110_v52  ;;  %v26111_v49 = vand.u32 4294901760, %v16900_v3  ;;  %v26114_v61 = vand.u32 4294901760, %v16622_v57 }
  0xc2   :  { %v1360_v10 = vsub.f32 %v16878_v8, %v26106_v15  ;;  %13598 = vmatprep.subr.bf16.mxu1 %v13597_v40  ;;  %v1473_v15 = vand.u32 4294901760, %v1472_v22  ;;  %v1486_v58 = vsub.f32 %v16905_v31, %v26112_v16  ;;  %v26115_v40 = vand.u32 4294901760, %v16649_v48 }
  0xc3   :  { %13524 = vmatpush3.bf16.msra.mxu0 %v26105_v7  ;;  %v1466_v56 = vand.u32 4294901760, %v1465_v53  ;;  %v26109_v7 = vld [vmem:[#allocation16_spill] sm:$0xff]  ;;  %v1479_v1 = vsub.f32 %v16900_v3, %v26111_v49  ;;  %v16956_v60 = vpack.c.bf16 %v26114_v61, %v26113_v36  ;;  %v26116_v30 = vand.u32 4294901760, %v16663_v51  ;;  %v26117_v53 = vld [vmem:[#allocation17_spill] sm:$0xff]  ;;  %v26118_v49 = vld [vmem:[#allocation6_spill] sm:$0xff] }
  0xc4   :  { %13526 = vmatprep.subr.bf16.mxu0 %v26109_v7  ;;  %v13603_v22 = vpack.c.bf16 %v1347_v63, %v1340_v6  ;;  %v1354_v45 = vand.u32 4294901760, %v1353_v2  ;;  %v1361_v7 = vand.u32 4294901760, %v1360_v10  ;;  %v26119_v41 = vand.u32 4294901760, %v26118_v49 }
  0xc5   :  { %v16962_v52 = vpack.c.bf16 %v26116_v30, %v26115_v40  ;;  %13600 = vmatpush3.bf16.msra.mxu1 %v13599_v5  ;;  %v26120_v55 = vand.u32 4294901760, %v16415_v20  ;;  %v26121_v51 = vand.u32 4294901760, %v16436_v24  ;;  %v26122_v36 = vand.u32 4294901760, %v16441_v23 }
  0xc6   :  { %v1367_v16 = vsub.f32 %v26118_v49, %v26119_v41  ;;  %13602 = vmatprep.subr.bf16.mxu1 %v13601_v19  ;;  %v1295_v63 = vand.u32 4294901760, %v1294_v27  ;;  %v13605_v2 = vpack.c.bf16 %v1473_v15, %v1466_v56  ;;  %v1480_v10 = vand.u32 4294901760, %v1479_v1 }
  0xc7   :  { %13528 = vmatpush3.bf16.msra.mxu0 %v26117_v53  ;;  %v1374_v57 = vsub.f32 %v16415_v20, %v26120_v55  ;;  %v1493_v48 = vsub.f32 %v16436_v24, %v26121_v51  ;;  %v1500_v6 = vsub.f32 %v16441_v23, %v26122_v36  ;;  %v1487_v41 = vand.u32 4294901760, %v1486_v58 }
  0xc8   :  { %13562 = vmatprep.subr.bf16.mxu0 %v16940_v46  ;;  %v26123_v5 = vand.u32 4294901760, %v16688_v13  ;;  %v26124_v61 = vand.u32 4294901760, %v16704_v54  ;;  %v26125_v30 = vand.u32 4294901760, %v16710_v44  ;;  %v26126_v53 = vand.u32 4294901760, %v16715_v62 }
  0xc9   :  { %v13607_v27 = vpack.c.bf16 %v1361_v7, %v1354_v45  ;;  %v26127_v19 = vand.u32 4294901760, %v16464_v14  ;;  %v26128_v13 = vand.u32 4294901760, %v16469_v38  ;;  %13604 = vmatpush3.bf16.msra.mxu1 %v13603_v22  ;;  %v1368_v44 = vand.u32 4294901760, %v1367_v16 }
  0xca   :  { %1086 = vmatmul.mubr.f32.vlgmr.msra.gmra.mrb[4].mxu0 %v16337_v0  ;;  %v16983_v40 = vpack.c.bf16 %v26124_v61, %v26123_v5  ;;  %v16989_v55 = vpack.c.bf16 %v26126_v53, %v26125_v30  ;;  %v1375_v56 = vand.u32 4294901760, %v1374_v57  ;;  %v1494_v62 = vand.u32 4294901760, %v1493_v48  ;;  %13606 = vmatprep.subr.bf16.mxu1 %v13605_v2 }
  0xcb   :  { %13564 = vmatpush3.bf16.msra.mxu0 %v16956_v60  ;;  %1296 = vmatprep.mubr.f32.mxu0 %v1295_v63  ;;  %v1381_v0 = vsub.f32 %v16464_v14, %v26127_v19  ;;  %v1388_v54 = vsub.f32 %v16469_v38, %v26128_v13  ;;  %v1501_v15 = vand.u32 4294901760, %v1500_v6  ;;  %v13609_v1 = vpack.c.bf16 %v1487_v41, %v1480_v10 }
  0xcc   :  { %13566 = vmatprep.subr.bf16.mxu0 %v16962_v52  ;;  %v26129_v58 = vand.u32 4294901760, %v16508_v25  ;;  %v26130_v7 = vand.u32 4294901760, %v16513_v26  ;;  %v26131_v36 = vand.u32 4294901760, %v16737_v59  ;;  %v26132_v22 = vand.u32 4294901760, %v16742_v9 }
  0xcd   :  { %v26133_v16 = vand.u32 4294901760, %v16754_v34  ;;  %v26134_v57 = vand.u32 4294901760, %v16776_v43  ;;  %v1382_v6 = vand.u32 4294901760, %v1381_v0  ;;  %v1389_v2 = vand.u32 4294901760, %v1388_v54  ;;  %13608 = vmatpush3.bf16.msra.mxu1 %v13607_v27  ;;  %v46_v27 = vld [vmem:[%s25145_s1 + $0x10] sm:$0xff] }
  0xce   :  { %v1507_v45 = vsub.f32 %v16508_v25, %v26129_v58  ;;  %v1514_v51 = vsub.f32 %v16513_v26, %v26130_v7  ;;  %v17009_v63 = vpack.c.bf16 %v26132_v22, %v26131_v36  ;;  %v26135_v10 = vand.u32 4294901760, %v16532_v47  ;;  %13610 = vmatprep.subr.bf16.mxu1 %v13609_v1  ;;  %v26145_v36 = vld [vmem:[#allocation18_spill] sm:$0xff] }
  0xcf   :  { %13568 = vmatpush3.bf16.msra.mxu0 %v16983_v40  ;;  %v17016_v48 = vpack.c.bf16 %v26134_v57, %v26133_v16  ;;  %v13611_v59 = vpack.c.bf16 %v1375_v56, %v1368_v44  ;;  %v13613_v9 = vpack.c.bf16 %v1501_v15, %v1494_v62  ;;  %v26136_v5 = vand.u32 4294901760, %v16537_v11  ;;  %v26146_v57 = vld [vmem:[#allocation19_spill] sm:$0xff] }
  0xd0   :  { %v1395_v41 = vsub.f32 %v16532_v47, %v26135_v10  ;;  %13570 = vmatprep.subr.bf16.mxu0 %v16989_v55  ;;  %v1508_v34 = vand.u32 4294901760, %v1507_v45  ;;  %v1515_v43 = vand.u32 4294901760, %v1514_v51  ;;  %v26137_v30 = vand.u32 4294901760, %v16556_v12 }
  0xd1   :  { %v1402_v61 = vsub.f32 %v16537_v11, %v26136_v5  ;;  %v26138_v19 = vand.u32 4294901760, %v16561_v39  ;;  %v26139_v13 = vand.u32 4294901760, %v16802_v4  ;;  %v26140_v54 = vand.u32 4294901760, %v16807_v29  ;;  %13612 = vmatpush3.bf16.msra.mxu1 %v13611_v59  ;;  %v26150_v59 = vld [vmem:[#allocation21_spill] sm:$0xff] }
  0xd2   :  { %v1521_v53 = vsub.f32 %v16556_v12, %v26137_v30  ;;  %v13615_v56 = vpack.c.bf16 %v1389_v2, %v1382_v6  ;;  %v26141_v62 = vand.u32 4294901760, %v16824_v42  ;;  %v26142_v15 = vand.u32 4294901760, %v16829_v32  ;;  %13614 = vmatprep.subr.bf16.mxu1 %v13613_v9  ;;  %v26148_v2 = vld [vmem:[#allocation20_spill] sm:$0xff] }
  0xd3   :  { %v1528_v0 = vsub.f32 %v16561_v39, %v26138_v19  ;;  %13572 = vmatpush3.bf16.msra.mxu0 %v17009_v63  ;;  %v17039_v44 = vpack.c.bf16 %v26140_v54, %v26139_v13  ;;  %v1396_v58 = vand.u32 4294901760, %v1395_v41  ;;  %v1403_v45 = vand.u32 4294901760, %v1402_v61  ;;  %v26152_v61 = vld [vmem:[#allocation22_spill] sm:$0xff]  ;;  %v26156_v54 = vld [vmem:[#allocation23_spill] sm:$0xff] }
  0xd4   :  { %v17045_v1 = vpack.c.bf16 %v26142_v15, %v26141_v62  ;;  %13574 = vmatprep.subr.bf16.mxu0 %v17016_v48  ;;  %v26143_v7 = vand.u32 4294901760, %v16570_v50  ;;  %v26144_v29 = vand.u32 4294901760, %v16575_v17  ;;  %v62_v22 = vmul.f32 %v46_v27, %v26145_v36  ;;  %v26154_v27 = vld [vmem:[#allocation5_spill] sm:$0xff] }
  0xd5   :  { %v13617_v42 = vpack.c.bf16 %v1515_v43, %v1508_v34  ;;  %v1522_v32 = vand.u32 4294901760, %v1521_v53  ;;  %v1529_v16 = vand.u32 4294901760, %v1528_v0  ;;  %v26147_v6 = vand.u32 4294901760, %v26146_v57  ;;  %13616 = vmatpush3.bf16.msra.mxu1 %v13615_v56 }
  0xd6   :  { %v1409_v4 = vsub.f32 %v16570_v50, %v26143_v7  ;;  %v1416_v51 = vsub.f32 %v16575_v17, %v26144_v29  ;;  %v26149_v10 = vand.u32 4294901760, %v26148_v2  ;;  %v26151_v5 = vand.u32 4294901760, %v26150_v59  ;;  %v26158_v7 = vld [vmem:[#allocation24_spill] sm:$0xff] }
  0xd7   :  { %13576 = vmatpush3.bf16.msra.mxu0 %v17039_v44  ;;  %v26153_v30 = vand.u32 4294901760, %v26152_v61  ;;  %v13619_v9 = vpack.c.bf16 %v1403_v45, %v1396_v58  ;;  %v17069_v53 = vand.u32 4294901760, %v62_v22  ;;  %13618 = vmatprep.subr.bf16.mxu1 %v13617_v42  ;;  %v13621_v0 = vpack.c.bf16 %v1529_v16, %v1522_v32  ;;  %v26160_v45 = vld [vmem:[#allocation25_spill] sm:$0xff]  ;;  %v26162_v42 = vld [vmem:[#allocation7_spill] sm:$0xff]  ;;  %v26164_v16 = vld [vmem:[#allocation26_spill] sm:$0xff] }
  0xd8   :  { %v17060_v41 = vpack.c.bf16 %v26149_v10, %v26147_v6  ;;  %13578 = vmatprep.subr.bf16.mxu0 %v17045_v1  ;;  %v1410_v34 = vand.u32 4294901760, %v1409_v4  ;;  %v1417_v43 = vand.u32 4294901760, %v1416_v51  ;;  %v26155_v13 = vand.u32 4294901760, %v26154_v27  ;;  %v26166_v10 = vld [vmem:[#allocation8_spill] sm:$0xff] }
  0xd9   :  { %v17066_v19 = vpack.c.bf16 %v26153_v30, %v26151_v5  ;;  %v26157_v62 = vand.u32 4294901760, %v26156_v54  ;;  %13620 = vmatpush3.bf16.msra.mxu1 %v13619_v9  ;;  %v26159_v58 = vand.u32 4294901760, %v26158_v7  ;;  %v26161_v4 = vand.u32 4294901760, %v26160_v45  ;;  %v26170_v30 = vld [vmem:[#allocation28_spill] sm:$0xff]  ;;  %v26175_v54 = vld [vmem:[#allocation37_spill] sm:$0xff]  ;;  %v26177_v7 = vld [vmem:[#allocation39_spill] sm:$0xff] }
  0xda   :  { %v13623_v56 = vpack.c.bf16 %v1417_v43, %v1410_v34  ;;  %v17086_v51 = vsub.f32 %v62_v22, %v17069_v53  ;;  %13622 = vmatprep.subr.bf16.mxu1 %v13621_v0  ;;  %v26163_v32 = vand.u32 4294901760, %v26162_v42  ;;  %v26165_v57 = vand.u32 4294901760, %v26164_v16  ;;  %v26168_v22 = vld [vmem:[#allocation27_spill] sm:$0xff]  ;;  %v26172_v34 = vld [vmem:[#allocation29_spill] sm:$0xff] }
  0xdb   :  { %13580 = vmatpush3.bf16.msra.mxu0 %v17060_v41  ;;  %v17076_v15 = vpack.c.bf16 %v26157_v62, %v26155_v13  ;;  %v17083_v29 = vpack.c.bf16 %v26161_v4, %v26159_v58  ;;  %v26167_v59 = vand.u32 4294901760, %v26166_v10  ;;  %v26169_v5 = vand.u32 4294901760, %v26168_v22  ;;  %v26176_v62 = vld [vmem:[#allocation38_spill] sm:$0xff]  ;;  %v26178_v58 = vld [vmem:[#allocation40_spill] sm:$0xff]  ;;  %v26179_v42 = vld [vmem:[#allocation41_spill] sm:$0xff] }
  0xdc   :  { %13582 = vmatprep.subr.bf16.mxu0 %v17066_v19  ;;  %v17093_v6 = vpack.c.bf16 %v26165_v57, %v26163_v32  ;;  %v25256_v2 = vand.u32 4294901760, %v17086_v51  ;;  %v26171_v9 = vand.u32 4294901760, %v26170_v30  ;;  %v26173_v43 = vand.u32 4294901760, %v26172_v34  ;;  %v26180_v32 = vld [vmem:[#allocation42_spill] sm:$0xff]  ;;  %v26181_v57 = vld [vmem:[#allocation9_spill] sm:$0xff]  ;;  %v26183_v22 = vld [vmem:[#allocation44_spill] sm:$0xff] }
  0xdd   :  { %13624 = vmatpush3.bf16.msra.mxu1 %v13623_v56  ;;  %v17102_v61 = vpack.c.bf16 %v26169_v5, %v26167_v59  ;;  %v26174_v27 = vand.u32 4294901760, %v16894_v28  ;;  %v13625_v56 = vpack.c.bf16 %v26176_v62, %v26175_v54  ;;  %v13627_v45 = vpack.c.bf16 %v26178_v58, %v26177_v7  ;;  %v26182_v59 = vld [vmem:[#allocation43_spill] sm:$0xff] }
  0xde   :  { %13658 = vmatprep.subr.bf16.mxu1 %v16940_v46  ;;  %v17110_v0 = vpack.c.bf16 %v26173_v43, %v26171_v9  ;;  %v1300_v13 = vsub.f32 %v17086_v51, %v25256_v2  ;;  %v13629_v16 = vpack.c.bf16 %v26180_v32, %v26179_v42  ;;  %v13631_v10 = vpack.c.bf16 %v26181_v57, %v16749_v37  ;;  %v17145_v9 = vld [vmem:[%s25149_s5 + $0x250] sm:$0xff]  ;;  %v17150_v34 = vld [vmem:[%s25149_s5 + $0x258] sm:$0xff] }
  0xdf   :  { %13584 = vmatpush3.bf16.msra.mxu0 %v17076_v15  ;;  %v13633_v5 = vpack.c.bf16 %v26183_v22, %v26182_v59  ;;  %v13635_v30 = vpack.c.bf16 %v16840_v18, %v16835_v35  ;;  %26184 = vst [vmem:[#allocation12_spill] sm:$0xff] %v17145_v9  ;;  %26185 = vst [vmem:[#allocation13_spill] sm:$0xff] %v17150_v34  ;;  %v26186_v43 = vld [vmem:[#allocation11_spill] sm:$0xff]  ;;  %v13647_v2 = vpack.c.bf16 %v16469_v38, %v16464_v14  ;;  %v49_v38 = vld [vmem:[%s25145_s1 + $0x28] sm:$0xff] }
  0xe0   :  { %13586 = vmatprep.subr.bf16.mxu0 %v17083_v29  ;;  %1534 = vmatmul.mubr.f32.vlgmr.msra.gmra.mrb[6].mxu1 %v17069_v53  ;;  %v1301_v4 = vand.u32 4294901760, %v1300_v13  ;;  %v13641_v13 = vpack.c.bf16 %v16905_v31, %v16900_v3 }
  0xe1   :  { %13660 = vmatpush3.bf16.msra.mxu1 %v16956_v60  ;;  %1776 = vmatprep.mubr.f32.mxu1 %v26174_v27  ;;  %v13639_v27 = vpack.c.bf16 %v16878_v8, %v26186_v43 }
  0xe2   :  { %13662 = vmatprep.subr.bf16.mxu1 %v16962_v52 }
  0xe3   :  { %13588 = vmatpush3.bf16.msra.mxu0 %v17093_v6 }
  0xe4   :  { %13590 = vmatprep.subr.bf16.mxu0 %v17102_v61 }
  0xe5   :  { %13664 = vmatpush3.bf16.msra.mxu1 %v16983_v40 }
  0xe6   :  { %13666 = vmatprep.subr.bf16.mxu1 %v16989_v55 }
  0xe7   :  { %13592 = vmatpush3.bf16.msra.mxu0 %v17110_v0 }
  0xe8   :  { %13626 = vmatprep.subr.bf16.mxu0 %v13625_v56  ;;  %v25254_v56 = vand.u32 4294901760, %v17145_v9 }
  0xe9   :  { %13668 = vmatpush3.bf16.msra.mxu1 %v17009_v63 }
  0xea   :  { %1302 = vmatmul.mubr.f32.vlgmr.msra.gmra.mrb[6].mxu0 %v1301_v4  ;;  %13670 = vmatprep.subr.bf16.mxu1 %v17016_v48  ;;  %v17163_v4 = vld [vmem:[%s25149_s5 + $0x260] sm:$0xff] }
  0xeb   :  { %13628 = vmatpush3.bf16.msra.mxu0 %v13627_v45  ;;  %1669 = vmatprep.mubr.f32.mxu0 %v16894_v28  ;;  %v13637_v28 = vpack.c.bf16 %v16860_v33, %v16852_v21  ;;  %v25255_v45 = vand.u32 4294901760, %v17150_v34  ;;  %26187 = vst [vmem:[#allocation14_spill] sm:$0xff] %v17163_v4 }
  0xec   :  { %13630 = vmatprep.subr.bf16.mxu0 %v13629_v16  ;;  %v17168_v16 = vld [vmem:[%s25149_s5 + $0x268] sm:$0xff] }
  0xed   :  { %13672 = vmatpush3.bf16.msra.mxu1 %v17039_v44  ;;  %26188 = vst [vmem:[#allocation15_spill] sm:$0xff] %v17168_v16  ;;  %v26194_v14 = vand.u32 4294901760, %v17168_v16 }
  0xee   :  { %13674 = vmatprep.subr.bf16.mxu1 %v17045_v1 }
  0xef   :  { %13632 = vmatpush3.bf16.msra.mxu0 %v13631_v10  ;;  %v13643_v10 = vpack.c.bf16 %v16415_v20, %v26118_v49  ;;  %v17188_v20 = vsub.f32 %v17145_v9, %v25254_v56  ;;  %v13649_v49 = vpack.c.bf16 %v16513_v26, %v16508_v25  ;;  %v17227_v26 = vsub.f32 %v17168_v16, %v26194_v14  ;;  %v17233_v25 = vld [vmem:[%s25149_s5 + $0x280] sm:$0xff] }
  0xf0   :  { %13634 = vmatprep.subr.bf16.mxu0 %v13633_v5  ;;  %v13645_v5 = vpack.c.bf16 %v16441_v23, %v16436_v24  ;;  %v17193_v23 = vsub.f32 %v17150_v34, %v25255_v45  ;;  %v26193_v45 = vand.u32 4294901760, %v17163_v4  ;;  %v13651_v16 = vpack.c.bf16 %v16537_v11, %v16532_v47  ;;  %v17275_v47 = vld [vmem:[%s25149_s5 + $0x200] sm:$0xff]  ;;  %v17280_v11 = vld [vmem:[%s25149_s5 + $0x208] sm:$0xff] }
  0xf1   :  { %13676 = vmatpush3.bf16.msra.mxu1 %v17060_v41  ;;  %v25264_v9 = vand.u32 4294901760, %v17188_v20 }
  0xf2   :  { %13678 = vmatprep.subr.bf16.mxu1 %v17066_v19  ;;  %v25263_v56 = vand.u32 4294901760, %v17193_v23 }
  0xf3   :  { %13636 = vmatpush3.bf16.msra.mxu0 %v13635_v30  ;;  %v17177_v30 = vld [vmem:[%s25149_s5 + $0x2f0] sm:$0xff] }
  0xf4   :  { %13638 = vmatprep.subr.bf16.mxu0 %v13637_v28  ;;  %26189 = vst [vmem:[#allocation16_spill] sm:$0xff] %v17177_v30  ;;  %v17182_v28 = vld [vmem:[%s25149_s5 + $0x2f8] sm:$0xff]  ;;  %v17252_v24 = vpack.c.bf16 %v25263_v56, %v25264_v9  ;;  %v65_v9 = vmul.f32 %v49_v38, %v26145_v36  ;;  %v26205_v56 = vand.u32 4294901760, %v26175_v54  ;;  %v17327_v54 = vld [vmem:[%s25149_s5 + $0x290] sm:$0xff] }
  0xf5   :  { %26190 = vst [vmem:[#allocation17_spill] sm:$0xff] %v17182_v28  ;;  %13680 = vmatpush3.bf16.msra.mxu1 %v17076_v15  ;;  %v26196_v34 = vand.u32 4294901760, %v17182_v28 }
  0xf6   :  { %13682 = vmatprep.subr.bf16.mxu1 %v17083_v29  ;;  %26197 = vst [vmem:[#allocation20_spill] sm:$0xff] %v17252_v24  ;;  %v26204_v24 = vld [vmem:[#allocation10_spill] sm:$0xff] }
  0xf7   :  { %13640 = vmatpush3.bf16.msra.mxu0 %v13639_v27  ;;  %v17200_v27 = vld [vmem:[%s25149_s5 + $0x270] sm:$0xff]  ;;  %v17246_v14 = vsub.f32 %v17182_v28, %v26196_v34 }
  0xf8   :  { %13642 = vmatprep.subr.bf16.mxu0 %v13641_v13  ;;  %26191 = vst [vmem:[#allocation6_spill] sm:$0xff] %v17200_v27  ;;  %v17205_v13 = vld [vmem:[%s25149_s5 + $0x278] sm:$0xff] }
  0xf9   :  { %26192 = vst [vmem:[#allocation19_spill] sm:$0xff] %v17205_v13  ;;  %13684 = vmatpush3.bf16.msra.mxu1 %v17093_v6  ;;  %v26199_v28 = vand.u32 4294901760, %v17205_v13 }
  0xfa   :  { %13686 = vmatprep.subr.bf16.mxu1 %v17102_v61 }
  0xfb   :  { %13644 = vmatpush3.bf16.msra.mxu0 %v13643_v10  ;;  %v17222_v10 = vsub.f32 %v17163_v4, %v26193_v45  ;;  %v17269_v4 = vsub.f32 %v17205_v13, %v26199_v28  ;;  %v13653_v28 = vpack.c.bf16 %v16561_v39, %v16556_v12  ;;  %v26203_v12 = vand.u32 4294901760, %v17086_v51 }
  0xfc   :  { %13646 = vmatprep.subr.bf16.mxu0 %v13645_v5  ;;  %v26195_v5 = vand.u32 4294901760, %v17177_v30 }
  0xfd   :  { %13688 = vmatpush3.bf16.msra.mxu1 %v17110_v0  ;;  %v25269_v38 = vand.u32 4294901760, %v17269_v4 }
  0xfe   :  { %v17241_v45 = vsub.f32 %v17177_v30, %v26195_v5  ;;  %v17259_v5 = vld [vmem:[%s25149_s5 + $0x288] sm:$0xff]  ;;  %v26198_v30 = vand.u32 4294901760, %v17200_v27  ;;  %13722 = vmatprep.subr.bf16.mxu1 %v16940_v46  ;;  %v26201_v46 = vand.u32 4294901760, %v17227_v26 }
  0xff   :  { %13648 = vmatpush3.bf16.msra.mxu0 %v13647_v2  ;;  %v25267_v2 = vand.u32 4294901760, %v17246_v14 }
 0x100   :  { %v17264_v34 = vsub.f32 %v17200_v27, %v26198_v30  ;;  %13650 = vmatprep.subr.bf16.mxu0 %v13649_v49  ;;  %v13655_v49 = vpack.c.bf16 %v16575_v17, %v16570_v50  ;;  %v25268_v13 = vand.u32 4294901760, %v17241_v45  ;;  %v26200_v30 = vand.u32 4294901760, %v17222_v10  ;;  %1780 = vmatmul.mubr.f32.vlgmr.msra.gmra.mrb[8].mxu1 %v26203_v12 }
 0x101   :  { %v25271_v50 = vand.u32 4294901760, %v17275_v47  ;;  %13724 = vmatpush3.bf16.msra.mxu1 %v16956_v60  ;;  %2050 = vmatprep.mubr.f32.mxu1 %v26204_v24  ;;  %v26208_v12 = vand.u32 4294901760, %v17233_v25 }
 0x102   :  { %v17298_v27 = vpack.c.bf16 %v26201_v46, %v26200_v30  ;;  %v25270_v17 = vand.u32 4294901760, %v17264_v34  ;;  %v26206_v30 = vand.u32 4294901760, %v26176_v62  ;;  %13726 = vmatprep.subr.bf16.mxu1 %v16962_v52  ;;  %v17332_v62 = vld [vmem:[%s25149_s5 + $0x298] sm:$0xff] }
 0x103   :  { %13652 = vmatpush3.bf16.msra.mxu0 %v13651_v16  ;;  %v17316_v16 = vpack.c.bf16 %v25267_v2, %v25268_v13  ;;  %v17322_v60 = vsub.f32 %v17233_v25, %v26208_v12  ;;  %v26212_v12 = vand.u32 4294901760, %v26177_v7  ;;  %v26213_v2 = vand.u32 4294901760, %v26178_v58 }
 0x104   :  { %26202 = vst [vmem:[#allocation21_spill] sm:$0xff] %v17298_v27  ;;  %v13689_v46 = vpack.c.bf16 %v26206_v30, %v26205_v56  ;;  %13654 = vmatprep.subr.bf16.mxu0 %v13653_v28  ;;  %v17338_v52 = vpack.c.bf16 %v25269_v38, %v25270_v17  ;;  %v17340_v56 = vand.u32 4294901760, %v65_v9  ;;  %v17345_v28 = vld [vmem:[%s25149_s5 + $0x210] sm:$0xff]  ;;  %v17350_v30 = vld [vmem:[%s25149_s5 + $0x218] sm:$0xff]  ;;  %v26214_v38 = vand.u32 4294901760, %v17259_v5 }
 0x105   :  { %26207 = vst [vmem:[#allocation22_spill] sm:$0xff] %v17316_v16  ;;  %26209 = vst [vmem:[#allocation5_spill] sm:$0xff] %v17322_v60  ;;  %v13691_v13 = vpack.c.bf16 %v26213_v2, %v26212_v12  ;;  %v17364_v39 = vsub.f32 %v17275_v47, %v25271_v50  ;;  %13728 = vmatpush3.bf16.msra.mxu1 %v16983_v40  ;;  %v26219_v7 = vand.u32 4294901760, %v26179_v42  ;;  %v26220_v58 = vand.u32 4294901760, %v26180_v32  ;;  %v17386_v40 = vld [vmem:[%s25149_s5 + $0x2a0] sm:$0xff] }
 0x106   :  { %26210 = vst [vmem:[#allocation23_spill] sm:$0xff] %v17338_v52  ;;  %26211 = vst [vmem:[#allocation24_spill] sm:$0xff] %v17340_v56  ;;  %v17359_v17 = vsub.f32 %v17259_v5, %v26214_v38  ;;  %v26217_v52 = vand.u32 4294901760, %v17280_v11  ;;  %v25274_v38 = vand.u32 4294901760, %v17332_v62  ;;  %13730 = vmatprep.subr.bf16.mxu1 %v16989_v55  ;;  %v25272_v12 = vand.u32 4294901760, %v17322_v60 }
 0x107   :  { %13656 = vmatpush3.bf16.msra.mxu0 %v13655_v49  ;;  %26216 = vst [vmem:[#allocation7_spill] sm:$0xff] %v17364_v39  ;;  %v13693_v2 = vpack.c.bf16 %v26220_v58, %v26219_v7  ;;  %v25278_v49 = vand.u32 4294901760, %v17327_v54  ;;  %v25273_v50 = vand.u32 4294901760, %v17345_v28  ;;  %v17389_v42 = vsub.f32 %v65_v9, %v17340_v56 }
 0x108   :  { %26215 = vst [vmem:[#allocation25_spill] sm:$0xff] %v17359_v17  ;;  %v17369_v16 = vsub.f32 %v17280_v11, %v26217_v52  ;;  %13690 = vmatprep.subr.bf16.mxu0 %v13689_v46  ;;  %v26222_v55 = vand.u32 4294901760, %v16749_v37  ;;  %v26223_v32 = vand.u32 4294901760, %v26181_v57  ;;  %v25277_v7 = vand.u32 4294901760, %v17359_v17  ;;  %v17402_v52 = vld [vmem:[%s25149_s5 + $0x2a8] sm:$0xff] }
 0x109   :  { %26221 = vst [vmem:[#allocation8_spill] sm:$0xff] %v17389_v42  ;;  %13732 = vmatpush3.bf16.msra.mxu1 %v17009_v63  ;;  %v26224_v9 = vand.u32 4294901760, %v26182_v59  ;;  %v26225_v37 = vand.u32 4294901760, %v26183_v22  ;;  %v2285_v63 = vsub.f32 %v17322_v60, %v25272_v12  ;;  %v17426_v59 = vsub.f32 %v17345_v28, %v25273_v50 }
 0x10a   :  { %26218 = vst [vmem:[#allocation26_spill] sm:$0xff] %v17369_v16  ;;  %1672 = vmatmul.mubr.f32.vlgmr.msra.gmra.mrb[8].mxu0 %v17086_v51  ;;  %v13695_v46 = vpack.c.bf16 %v26223_v32, %v26222_v55  ;;  %v25276_v51 = vand.u32 4294901760, %v17364_v39  ;;  %v25275_v58 = vand.u32 4294901760, %v17369_v16  ;;  %13734 = vmatprep.subr.bf16.mxu1 %v17016_v48  ;;  %v26229_v22 = vand.u32 4294901760, %v17350_v30  ;;  %v17478_v55 = vld [vmem:[%s25149_s5 + $0x2b8] sm:$0xff] }
 0x10b   :  { %13692 = vmatpush3.bf16.msra.mxu0 %v13691_v13  ;;  %1946 = vmatprep.mubr.f32.mxu0 %v26204_v24  ;;  %v13697_v57 = vpack.c.bf16 %v26225_v37, %v26224_v9  ;;  %v17412_v24 = vsub.f32 %v17327_v54, %v25278_v49  ;;  %v17417_v13 = vsub.f32 %v17332_v62, %v25274_v38  ;;  %v26231_v9 = vand.u32 4294901760, %v16835_v35  ;;  %v17457_v35 = vld [vmem:[%s25149_s5 + $0x228] sm:$0xff] }
 0x10c   :  { %13694 = vmatprep.subr.bf16.mxu0 %v13693_v2  ;;  %26228 = vst [vmem:[#allocation29_spill] sm:$0xff] %v17426_v59  ;;  %v17431_v2 = vsub.f32 %v17350_v30, %v26229_v22  ;;  %v26232_v37 = vand.u32 4294901760, %v16840_v18  ;;  %v2292_v50 = vsub.f32 %v17359_v17, %v25277_v7  ;;  %v2173_v22 = vsub.f32 %v17364_v39, %v25276_v51  ;;  %v17462_v18 = vld [vmem:[%s25149_s5 + $0x2b0] sm:$0xff] }
 0x10d   :  { %26226 = vst [vmem:[#allocation27_spill] sm:$0xff] %v17412_v24  ;;  %26227 = vst [vmem:[#allocation28_spill] sm:$0xff] %v17417_v13  ;;  %v2180_v38 = vsub.f32 %v17369_v16, %v25275_v58  ;;  %13736 = vmatpush3.bf16.msra.mxu1 %v17039_v44  ;;  %v26235_v51 = vand.u32 4294901760, %v26186_v43  ;;  %v26236_v7 = vand.u32 4294901760, %v16878_v8  ;;  %v25279_v48 = vand.u32 4294901760, %v17412_v24 }
 0x10e   :  { %26230 = vst [vmem:[#allocation37_spill] sm:$0xff] %v17431_v2  ;;  %v13699_v12 = vpack.c.bf16 %v26232_v37, %v26231_v9  ;;  %v26233_v9 = vand.u32 4294901760, %v16852_v21  ;;  %v26234_v37 = vand.u32 4294901760, %v16860_v33  ;;  %13738 = vmatprep.subr.bf16.mxu1 %v17045_v1  ;;  %v2286_v21 = vand.u32 4294901760, %v2285_v63  ;;  %v17555_v33 = vld [vmem:[%s25149_s5 + $0x2c8] sm:$0xff] }
 0x10f   :  { %13696 = vmatpush3.bf16.msra.mxu0 %v13695_v46  ;;  %v17452_v46 = vld [vmem:[%s25149_s5 + $0x220] sm:$0xff]  ;;  %v13703_v49 = vpack.c.bf16 %v26236_v7, %v26235_v51  ;;  %v26237_v43 = vand.u32 4294901760, %v17386_v40  ;;  %v26239_v7 = vand.u32 4294901760, %v17402_v52  ;;  %v2293_v63 = vand.u32 4294901760, %v2292_v50 }
 0x110   :  { %13698 = vmatprep.subr.bf16.mxu0 %v13697_v57  ;;  %v13701_v58 = vpack.c.bf16 %v26234_v37, %v26233_v9  ;;  %v25280_v57 = vand.u32 4294901760, %v17452_v46  ;;  %v2174_v37 = vand.u32 4294901760, %v2173_v22  ;;  %v2181_v44 = vand.u32 4294901760, %v2180_v38  ;;  %v17511_v38 = vld [vmem:[%s25149_s5 + $0x230] sm:$0xff] }
 0x111   :  { %v17486_v8 = vsub.f32 %v17386_v40, %v26237_v43  ;;  %v17491_v51 = vsub.f32 %v17402_v52, %v26239_v7  ;;  %13740 = vmatpush3.bf16.msra.mxu1 %v17060_v41  ;;  %v26241_v43 = vand.u32 4294901760, %v16900_v3  ;;  %v26242_v7 = vand.u32 4294901760, %v16905_v31 }
 0x112   :  { %v2299_v9 = vsub.f32 %v17412_v24, %v25279_v48  ;;  %v26243_v1 = vand.u32 4294901760, %v17417_v13  ;;  %13742 = vmatprep.subr.bf16.mxu1 %v17066_v19  ;;  %v26244_v3 = vand.u32 4294901760, %v17426_v59  ;;  %v26245_v41 = vand.u32 4294901760, %v17431_v2  ;;  %v17534_v19 = vld [vmem:[%s25149_s5 + $0x2c0] sm:$0xff] }
 0x113   :  { %26238 = vst [vmem:[#allocation38_spill] sm:$0xff] %v17486_v8  ;;  %26240 = vst [vmem:[#allocation39_spill] sm:$0xff] %v17491_v51  ;;  %13700 = vmatpush3.bf16.msra.mxu0 %v13699_v12  ;;  %v13705_v32 = vpack.c.bf16 %v26242_v7, %v26241_v43  ;;  %v26246_v22 = vand.u32 4294901760, %v17389_v42  ;;  %v17529_v43 = vld [vmem:[%s25149_s5 + $0x238] sm:$0xff]  ;;  %v26250_v48 = vand.u32 4294901760, %v17462_v18  ;;  %v13785_v7 = vpack.c.bf16 %v2293_v63, %v2286_v21  ;;  %v17576_v21 = vld [vmem:[%s25149_s5 + $0x248] sm:$0xff] }
 0x114   :  { %13702 = vmatprep.subr.bf16.mxu0 %v13701_v58  ;;  %v2306_v50 = vsub.f32 %v17417_v13, %v26243_v1  ;;  %v2187_v31 = vsub.f32 %v17426_v59, %v26244_v3  ;;  %v2194_v12 = vsub.f32 %v17431_v2, %v26245_v41  ;;  %v17540_v3 = vsub.f32 %v17452_v46, %v25280_v57  ;;  %v17586_v63 = vld [vmem:[%s25149_s5 + $0x2d0] sm:$0xff] }
 0x115   :  { %v17524_v1 = vsub.f32 %v17389_v42, %v26246_v22  ;;  %v26248_v41 = vand.u32 4294901760, %v17457_v35  ;;  %v17550_v58 = vsub.f32 %v17462_v18, %v26250_v48  ;;  %v17557_v27 = vpack.c.bf16 %v2181_v44, %v2174_v37  ;;  %13744 = vmatpush3.bf16.msra.mxu1 %v17076_v15  ;;  %26255 = vst [vmem:[#allocation43_spill] sm:$0xff] %v17586_v63  ;;  %v17591_v37 = vld [vmem:[%s25149_s5 + $0x2d8] sm:$0xff] }
 0x116   :  { %26247 = vst [vmem:[#allocation40_spill] sm:$0xff] %v17540_v3  ;;  %v26252_v57 = vand.u32 4294901760, %v17478_v55  ;;  %v2300_v48 = vand.u32 4294901760, %v2299_v9  ;;  %v2307_v59 = vand.u32 4294901760, %v2306_v50  ;;  %13746 = vmatprep.subr.bf16.mxu1 %v17083_v29  ;;  %v2188_v15 = vand.u32 4294901760, %v2187_v31  ;;  %v26257_v9 = vld [vmem:[#allocation30_spill] sm:$0xff] }
 0x117   :  { %v17545_v22 = vsub.f32 %v17457_v35, %v26248_v41  ;;  %26251 = vst [vmem:[#allocation42_spill] sm:$0xff] %v17550_v58  ;;  %13704 = vmatpush3.bf16.msra.mxu0 %v13703_v49  ;;  %v25293_v41 = vand.u32 4294901760, %v17511_v38  ;;  %v17571_v49 = vld [vmem:[%s25149_s5 + $0x240] sm:$0xff]  ;;  %v26254_v44 = vand.u32 4294901760, %v17486_v8  ;;  %v26256_v29 = vand.u32 4294901760, %v17491_v51 }
 0x118   :  { %v17562_v2 = vsub.f32 %v17478_v55, %v26252_v57  ;;  %13706 = vmatprep.subr.bf16.mxu0 %v13705_v32  ;;  %v2195_v32 = vand.u32 4294901760, %v2194_v12  ;;  %v26259_v12 = vand.u32 4294901760, %v17529_v43  ;;  %v13789_v16 = vpack.c.bf16 %v2307_v59, %v2300_v48  ;;  %v17640_v59 = vld [vmem:[%s25149_s5 + $0x2e0] sm:$0xff]  ;;  %v17645_v48 = vld [vmem:[%s25149_s5 + $0x2e8] sm:$0xff] }
 0x119   :  { %26249 = vst [vmem:[#allocation41_spill] sm:$0xff] %v17545_v22  ;;  %v2313_v57 = vsub.f32 %v17486_v8, %v26254_v44  ;;  %v2320_v50 = vsub.f32 %v17491_v51, %v26256_v29  ;;  %v17604_v13 = vsub.f32 %v17511_v38, %v25293_v41  ;;  %13748 = vmatpush3.bf16.msra.mxu1 %v17093_v6  ;;  %v26258_v29 = vld [vmem:[#allocation31_spill] sm:$0xff]  ;;  %v26262_v39 = vand.u32 4294901760, %v17540_v3 }
 0x11a   :  { %26253 = vst [vmem:[#allocation9_spill] sm:$0xff] %v17562_v2  ;;  %v17613_v44 = vsub.f32 %v17529_v43, %v26259_v12  ;;  %13750 = vmatprep.subr.bf16.mxu1 %v17102_v61  ;;  %v13791_v6 = vpack.c.bf16 %v2195_v32, %v2188_v15  ;;  %v26263_v17 = vand.u32 4294901760, %v17545_v22  ;;  %v26264_v8 = vand.u32 4294901760, %v17550_v58  ;;  %v26265_v15 = vld [vmem:[#allocation32_spill] sm:$0xff] }
 0x11b   :  { %13708 = vmatpush3.bf16.msra.mxu0 %v26257_v9  ;;  %v26260_v9 = vand.u32 4294901760, %v17534_v19  ;;  %v2314_v31 = vand.u32 4294901760, %v2313_v57  ;;  %v2321_v12 = vand.u32 4294901760, %v2320_v50  ;;  %v26268_v50 = vand.u32 4294901760, %v17576_v21 }
 0x11c   :  { %13710 = vmatprep.subr.bf16.mxu0 %v26258_v29  ;;  %v26261_v29 = vand.u32 4294901760, %v17555_v33  ;;  %v2208_v41 = vsub.f32 %v17545_v22, %v26263_v17  ;;  %v2327_v61 = vsub.f32 %v17550_v58, %v26264_v8  ;;  %v26267_v8 = vand.u32 4294901760, %v17571_v49  ;;  %v26269_v58 = vld [vmem:[#allocation33_spill] sm:$0xff] }
 0x11d   :  { %v17618_v24 = vsub.f32 %v17534_v19, %v26260_v9  ;;  %v2201_v9 = vsub.f32 %v17540_v3, %v26262_v39  ;;  %v26266_v39 = vand.u32 4294901760, %v17562_v2  ;;  %13752 = vmatpush3.bf16.msra.mxu1 %v17110_v0  ;;  %v26270_v32 = vand.u32 4294901760, %v17586_v63 }
 0x11e   :  { %v17626_v51 = vsub.f32 %v17555_v33, %v26261_v29  ;;  %v17655_v57 = vsub.f32 %v17571_v49, %v26267_v8  ;;  %v17660_v29 = vsub.f32 %v17576_v21, %v26268_v50  ;;  %v26271_v8 = vand.u32 4294901760, %v17591_v37  ;;  %13786 = vmatprep.subr.bf16.mxu1 %v13785_v7 }
 0x11f   :  { %13712 = vmatpush3.bf16.msra.mxu0 %v26265_v15  ;;  %v2334_v17 = vsub.f32 %v17562_v2, %v26266_v39  ;;  %v17669_v2 = vsub.f32 %v17586_v63, %v26270_v32  ;;  %v26273_v50 = vand.u32 4294901760, %v17233_v25  ;;  %v26274_v0 = vand.u32 4294901760, %v17259_v5 }
 0x120   :  { %13714 = vmatprep.subr.bf16.mxu0 %v26269_v58  ;;  %v17674_v22 = vsub.f32 %v17591_v37, %v26271_v8  ;;  %v25313_v15 = vand.u32 4294901760, %v17626_v51  ;;  %v25314_v39 = vand.u32 4294901760, %v17640_v59  ;;  %v25317_v3 = vand.u32 4294901760, %v17645_v48  ;;  %2052 = vmatmul.mubr.f32.vlgmr.msra.gmra.mrb[10].mxu1 %v17069_v53  ;;  %v26275_v8 = vld [vmem:[#allocation34_spill] sm:$0xff] }
 0x121   :  { %v17680_v58 = vpack.c.bf16 %v26274_v0, %v26273_v50  ;;  %v13793_v32 = vpack.c.bf16 %v2321_v12, %v2314_v31  ;;  %v2202_v60 = vand.u32 4294901760, %v2201_v9  ;;  %v2209_v42 = vand.u32 4294901760, %v2208_v41  ;;  %13788 = vmatpush3.bf16.msra.mxu1 %v17557_v27  ;;  %2394 = vmatprep.mubr.f32.mxu1 %v17340_v56 }
 0x122   :  { %26272 = vst [vmem:[#allocation44_spill] sm:$0xff] %v17674_v22  ;;  %v2328_v63 = vand.u32 4294901760, %v2327_v61  ;;  %v2335_v7 = vand.u32 4294901760, %v2334_v17  ;;  %v26276_v25 = vand.u32 4294901760, %v17604_v13  ;;  %v26277_v41 = vand.u32 4294901760, %v17613_v44  ;;  %13790 = vmatprep.subr.bf16.mxu1 %v13789_v16 }
 0x123   :  { %13716 = vmatpush3.bf16.msra.mxu0 %v26275_v8  ;;  %v26278_v12 = vand.u32 4294901760, %v17618_v24  ;;  %v26279_v8 = vld [vmem:[#allocation35_spill] sm:$0xff]  ;;  %v2348_v27 = vsub.f32 %v17626_v51, %v25313_v15  ;;  %v26282_v17 = vand.u32 4294901760, %v17280_v11  ;;  %v2157_v16 = vand.u32 4294901760, %v17524_v1 }
 0x124   :  { %v2215_v5 = vsub.f32 %v17604_v13, %v26276_v25  ;;  %v2222_v31 = vsub.f32 %v17613_v44, %v26277_v41  ;;  %13718 = vmatprep.subr.bf16.mxu0 %v26279_v8  ;;  %v17709_v25 = vsub.f32 %v17640_v59, %v25314_v39  ;;  %v17714_v41 = vsub.f32 %v17645_v48, %v25317_v3  ;;  %v26285_v39 = vld [vmem:[#allocation36_spill] sm:$0xff] }
 0x125   :  { %v2341_v9 = vsub.f32 %v17618_v24, %v26278_v12  ;;  %v26281_v12 = vand.u32 4294901760, %v17275_v47  ;;  %v26283_v15 = vand.u32 4294901760, %v17327_v54  ;;  %v26284_v61 = vand.u32 4294901760, %v17332_v62  ;;  %13792 = vmatpush3.bf16.msra.mxu1 %v13791_v6 }
 0x126   :  { %26280 = vst [vmem:[#allocation11_spill] sm:$0xff] %v17714_v41  ;;  %v13795_v50 = vpack.c.bf16 %v2209_v42, %v2202_v60  ;;  %v2216_v56 = vand.u32 4294901760, %v2215_v5  ;;  %v26286_v3 = vand.u32 4294901760, %v17655_v57  ;;  %v26287_v11 = vand.u32 4294901760, %v17660_v29  ;;  %13794 = vmatprep.subr.bf16.mxu1 %v13793_v32 }
 0x127   :  { %v17720_v8 = vpack.c.bf16 %v26282_v17, %v26281_v12  ;;  %v17727_v0 = vpack.c.bf16 %v26284_v61, %v26283_v15  ;;  %13720 = vmatpush3.bf16.msra.mxu0 %v26285_v39  ;;  %v13797_v54 = vpack.c.bf16 %v2335_v7, %v2328_v63  ;;  %v2223_v1 = vand.u32 4294901760, %v2222_v31 }
 0x128   :  { %v2229_v47 = vsub.f32 %v17655_v57, %v26286_v3  ;;  %v2236_v17 = vsub.f32 %v17660_v29, %v26287_v11  ;;  %13754 = vmatprep.subr.bf16.mxu0 %v17680_v58  ;;  %v26288_v62 = vand.u32 4294901760, %v17669_v2  ;;  %v26289_v60 = vand.u32 4294901760, %v17674_v22 }
 0x129   :  { %v2342_v39 = vand.u32 4294901760, %v2341_v9  ;;  %v2349_v3 = vand.u32 4294901760, %v2348_v27  ;;  %v25319_v5 = vand.u32 4294901760, %v17709_v25  ;;  %v25318_v61 = vand.u32 4294901760, %v17714_v41  ;;  %13796 = vmatpush3.bf16.msra.mxu1 %v13795_v50 }
 0x12a   :  { %v2355_v15 = vsub.f32 %v17669_v2, %v26288_v62  ;;  %v2362_v42 = vsub.f32 %v17674_v22, %v26289_v60  ;;  %1948 = vmatmul.mubr.f32.vlgmr.msra.gmra.mrb[10].mxu0 %v17069_v53  ;;  %v26290_v63 = vand.u32 4294901760, %v17345_v28  ;;  %v26291_v6 = vand.u32 4294901760, %v17350_v30  ;;  %13798 = vmatprep.subr.bf16.mxu1 %v13797_v54 }
 0x12b   :  { %13756 = vmatpush3.bf16.msra.mxu0 %v17720_v8  ;;  %2158 = vmatprep.mubr.f32.mxu0 %v2157_v16  ;;  %v2230_v31 = vand.u32 4294901760, %v2229_v47  ;;  %v2237_v12 = vand.u32 4294901760, %v2236_v17  ;;  %v26292_v32 = vand.u32 4294901760, %v17188_v20  ;;  %v26293_v27 = vand.u32 4294901760, %v17193_v23 }
 0x12c   :  { %v17750_v7 = vpack.c.bf16 %v26291_v6, %v26290_v63  ;;  %13758 = vmatprep.subr.bf16.mxu0 %v17727_v0  ;;  %v13799_v53 = vpack.c.bf16 %v2223_v1, %v2216_v56  ;;  %v26294_v28 = vand.u32 4294901760, %v17386_v40  ;;  %v26295_v30 = vand.u32 4294901760, %v17402_v52 }
 0x12d   :  { %v2243_v9 = vsub.f32 %v17188_v20, %v26292_v32  ;;  %v2250_v11 = vsub.f32 %v17193_v23, %v26293_v27  ;;  %v2356_v16 = vand.u32 4294901760, %v2355_v15  ;;  %v2363_v47 = vand.u32 4294901760, %v2362_v42 }
 0x12e   :  { %v17764_v62 = vpack.c.bf16 %v26295_v30, %v26294_v28  ;;  %v13801_v17 = vpack.c.bf16 %v2349_v3, %v2342_v39  ;;  %v2369_v60 = vsub.f32 %v17709_v25, %v25319_v5  ;;  %v2376_v50 = vsub.f32 %v17714_v41, %v25318_v61  ;;  %13800 = vmatpush3.bf16.msra.mxu1 %v13799_v53  ;;  %v17938_v61 = vld [vmem:[%s25149_s5 + $0x3f8] sm:$0xff] }
 0x12f   :  { %v26296_v56 = vand.u32 4294901760, %v17452_v46  ;;  %v26297_v40 = vand.u32 4294901760, %v17457_v35  ;;  %13760 = vmatpush3.bf16.msra.mxu0 %v17750_v7  ;;  %v13803_v52 = vpack.c.bf16 %v2237_v12, %v2230_v31  ;;  %v26298_v54 = vand.u32 4294901760, %v17462_v18 }
 0x130   :  { %v26299_v15 = vand.u32 4294901760, %v17478_v55  ;;  %v2244_v39 = vand.u32 4294901760, %v2243_v9  ;;  %v2251_v3 = vand.u32 4294901760, %v2250_v11  ;;  %13762 = vmatprep.subr.bf16.mxu0 %v17764_v62  ;;  %v13805_v63 = vpack.c.bf16 %v2363_v47, %v2356_v16  ;;  %v48_v55 = vld [vmem:[%s25145_s1 + $0x20] sm:$0xff]  ;;  %13802 = vmatprep.subr.bf16.mxu1 %v13801_v17 }
 0x131   :  { %v17776_v1 = vpack.c.bf16 %v26297_v40, %v26296_v56  ;;  %v26300_v46 = vand.u32 4294901760, %v17222_v10  ;;  %v26301_v6 = vand.u32 4294901760, %v17227_v26  ;;  %v2370_v18 = vand.u32 4294901760, %v2369_v60 }
 0x132   :  { %v17783_v42 = vpack.c.bf16 %v26299_v15, %v26298_v54  ;;  %v2377_v12 = vand.u32 4294901760, %v2376_v50  ;;  %v26302_v32 = vand.u32 4294901760, %v17241_v45  ;;  %v26303_v27 = vand.u32 4294901760, %v17246_v14  ;;  %13804 = vmatpush3.bf16.msra.mxu1 %v13803_v52 }
 0x133   :  { %v2257_v35 = vsub.f32 %v17222_v10, %v26300_v46  ;;  %v2264_v31 = vsub.f32 %v17227_v26, %v26301_v6  ;;  %13764 = vmatpush3.bf16.msra.mxu0 %v17776_v1  ;;  %v26304_v53 = vand.u32 4294901760, %v17511_v38  ;;  %v26305_v28 = vand.u32 4294901760, %v17529_v43  ;;  %13806 = vmatprep.subr.bf16.mxu1 %v13805_v63 }
 0x134   :  { %v2383_v9 = vsub.f32 %v17241_v45, %v26302_v32  ;;  %v2390_v11 = vsub.f32 %v17246_v14, %v26303_v27  ;;  %v13807_v16 = vpack.c.bf16 %v2251_v3, %v2244_v39  ;;  %v26306_v47 = vand.u32 4294901760, %v17534_v19  ;;  %13766 = vmatprep.subr.bf16.mxu0 %v17783_v42  ;;  %v26320_v27 = vld [vmem:[#allocation13_spill] sm:$0xff] }
 0x135   :  { %v17806_v30 = vpack.c.bf16 %v26305_v28, %v26304_v53  ;;  %v26307_v17 = vand.u32 4294901760, %v17555_v33  ;;  %v64_v50 = vmul.f32 %v48_v55, %v26145_v36  ;;  %v2258_v56 = vand.u32 4294901760, %v2257_v35  ;;  %26359 = vst [vmem:[#allocation13_spill] sm:$0xff] %v17938_v61 }
 0x136   :  { %v2265_v40 = vand.u32 4294901760, %v2264_v31  ;;  %v26308_v38 = vand.u32 4294901760, %v17264_v34  ;;  %v26309_v54 = vand.u32 4294901760, %v17269_v4  ;;  %v13809_v19 = vpack.c.bf16 %v2377_v12, %v2370_v18  ;;  %13808 = vmatpush3.bf16.msra.mxu1 %v13807_v16  ;;  %v26314_v31 = vld [vmem:[#allocation43_spill] sm:$0xff] }
 0x137   :  { %v17812_v60 = vpack.c.bf16 %v26307_v17, %v26306_v47  ;;  %v2384_v33 = vand.u32 4294901760, %v2383_v9  ;;  %v2391_v39 = vand.u32 4294901760, %v2390_v11  ;;  %13768 = vmatpush3.bf16.msra.mxu0 %v17806_v30  ;;  %v26310_v52 = vand.u32 4294901760, %v17571_v49 }
 0x138   :  { %v2271_v43 = vsub.f32 %v17264_v34, %v26308_v38  ;;  %v2278_v15 = vsub.f32 %v17269_v4, %v26309_v54  ;;  %v26311_v3 = vand.u32 4294901760, %v17576_v21  ;;  %v17829_v35 = vand.u32 4294901760, %v64_v50  ;;  %13810 = vmatprep.subr.bf16.mxu1 %v13809_v19  ;;  %v26318_v21 = vld [vmem:[#allocation12_spill] sm:$0xff]  ;;  %v26328_v38 = vld [vmem:[#allocation15_spill] sm:$0xff] }
 0x139   :  { %13770 = vmatprep.subr.bf16.mxu0 %v17812_v60  ;;  %v13811_v6 = vpack.c.bf16 %v2265_v40, %v2258_v56  ;;  %v26315_v55 = vand.u32 4294901760, %v26314_v31  ;;  %v26316_v63 = vand.u32 4294901760, %v17591_v37  ;;  %v13813_v49 = vpack.c.bf16 %v2391_v39, %v2384_v33  ;;  %v26326_v56 = vld [vmem:[#allocation14_spill] sm:$0xff] }
 0x13a   :  { %v17827_v46 = vpack.c.bf16 %v26311_v3, %v26310_v52  ;;  %26313 = vst [vmem:[#allocation30_spill] sm:$0xff] %v17829_v35  ;;  %v2272_v12 = vand.u32 4294901760, %v2271_v43  ;;  %v2279_v32 = vand.u32 4294901760, %v2278_v15  ;;  %v26319_v9 = vand.u32 4294901760, %v26318_v21  ;;  %v26336_v39 = vld [vmem:[#allocation6_spill] sm:$0xff]  ;;  %v26338_v3 = vld [vmem:[#allocation19_spill] sm:$0xff] }
 0x13b   :  { %v17836_v18 = vpack.c.bf16 %v26316_v63, %v26315_v55  ;;  %v26321_v11 = vand.u32 4294901760, %v26320_v27  ;;  %13812 = vmatpush3.bf16.msra.mxu1 %v13811_v6  ;;  %v26323_v37 = vand.u32 4294901760, %v17640_v59  ;;  %v26324_v16 = vand.u32 4294901760, %v17645_v48  ;;  %v26331_v48 = vld [vmem:[#allocation16_spill] sm:$0xff]  ;;  %v26345_v27 = vld [vmem:[#allocation26_spill] sm:$0xff] }
 0x13c   :  { %26312 = vst [vmem:[#allocation10_spill] sm:$0xff] %v17827_v46  ;;  %13772 = vmatpush3.bf16.msra.mxu0 %v17827_v46  ;;  %v13815_v28 = vpack.c.bf16 %v2279_v32, %v2272_v12  ;;  %v17853_v17 = vsub.f32 %v64_v50, %v17829_v35  ;;  %13814 = vmatprep.subr.bf16.mxu1 %v13813_v49  ;;  %v26327_v40 = vand.u32 4294901760, %v26326_v56  ;;  %v26329_v43 = vand.u32 4294901760, %v26328_v38  ;;  %v26333_v50 = vld [vmem:[#allocation17_spill] sm:$0xff]  ;;  %v26340_v55 = vld [vmem:[#allocation8_spill] sm:$0xff] }
 0x13d   :  { %26317 = vst [vmem:[#allocation31_spill] sm:$0xff] %v17836_v18  ;;  %v17843_v53 = vpack.c.bf16 %v26321_v11, %v26319_v9  ;;  %13774 = vmatprep.subr.bf16.mxu0 %v17836_v18  ;;  %v17850_v47 = vpack.c.bf16 %v26324_v16, %v26323_v37  ;;  %v26332_v15 = vand.u32 4294901760, %v26331_v48  ;;  %v26334_v19 = vand.u32 4294901760, %v26333_v50  ;;  %v26342_v32 = vld [vmem:[#allocation5_spill] sm:$0xff]  ;;  %v26344_v9 = vld [vmem:[#allocation7_spill] sm:$0xff]  ;;  %v26347_v16 = vld [vmem:[#allocation28_spill] sm:$0xff] }
 0x13e   :  { %v17860_v54 = vpack.c.bf16 %v26329_v43, %v26327_v40  ;;  %v25320_v59 = vand.u32 4294901760, %v17853_v17  ;;  %v26337_v52 = vand.u32 4294901760, %v26336_v39  ;;  %v26339_v6 = vand.u32 4294901760, %v26338_v3  ;;  %v26343_v49 = vld [vmem:[#allocation25_spill] sm:$0xff]  ;;  %v26346_v37 = vld [vmem:[#allocation27_spill] sm:$0xff]  ;;  %v26350_v48 = vld [vmem:[#allocation38_spill] sm:$0xff] }
 0x13f   :  { %26322 = vst [vmem:[#allocation32_spill] sm:$0xff] %v17843_v53  ;;  %26325 = vst [vmem:[#allocation33_spill] sm:$0xff] %v17850_v47  ;;  %13816 = vmatpush3.bf16.msra.mxu1 %v13815_v28  ;;  %v17869_v33 = vpack.c.bf16 %v26334_v19, %v26332_v15  ;;  %v26341_v63 = vand.u32 4294901760, %v26340_v55  ;;  %v13817_v21 = vpack.c.bf16 %v26343_v49, %v26342_v32  ;;  %v26348_v40 = vld [vmem:[#allocation29_spill] sm:$0xff]  ;;  %v26351_v15 = vld [vmem:[#allocation39_spill] sm:$0xff] }
 0x140   :  { %13776 = vmatpush3.bf16.msra.mxu0 %v17843_v53  ;;  %26330 = vst [vmem:[#allocation34_spill] sm:$0xff] %v17860_v54  ;;  %13850 = vmatprep.subr.bf16.mxu1 %v17680_v58  ;;  %v17877_v31 = vpack.c.bf16 %v26339_v6, %v26337_v52  ;;  %v2162_v12 = vsub.f32 %v17853_v17, %v25320_v59  ;;  %v26349_v38 = vld [vmem:[#allocation37_spill] sm:$0xff]  ;;  %v26352_v19 = vld [vmem:[#allocation40_spill] sm:$0xff]  ;;  %v26354_v3 = vld [vmem:[#allocation42_spill] sm:$0xff] }
 0x141   :  { %13778 = vmatprep.subr.bf16.mxu0 %v17850_v47  ;;  %26335 = vst [vmem:[#allocation35_spill] sm:$0xff] %v17869_v33  ;;  %v13819_v11 = vpack.c.bf16 %v26345_v27, %v26344_v9  ;;  %v13821_v56 = vpack.c.bf16 %v26347_v16, %v26346_v37  ;;  %v13823_v43 = vpack.c.bf16 %v26349_v38, %v26348_v40  ;;  %v26353_v39 = vld [vmem:[#allocation41_spill] sm:$0xff] }
 0x142   :  { %2396 = vmatmul.mubr.f32.vlgmr.msra.gmra.mrb[12].mxu1 %v17829_v35  ;;  %v2163_v28 = vand.u32 4294901760, %v2162_v12  ;;  %v13825_v50 = vpack.c.bf16 %v26351_v15, %v26350_v48  ;;  %v13827_v52 = vpack.c.bf16 %v26353_v39, %v26352_v19  ;;  %v26355_v6 = vld [vmem:[#allocation9_spill] sm:$0xff]  ;;  %v13833_v12 = vpack.c.bf16 %v17626_v51, %v17618_v24 }
 0x143   :  { %13852 = vmatpush3.bf16.msra.mxu1 %v17720_v8  ;;  %2638 = vmatprep.mubr.f32.mxu1 %v26341_v63  ;;  %v13831_v63 = vpack.c.bf16 %v17613_v44, %v17604_v13  ;;  %v13841_v59 = vpack.c.bf16 %v17714_v41, %v17709_v25 }
 0x144   :  { %13780 = vmatpush3.bf16.msra.mxu0 %v17860_v54  ;;  %13854 = vmatprep.subr.bf16.mxu1 %v17727_v0 }
 0x145   :  { %13782 = vmatprep.subr.bf16.mxu0 %v17869_v33 }
 0x147   :  { %13856 = vmatpush3.bf16.msra.mxu1 %v17750_v7 }
 0x148   :  { %13784 = vmatpush3.bf16.msra.mxu0 %v17877_v31  ;;  %13858 = vmatprep.subr.bf16.mxu1 %v17764_v62 }
 0x149   :  { %13818 = vmatprep.subr.bf16.mxu0 %v13817_v21 }
 0x14b   :  { %2164 = vmatmul.mubr.f32.vlgmr.msra.gmra.mrb[12].mxu0 %v2163_v28  ;;  %13860 = vmatpush3.bf16.msra.mxu1 %v17776_v1  ;;  %v17918_v28 = vld [vmem:[%s25149_s5 + $0x360] sm:$0xff] }
 0x14c   :  { %13820 = vmatpush3.bf16.msra.mxu0 %v13819_v11  ;;  %2531 = vmatprep.mubr.f32.mxu0 %v26340_v55  ;;  %v13829_v55 = vpack.c.bf16 %v26355_v6, %v26354_v3  ;;  %26356 = vst [vmem:[#allocation36_spill] sm:$0xff] %v17918_v28 }
 0x14d   :  { %13822 = vmatprep.subr.bf16.mxu0 %v13821_v56  ;;  %13862 = vmatprep.subr.bf16.mxu1 %v17783_v42  ;;  %v17923_v56 = vld [vmem:[%s25149_s5 + $0x368] sm:$0xff] }
 0x14e   :  { %26357 = vst [vmem:[#allocation43_spill] sm:$0xff] %v17923_v56 }
 0x14f   :  { %13864 = vmatpush3.bf16.msra.mxu1 %v17806_v30 }
 0x150   :  { %13824 = vmatpush3.bf16.msra.mxu0 %v13823_v43  ;;  %13866 = vmatprep.subr.bf16.mxu1 %v17812_v60 }
 0x151   :  { %13826 = vmatprep.subr.bf16.mxu0 %v13825_v50  ;;  %v13835_v50 = vpack.c.bf16 %v17660_v29, %v17655_v57 }
 0x153   :  { %13868 = vmatpush3.bf16.msra.mxu1 %v17827_v46  ;;  %v10916_v21 = vpop.f32.mrb[0].mxu1 }
 0x154   :  { %13828 = vmatpush3.bf16.msra.mxu0 %v13827_v52  ;;  %13870 = vmatprep.subr.bf16.mxu1 %v17836_v18  ;;  %v10917_v11 = vpop.f32.mrb[1].mxu1  ;;  %v51_v52 = vld [vmem:[%s25145_s1 + $0x38] sm:$0xff]  ;;  %v13839_v18 = vpack.c.bf16 %v17193_v23, %v17188_v20  ;;  %v26362_v20 = vand.u32 4294901760, %v17918_v28 }
 0x155   :  { %13830 = vmatprep.subr.bf16.mxu0 %v13829_v55  ;;  %v10918_v43 = vadd.f32 %v10917_v11, %v10916_v21  ;;  %v17933_v55 = vld [vmem:[%s25149_s5 + $0x3f0] sm:$0xff]  ;;  %v17951_v11 = vld [vmem:[%s25149_s5 + $0x378] sm:$0xff] }
 0x156   :  { %26358 = vst [vmem:[#allocation12_spill] sm:$0xff] %v17933_v55  ;;  %v17946_v21 = vld [vmem:[%s25149_s5 + $0x370] sm:$0xff]  ;;  %26361 = vst [vmem:[#allocation15_spill] sm:$0xff] %v17951_v11  ;;  %v17975_v23 = vsub.f32 %v17918_v28, %v26362_v20  ;;  %v26365_v20 = vand.u32 4294901760, %v17933_v55  ;;  %v26368_v41 = vand.u32 4294901760, %v17951_v11 }
 0x157   :  { %13872 = vmatpush3.bf16.msra.mxu1 %v17843_v53  ;;  %26360 = vst [vmem:[#allocation14_spill] sm:$0xff] %v17946_v21  ;;  %v17988_v53 = vld [vmem:[%s25149_s5 + $0x388] sm:$0xff] }
 0x158   :  { %13832 = vmatpush3.bf16.msra.mxu0 %v13831_v63  ;;  %v13837_v63 = vpack.c.bf16 %v17674_v22, %v17669_v2  ;;  %13874 = vmatprep.subr.bf16.mxu1 %v17850_v47  ;;  %v332_v22 = vld [vmem:[%s25146_s2] sm:$0xff]  ;;  %v17995_v28 = vsub.f32 %v17933_v55, %v26365_v20  ;;  %v18012_v20 = vsub.f32 %v17951_v11, %v26368_v41  ;;  %v18028_v41 = vld [vmem:[%s25149_s5 + $0x308] sm:$0xff]  ;;  %v26386_v11 = vand.u32 4294901760, %v26347_v16 }
 0x159   :  { %13834 = vmatprep.subr.bf16.mxu0 %v13833_v12  ;;  %v67_v12 = vmul.f32 %v51_v52, %v26145_v36  ;;  %v26363_v52 = vand.u32 4294901760, %v17923_v56  ;;  %v26467_v55 = vld [vmem:[#allocation21_spill] sm:$0xff] }
 0x15b   :  { %13876 = vmatpush3.bf16.msra.mxu1 %v17860_v54  ;;  %v10881_v5 = vpop.f32.mrb[0].mxu0  ;;  %v17990_v35 = vand.u32 4294901760, %v67_v12  ;;  %v26367_v54 = vand.u32 4294901760, %v17946_v21 }
 0x15c   :  { %13836 = vmatpush3.bf16.msra.mxu0 %v13835_v50  ;;  %13878 = vmatprep.subr.bf16.mxu1 %v17869_v33  ;;  %v17970_v50 = vld [vmem:[%s25149_s5 + $0x380] sm:$0xff]  ;;  %v10882_v46 = vpop.f32.mrb[1].mxu0  ;;  %v13843_v33 = vpack.c.bf16 %v17227_v26, %v17222_v10  ;;  %v18046_v10 = vld [vmem:[%s25149_s5 + $0x390] sm:$0xff] }
 0x15d   :  { %13838 = vmatprep.subr.bf16.mxu0 %v13837_v63  ;;  %v17980_v63 = vsub.f32 %v17923_v56, %v26363_v52  ;;  %26364 = vst [vmem:[#allocation16_spill] sm:$0xff] %v17990_v35  ;;  %v26366_v52 = vand.u32 4294901760, %v17938_v61  ;;  %v10883_v36 = vadd.f32 %v10882_v46, %v10881_v5  ;;  %v18007_v47 = vsub.f32 %v17946_v21, %v26367_v54  ;;  %v18023_v26 = vld [vmem:[%s25149_s5 + $0x300] sm:$0xff] }
 0x15e   :  { %v13845_v5 = vpack.c.bf16 %v17246_v14, %v17241_v45  ;;  %v25336_v46 = vand.u32 4294901760, %v17970_v50  ;;  %v25335_v54 = vand.u32 4294901760, %v17975_v23  ;;  %v18035_v14 = vsub.f32 %v67_v12, %v17990_v35 }
 0x15f   :  { %v18000_v56 = vsub.f32 %v17938_v61, %v26366_v52  ;;  %13880 = vmatpush3.bf16.msra.mxu1 %v17877_v31  ;;  %v25334_v45 = vand.u32 4294901760, %v17980_v63 }
 0x160   :  { %13840 = vmatpush3.bf16.msra.mxu0 %v13839_v18  ;;  %v442_v18 = vadd.f32 %v10883_v36, %v332_v22  ;;  %13914 = vmatprep.subr.bf16.mxu1 %v17680_v58  ;;  %v13847_v36 = vpack.c.bf16 %v17269_v4, %v17264_v34  ;;  %26369 = vst [vmem:[#allocation17_spill] sm:$0xff] %v18035_v14  ;;  %v25337_v22 = vand.u32 4294901760, %v17995_v28  ;;  %v26381_v58 = vand.u32 4294901760, %v18012_v20 }
 0x161   :  { %13842 = vmatprep.subr.bf16.mxu0 %v13841_v59  ;;  %v26370_v59 = vand.u32 4294901760, %v17853_v17  ;;  %v18054_v12 = vpack.c.bf16 %v25334_v45, %v25335_v54  ;;  %v18065_v4 = vsub.f32 %v17970_v50, %v25336_v46  ;;  %v26378_v45 = vand.u32 4294901760, %v18000_v56 }
 0x162   :  { %v18041_v52 = vadd.f32 %v10918_v43, %v442_v18  ;;  %v26373_v43 = vand.u32 4294901760, %v26342_v32  ;;  %v26374_v18 = vand.u32 4294901760, %v26343_v49  ;;  %v18077_v32 = vld [vmem:[%s25149_s5 + $0x310] sm:$0xff]  ;;  %v18082_v49 = vld [vmem:[%s25149_s5 + $0x318] sm:$0xff]  ;;  %v26380_v46 = vand.u32 4294901760, %v18007_v47 }
 0x163   :  { %2642 = vmatmul.mubr.f32.vlgmr.msra.gmra.mrb[14].mxu1 %v26370_v59  ;;  %26371 = vst [vmem:[#allocation6_spill] sm:$0xff] %v18054_v12  ;;  %26375 = vst [vmem:[#allocation19_spill] sm:$0xff] %v18065_v4  ;;  %v18094_v54 = vpack.c.bf16 %v26378_v45, %v25337_v22  ;;  %v26383_v22 = vand.u32 4294901760, %v26344_v9  ;;  %v26385_v12 = vand.u32 4294901760, %v26346_v37  ;;  %v26387_v9 = vand.u32 4294901760, %v18023_v26 }
 0x164   :  { %13844 = vmatpush3.bf16.msra.mxu0 %v13843_v33  ;;  %13916 = vmatpush3.bf16.msra.mxu1 %v17720_v8  ;;  %v26372_v33 = vld [vmem:[#allocation24_spill] sm:$0xff]  ;;  %v13881_v59 = vpack.c.bf16 %v26374_v18, %v26373_v43  ;;  %v18072_v8 = vld [vmem:[%s25149_s5 + $0x398] sm:$0xff]  ;;  %v26376_v43 = vand.u32 4294901760, %v17988_v53  ;;  %v18100_v34 = vpack.c.bf16 %v26381_v58, %v26380_v46  ;;  %v26384_v46 = vand.u32 4294901760, %v26345_v27 }
 0x165   :  { %2912 = vmatprep.mubr.f32.mxu1 %v26372_v33  ;;  %13846 = vmatprep.subr.bf16.mxu0 %v13845_v5  ;;  %26379 = vst [vmem:[#allocation5_spill] sm:$0xff] %v18094_v54  ;;  %v25340_v5 = vand.u32 4294901760, %v18072_v8  ;;  %v13885_v45 = vpack.c.bf16 %v26386_v11, %v26385_v12  ;;  %v18130_v27 = vsub.f32 %v18023_v26, %v26387_v9  ;;  %v18144_v11 = vld [vmem:[%s25149_s5 + $0x320] sm:$0xff]  ;;  %v26391_v12 = vand.u32 4294901760, %v26348_v40 }
 0x166   :  { %13918 = vmatprep.subr.bf16.mxu1 %v17727_v0  ;;  %v18088_v18 = vsub.f32 %v17988_v53, %v26376_v43  ;;  %26382 = vst [vmem:[#allocation25_spill] sm:$0xff] %v18100_v34  ;;  %v18106_v0 = vld [vmem:[%s25149_s5 + $0x3a0] sm:$0xff]  ;;  %v18111_v43 = vld [vmem:[%s25149_s5 + $0x3a8] sm:$0xff]  ;;  %v13883_v58 = vpack.c.bf16 %v26384_v46, %v26383_v22  ;;  %v25339_v34 = vand.u32 4294901760, %v18077_v32  ;;  %v26389_v22 = vand.u32 4294901760, %v18028_v41 }
 0x167   :  { %26388 = vst [vmem:[#allocation7_spill] sm:$0xff] %v18130_v27  ;;  %v26395_v37 = vand.u32 4294901760, %v18046_v10 }
 0x168   :  { %26377 = vst [vmem:[#allocation8_spill] sm:$0xff] %v18088_v18  ;;  %13848 = vmatpush3.bf16.msra.mxu0 %v13847_v36  ;;  %13920 = vmatpush3.bf16.msra.mxu1 %v17750_v7  ;;  %v18135_v46 = vsub.f32 %v18028_v41, %v26389_v22  ;;  %v26394_v22 = vand.u32 4294901760, %v26351_v15  ;;  %v26397_v36 = vand.u32 4294901760, %v18035_v14  ;;  %v18174_v40 = vsub.f32 %v18077_v32, %v25339_v34  ;;  %v18184_v15 = vld [vmem:[%s25149_s5 + $0x328] sm:$0xff] }
 0x169   :  { %13882 = vmatprep.subr.bf16.mxu0 %v13881_v59  ;;  %13922 = vmatprep.subr.bf16.mxu1 %v17764_v62  ;;  %v26392_v59 = vand.u32 4294901760, %v26349_v38  ;;  %v26393_v62 = vand.u32 4294901760, %v26350_v48  ;;  %v18158_v16 = vsub.f32 %v18046_v10, %v26395_v37  ;;  %v26400_v38 = vand.u32 4294901760, %v18082_v49  ;;  %v18224_v37 = vld [vmem:[%s25149_s5 + $0x3b0] sm:$0xff] }
 0x16a   :  { %26390 = vst [vmem:[#allocation26_spill] sm:$0xff] %v18135_v46  ;;  %v18163_v54 = vsub.f32 %v18035_v14, %v26397_v36  ;;  %26399 = vst [vmem:[#allocation29_spill] sm:$0xff] %v18174_v40  ;;  %v25341_v36 = vand.u32 4294901760, %v18130_v27  ;;  %v26408_v34 = vand.u32 4294901760, %v18111_v43 }
 0x16b   :  { %2534 = vmatmul.mubr.f32.vlgmr.msra.gmra.mrb[14].mxu0 %v17853_v17  ;;  %v13887_v9 = vpack.c.bf16 %v26392_v59, %v26391_v12  ;;  %v13889_v7 = vpack.c.bf16 %v26394_v22, %v26393_v62  ;;  %26396 = vst [vmem:[#allocation27_spill] sm:$0xff] %v18158_v16  ;;  %v18169_v17 = vsub.f32 %v18072_v8, %v25340_v5  ;;  %v26403_v59 = vand.u32 4294901760, %v26352_v19 }
 0x16c   :  { %13884 = vmatpush3.bf16.msra.mxu0 %v13883_v58  ;;  %2808 = vmatprep.mubr.f32.mxu0 %v26372_v33  ;;  %v18179_v48 = vsub.f32 %v18082_v49, %v26400_v38  ;;  %v26402_v33 = vand.u32 4294901760, %v18065_v4  ;;  %v26404_v62 = vand.u32 4294901760, %v26353_v39  ;;  %v26406_v38 = vand.u32 4294901760, %v18106_v0 }
 0x16d   :  { %26398 = vst [vmem:[#allocation28_spill] sm:$0xff] %v18169_v17  ;;  %13924 = vmatpush3.bf16.msra.mxu1 %v17776_v1  ;;  %13886 = vmatprep.subr.bf16.mxu0 %v13885_v45  ;;  %v26405_v1 = vand.u32 4294901760, %v18088_v18  ;;  %v18209_v5 = vsub.f32 %v18111_v43, %v26408_v34  ;;  %v26411_v19 = vand.u32 4294901760, %v26355_v6  ;;  %v25342_v12 = vand.u32 4294901760, %v18158_v16 }
 0x16e   :  { %26401 = vst [vmem:[#allocation37_spill] sm:$0xff] %v18179_v48  ;;  %v3147_v58 = vsub.f32 %v18065_v4, %v26402_v33  ;;  %13926 = vmatprep.subr.bf16.mxu1 %v17783_v42  ;;  %v13891_v22 = vpack.c.bf16 %v26404_v62, %v26403_v59  ;;  %v18204_v33 = vsub.f32 %v18106_v0, %v26406_v38  ;;  %v26410_v42 = vand.u32 4294901760, %v26354_v3 }
 0x16f   :  { %v3154_v45 = vsub.f32 %v18088_v18, %v26405_v1  ;;  %26409 = vst [vmem:[#allocation39_spill] sm:$0xff] %v18209_v5  ;;  %v26412_v59 = vand.u32 4294901760, %v17604_v13  ;;  %v26413_v62 = vand.u32 4294901760, %v17613_v44  ;;  %v25343_v38 = vand.u32 4294901760, %v18184_v15 }
 0x170   :  { %26407 = vst [vmem:[#allocation38_spill] sm:$0xff] %v18204_v33  ;;  %v13893_v39 = vpack.c.bf16 %v26411_v19, %v26410_v42  ;;  %13888 = vmatpush3.bf16.msra.mxu0 %v13887_v9  ;;  %v26414_v3 = vand.u32 4294901760, %v17618_v24  ;;  %v26415_v6 = vand.u32 4294901760, %v17626_v51  ;;  %v25344_v13 = vand.u32 4294901760, %v18169_v17  ;;  %v18236_v19 = vld [vmem:[%s25149_s5 + $0x3b8] sm:$0xff] }
 0x171   :  { %v13895_v1 = vpack.c.bf16 %v26413_v62, %v26412_v59  ;;  %13928 = vmatpush3.bf16.msra.mxu1 %v17806_v30  ;;  %13890 = vmatprep.subr.bf16.mxu0 %v13889_v7  ;;  %v3148_v9 = vand.u32 4294901760, %v3147_v58  ;;  %v3035_v24 = vsub.f32 %v18130_v27, %v25341_v36  ;;  %v26416_v51 = vand.u32 4294901760, %v18135_v46  ;;  %v26423_v58 = vld [vmem:[#allocation44_spill] sm:$0xff] }
 0x172   :  { %v13897_v34 = vpack.c.bf16 %v26415_v6, %v26414_v3  ;;  %v26417_v62 = vand.u32 4294901760, %v18144_v11  ;;  %13930 = vmatprep.subr.bf16.mxu1 %v17812_v60  ;;  %v3155_v6 = vand.u32 4294901760, %v3154_v45  ;;  %v26419_v36 = vand.u32 4294901760, %v17655_v57 }
 0x173   :  { %v3042_v59 = vsub.f32 %v18135_v46, %v26416_v51  ;;  %v26420_v42 = vand.u32 4294901760, %v17660_v29  ;;  %v3161_v51 = vsub.f32 %v18158_v16, %v25342_v12  ;;  %v18264_v60 = vsub.f32 %v18184_v15, %v25343_v38 }
 0x174   :  { %v18248_v3 = vsub.f32 %v18144_v11, %v26417_v62  ;;  %13892 = vmatpush3.bf16.msra.mxu0 %v13891_v22  ;;  %v26422_v62 = vand.u32 4294901760, %v17669_v2  ;;  %v26424_v7 = vand.u32 4294901760, %v26423_v58  ;;  %v3168_v29 = vsub.f32 %v18169_v17, %v25344_v13  ;;  %v18283_v22 = vld [vmem:[%s25149_s5 + $0x330] sm:$0xff]  ;;  %v26429_v58 = vld [vmem:[#allocation11_spill] sm:$0xff] }
 0x175   :  { %v13899_v44 = vpack.c.bf16 %v26420_v42, %v26419_v36  ;;  %26421 = vst [vmem:[#allocation41_spill] sm:$0xff] %v18264_v60  ;;  %v26425_v36 = vand.u32 4294901760, %v18174_v40  ;;  %v26426_v12 = vand.u32 4294901760, %v18179_v48  ;;  %v26427_v2 = vld [vmem:[#allocation10_spill] sm:$0xff]  ;;  %13894 = vmatprep.subr.bf16.mxu0 %v13893_v39  ;;  %v3036_v45 = vand.u32 4294901760, %v3035_v24 }
 0x176   :  { %26418 = vst [vmem:[#allocation40_spill] sm:$0xff] %v18248_v3  ;;  %v13901_v57 = vpack.c.bf16 %v26424_v7, %v26422_v62  ;;  %13932 = vmatpush3.bf16.msra.mxu1 %v26427_v2  ;;  %v26428_v7 = vand.u32 4294901760, %v17709_v25  ;;  %v26430_v62 = vand.u32 4294901760, %v26429_v58  ;;  %v26432_v17 = vand.u32 4294901760, %v18204_v33  ;;  %v18334_v58 = vld [vmem:[%s25149_s5 + $0x340] sm:$0xff] }
 0x177   :  { %v3049_v42 = vsub.f32 %v18174_v40, %v26425_v36  ;;  %v3056_v38 = vsub.f32 %v18179_v48, %v26426_v12  ;;  %v3043_v36 = vand.u32 4294901760, %v3042_v59  ;;  %v10986_v40 = vpop.f32.mrb[2].mxu1  ;;  %v26431_v12 = vld [vmem:[#allocation31_spill] sm:$0xff]  ;;  %v18294_v48 = vpack.c.bf16 %v3155_v6, %v3148_v9  ;;  %v18315_v9 = vld [vmem:[%s25149_s5 + $0x3c0] sm:$0xff] }
 0x178   :  { %v18290_v13 = vpack.c.bf16 %v26430_v62, %v26428_v7  ;;  %13934 = vmatprep.subr.bf16.mxu1 %v26431_v12  ;;  %v3175_v2 = vsub.f32 %v18204_v33, %v26432_v17  ;;  %v26433_v39 = vand.u32 4294901760, %v18209_v5  ;;  %v26434_v7 = vand.u32 4294901760, %v18224_v37  ;;  %v18310_v59 = vld [vmem:[%s25149_s5 + $0x338] sm:$0xff]  ;;  %v10987_v17 = vpop.f32.mrb[3].mxu1  ;;  %13896 = vmatpush3.bf16.msra.mxu0 %v13895_v1 }
 0x179   :  { %v3162_v6 = vand.u32 4294901760, %v3161_v51  ;;  %v26436_v62 = vand.u32 4294901760, %v18236_v19  ;;  %v18329_v30 = vadd.f32 %v10987_v17, %v10986_v40  ;;  %v3050_v33 = vand.u32 4294901760, %v3049_v42  ;;  %13898 = vmatprep.subr.bf16.mxu0 %v13897_v34  ;;  %v18362_v17 = vld [vmem:[%s25149_s5 + $0x3d8] sm:$0xff] }
 0x17a   :  { %v3182_v25 = vsub.f32 %v18209_v5, %v26433_v39  ;;  %v18305_v24 = vsub.f32 %v18224_v37, %v26434_v7  ;;  %v18327_v7 = vld [vmem:[%s25149_s5 + $0x3c8] sm:$0xff]  ;;  %v3169_v5 = vand.u32 4294901760, %v3168_v29  ;;  %v3057_v51 = vand.u32 4294901760, %v3056_v38 }
 0x17b   :  { %v18321_v12 = vsub.f32 %v18236_v19, %v26436_v62  ;;  %v26438_v62 = vld [vmem:[#allocation32_spill] sm:$0xff]  ;;  %v18337_v39 = vpack.c.bf16 %v3043_v36, %v3036_v45  ;;  %v26439_v16 = vand.u32 4294901760, %v18248_v3  ;;  %v18349_v38 = vld [vmem:[%s25149_s5 + $0x348] sm:$0xff]  ;;  %v3176_v42 = vand.u32 4294901760, %v3175_v2  ;;  %v26446_v2 = vld [vmem:[#allocation34_spill] sm:$0xff] }
 0x17c   :  { %26435 = vst [vmem:[#allocation42_spill] sm:$0xff] %v18305_v24  ;;  %13936 = vmatpush3.bf16.msra.mxu1 %v26438_v62  ;;  %v26440_v29 = vld [vmem:[#allocation33_spill] sm:$0xff]  ;;  %v3183_v34 = vand.u32 4294901760, %v3182_v25  ;;  %v26441_v62 = vand.u32 4294901760, %v18264_v60  ;;  %v26442_v25 = vand.u32 4294901760, %v18283_v22  ;;  %13900 = vmatpush3.bf16.msra.mxu0 %v13899_v44  ;;  %v13981_v1 = vpack.c.bf16 %v3169_v5, %v3162_v6  ;;  %v18406_v44 = vld [vmem:[%s25149_s5 + $0x358] sm:$0xff] }
 0x17d   :  { %26437 = vst [vmem:[#allocation9_spill] sm:$0xff] %v18321_v12  ;;  %v18342_v46 = vsub.f32 %v18248_v3, %v26439_v16  ;;  %13938 = vmatprep.subr.bf16.mxu1 %v26440_v29  ;;  %v18357_v16 = vld [vmem:[%s25149_s5 + $0x3d0] sm:$0xff]  ;;  %v18376_v40 = vpack.c.bf16 %v3057_v51, %v3050_v33  ;;  %v26444_v3 = vand.u32 4294901760, %v17970_v50  ;;  %v26445_v27 = vand.u32 4294901760, %v17988_v53  ;;  %13902 = vmatprep.subr.bf16.mxu0 %v13901_v57  ;;  %v26451_v57 = vld [vmem:[#allocation35_spill] sm:$0xff] }
 0x17e   :  { %v18367_v29 = vsub.f32 %v18264_v60, %v26441_v62  ;;  %v18373_v36 = vsub.f32 %v18283_v22, %v26442_v25  ;;  %v26447_v25 = vand.u32 4294901760, %v18310_v59  ;;  %v26449_v5 = vand.u32 4294901760, %v18315_v9 }
 0x17f   :  { %v18382_v18 = vpack.c.bf16 %v26445_v27, %v26444_v3  ;;  %v18401_v27 = vld [vmem:[%s25149_s5 + $0x350] sm:$0xff]  ;;  %v10951_v3 = vpop.f32.mrb[2].mxu0  ;;  %v18409_v6 = vpack.c.bf16 %v3183_v34, %v3176_v42  ;;  %v3064_v51 = vand.u32 4294901760, %v18342_v46  ;;  %v26455_v45 = vand.u32 4294901760, %v18321_v12 }
 0x180   :  { %26443 = vst [vmem:[#allocation24_spill] sm:$0xff] %v18373_v36  ;;  %13940 = vmatpush3.bf16.msra.mxu1 %v26446_v2  ;;  %v18389_v60 = vsub.f32 %v18310_v59, %v26447_v25  ;;  %v18394_v33 = vsub.f32 %v18315_v9, %v26449_v5  ;;  %v26452_v2 = vand.u32 4294901760, %v18305_v24  ;;  %v26453_v5 = vand.u32 4294901760, %v18327_v7  ;;  %v10952_v50 = vpop.f32.mrb[3].mxu0 }
 0x181   :  { %13942 = vmatprep.subr.bf16.mxu1 %v26451_v57  ;;  %v3071_v62 = vand.u32 4294901760, %v18367_v29  ;;  %v3196_v57 = vsub.f32 %v18321_v12, %v26455_v45  ;;  %v26456_v46 = vand.u32 4294901760, %v18334_v58  ;;  %v18438_v29 = vld [vmem:[%s25149_s5 + $0x3e8] sm:$0xff]  ;;  %v26459_v45 = vand.u32 4294901760, %v18349_v38 }
 0x182   :  { %26448 = vst [vmem:[#allocation44_spill] sm:$0xff] %v18389_v60  ;;  %26450 = vst [vmem:[#allocation10_spill] sm:$0xff] %v18394_v33  ;;  %v3189_v25 = vsub.f32 %v18305_v24, %v26452_v2  ;;  %v18418_v53 = vsub.f32 %v18327_v7, %v26453_v5  ;;  %v18433_v2 = vld [vmem:[%s25149_s5 + $0x3e0] sm:$0xff]  ;;  %v10953_v5 = vadd.f32 %v10952_v50, %v10951_v3  ;;  %v26461_v50 = vand.u32 4294901760, %v18357_v16 }
 0x183   :  { %v18428_v34 = vsub.f32 %v18334_v58, %v26456_v46  ;;  %v26458_v24 = vld [vmem:[#allocation20_spill] sm:$0xff]  ;;  %v18444_v42 = vsub.f32 %v18349_v38, %v26459_v45  ;;  %v26463_v3 = vand.u32 4294901760, %v18362_v17  ;;  %v3197_v46 = vand.u32 4294901760, %v3196_v57 }
 0x184   :  { %26454 = vst [vmem:[#allocation11_spill] sm:$0xff] %v18418_v53  ;;  %13904 = vmatpush3.bf16.msra.mxu0 %v26458_v24  ;;  %13944 = vmatpush3.bf16.msra.mxu1 %v17877_v31  ;;  %v18455_v24 = vsub.f32 %v18357_v16, %v26461_v50  ;;  %v812_v12 = vadd.f32 %v10953_v5, %v18041_v52  ;;  %v25380_v31 = vand.u32 4294901760, %v18418_v53  ;;  %v3190_v4 = vand.u32 4294901760, %v3189_v25 }
 0x185   :  { %26457 = vst [vmem:[#allocation31_spill] sm:$0xff] %v18428_v34  ;;  %26460 = vst [vmem:[#allocation32_spill] sm:$0xff] %v18444_v42  ;;  %13906 = vmatprep.subr.bf16.mxu0 %v18290_v13  ;;  %v18460_v45 = vsub.f32 %v18362_v17, %v26463_v3  ;;  %13978 = vmatprep.subr.bf16.mxu1 %v18294_v48  ;;  %v26465_v50 = vand.u32 4294901760, %v18373_v36  ;;  %v26466_v3 = vld [vmem:[#allocation30_spill] sm:$0xff]  ;;  %v26468_v48 = vand.u32 4294901760, %v18401_v27  ;;  %v26469_v25 = vand.u32 4294901760, %v18406_v44 }
 0x186   :  { %26462 = vst [vmem:[#allocation33_spill] sm:$0xff] %v18455_v24  ;;  %v26472_v61 = vand.u32 4294901760, %v18394_v33  ;;  %v26473_v13 = vld [vmem:[#allocation22_spill] sm:$0xff] }
 0x187   :  { %26464 = vst [vmem:[#allocation34_spill] sm:$0xff] %v18460_v45  ;;  %v3077_v21 = vsub.f32 %v18373_v36, %v26465_v50  ;;  %2914 = vmatmul.mubr.f32.vlgmr.msra.gmra.mrb[16].mxu1 %v26466_v3  ;;  %v18477_v5 = vsub.f32 %v18401_v27, %v26468_v48  ;;  %v18482_v57 = vsub.f32 %v18406_v44, %v26469_v25  ;;  %v26476_v25 = vand.u32 4294901760, %v18023_v26 }
 0x188   :  { %13908 = vmatpush3.bf16.msra.mxu0 %v26467_v55  ;;  %v18485_v50 = vadd.f32 %v18329_v30, %v812_v12  ;;  %13980 = vmatpush3.bf16.msra.mxu1 %v18337_v39  ;;  %v26471_v55 = vand.u32 4294901760, %v18389_v60  ;;  %v3203_v48 = vsub.f32 %v18394_v33, %v26472_v61  ;;  %v3019_v30 = vand.u32 4294901760, %v18163_v54  ;;  %v26480_v33 = vld [vmem:[#allocation23_spill] sm:$0xff] }
 0x189   :  { %26470 = vst [vmem:[#allocation35_spill] sm:$0xff] %v18482_v57  ;;  %3256 = vmatprep.mubr.f32.mxu1 %v17990_v35  ;;  %13910 = vmatprep.subr.bf16.mxu0 %v26473_v13  ;;  %v3210_v12 = vsub.f32 %v18418_v53, %v25380_v31  ;;  %v26474_v39 = vand.u32 4294901760, %v18433_v2  ;;  %v26475_v61 = vand.u32 4294901760, %v18438_v29  ;;  %v13987_v54 = vpack.c.bf16 %v3071_v62, %v3064_v51 }
 0x18a   :  { %v3084_v52 = vsub.f32 %v18389_v60, %v26471_v55  ;;  %13982 = vmatprep.subr.bf16.mxu1 %v13981_v1  ;;  %v26477_v1 = vand.u32 4294901760, %v18028_v41  ;;  %v26478_v35 = vand.u32 4294901760, %v18046_v10  ;;  %v26479_v31 = vand.u32 4294901760, %v18072_v8 }
 0x18b   :  { %v18505_v55 = vsub.f32 %v18433_v2, %v26474_v39  ;;  %v18510_v14 = vsub.f32 %v18438_v29, %v26475_v61  ;;  %v13989_v39 = vpack.c.bf16 %v3197_v46, %v3190_v4  ;;  %v26481_v60 = vand.u32 4294901760, %v18428_v34 }
 0x18c   :  { %v18516_v13 = vpack.c.bf16 %v26477_v1, %v26476_v25  ;;  %v18522_v53 = vpack.c.bf16 %v26479_v31, %v26478_v35  ;;  %13912 = vmatpush3.bf16.msra.mxu0 %v26480_v33  ;;  %v26482_v26 = vand.u32 4294901760, %v18444_v42  ;;  %v25395_v25 = vand.u32 4294901760, %v18477_v5  ;;  %13984 = vmatpush3.bf16.msra.mxu1 %v18376_v40 }
 0x18d   :  { %v3091_v61 = vsub.f32 %v18428_v34, %v26481_v60  ;;  %v25394_v62 = vand.u32 4294901760, %v18482_v57  ;;  %13946 = vmatprep.subr.bf16.mxu0 %v18382_v18  ;;  %v3078_v35 = vand.u32 4294901760, %v3077_v21  ;;  %v3085_v10 = vand.u32 4294901760, %v3084_v52  ;;  %13986 = vmatprep.subr.bf16.mxu1 %v18409_v6 }
 0x18e   :  { %v3098_v41 = vsub.f32 %v18444_v42, %v26482_v26  ;;  %v26483_v4 = vand.u32 4294901760, %v18455_v24  ;;  %v26484_v60 = vand.u32 4294901760, %v18460_v45  ;;  %v3204_v51 = vand.u32 4294901760, %v3203_v48 }
 0x18f   :  { %v3211_v46 = vand.u32 4294901760, %v3210_v12  ;;  %v25388_v31 = vand.u32 4294901760, %v18505_v55  ;;  %v25387_v40 = vand.u32 4294901760, %v18510_v14  ;;  %2810 = vmatmul.mubr.f32.vlgmr.msra.gmra.mrb[16].mxu0 %v26466_v3  ;;  %v26485_v21 = vand.u32 4294901760, %v18077_v32 }
 0x190   :  { %v3217_v8 = vsub.f32 %v18455_v24, %v26483_v4  ;;  %v3224_v33 = vsub.f32 %v18460_v45, %v26484_v60  ;;  %v26486_v52 = vand.u32 4294901760, %v18082_v49  ;;  %13948 = vmatpush3.bf16.msra.mxu0 %v18516_v13  ;;  %3020 = vmatprep.mubr.f32.mxu0 %v3019_v30  ;;  %v3092_v26 = vand.u32 4294901760, %v3091_v61 }
 0x191   :  { %v3099_v4 = vand.u32 4294901760, %v3098_v41  ;;  %v3105_v6 = vsub.f32 %v18477_v5, %v25395_v25  ;;  %v3112_v48 = vsub.f32 %v18482_v57, %v25394_v62  ;;  %13988 = vmatpush3.bf16.msra.mxu1 %v13987_v54  ;;  %13950 = vmatprep.subr.bf16.mxu0 %v18522_v53  ;;  %v13991_v32 = vpack.c.bf16 %v3085_v10, %v3078_v35 }
 0x192   :  { %v18549_v1 = vpack.c.bf16 %v26486_v52, %v26485_v21  ;;  %v26487_v49 = vand.u32 4294901760, %v18106_v0  ;;  %v26488_v3 = vand.u32 4294901760, %v18111_v43  ;;  %v3218_v30 = vand.u32 4294901760, %v3217_v8  ;;  %13990 = vmatprep.subr.bf16.mxu1 %v13989_v39 }
 0x193   :  { %v3225_v61 = vand.u32 4294901760, %v3224_v33  ;;  %v13993_v41 = vpack.c.bf16 %v3211_v46, %v3204_v51  ;;  %v3231_v60 = vsub.f32 %v18505_v55, %v25388_v31  ;;  %v3238_v54 = vsub.f32 %v18510_v14, %v25387_v40  ;;  %v26544_v40 = vld [vmem:[#allocation28_spill] sm:$0xff] }
 0x194   :  { %v18563_v12 = vpack.c.bf16 %v26488_v3, %v26487_v49  ;;  %v26489_v35 = vand.u32 4294901760, %v18144_v11  ;;  %v26490_v0 = vand.u32 4294901760, %v18184_v15  ;;  %13952 = vmatpush3.bf16.msra.mxu0 %v18549_v1  ;;  %v13995_v43 = vpack.c.bf16 %v3099_v4, %v3092_v26 }
 0x195   :  { %v26492_v39 = vand.u32 4294901760, %v18224_v37  ;;  %v26493_v8 = vand.u32 4294901760, %v18236_v19  ;;  %v3106_v51 = vand.u32 4294901760, %v3105_v6  ;;  %v3113_v46 = vand.u32 4294901760, %v3112_v48  ;;  %13992 = vmatpush3.bf16.msra.mxu1 %v13991_v32  ;;  %v50_v37 = vld [vmem:[%s25145_s1 + $0x30] sm:$0xff] }
 0x196   :  { %v18575_v10 = vpack.c.bf16 %v26490_v0, %v26489_v35  ;;  %13954 = vmatprep.subr.bf16.mxu0 %v18563_v12  ;;  %v13997_v21 = vpack.c.bf16 %v3225_v61, %v3218_v30  ;;  %v26495_v11 = vand.u32 4294901760, %v17975_v23  ;;  %v26496_v52 = vand.u32 4294901760, %v17980_v63  ;;  %13994 = vmatprep.subr.bf16.mxu1 %v13993_v41  ;;  %v26503_v0 = vld [vmem:[#allocation18_spill] sm:$0xff] }
 0x197   :  { %v18582_v33 = vpack.c.bf16 %v26493_v8, %v26492_v39  ;;  %v3232_v19 = vand.u32 4294901760, %v3231_v60  ;;  %v3239_v4 = vand.u32 4294901760, %v3238_v54  ;;  %v26497_v6 = vand.u32 4294901760, %v17995_v28 }
 0x198   :  { %26491 = vst [vmem:[#allocation20_spill] sm:$0xff] %v18575_v10  ;;  %v3119_v15 = vsub.f32 %v17975_v23, %v26495_v11  ;;  %v3126_v26 = vsub.f32 %v17980_v63, %v26496_v52  ;;  %v26498_v32 = vand.u32 4294901760, %v18000_v56  ;;  %13956 = vmatpush3.bf16.msra.mxu0 %v18575_v10  ;;  %v26499_v3 = vand.u32 4294901760, %v18283_v22 }
 0x199   :  { %26494 = vst [vmem:[#allocation30_spill] sm:$0xff] %v18582_v33  ;;  %v3245_v48 = vsub.f32 %v17995_v28, %v26497_v6  ;;  %v26500_v30 = vand.u32 4294901760, %v18310_v59  ;;  %v13999_v35 = vpack.c.bf16 %v3113_v46, %v3106_v51  ;;  %v26501_v41 = vand.u32 4294901760, %v18315_v9  ;;  %13996 = vmatpush3.bf16.msra.mxu1 %v13995_v43  ;;  %13958 = vmatprep.subr.bf16.mxu0 %v18582_v33  ;;  %v11056_v6 = vpop.f32.mrb[4].mxu1 }
 0x19a   :  { %v3252_v49 = vsub.f32 %v18000_v56, %v26498_v32  ;;  %v26502_v60 = vand.u32 4294901760, %v18327_v7  ;;  %v66_v39 = vmul.f32 %v50_v37, %v26503_v0  ;;  %v3120_v8 = vand.u32 4294901760, %v3119_v15  ;;  %13998 = vmatprep.subr.bf16.mxu1 %v13997_v21  ;;  %v11057_v32 = vpop.f32.mrb[5].mxu1  ;;  %v26562_v0 = vld [vmem:[#allocation40_spill] sm:$0xff] }
 0x19b   :  { %v18605_v61 = vpack.c.bf16 %v26500_v30, %v26499_v3  ;;  %v3127_v11 = vand.u32 4294901760, %v3126_v26  ;;  %v26504_v22 = vand.u32 4294901760, %v18007_v47  ;;  %v26505_v52 = vand.u32 4294901760, %v18012_v20 }
 0x19c   :  { %v18611_v54 = vpack.c.bf16 %v26502_v60, %v26501_v41  ;;  %v14001_v9 = vpack.c.bf16 %v3239_v4, %v3232_v19  ;;  %v3246_v7 = vand.u32 4294901760, %v3245_v48  ;;  %v3253_v46 = vand.u32 4294901760, %v3252_v49 }
 0x19d   :  { %v3133_v59 = vsub.f32 %v18007_v47, %v26504_v22  ;;  %v3140_v51 = vsub.f32 %v18012_v20, %v26505_v52  ;;  %13960 = vmatpush3.bf16.msra.mxu0 %v18605_v61  ;;  %v26506_v43 = vand.u32 4294901760, %v18334_v58  ;;  %v26507_v15 = vand.u32 4294901760, %v18349_v38  ;;  %14000 = vmatpush3.bf16.msra.mxu1 %v13999_v35  ;;  %v11021_v22 = vpop.f32.mrb[4].mxu0 }
 0x19e   :  { %v26509_v37 = vand.u32 4294901760, %v18357_v16  ;;  %v26510_v3 = vand.u32 4294901760, %v18362_v17  ;;  %v18634_v21 = vand.u32 4294901760, %v66_v39  ;;  %v11058_v19 = vadd.f32 %v11057_v32, %v11056_v6  ;;  %13962 = vmatprep.subr.bf16.mxu0 %v18611_v54  ;;  %14002 = vmatprep.subr.bf16.mxu1 %v14001_v9  ;;  %v26523_v6 = vld [vmem:[#allocation12_spill] sm:$0xff] }
 0x19f   :  { %v18626_v26 = vpack.c.bf16 %v26507_v15, %v26506_v43  ;;  %v14003_v4 = vpack.c.bf16 %v3127_v11, %v3120_v8  ;;  %v3134_v48 = vand.u32 4294901760, %v3133_v59  ;;  %v3141_v49 = vand.u32 4294901760, %v3140_v51  ;;  %v26519_v51 = vld [vmem:[#allocation43_spill] sm:$0xff]  ;;  %v26525_v43 = vld [vmem:[#allocation13_spill] sm:$0xff] }
 0x1a0   :  { %v18632_v30 = vpack.c.bf16 %v26510_v3, %v26509_v37  ;;  %26512 = vst [vmem:[#allocation23_spill] sm:$0xff] %v18634_v21  ;;  %v14005_v58 = vpack.c.bf16 %v3253_v46, %v3246_v7  ;;  %v26513_v38 = vand.u32 4294901760, %v18401_v27  ;;  %v26514_v16 = vand.u32 4294901760, %v18406_v44  ;;  %v11022_v27 = vpop.f32.mrb[5].mxu0  ;;  %v26517_v44 = vld [vmem:[#allocation36_spill] sm:$0xff]  ;;  %v26527_v3 = vld [vmem:[#allocation14_spill] sm:$0xff] }
 0x1a1   :  { %26508 = vst [vmem:[#allocation21_spill] sm:$0xff] %v18626_v26  ;;  %13964 = vmatpush3.bf16.msra.mxu0 %v18626_v26  ;;  %14004 = vmatpush3.bf16.msra.mxu1 %v14003_v4  ;;  %v14007_v41 = vpack.c.bf16 %v3141_v49, %v3134_v48  ;;  %v26515_v35 = vand.u32 4294901760, %v18433_v2  ;;  %v26516_v60 = vand.u32 4294901760, %v18438_v29  ;;  %v18652_v11 = vsub.f32 %v66_v39, %v18634_v21  ;;  %v18666_v29 = vld [vmem:[%s25149_s5 + $0x410] sm:$0xff]  ;;  %v18671_v39 = vld [vmem:[%s25149_s5 + $0x418] sm:$0xff] }
 0x1a2   :  { %26511 = vst [vmem:[#allocation22_spill] sm:$0xff] %v18632_v30  ;;  %v18642_v17 = vpack.c.bf16 %v26514_v16, %v26513_v38  ;;  %13966 = vmatprep.subr.bf16.mxu0 %v18632_v30  ;;  %14006 = vmatprep.subr.bf16.mxu1 %v14005_v58  ;;  %v11023_v59 = vadd.f32 %v11022_v27, %v11021_v22  ;;  %v26518_v52 = vand.u32 4294901760, %v26517_v44  ;;  %v26520_v9 = vand.u32 4294901760, %v26519_v51  ;;  %v26529_v48 = vld [vmem:[#allocation15_spill] sm:$0xff]  ;;  %v26537_v44 = vld [vmem:[#allocation8_spill] sm:$0xff]  ;;  %v18719_v51 = vld [vmem:[%s25149_s5 + $0x428] sm:$0xff] }
 0x1a3   :  { %v18649_v8 = vpack.c.bf16 %v26516_v60, %v26515_v35  ;;  %v25396_v2 = vand.u32 4294901760, %v18652_v11  ;;  %26521 = vst [vmem:[#allocation36_spill] sm:$0xff] %v18666_v29  ;;  %26522 = vst [vmem:[#allocation43_spill] sm:$0xff] %v18671_v39  ;;  %v26524_v32 = vand.u32 4294901760, %v26523_v6  ;;  %v26526_v15 = vand.u32 4294901760, %v26525_v43  ;;  %v18701_v35 = vld [vmem:[%s25149_s5 + $0x4a8] sm:$0xff] }
 0x1a4   :  { %v18659_v7 = vpack.c.bf16 %v26520_v9, %v26518_v52  ;;  %v1088_v46 = vadd.f32 %v11023_v59, %v18485_v50  ;;  %v26528_v4 = vand.u32 4294901760, %v26527_v3  ;;  %v26530_v49 = vand.u32 4294901760, %v26529_v48  ;;  %26532 = vst [vmem:[#allocation13_spill] sm:$0xff] %v18701_v35  ;;  %v18706_v60 = vld [vmem:[%s25149_s5 + $0x420] sm:$0xff]  ;;  %v26536_v59 = vld [vmem:[#allocation19_spill] sm:$0xff]  ;;  %26538 = vst [vmem:[#allocation15_spill] sm:$0xff] %v18719_v51 }
 0x1a5   :  { %13968 = vmatpush3.bf16.msra.mxu0 %v18642_v17  ;;  %14008 = vmatpush3.bf16.msra.mxu1 %v14007_v41  ;;  %v18679_v37 = vpack.c.bf16 %v26526_v15, %v26524_v32  ;;  %v25389_v50 = vand.u32 4294901760, %v18666_v29  ;;  %v25390_v16 = vand.u32 4294901760, %v18671_v39  ;;  %v18696_v41 = vld [vmem:[%s25149_s5 + $0x4a0] sm:$0xff]  ;;  %26533 = vst [vmem:[#allocation14_spill] sm:$0xff] %v18706_v60  ;;  %v3024_v27 = vsub.f32 %v18652_v11, %v25396_v2  ;;  %v26539_v32 = vld [vmem:[#allocation7_spill] sm:$0xff]  ;;  %v26540_v43 = vld [vmem:[#allocation26_spill] sm:$0xff] }
 0x1a6   :  { %13970 = vmatprep.subr.bf16.mxu0 %v18649_v8  ;;  %14042 = vmatprep.subr.bf16.mxu1 %v18382_v18  ;;  %v18687_v58 = vpack.c.bf16 %v26530_v49, %v26528_v4  ;;  %v18689_v38 = vadd.f32 %v11058_v19, %v1088_v46  ;;  %26531 = vst [vmem:[#allocation12_spill] sm:$0xff] %v18696_v41  ;;  %v26534_v19 = vld [vmem:[#allocation17_spill] sm:$0xff]  ;;  %v25393_v9 = vand.u32 4294901760, %v18696_v41  ;;  %v25391_v46 = vand.u32 4294901760, %v18701_v35  ;;  %v18795_v2 = vld [vmem:[%s25149_s5 + $0x440] sm:$0xff] }
 0x1a7   :  { %v26535_v22 = vand.u32 4294901760, %v26534_v19  ;;  %v14009_v52 = vpack.c.bf16 %v26537_v44, %v26536_v59  ;;  %v25392_v6 = vand.u32 4294901760, %v18706_v60  ;;  %v14011_v15 = vpack.c.bf16 %v26540_v43, %v26539_v32  ;;  %26557 = vst [vmem:[#allocation47_spill] sm:$0xff] %v18795_v2 }
 0x1a8   :  { %3258 = vmatmul.mubr.f32.vlgmr.msra.gmra.mrb[18].mxu1 %v18634_v21  ;;  %v18732_v3 = vsub.f32 %v18666_v29, %v25389_v50  ;;  %v18737_v4 = vsub.f32 %v18671_v39, %v25390_v16  ;;  %v25400_v48 = vand.u32 4294901760, %v18719_v51  ;;  %v3025_v49 = vand.u32 4294901760, %v3024_v27 }
 0x1a9   :  { %13972 = vmatpush3.bf16.msra.mxu0 %v18659_v7  ;;  %14044 = vmatpush3.bf16.msra.mxu1 %v18516_v13  ;;  %v18747_v50 = vsub.f32 %v18696_v41, %v25393_v9  ;;  %v18752_v16 = vsub.f32 %v18701_v35, %v25391_v46  ;;  %v18757_v27 = vsub.f32 %v18706_v60, %v25392_v6  ;;  %v18772_v46 = vld [vmem:[%s25149_s5 + $0x4c0] sm:$0xff]  ;;  %v26551_v6 = vld [vmem:[#allocation29_spill] sm:$0xff]  ;;  %v26554_v35 = vld [vmem:[#allocation38_spill] sm:$0xff] }
 0x1aa   :  { %3500 = vmatprep.mubr.f32.mxu1 %v26535_v22  ;;  %13974 = vmatprep.subr.bf16.mxu0 %v18679_v37  ;;  %26541 = vst [vmem:[#allocation17_spill] sm:$0xff] %v18732_v3  ;;  %26542 = vst [vmem:[#allocation19_spill] sm:$0xff] %v18737_v4  ;;  %v26543_v22 = vld [vmem:[#allocation27_spill] sm:$0xff]  ;;  %v26552_v9 = vld [vmem:[#allocation37_spill] sm:$0xff]  ;;  %v18782_v60 = vsub.f32 %v18719_v51, %v25400_v48  ;;  %v26559_v39 = vand.u32 4294901760, %v18732_v3  ;;  %v26560_v29 = vand.u32 4294901760, %v18737_v4 }
 0x1ab   :  { %14046 = vmatprep.subr.bf16.mxu1 %v18522_v53  ;;  %v14013_v31 = vpack.c.bf16 %v26544_v40, %v26543_v22  ;;  %26545 = vst [vmem:[#allocation8_spill] sm:$0xff] %v18747_v50  ;;  %26546 = vst [vmem:[#allocation7_spill] sm:$0xff] %v18752_v16  ;;  %v14015_v62 = vpack.c.bf16 %v26552_v9, %v26551_v6  ;;  %v26555_v41 = vld [vmem:[#allocation39_spill] sm:$0xff]  ;;  %v18800_v48 = vld [vmem:[%s25149_s5 + $0x448] sm:$0xff]  ;;  %v25410_v9 = vand.u32 4294901760, %v18752_v16  ;;  %v26571_v51 = vand.u32 4294901760, %v18772_v46 }
 0x1ac   :  { %26547 = vst [vmem:[#allocation26_spill] sm:$0xff] %v18757_v27  ;;  %26550 = vst [vmem:[#allocation45_spill] sm:$0xff] %v18772_v46  ;;  %v18810_v21 = vpack.c.bf16 %v26560_v29, %v26559_v39  ;;  %v26564_v29 = vld [vmem:[#allocation42_spill] sm:$0xff]  ;;  %v26565_v39 = vld [vmem:[#allocation9_spill] sm:$0xff] }
 0x1ad   :  { %13976 = vmatpush3.bf16.msra.mxu0 %v18687_v58  ;;  %14048 = vmatpush3.bf16.msra.mxu1 %v18549_v1  ;;  %26553 = vst [vmem:[#allocation29_spill] sm:$0xff] %v18782_v60  ;;  %26558 = vst [vmem:[#allocation48_spill] sm:$0xff] %v18800_v48  ;;  %v18844_v25 = vsub.f32 %v18772_v46, %v26571_v51  ;;  %v26576_v51 = vld [vmem:[#allocation44_spill] sm:$0xff]  ;;  %v18904_v16 = vld [vmem:[%s25149_s5 + $0x4e8] sm:$0xff] }
 0x1ae   :  { %14010 = vmatprep.subr.bf16.mxu0 %v14009_v52  ;;  %14050 = vmatprep.subr.bf16.mxu1 %v18563_v12  ;;  %v18762_v52 = vld [vmem:[%s25149_s5 + $0x430] sm:$0xff]  ;;  %26561 = vst [vmem:[#allocation49_spill] sm:$0xff] %v18810_v21  ;;  %v14021_v21 = vpack.c.bf16 %v26565_v39, %v26564_v29  ;;  %v14023_v46 = vpack.c.bf16 %v26576_v51, %v18373_v36  ;;  %26586 = vst [vmem:[#allocation55_spill] sm:$0xff] %v18904_v16  ;;  %v18940_v3 = vld [vmem:[%s25149_s5 + $0x4f8] sm:$0xff] }
 0x1af   :  { %26548 = vst [vmem:[#allocation27_spill] sm:$0xff] %v18762_v52 }
 0x1b0   :  { %3026 = vmatmul.mubr.f32.vlgmr.msra.gmra.mrb[18].mxu0 %v3025_v49  ;;  %v18767_v49 = vld [vmem:[%s25149_s5 + $0x438] sm:$0xff] }
 0x1b1   :  { %26549 = vst [vmem:[#allocation28_spill] sm:$0xff] %v18767_v49  ;;  %14012 = vmatpush3.bf16.msra.mxu0 %v14011_v15  ;;  %3393 = vmatprep.mubr.f32.mxu0 %v26534_v19  ;;  %v14017_v15 = vpack.c.bf16 %v26555_v41, %v26554_v35  ;;  %v18790_v19 = vld [vmem:[%s25149_s5 + $0x4c8] sm:$0xff]  ;;  %v26569_v4 = vand.u32 4294901760, %v18767_v49 }
 0x1b2   :  { %14052 = vmatpush3.bf16.msra.mxu1 %v18575_v10  ;;  %14014 = vmatprep.subr.bf16.mxu0 %v14013_v31  ;;  %26556 = vst [vmem:[#allocation46_spill] sm:$0xff] %v18790_v19  ;;  %v26563_v41 = vld [vmem:[#allocation41_spill] sm:$0xff]  ;;  %v25411_v10 = vand.u32 4294901760, %v18747_v50 }
 0x1b3   :  { %14054 = vmatprep.subr.bf16.mxu1 %v18582_v33  ;;  %v14019_v35 = vpack.c.bf16 %v26563_v41, %v26562_v0 }
 0x1b4   :  { %v18828_v33 = vpack.c.bf16 %v25410_v9, %v25411_v10  ;;  %v26572_v9 = vand.u32 4294901760, %v18757_v27  ;;  %v26573_v10 = vand.u32 4294901760, %v18782_v60  ;;  %v14029_v27 = vpack.c.bf16 %v18460_v45, %v18455_v24  ;;  %v18919_v45 = vld [vmem:[%s25149_s5 + $0x468] sm:$0xff]  ;;  %v11126_v24 = vpop.f32.mrb[6].mxu1 }
 0x1b5   :  { %14016 = vmatpush3.bf16.msra.mxu0 %v14015_v62  ;;  %v26567_v62 = vand.u32 4294901760, %v18762_v52  ;;  %26588 = vst [vmem:[#allocation57_spill] sm:$0xff] %v18919_v45 }
 0x1b6   :  { %14056 = vmatpush3.bf16.msra.mxu1 %v18605_v61  ;;  %14018 = vmatprep.subr.bf16.mxu0 %v14017_v15  ;;  %26566 = vst [vmem:[#allocation40_spill] sm:$0xff] %v18828_v33  ;;  %v18839_v15 = vsub.f32 %v18767_v49, %v26569_v4  ;;  %v18850_v33 = vpack.c.bf16 %v26573_v10, %v26572_v9  ;;  %v18860_v4 = vld [vmem:[%s25149_s5 + $0x4d8] sm:$0xff]  ;;  %v26577_v49 = vand.u32 4294901760, %v18790_v19  ;;  %v26579_v10 = vand.u32 4294901760, %v18795_v2 }
 0x1b7   :  { %14058 = vmatprep.subr.bf16.mxu1 %v18611_v54  ;;  %v18834_v31 = vsub.f32 %v18762_v52, %v26567_v62  ;;  %v18855_v62 = vld [vmem:[%s25149_s5 + $0x4d0] sm:$0xff] }
 0x1b8   :  { %26570 = vst [vmem:[#allocation42_spill] sm:$0xff] %v18839_v15  ;;  %26574 = vst [vmem:[#allocation9_spill] sm:$0xff] %v18850_v33  ;;  %v18867_v52 = vsub.f32 %v18790_v19, %v26577_v49  ;;  %v18872_v9 = vsub.f32 %v18795_v2, %v26579_v10  ;;  %v26580_v33 = vand.u32 4294901760, %v18800_v48  ;;  %v18887_v49 = vld [vmem:[%s25149_s5 + $0x458] sm:$0xff]  ;;  %v18892_v10 = vld [vmem:[%s25149_s5 + $0x4e0] sm:$0xff]  ;;  %v14027_v19 = vpack.c.bf16 %v18444_v42, %v18428_v34 }
 0x1b9   :  { %26568 = vst [vmem:[#allocation41_spill] sm:$0xff] %v18834_v31  ;;  %26575 = vst [vmem:[#allocation50_spill] sm:$0xff] %v18855_v62  ;;  %14020 = vmatpush3.bf16.msra.mxu0 %v14019_v35  ;;  %v18882_v35 = vld [vmem:[%s25149_s5 + $0x450] sm:$0xff]  ;;  %v18914_v42 = vld [vmem:[%s25149_s5 + $0x460] sm:$0xff]  ;;  %v26589_v51 = vand.u32 4294901760, %v18834_v31 }
 0x1ba   :  { %26578 = vst [vmem:[#allocation51_spill] sm:$0xff] %v18867_v52  ;;  %v18877_v60 = vsub.f32 %v18800_v48, %v26580_v33  ;;  %26581 = vst [vmem:[#allocation52_spill] sm:$0xff] %v18882_v35  ;;  %14060 = vmatpush3.bf16.msra.mxu1 %v18626_v26  ;;  %14022 = vmatprep.subr.bf16.mxu0 %v14021_v21  ;;  %v26584_v33 = vld [vmem:[#allocation10_spill] sm:$0xff]  ;;  %v26585_v48 = vld [vmem:[#allocation11_spill] sm:$0xff]  ;;  %v26592_v21 = vand.u32 4294901760, %v18855_v62  ;;  %v26598_v31 = vand.u32 4294901760, %v18882_v35 }
 0x1bb   :  { %26582 = vst [vmem:[#allocation53_spill] sm:$0xff] %v18887_v49  ;;  %26583 = vst [vmem:[#allocation54_spill] sm:$0xff] %v18892_v10  ;;  %v14025_v2 = vpack.c.bf16 %v26585_v48, %v26584_v33  ;;  %14062 = vmatprep.subr.bf16.mxu1 %v18632_v30  ;;  %v11127_v48 = vpop.f32.mrb[7].mxu1  ;;  %v25443_v30 = vand.u32 4294901760, %v18867_v52  ;;  %v25444_v33 = vand.u32 4294901760, %v18872_v9  ;;  %v18959_v34 = vld [vmem:[%s25149_s5 + $0x470] sm:$0xff] }
 0x1bc   :  { %26587 = vst [vmem:[#allocation56_spill] sm:$0xff] %v18914_v42  ;;  %v11128_v36 = vadd.f32 %v11127_v48, %v11126_v24  ;;  %v26590_v24 = vand.u32 4294901760, %v18839_v15  ;;  %v18954_v50 = vsub.f32 %v18855_v62, %v26592_v21  ;;  %v26595_v21 = vand.u32 4294901760, %v18877_v60 }
 0x1bd   :  { %14024 = vmatpush3.bf16.msra.mxu0 %v14023_v46  ;;  %v18935_v46 = vld [vmem:[%s25149_s5 + $0x4f0] sm:$0xff]  ;;  %v26597_v62 = vand.u32 4294901760, %v18860_v4  ;;  %v26599_v52 = vand.u32 4294901760, %v18887_v49 }
 0x1be   :  { %14064 = vmatpush3.bf16.msra.mxu1 %v18642_v17  ;;  %14026 = vmatprep.subr.bf16.mxu0 %v14025_v2  ;;  %v18946_v48 = vpack.c.bf16 %v26590_v24, %v26589_v51  ;;  %v14031_v2 = vpack.c.bf16 %v18482_v57, %v18477_v5  ;;  %v18964_v51 = vld [vmem:[%s25149_s5 + $0x478] sm:$0xff]  ;;  %v26593_v24 = vand.u32 4294901760, %v18844_v25  ;;  %v18986_v57 = vsub.f32 %v18882_v35, %v26598_v31  ;;  %v11091_v31 = vpop.f32.mrb[6].mxu0 }
 0x1bf   :  { %14066 = vmatprep.subr.bf16.mxu1 %v18649_v8  ;;  %v18981_v15 = vsub.f32 %v18860_v4, %v26597_v62  ;;  %v14033_v62 = vpack.c.bf16 %v18510_v14, %v18505_v55 }
 0x1c0   :  { %26591 = vst [vmem:[#allocation58_spill] sm:$0xff] %v18946_v48  ;;  %v18970_v26 = vpack.c.bf16 %v25443_v30, %v26593_v24  ;;  %v18976_v48 = vpack.c.bf16 %v26595_v21, %v25444_v33  ;;  %v18991_v24 = vsub.f32 %v18887_v49, %v26599_v52  ;;  %v26600_v30 = vand.u32 4294901760, %v18892_v10 }
 0x1c1   :  { %14028 = vmatpush3.bf16.msra.mxu0 %v14027_v19  ;;  %v26601_v33 = vand.u32 4294901760, %v18904_v16  ;;  %v26602_v52 = vand.u32 4294901760, %v18914_v42  ;;  %v26603_v19 = vand.u32 4294901760, %v18919_v45  ;;  %v25451_v49 = vand.u32 4294901760, %v18981_v15 }
 0x1c2   :  { %26594 = vst [vmem:[#allocation59_spill] sm:$0xff] %v18970_v26  ;;  %26596 = vst [vmem:[#allocation60_spill] sm:$0xff] %v18976_v48  ;;  %v18996_v21 = vsub.f32 %v18892_v10, %v26600_v30  ;;  %14068 = vmatpush3.bf16.msra.mxu1 %v18659_v7  ;;  %14030 = vmatprep.subr.bf16.mxu0 %v14029_v27  ;;  %v14035_v27 = vpack.c.bf16 %v17980_v63, %v17975_v23  ;;  %v26604_v23 = vand.u32 4294901760, %v18935_v46 }
 0x1c3   :  { %v19003_v48 = vsub.f32 %v18904_v16, %v26601_v33  ;;  %v19011_v30 = vsub.f32 %v18914_v42, %v26602_v52  ;;  %v19016_v10 = vsub.f32 %v18919_v45, %v26603_v19  ;;  %14070 = vmatprep.subr.bf16.mxu1 %v18679_v37  ;;  %v14037_v26 = vpack.c.bf16 %v18000_v56, %v17995_v28  ;;  %v11092_v42 = vpop.f32.mrb[7].mxu0 }
 0x1c4   :  { %v25453_v52 = vand.u32 4294901760, %v18954_v50  ;;  %v25452_v19 = vand.u32 4294901760, %v18986_v57  ;;  %v25458_v16 = vand.u32 4294901760, %v18996_v21  ;;  %v11093_v45 = vadd.f32 %v11092_v42, %v11091_v31 }
 0x1c5   :  { %14032 = vmatpush3.bf16.msra.mxu0 %v14031_v2  ;;  %v19034_v63 = vsub.f32 %v18935_v46, %v26604_v23  ;;  %v26605_v28 = vand.u32 4294901760, %v18940_v3  ;;  %v26606_v2 = vand.u32 4294901760, %v18959_v34  ;;  %v26608_v23 = vand.u32 4294901760, %v18964_v51 }
 0x1c6   :  { %14072 = vmatpush3.bf16.msra.mxu1 %v18687_v58  ;;  %14034 = vmatprep.subr.bf16.mxu0 %v14033_v62  ;;  %v19060_v62 = vpack.c.bf16 %v25451_v49, %v25453_v52  ;;  %v26616_v52 = vand.u32 4294901760, %v19016_v10 }
 0x1c7   :  { %v19039_v56 = vsub.f32 %v18940_v3, %v26605_v28  ;;  %v19047_v31 = vsub.f32 %v18959_v34, %v26606_v2  ;;  %v19052_v35 = vsub.f32 %v18964_v51, %v26608_v23  ;;  %v1304_v28 = vadd.f32 %v11093_v45, %v18689_v38  ;;  %14106 = vmatprep.subr.bf16.mxu1 %v18382_v18 }
 0x1c8   :  { %26609 = vst [vmem:[#allocation62_spill] sm:$0xff] %v19060_v62  ;;  %v26610_v2 = vand.u32 4294901760, %v18991_v24  ;;  %v26612_v23 = vand.u32 4294901760, %v19003_v48  ;;  %v14039_v18 = vpack.c.bf16 %v18012_v20, %v18007_v47  ;;  %v26614_v45 = vand.u32 4294901760, %v18652_v11  ;;  %v26664_v62 = vld [vmem:[#allocation34_spill] sm:$0xff] }
 0x1c9   :  { %26607 = vst [vmem:[#allocation61_spill] sm:$0xff] %v19047_v31  ;;  %14036 = vmatpush3.bf16.msra.mxu0 %v14035_v27  ;;  %v19078_v38 = vadd.f32 %v11128_v36, %v1304_v28  ;;  %v25455_v49 = vand.u32 4294901760, %v19034_v63  ;;  %v26619_v47 = vand.u32 4294901760, %v26536_v59  ;;  %v26620_v20 = vand.u32 4294901760, %v26537_v44  ;;  %v19097_v27 = vld [vmem:[%s25149_s5 + $0x480] sm:$0xff]  ;;  %v19102_v28 = vld [vmem:[%s25149_s5 + $0x488] sm:$0xff] }
 0x1ca   :  { %v19066_v42 = vpack.c.bf16 %v26610_v2, %v25452_v19  ;;  %v19072_v33 = vpack.c.bf16 %v26612_v23, %v25458_v16  ;;  %3504 = vmatmul.mubr.f32.vlgmr.msra.gmra.mrb[20].mxu1 %v26614_v45  ;;  %v25454_v2 = vand.u32 4294901760, %v19039_v56  ;;  %v26615_v19 = vand.u32 4294901760, %v19011_v30  ;;  %v26618_v23 = vld [vmem:[#allocation16_spill] sm:$0xff]  ;;  %14038 = vmatprep.subr.bf16.mxu0 %v14037_v26 }
 0x1cb   :  { %14108 = vmatpush3.bf16.msra.mxu1 %v18516_v13  ;;  %3774 = vmatprep.mubr.f32.mxu1 %v26618_v23  ;;  %v14073_v36 = vpack.c.bf16 %v26620_v20, %v26619_v47  ;;  %v25456_v13 = vand.u32 4294901760, %v19052_v35  ;;  %v26624_v45 = vand.u32 4294901760, %v26540_v43  ;;  %v25463_v47 = vand.u32 4294901760, %v19102_v28  ;;  %v19139_v43 = vld [vmem:[%s25149_s5 + $0x408] sm:$0xff] }
 0x1cc   :  { %26611 = vst [vmem:[#allocation63_spill] sm:$0xff] %v19066_v42  ;;  %26613 = vst [vmem:[#allocation64_spill] sm:$0xff] %v19072_v33  ;;  %v19086_v42 = vpack.c.bf16 %v26616_v52, %v26615_v19  ;;  %v25457_v52 = vand.u32 4294901760, %v19047_v31  ;;  %14110 = vmatprep.subr.bf16.mxu1 %v18522_v53  ;;  %v19111_v59 = vpack.c.bf16 %v25454_v2, %v25455_v49  ;;  %v26623_v19 = vand.u32 4294901760, %v26539_v32  ;;  %v19134_v32 = vld [vmem:[%s25149_s5 + $0x400] sm:$0xff]  ;;  %v26662_v33 = vld [vmem:[#allocation33_spill] sm:$0xff] }
 0x1cd   :  { %14040 = vmatpush3.bf16.msra.mxu0 %v14039_v18  ;;  %v25464_v53 = vand.u32 4294901760, %v19097_v27  ;;  %v26625_v20 = vand.u32 4294901760, %v26543_v22  ;;  %v26626_v2 = vand.u32 4294901760, %v26544_v40  ;;  %v19150_v40 = vld [vmem:[%s25149_s5 + $0x498] sm:$0xff]  ;;  %v26628_v22 = vld [vmem:[#allocation37_spill] sm:$0xff]  ;;  %v26638_v16 = vand.u32 4294901760, %v26562_v0 }
 0x1ce   :  { %26617 = vst [vmem:[#allocation65_spill] sm:$0xff] %v19086_v42  ;;  %26621 = vst [vmem:[#allocation16_spill] sm:$0xff] %v19111_v59  ;;  %v19117_v44 = vpack.c.bf16 %v25456_v13, %v25457_v52  ;;  %v14075_v26 = vpack.c.bf16 %v26624_v45, %v26623_v19  ;;  %14074 = vmatprep.subr.bf16.mxu0 %v14073_v36  ;;  %v26629_v18 = vand.u32 4294901760, %v26628_v22  ;;  %v26632_v19 = vld [vmem:[#allocation20_spill] sm:$0xff]  ;;  %v26633_v45 = vld [vmem:[#allocation38_spill] sm:$0xff]  ;;  %v25460_v22 = vand.u32 4294901760, %v19139_v43 }
 0x1cf   :  { %14112 = vmatpush3.bf16.msra.mxu1 %v18549_v1  ;;  %v14077_v49 = vpack.c.bf16 %v26626_v2, %v26625_v20  ;;  %v19145_v1 = vld [vmem:[%s25149_s5 + $0x490] sm:$0xff]  ;;  %v19165_v36 = vsub.f32 %v19102_v28, %v25463_v47  ;;  %v25461_v52 = vand.u32 4294901760, %v19150_v40 }
 0x1d0   :  { %26622 = vst [vmem:[#allocation66_spill] sm:$0xff] %v19117_v44  ;;  %14114 = vmatprep.subr.bf16.mxu1 %v18563_v12  ;;  %3396 = vmatmul.mubr.f32.vlgmr.msra.gmra.mrb[20].mxu0 %v18652_v11  ;;  %v26627_v12 = vand.u32 4294901760, %v26551_v6  ;;  %v19160_v11 = vsub.f32 %v19097_v27, %v25464_v53  ;;  %v25459_v13 = vand.u32 4294901760, %v19145_v1  ;;  %v26652_v47 = vld [vmem:[#allocation10_spill] sm:$0xff]  ;;  %v26654_v44 = vld [vmem:[#allocation11_spill] sm:$0xff] }
 0x1d1   :  { %14076 = vmatpush3.bf16.msra.mxu0 %v14075_v26  ;;  %3670 = vmatprep.mubr.f32.mxu0 %v26618_v23  ;;  %26631 = vst [vmem:[#allocation67_spill] sm:$0xff] %v19165_v36  ;;  %v26634_v23 = vand.u32 4294901760, %v26633_v45  ;;  %v26635_v26 = vld [vmem:[#allocation39_spill] sm:$0xff]  ;;  %v26653_v53 = vand.u32 4294901760, %v26652_v47 }
 0x1d2   :  { %v14079_v2 = vpack.c.bf16 %v26629_v18, %v26627_v12  ;;  %26630 = vst [vmem:[#allocation37_spill] sm:$0xff] %v19160_v11  ;;  %14078 = vmatprep.subr.bf16.mxu0 %v14077_v49  ;;  %v26636_v6 = vand.u32 4294901760, %v26635_v26  ;;  %v25462_v12 = vand.u32 4294901760, %v19134_v32  ;;  %v26637_v18 = vld [vmem:[#allocation30_spill] sm:$0xff]  ;;  %v26639_v49 = vand.u32 4294901760, %v26563_v41  ;;  %v53_v26 = vld [vmem:[%s25145_s1 + $0x48] sm:$0xff] }
 0x1d3   :  { %14116 = vmatpush3.bf16.msra.mxu1 %v26632_v19  ;;  %v25465_v45 = vand.u32 4294901760, %v19160_v11  ;;  %v19210_v41 = vsub.f32 %v19150_v40, %v25461_v52 }
 0x1d4   :  { %v14081_v20 = vpack.c.bf16 %v26636_v6, %v26634_v23  ;;  %14118 = vmatprep.subr.bf16.mxu1 %v26637_v18  ;;  %v14083_v19 = vpack.c.bf16 %v26639_v49, %v26638_v16  ;;  %v25466_v23 = vand.u32 4294901760, %v19165_v36  ;;  %v26640_v6 = vand.u32 4294901760, %v26564_v29  ;;  %v26646_v29 = vld [vmem:[#allocation18_spill] sm:$0xff]  ;;  %v26647_v49 = vld [vmem:[#allocation24_spill] sm:$0xff] }
 0x1d5   :  { %14080 = vmatpush3.bf16.msra.mxu0 %v14079_v2  ;;  %v26641_v2 = vand.u32 4294901760, %v26565_v39  ;;  %v19194_v0 = vsub.f32 %v19134_v32, %v25462_v12  ;;  %v19199_v16 = vsub.f32 %v19139_v43, %v25460_v22  ;;  %26645 = vst [vmem:[#allocation30_spill] sm:$0xff] %v19210_v41  ;;  %v69_v39 = vmul.f32 %v53_v26, %v26646_v29  ;;  %v26651_v12 = vld [vmem:[#allocation21_spill] sm:$0xff] }
 0x1d6   :  { %14082 = vmatprep.subr.bf16.mxu0 %v14081_v20  ;;  %v19216_v20 = vld [vmem:[%s25149_s5 + $0x4b0] sm:$0xff]  ;;  %v4009_v26 = vsub.f32 %v19160_v11, %v25465_v45  ;;  %v4016_v52 = vsub.f32 %v19165_v36, %v25466_v23 }
 0x1d7   :  { %14120 = vmatpush3.bf16.msra.mxu1 %v18605_v61  ;;  %v14085_v18 = vpack.c.bf16 %v26641_v2, %v26640_v6  ;;  %26642 = vst [vmem:[#allocation20_spill] sm:$0xff] %v19194_v0  ;;  %26643 = vst [vmem:[#allocation38_spill] sm:$0xff] %v19199_v16  ;;  %v19205_v61 = vsub.f32 %v19145_v1, %v25459_v13  ;;  %v26648_v6 = vand.u32 4294901760, %v26647_v49  ;;  %v26649_v2 = vld [vmem:[#allocation44_spill] sm:$0xff]  ;;  %v19245_v42 = vand.u32 4294901760, %v69_v39 }
 0x1d8   :  { %14122 = vmatprep.subr.bf16.mxu1 %v18611_v54  ;;  %v19221_v54 = vld [vmem:[%s25149_s5 + $0x4b8] sm:$0xff]  ;;  %v26650_v13 = vand.u32 4294901760, %v26649_v2  ;;  %v26665_v2 = vand.u32 4294901760, %v26664_v62  ;;  %v4010_v45 = vand.u32 4294901760, %v4009_v26  ;;  %v4017_v11 = vand.u32 4294901760, %v4016_v52 }
 0x1d9   :  { %26644 = vst [vmem:[#allocation39_spill] sm:$0xff] %v19205_v61  ;;  %14084 = vmatpush3.bf16.msra.mxu0 %v14083_v19  ;;  %v26655_v19 = vand.u32 4294901760, %v26654_v44  ;;  %26657 = vst [vmem:[#allocation24_spill] sm:$0xff] %v19245_v42  ;;  %v26658_v44 = vld [vmem:[#allocation31_spill] sm:$0xff]  ;;  %v26669_v52 = vand.u32 4294901760, %v19210_v41 }
 0x1da   :  { %v14087_v22 = vpack.c.bf16 %v26650_v13, %v26648_v6  ;;  %14086 = vmatprep.subr.bf16.mxu0 %v14085_v18  ;;  %v26656_v6 = vld [vmem:[#allocation22_spill] sm:$0xff]  ;;  %v11196_v18 = vpop.f32.mrb[8].mxu1 }
 0x1db   :  { %14124 = vmatpush3.bf16.msra.mxu1 %v26651_v12  ;;  %v14089_v59 = vpack.c.bf16 %v26655_v19, %v26653_v53  ;;  %v11197_v47 = vpop.f32.mrb[9].mxu1  ;;  %v26659_v53 = vand.u32 4294901760, %v26658_v44  ;;  %v26660_v19 = vld [vmem:[#allocation32_spill] sm:$0xff]  ;;  %v26666_v12 = vand.u32 4294901760, %v19194_v0  ;;  %v26667_v44 = vand.u32 4294901760, %v19199_v16 }
 0x1dc   :  { %14126 = vmatprep.subr.bf16.mxu1 %v26656_v6  ;;  %v26661_v49 = vand.u32 4294901760, %v26660_v19  ;;  %v26663_v6 = vand.u32 4294901760, %v26662_v33  ;;  %v11198_v23 = vadd.f32 %v11197_v47, %v11196_v18  ;;  %v26668_v33 = vand.u32 4294901760, %v19205_v61 }
 0x1dd   :  { %14088 = vmatpush3.bf16.msra.mxu0 %v14087_v22  ;;  %v3897_v22 = vsub.f32 %v19194_v0, %v26666_v12  ;;  %v3904_v19 = vsub.f32 %v19199_v16, %v26667_v44  ;;  %v4030_v26 = vsub.f32 %v19210_v41, %v26669_v52  ;;  %v26672_v12 = vld [vmem:[#allocation17_spill] sm:$0xff]  ;;  %v19283_v47 = vsub.f32 %v69_v39, %v19245_v42 }
 0x1de   :  { %v14091_v13 = vpack.c.bf16 %v26661_v49, %v26659_v53  ;;  %v14093_v36 = vpack.c.bf16 %v26665_v2, %v26663_v6  ;;  %14090 = vmatprep.subr.bf16.mxu0 %v14089_v59  ;;  %v4023_v62 = vsub.f32 %v19205_v61, %v26668_v33  ;;  %v26671_v49 = vand.u32 4294901760, %v19221_v54  ;;  %v26675_v6 = vld [vmem:[#allocation35_spill] sm:$0xff] }
 0x1df   :  { %14128 = vmatpush3.bf16.msra.mxu1 %v18642_v17  ;;  %v26670_v17 = vand.u32 4294901760, %v19216_v20  ;;  %v26674_v53 = vand.u32 4294901760, %v18477_v5  ;;  %v26676_v44 = vand.u32 4294901760, %v26675_v6  ;;  %v26677_v52 = vand.u32 4294901760, %v18505_v55  ;;  %v26679_v61 = vld [vmem:[#allocation19_spill] sm:$0xff] }
 0x1e0   :  { %14130 = vmatprep.subr.bf16.mxu1 %v18649_v8  ;;  %v19277_v2 = vsub.f32 %v19221_v54, %v26671_v49  ;;  %v26673_v8 = vand.u32 4294901760, %v26672_v12  ;;  %v14169_v49 = vpack.c.bf16 %v4017_v11, %v4010_v45  ;;  %v26680_v16 = vand.u32 4294901760, %v26679_v61 }
 0x1e1   :  { %v19272_v59 = vsub.f32 %v19216_v20, %v26670_v17  ;;  %14092 = vmatpush3.bf16.msra.mxu0 %v14091_v13  ;;  %v14095_v33 = vpack.c.bf16 %v26676_v44, %v26674_v53  ;;  %v26678_v17 = vand.u32 4294901760, %v18510_v14  ;;  %v3898_v39 = vand.u32 4294901760, %v3897_v22  ;;  %v26683_v53 = vld [vmem:[#allocation7_spill] sm:$0xff]  ;;  %v11161_v14 = vpop.f32.mrb[8].mxu0 }
 0x1e2   :  { %v3911_v18 = vsub.f32 %v26672_v12, %v26673_v8  ;;  %v3918_v0 = vsub.f32 %v26679_v61, %v26680_v16  ;;  %14094 = vmatprep.subr.bf16.mxu0 %v14093_v36  ;;  %v3905_v13 = vand.u32 4294901760, %v3904_v19  ;;  %v26681_v8 = vld [vmem:[#allocation8_spill] sm:$0xff]  ;;  %v26684_v44 = vand.u32 4294901760, %v26683_v53  ;;  %v11162_v36 = vpop.f32.mrb[9].mxu0 }
 0x1e3   :  { %v14097_v41 = vpack.c.bf16 %v26678_v17, %v26677_v52  ;;  %14132 = vmatpush3.bf16.msra.mxu1 %v18659_v7  ;;  %v26682_v5 = vand.u32 4294901760, %v26681_v8  ;;  %v4024_v11 = vand.u32 4294901760, %v4023_v62  ;;  %v4031_v45 = vand.u32 4294901760, %v4030_v26 }
 0x1e4   :  { %v4044_v55 = vsub.f32 %v26683_v53, %v26684_v44  ;;  %14134 = vmatprep.subr.bf16.mxu1 %v18679_v37  ;;  %v25482_v16 = vand.u32 4294901760, %v19272_v59  ;;  %v3912_v22 = vand.u32 4294901760, %v3911_v18  ;;  %v25483_v19 = vand.u32 4294901760, %v19283_v47  ;;  %v26687_v53 = vld [vmem:[#allocation29_spill] sm:$0xff] }
 0x1e5   :  { %v4037_v6 = vsub.f32 %v26681_v8, %v26682_v5  ;;  %v11163_v52 = vadd.f32 %v11162_v36, %v11161_v14  ;;  %14096 = vmatpush3.bf16.msra.mxu0 %v14095_v33  ;;  %v3919_v17 = vand.u32 4294901760, %v3918_v0  ;;  %v26685_v5 = vld [vmem:[#allocation26_spill] sm:$0xff]  ;;  %v26688_v61 = vand.u32 4294901760, %v26687_v53 }
 0x1e6   :  { %v26686_v8 = vand.u32 4294901760, %v26685_v5  ;;  %14098 = vmatprep.subr.bf16.mxu0 %v14097_v41  ;;  %v14171_v62 = vpack.c.bf16 %v3905_v13, %v3898_v39  ;;  %v4045_v7 = vand.u32 4294901760, %v4044_v55  ;;  %v14173_v14 = vpack.c.bf16 %v4031_v45, %v4024_v11  ;;  %v26693_v39 = vld [vmem:[#allocation6_spill] sm:$0xff] }
 0x1e7   :  { %v3932_v37 = vsub.f32 %v26687_v53, %v26688_v61  ;;  %14136 = vmatpush3.bf16.msra.mxu1 %v18687_v58  ;;  %v4038_v26 = vand.u32 4294901760, %v4037_v6  ;;  %v1674_v18 = vadd.f32 %v11163_v52, %v19078_v38  ;;  %v4051_v0 = vsub.f32 %v19272_v59, %v25482_v16  ;;  %v26696_v52 = vld [vmem:[#allocation42_spill] sm:$0xff] }
 0x1e8   :  { %v3925_v44 = vsub.f32 %v26685_v5, %v26686_v8  ;;  %14170 = vmatprep.subr.bf16.mxu1 %v14169_v49  ;;  %v26689_v33 = vand.u32 4294901760, %v19277_v2  ;;  %v26690_v61 = vand.u32 4294901760, %v19097_v27  ;;  %v26691_v58 = vand.u32 4294901760, %v19102_v28  ;;  %v26692_v49 = vld [vmem:[#allocation23_spill] sm:$0xff]  ;;  %v26694_v28 = vld [vmem:[#allocation41_spill] sm:$0xff] }
 0x1e9   :  { %v3880_v38 = vsub.f32 %v19283_v47, %v25483_v19  ;;  %14100 = vmatpush3.bf16.msra.mxu0 %v26693_v39  ;;  %v14175_v13 = vpack.c.bf16 %v3919_v17, %v3912_v22  ;;  %v3933_v55 = vand.u32 4294901760, %v3932_v37  ;;  %v19332_v11 = vadd.f32 %v11198_v23, %v1674_v18  ;;  %v26700_v37 = vld [vmem:[#allocation51_spill] sm:$0xff] }
 0x1ea   :  { %v4058_v8 = vsub.f32 %v19277_v2, %v26689_v33  ;;  %v19325_v41 = vpack.c.bf16 %v26691_v58, %v26690_v61  ;;  %3776 = vmatmul.mubr.f32.vlgmr.msra.gmra.mrb[22].mxu1 %v26692_v49  ;;  %v3926_v6 = vand.u32 4294901760, %v3925_v44  ;;  %v14177_v27 = vpack.c.bf16 %v4045_v7, %v4038_v26  ;;  %v26698_v58 = vld [vmem:[#allocation5_spill] sm:$0xff] }
 0x1eb   :  { %14172 = vmatpush3.bf16.msra.mxu1 %v14171_v62  ;;  %4118 = vmatprep.mubr.f32.mxu1 %v19245_v42  ;;  %v26695_v45 = vand.u32 4294901760, %v26694_v28  ;;  %v26697_v33 = vand.u32 4294901760, %v26696_v52  ;;  %v4052_v22 = vand.u32 4294901760, %v4051_v0  ;;  %v26699_v23 = vand.u32 4294901760, %v18844_v25 }
 0x1ec   :  { %14102 = vmatprep.subr.bf16.mxu0 %v26698_v58  ;;  %14174 = vmatprep.subr.bf16.mxu1 %v14173_v14  ;;  %v4059_v17 = vand.u32 4294901760, %v4058_v8  ;;  %v26701_v62 = vand.u32 4294901760, %v26700_v37  ;;  %v26702_v26 = vand.u32 4294901760, %v19134_v32  ;;  %v26703_v18 = vand.u32 4294901760, %v19139_v43 }
 0x1ed   :  { %v3939_v36 = vsub.f32 %v26694_v28, %v26695_v45  ;;  %v3946_v61 = vsub.f32 %v26696_v52, %v26697_v33  ;;  %v4065_v44 = vsub.f32 %v18844_v25, %v26699_v23  ;;  %v26704_v45 = vld [vmem:[#allocation25_spill] sm:$0xff]  ;;  %v14179_v33 = vpack.c.bf16 %v3933_v55, %v3926_v6 }
 0x1ee   :  { %v4072_v7 = vsub.f32 %v26700_v37, %v26701_v62  ;;  %v19352_v39 = vpack.c.bf16 %v26703_v18, %v26702_v26  ;;  %14104 = vmatpush3.bf16.msra.mxu0 %v26704_v45  ;;  %v26705_v14 = vand.u32 4294901760, %v19145_v1  ;;  %v26706_v0 = vand.u32 4294901760, %v19150_v40 }
 0x1ef   :  { %v26707_v58 = vand.u32 4294901760, %v18872_v9  ;;  %v26708_v62 = vand.u32 4294901760, %v18877_v60  ;;  %14176 = vmatpush3.bf16.msra.mxu1 %v14175_v13  ;;  %14138 = vmatprep.subr.bf16.mxu0 %v19325_v41  ;;  %v3940_v43 = vand.u32 4294901760, %v3939_v36  ;;  %v3947_v26 = vand.u32 4294901760, %v3946_v61  ;;  %v26711_v13 = vld [vmem:[#allocation36_spill] sm:$0xff] }
 0x1f0   :  { %v19359_v8 = vpack.c.bf16 %v26706_v0, %v26705_v14  ;;  %v26709_v6 = vand.u32 4294901760, %v18954_v50  ;;  %v26710_v40 = vand.u32 4294901760, %v18981_v15  ;;  %14178 = vmatprep.subr.bf16.mxu1 %v14177_v27  ;;  %v3881_v18 = vand.u32 4294901760, %v3880_v38 }
 0x1f1   :  { %v3953_v23 = vsub.f32 %v18872_v9, %v26707_v58  ;;  %v3960_v32 = vsub.f32 %v18877_v60, %v26708_v62  ;;  %v14181_v45 = vpack.c.bf16 %v4059_v17, %v4052_v22  ;;  %v4066_v14 = vand.u32 4294901760, %v4065_v44  ;;  %3672 = vmatmul.mubr.f32.vlgmr.msra.gmra.mrb[22].mxu0 %v26692_v49  ;;  %v26713_v62 = vld [vmem:[#allocation43_spill] sm:$0xff]  ;;  %v26717_v17 = vld [vmem:[#allocation12_spill] sm:$0xff] }
 0x1f2   :  { %v4079_v1 = vsub.f32 %v18954_v50, %v26709_v6  ;;  %v4086_v55 = vsub.f32 %v18981_v15, %v26710_v40  ;;  %v4073_v0 = vand.u32 4294901760, %v4072_v7  ;;  %v26712_v58 = vand.u32 4294901760, %v26711_v13  ;;  %14140 = vmatpush3.bf16.msra.mxu0 %v19352_v39  ;;  %3882 = vmatprep.mubr.f32.mxu0 %v3881_v18  ;;  %v26719_v7 = vld [vmem:[#allocation13_spill] sm:$0xff] }
 0x1f3   :  { %v26714_v36 = vand.u32 4294901760, %v26713_v62  ;;  %v3954_v6 = vand.u32 4294901760, %v3953_v23  ;;  %v3961_v16 = vand.u32 4294901760, %v3960_v32  ;;  %v26715_v40 = vand.u32 4294901760, %v18986_v57  ;;  %14180 = vmatpush3.bf16.msra.mxu1 %v14179_v33  ;;  %14142 = vmatprep.subr.bf16.mxu0 %v19359_v8 }
 0x1f4   :  { %v26716_v27 = vand.u32 4294901760, %v18991_v24  ;;  %v14183_v49 = vpack.c.bf16 %v3947_v26, %v3940_v43  ;;  %v26718_v44 = vand.u32 4294901760, %v26717_v17  ;;  %v26720_v13 = vand.u32 4294901760, %v26719_v7  ;;  %14182 = vmatprep.subr.bf16.mxu1 %v14181_v45  ;;  %v26726_v26 = vld [vmem:[#allocation15_spill] sm:$0xff] }
 0x1f5   :  { %v19379_v61 = vpack.c.bf16 %v26714_v36, %v26712_v58  ;;  %v3967_v38 = vsub.f32 %v18986_v57, %v26715_v40  ;;  %v4080_v23 = vand.u32 4294901760, %v4079_v1  ;;  %v4087_v32 = vand.u32 4294901760, %v4086_v55 }
 0x1f6   :  { %v3974_v22 = vsub.f32 %v18991_v24, %v26716_v27  ;;  %v19393_v58 = vpack.c.bf16 %v26720_v13, %v26718_v44  ;;  %v14185_v18 = vpack.c.bf16 %v4073_v0, %v4066_v14  ;;  %v26722_v62 = vand.u32 4294901760, %v18996_v21  ;;  %v26724_v27 = vld [vmem:[#allocation14_spill] sm:$0xff] }
 0x1f7   :  { %v26723_v40 = vand.u32 4294901760, %v19003_v48  ;;  %v26725_v43 = vand.u32 4294901760, %v26724_v27  ;;  %v26727_v17 = vand.u32 4294901760, %v26726_v26  ;;  %14144 = vmatpush3.bf16.msra.mxu0 %v19379_v61  ;;  %v14187_v1 = vpack.c.bf16 %v3961_v16, %v3954_v6  ;;  %14184 = vmatpush3.bf16.msra.mxu1 %v14183_v49 }
 0x1f8   :  { %26721 = vst [vmem:[#allocation44_spill] sm:$0xff] %v19393_v58  ;;  %v4093_v36 = vsub.f32 %v18996_v21, %v26722_v62  ;;  %v26729_v55 = vand.u32 4294901760, %v19216_v20  ;;  %v26730_v45 = vand.u32 4294901760, %v19221_v54  ;;  %v3968_v0 = vand.u32 4294901760, %v3967_v38  ;;  %14146 = vmatprep.subr.bf16.mxu0 %v19393_v58  ;;  %v52_v20 = vld [vmem:[%s25145_s1 + $0x40] sm:$0xff]  ;;  %14186 = vmatprep.subr.bf16.mxu1 %v14185_v18  ;;  %v26740_v18 = vld [vmem:[#allocation45_spill] sm:$0xff] }
 0x1f9   :  { %v4100_v33 = vsub.f32 %v19003_v48, %v26723_v40  ;;  %v19405_v19 = vpack.c.bf16 %v26727_v17, %v26725_v43  ;;  %v3975_v44 = vand.u32 4294901760, %v3974_v22  ;;  %v14189_v7 = vpack.c.bf16 %v4087_v32, %v4080_v23  ;;  %v26736_v32 = vld [vmem:[#allocation27_spill] sm:$0xff]  ;;  %v26738_v43 = vld [vmem:[#allocation28_spill] sm:$0xff] }
 0x1fa   :  { %v19412_v14 = vpack.c.bf16 %v26730_v45, %v26729_v55  ;;  %v26732_v13 = vand.u32 4294901760, %v19011_v30  ;;  %v26733_v40 = vand.u32 4294901760, %v19016_v10  ;;  %v4094_v54 = vand.u32 4294901760, %v4093_v36 }
 0x1fb   :  { %26728 = vst [vmem:[#allocation21_spill] sm:$0xff] %v19405_v19  ;;  %v4101_v6 = vand.u32 4294901760, %v4100_v33  ;;  %v26734_v38 = vand.u32 4294901760, %v19034_v63  ;;  %v26735_v49 = vand.u32 4294901760, %v19039_v56  ;;  %14148 = vmatpush3.bf16.msra.mxu0 %v19405_v19  ;;  %v26737_v27 = vand.u32 4294901760, %v26736_v32  ;;  %v26742_v33 = vld [vmem:[#allocation46_spill] sm:$0xff]  ;;  %14188 = vmatpush3.bf16.msra.mxu1 %v14187_v1 }
 0x1fc   :  { %26731 = vst [vmem:[#allocation10_spill] sm:$0xff] %v19412_v14  ;;  %v3981_v62 = vsub.f32 %v19011_v30, %v26732_v13  ;;  %v3988_v16 = vsub.f32 %v19016_v10, %v26733_v40  ;;  %v26739_v26 = vand.u32 4294901760, %v26738_v43  ;;  %v14191_v55 = vpack.c.bf16 %v3975_v44, %v3968_v0  ;;  %14150 = vmatprep.subr.bf16.mxu0 %v19412_v14  ;;  %v26746_v1 = vld [vmem:[#allocation47_spill] sm:$0xff] }
 0x1fd   :  { %v4107_v22 = vsub.f32 %v19034_v63, %v26734_v38  ;;  %v4114_v23 = vsub.f32 %v19039_v56, %v26735_v49  ;;  %v26741_v36 = vand.u32 4294901760, %v26740_v18  ;;  %v26743_v45 = vand.u32 4294901760, %v26742_v33  ;;  %14190 = vmatprep.subr.bf16.mxu1 %v14189_v7 }
 0x1fe   :  { %v19435_v17 = vpack.c.bf16 %v26739_v26, %v26737_v27  ;;  %v68_v40 = vmul.f32 %v52_v20, %v26646_v29  ;;  %v3982_v38 = vand.u32 4294901760, %v3981_v62  ;;  %v3989_v49 = vand.u32 4294901760, %v3988_v16  ;;  %v26748_v62 = vld [vmem:[#allocation48_spill] sm:$0xff]  ;;  %v26750_v29 = vld [vmem:[#allocation50_spill] sm:$0xff] }
 0x1ff   :  { %v19441_v13 = vpack.c.bf16 %v26743_v45, %v26741_v36  ;;  %v26744_v32 = vand.u32 4294901760, %v19047_v31  ;;  %v26745_v27 = vand.u32 4294901760, %v19052_v35  ;;  %v14193_v44 = vpack.c.bf16 %v4101_v6, %v4094_v54  ;;  %v11266_v36 = vpop.f32.mrb[10].mxu1  ;;  %14192 = vmatpush3.bf16.msra.mxu1 %v14191_v55  ;;  %v26758_v55 = vld [vmem:[#allocation54_spill] sm:$0xff] }
 0x200   :  { %v4108_v26 = vand.u32 4294901760, %v4107_v22  ;;  %v4115_v18 = vand.u32 4294901760, %v4114_v23  ;;  %v11267_v33 = vpop.f32.mrb[11].mxu1  ;;  %14152 = vmatpush3.bf16.msra.mxu0 %v19435_v17  ;;  %v26747_v20 = vand.u32 4294901760, %v26746_v1  ;;  %v26749_v16 = vand.u32 4294901760, %v26748_v62  ;;  %v26754_v1 = vld [vmem:[#allocation52_spill] sm:$0xff] }
 0x201   :  { %v3995_v43 = vsub.f32 %v19047_v31, %v26744_v32  ;;  %v4002_v0 = vsub.f32 %v19052_v35, %v26745_v27  ;;  %v26751_v32 = vand.u32 4294901760, %v26750_v29  ;;  %v26752_v42 = vand.u32 4294901760, %v18860_v4  ;;  %14154 = vmatprep.subr.bf16.mxu0 %v19441_v13  ;;  %14194 = vmatprep.subr.bf16.mxu1 %v14193_v44  ;;  %v26756_v29 = vld [vmem:[#allocation53_spill] sm:$0xff] }
 0x202   :  { %v19456_v45 = vpack.c.bf16 %v26749_v16, %v26747_v20  ;;  %v19464_v7 = vand.u32 4294901760, %v68_v40  ;;  %v11268_v54 = vadd.f32 %v11267_v33, %v11266_v36  ;;  %v14195_v6 = vpack.c.bf16 %v3989_v49, %v3982_v38  ;;  %v26760_v33 = vld [vmem:[#allocation55_spill] sm:$0xff] }
 0x203   :  { %v19462_v31 = vpack.c.bf16 %v26752_v42, %v26751_v32  ;;  %v3996_v22 = vand.u32 4294901760, %v3995_v43  ;;  %v4003_v23 = vand.u32 4294901760, %v4002_v0  ;;  %v14197_v27 = vpack.c.bf16 %v4115_v18, %v4108_v26  ;;  %v11231_v0 = vpop.f32.mrb[10].mxu0  ;;  %v26762_v18 = vld [vmem:[#allocation56_spill] sm:$0xff]  ;;  %v26764_v32 = vld [vmem:[#allocation57_spill] sm:$0xff] }
 0x204   :  { %26753 = vst [vmem:[#allocation11_spill] sm:$0xff] %v19464_v7  ;;  %14156 = vmatpush3.bf16.msra.mxu0 %v19456_v45  ;;  %v26755_v20 = vand.u32 4294901760, %v26754_v1  ;;  %v26757_v62 = vand.u32 4294901760, %v26756_v29  ;;  %14196 = vmatpush3.bf16.msra.mxu1 %v14195_v6  ;;  %v26759_v36 = vand.u32 4294901760, %v26758_v55  ;;  %v26761_v38 = vand.u32 4294901760, %v26760_v33  ;;  %v11232_v44 = vpop.f32.mrb[11].mxu0 }
 0x205   :  { %14158 = vmatprep.subr.bf16.mxu0 %v19462_v31  ;;  %v14199_v42 = vpack.c.bf16 %v4003_v23, %v3996_v22  ;;  %v19482_v43 = vsub.f32 %v68_v40, %v19464_v7  ;;  %14198 = vmatprep.subr.bf16.mxu1 %v14197_v27  ;;  %v11233_v26 = vadd.f32 %v11232_v44, %v11231_v0  ;;  %v26763_v16 = vand.u32 4294901760, %v26762_v18  ;;  %v19496_v40 = vld [vmem:[%s25149_s5 + $0x510] sm:$0xff]  ;;  %v19501_v27 = vld [vmem:[%s25149_s5 + $0x518] sm:$0xff]  ;;  %v19549_v18 = vld [vmem:[%s25149_s5 + $0x528] sm:$0xff] }
 0x206   :  { %v19472_v4 = vpack.c.bf16 %v26757_v62, %v26755_v20  ;;  %v19479_v49 = vpack.c.bf16 %v26761_v38, %v26759_v36  ;;  %v26765_v6 = vand.u32 4294901760, %v26764_v32  ;;  %26766 = vst [vmem:[#allocation22_spill] sm:$0xff] %v19496_v40  ;;  %26767 = vst [vmem:[#allocation31_spill] sm:$0xff] %v19501_v27  ;;  %v26768_v20 = vand.u32 4294901760, %v18935_v46  ;;  %v19531_v38 = vld [vmem:[%s25149_s5 + $0x5a8] sm:$0xff]  ;;  %v26776_v0 = vld [vmem:[#allocation67_spill] sm:$0xff] }
 0x207   :  { %v25488_v23 = vand.u32 4294901760, %v19482_v43  ;;  %v1950_v1 = vadd.f32 %v11233_v26, %v19332_v11  ;;  %v26769_v29 = vand.u32 4294901760, %v18940_v3  ;;  %v26771_v55 = vand.u32 4294901760, %v18964_v51  ;;  %v19526_v3 = vld [vmem:[%s25149_s5 + $0x5a0] sm:$0xff]  ;;  %26773 = vst [vmem:[#allocation33_spill] sm:$0xff] %v19531_v38  ;;  %26778 = vst [vmem:[#allocation17_spill] sm:$0xff] %v19549_v18 }
 0x208   :  { %14160 = vmatpush3.bf16.msra.mxu0 %v19472_v4  ;;  %v19489_v22 = vpack.c.bf16 %v26765_v6, %v26763_v16  ;;  %14200 = vmatpush3.bf16.msra.mxu1 %v14199_v42  ;;  %v26770_v42 = vand.u32 4294901760, %v18959_v34  ;;  %v25491_v11 = vand.u32 4294901760, %v19496_v40  ;;  %v25493_v46 = vand.u32 4294901760, %v19501_v27  ;;  %26772 = vst [vmem:[#allocation32_spill] sm:$0xff] %v19526_v3  ;;  %v19544_v26 = vld [vmem:[%s25149_s5 + $0x520] sm:$0xff]  ;;  %v26780_v32 = vld [vmem:[#allocation38_spill] sm:$0xff] }
 0x209   :  { %14162 = vmatprep.subr.bf16.mxu0 %v19479_v49  ;;  %14234 = vmatprep.subr.bf16.mxu1 %v19325_v41  ;;  %v19509_v62 = vpack.c.bf16 %v26769_v29, %v26768_v20  ;;  %v19519_v33 = vadd.f32 %v11268_v54, %v1950_v1  ;;  %v26774_v34 = vand.u32 4294901760, %v19283_v47  ;;  %v3886_v51 = vsub.f32 %v19482_v43, %v25488_v23  ;;  %v26775_v54 = vld [vmem:[#allocation37_spill] sm:$0xff]  ;;  %v26779_v16 = vld [vmem:[#allocation20_spill] sm:$0xff]  ;;  %v26783_v20 = vld [vmem:[#allocation39_spill] sm:$0xff] }
 0x20a   :  { %v19517_v36 = vpack.c.bf16 %v26771_v55, %v26770_v42  ;;  %v14201_v44 = vpack.c.bf16 %v26776_v0, %v26775_v54  ;;  %26777 = vst [vmem:[#allocation34_spill] sm:$0xff] %v19544_v26  ;;  %v14203_v6 = vpack.c.bf16 %v26780_v32, %v26779_v16  ;;  %v19561_v29 = vsub.f32 %v19496_v40, %v25491_v11  ;;  %v26784_v1 = vld [vmem:[#allocation30_spill] sm:$0xff]  ;;  %v26785_v11 = vld [vmem:[#allocation19_spill] sm:$0xff] }
 0x20b   :  { %4120 = vmatmul.mubr.f32.vlgmr.msra.gmra.mrb[24].mxu1 %v19464_v7  ;;  %v19566_v42 = vsub.f32 %v19501_v27, %v25493_v46  ;;  %v3887_v23 = vand.u32 4294901760, %v3886_v51  ;;  %v14205_v7 = vpack.c.bf16 %v26784_v1, %v26783_v20  ;;  %v14207_v40 = vpack.c.bf16 %v26785_v11, %v26672_v12  ;;  %v19589_v51 = vld [vmem:[%s25149_s5 + $0x530] sm:$0xff]  ;;  %v26799_v11 = vld [vmem:[#allocation7_spill] sm:$0xff] }
 0x20c   :  { %14164 = vmatpush3.bf16.msra.mxu0 %v19489_v22  ;;  %14236 = vmatpush3.bf16.msra.mxu1 %v19352_v39  ;;  %26781 = vst [vmem:[#allocation35_spill] sm:$0xff] %v19561_v29  ;;  %v26786_v46 = vand.u32 4294901760, %v19526_v3  ;;  %26790 = vst [vmem:[#allocation6_spill] sm:$0xff] %v19589_v51 }
 0x20d   :  { %4362 = vmatprep.mubr.f32.mxu1 %v26774_v34  ;;  %14166 = vmatprep.subr.bf16.mxu0 %v19509_v62  ;;  %26782 = vst [vmem:[#allocation26_spill] sm:$0xff] %v19566_v42  ;;  %v26788_v34 = vand.u32 4294901760, %v19531_v38 }
 0x20e   :  { %14238 = vmatprep.subr.bf16.mxu1 %v19359_v8  ;;  %v19579_v27 = vsub.f32 %v19526_v3, %v26786_v46  ;;  %v26792_v46 = vand.u32 4294901760, %v19544_v26 }
 0x20f   :  { %v19584_v55 = vsub.f32 %v19531_v38, %v26788_v34  ;;  %v26794_v34 = vand.u32 4294901760, %v19549_v18 }
 0x210   :  { %14168 = vmatpush3.bf16.msra.mxu0 %v19517_v36  ;;  %14240 = vmatpush3.bf16.msra.mxu1 %v19379_v61  ;;  %26787 = vst [vmem:[#allocation29_spill] sm:$0xff] %v19579_v27 }
 0x211   :  { %14202 = vmatprep.subr.bf16.mxu0 %v14201_v44  ;;  %14242 = vmatprep.subr.bf16.mxu1 %v19393_v58  ;;  %26789 = vst [vmem:[#allocation23_spill] sm:$0xff] %v19584_v55  ;;  %v19602_v44 = vsub.f32 %v19544_v26, %v26792_v46  ;;  %v19607_v38 = vsub.f32 %v19549_v18, %v26794_v34  ;;  %v26798_v46 = vld [vmem:[#allocation8_spill] sm:$0xff]  ;;  %v19630_v18 = vld [vmem:[%s25149_s5 + $0x548] sm:$0xff]  ;;  %v25503_v58 = vand.u32 4294901760, %v19579_v27  ;;  %v25502_v1 = vand.u32 4294901760, %v19584_v55 }
 0x212   :  { %v14209_v12 = vpack.c.bf16 %v26799_v11, %v26798_v46  ;;  %v19625_v34 = vld [vmem:[%s25149_s5 + $0x540] sm:$0xff]  ;;  %26801 = vst [vmem:[#allocation43_spill] sm:$0xff] %v19630_v18  ;;  %v14211_v26 = vpack.c.bf16 %v26687_v53, %v26685_v5  ;;  %v26802_v11 = vand.u32 4294901760, %v19561_v29  ;;  %v26803_v46 = vand.u32 4294901760, %v19566_v42 }
 0x213   :  { %3888 = vmatmul.mubr.f32.vlgmr.msra.gmra.mrb[24].mxu0 %v3887_v23  ;;  %v19594_v23 = vld [vmem:[%s25149_s5 + $0x538] sm:$0xff]  ;;  %26793 = vst [vmem:[#allocation42_spill] sm:$0xff] %v19602_v44  ;;  %26795 = vst [vmem:[#allocation5_spill] sm:$0xff] %v19607_v38  ;;  %v25505_v53 = vand.u32 4294901760, %v19602_v44  ;;  %v25504_v5 = vand.u32 4294901760, %v19607_v38  ;;  %v19780_v38 = vld [vmem:[%s25149_s5 + $0x570] sm:$0xff] }
 0x214   :  { %26791 = vst [vmem:[#allocation41_spill] sm:$0xff] %v19594_v23  ;;  %14204 = vmatpush3.bf16.msra.mxu0 %v14203_v6  ;;  %4255 = vmatprep.mubr.f32.mxu0 %v19283_v47  ;;  %v19612_v6 = vld [vmem:[%s25149_s5 + $0x5c0] sm:$0xff]  ;;  %v19617_v47 = vld [vmem:[%s25149_s5 + $0x5c8] sm:$0xff]  ;;  %26800 = vst [vmem:[#allocation36_spill] sm:$0xff] %v19625_v34  ;;  %v26809_v3 = vand.u32 4294901760, %v19594_v23 }
 0x215   :  { %26796 = vst [vmem:[#allocation51_spill] sm:$0xff] %v19612_v6  ;;  %26797 = vst [vmem:[#allocation25_spill] sm:$0xff] %v19617_v47  ;;  %14244 = vmatpush3.bf16.msra.mxu1 %v19405_v19  ;;  %14206 = vmatprep.subr.bf16.mxu0 %v14205_v7  ;;  %v19641_v19 = vpack.c.bf16 %v26803_v46, %v26802_v11  ;;  %v14213_v11 = vpack.c.bf16 %v19277_v2, %v19272_v59  ;;  %v19657_v46 = vld [vmem:[%s25149_s5 + $0x5d0] sm:$0xff]  ;;  %v26807_v7 = vand.u32 4294901760, %v19589_v51 }
 0x216   :  { %14246 = vmatprep.subr.bf16.mxu1 %v19412_v14  ;;  %26805 = vst [vmem:[#allocation13_spill] sm:$0xff] %v19657_v46  ;;  %v19674_v14 = vsub.f32 %v19594_v23, %v26809_v3  ;;  %v19680_v20 = vpack.c.bf16 %v25504_v5, %v25505_v53  ;;  %v19695_v3 = vld [vmem:[%s25149_s5 + $0x5d8] sm:$0xff]  ;;  %v19700_v5 = vld [vmem:[%s25149_s5 + $0x550] sm:$0xff]  ;;  %v26816_v53 = vand.u32 4294901760, %v19625_v34  ;;  %v26819_v23 = vand.u32 4294901760, %v19657_v46 }
 0x217   :  { %26804 = vst [vmem:[#allocation12_spill] sm:$0xff] %v19641_v19  ;;  %26814 = vst [vmem:[#allocation45_spill] sm:$0xff] %v19695_v3 }
 0x218   :  { %14208 = vmatpush3.bf16.msra.mxu0 %v14207_v40  ;;  %v19663_v40 = vpack.c.bf16 %v25502_v1, %v25503_v58  ;;  %26810 = vst [vmem:[#allocation27_spill] sm:$0xff] %v19680_v20  ;;  %v26811_v1 = vand.u32 4294901760, %v19612_v6  ;;  %26815 = vst [vmem:[#allocation46_spill] sm:$0xff] %v19700_v5  ;;  %v19707_v20 = vsub.f32 %v19625_v34, %v26816_v53  ;;  %v19785_v34 = vld [vmem:[%s25149_s5 + $0x578] sm:$0xff] }
 0x219   :  { %14248 = vmatpush3.bf16.msra.mxu1 %v19435_v17  ;;  %14210 = vmatprep.subr.bf16.mxu0 %v14209_v12  ;;  %v19669_v12 = vsub.f32 %v19589_v51, %v26807_v7  ;;  %v14221_v53 = vpack.c.bf16 %v18981_v15, %v18954_v50  ;;  %v19750_v50 = vld [vmem:[%s25149_s5 + $0x568] sm:$0xff]  ;;  %v11336_v15 = vpop.f32.mrb[12].mxu1  ;;  %v19761_v51 = vsub.f32 %v19657_v46, %v26819_v23 }
 0x21a   :  { %26806 = vst [vmem:[#allocation14_spill] sm:$0xff] %v19663_v40  ;;  %14250 = vmatprep.subr.bf16.mxu1 %v19441_v13  ;;  %v19685_v58 = vsub.f32 %v19612_v6, %v26811_v1  ;;  %v26812_v40 = vand.u32 4294901760, %v19617_v47  ;;  %v14215_v1 = vpack.c.bf16 %v26696_v52, %v26694_v28  ;;  %v19718_v6 = vld [vmem:[%s25149_s5 + $0x558] sm:$0xff]  ;;  %v19723_v28 = vld [vmem:[%s25149_s5 + $0x5e0] sm:$0xff]  ;;  %v14217_v52 = vpack.c.bf16 %v26700_v37, %v18844_v25  ;;  %v11337_v25 = vpop.f32.mrb[13].mxu1  ;;  %v19767_v37 = vld [vmem:[%s25149_s5 + $0x5f0] sm:$0xff] }
 0x21b   :  { %26808 = vst [vmem:[#allocation15_spill] sm:$0xff] %v19669_v12  ;;  %26818 = vst [vmem:[#allocation47_spill] sm:$0xff] %v19750_v50 }
 0x21c   :  { %v19690_v7 = vsub.f32 %v19617_v47, %v26812_v40  ;;  %14212 = vmatpush3.bf16.msra.mxu0 %v14211_v26  ;;  %v26817_v40 = vand.u32 4294901760, %v19630_v18  ;;  %v14219_v26 = vpack.c.bf16 %v18877_v60, %v18872_v9  ;;  %v19745_v60 = vld [vmem:[%s25149_s5 + $0x560] sm:$0xff]  ;;  %26820 = vst [vmem:[#allocation48_spill] sm:$0xff] %v19785_v34  ;;  %v26821_v47 = vand.u32 4294901760, %v19669_v12 }
 0x21d   :  { %14252 = vmatpush3.bf16.msra.mxu1 %v19456_v45  ;;  %14214 = vmatprep.subr.bf16.mxu0 %v14213_v11  ;;  %v26825_v11 = vand.u32 4294901760, %v19700_v5  ;;  %v26826_v46 = vand.u32 4294901760, %v19685_v58 }
 0x21e   :  { %26813 = vst [vmem:[#allocation28_spill] sm:$0xff] %v19690_v7  ;;  %v19712_v19 = vsub.f32 %v19630_v18, %v26817_v40  ;;  %v19735_v40 = vld [vmem:[%s25149_s5 + $0x5e8] sm:$0xff]  ;;  %14254 = vmatprep.subr.bf16.mxu1 %v19462_v31  ;;  %v11338_v18 = vadd.f32 %v11337_v25, %v11336_v15  ;;  %v26822_v25 = vand.u32 4294901760, %v19674_v14  ;;  %v26827_v12 = vand.u32 4294901760, %v19690_v7 }
 0x21f   :  { %v19802_v9 = vsub.f32 %v19700_v5, %v26825_v11  ;;  %v26833_v11 = vand.u32 4294901760, %v19723_v28  ;;  %v26843_v7 = vand.u32 4294901760, %v19785_v34 }
 0x220   :  { %14216 = vmatpush3.bf16.msra.mxu0 %v14215_v1  ;;  %v19772_v1 = vld [vmem:[%s25149_s5 + $0x5f8] sm:$0xff]  ;;  %v19791_v15 = vpack.c.bf16 %v26822_v25, %v26821_v47  ;;  %v19808_v44 = vpack.c.bf16 %v26827_v12, %v26826_v46  ;;  %v26829_v47 = vand.u32 4294901760, %v19707_v20  ;;  %v26830_v25 = vand.u32 4294901760, %v19712_v19 }
 0x221   :  { %14256 = vmatpush3.bf16.msra.mxu1 %v19472_v4  ;;  %14218 = vmatprep.subr.bf16.mxu0 %v14217_v52  ;;  %v26824_v52 = vand.u32 4294901760, %v19695_v3  ;;  %v19824_v5 = vsub.f32 %v19723_v28, %v26833_v11  ;;  %v14223_v12 = vpack.c.bf16 %v18991_v24, %v18986_v57  ;;  %v14225_v11 = vpack.c.bf16 %v19003_v48, %v18996_v21 }
 0x222   :  { %26823 = vst [vmem:[#allocation50_spill] sm:$0xff] %v19791_v15  ;;  %14258 = vmatprep.subr.bf16.mxu1 %v19479_v49  ;;  %26828 = vst [vmem:[#allocation52_spill] sm:$0xff] %v19808_v44  ;;  %v19814_v15 = vpack.c.bf16 %v26830_v25, %v26829_v47  ;;  %v26834_v47 = vand.u32 4294901760, %v19735_v40  ;;  %v26836_v57 = vand.u32 4294901760, %v19750_v50  ;;  %v26841_v21 = vand.u32 4294901760, %v19780_v38 }
 0x223   :  { %v19797_v23 = vsub.f32 %v19695_v3, %v26824_v52  ;;  %v26832_v52 = vand.u32 4294901760, %v19718_v6  ;;  %v26847_v48 = vand.u32 4294901760, %v19802_v9 }
 0x224   :  { %26831 = vst [vmem:[#allocation53_spill] sm:$0xff] %v19814_v15  ;;  %14220 = vmatpush3.bf16.msra.mxu0 %v14219_v26  ;;  %v19833_v25 = vsub.f32 %v19735_v40, %v26834_v47  ;;  %v26835_v26 = vand.u32 4294901760, %v19745_v60  ;;  %v19848_v24 = vsub.f32 %v19750_v50, %v26836_v57  ;;  %v11301_v47 = vpop.f32.mrb[12].mxu0  ;;  %v14227_v15 = vpack.c.bf16 %v19016_v10, %v19011_v30 }
 0x225   :  { %v19819_v3 = vsub.f32 %v19718_v6, %v26832_v52  ;;  %14260 = vmatpush3.bf16.msra.mxu1 %v19489_v22  ;;  %14222 = vmatprep.subr.bf16.mxu0 %v14221_v53  ;;  %v11302_v52 = vpop.f32.mrb[13].mxu0  ;;  %v26837_v57 = vand.u32 4294901760, %v19767_v37  ;;  %v26839_v50 = vand.u32 4294901760, %v19772_v1  ;;  %v19877_v53 = vsub.f32 %v19785_v34, %v26843_v7 }
 0x226   :  { %v19843_v46 = vsub.f32 %v19745_v60, %v26835_v26  ;;  %14262 = vmatprep.subr.bf16.mxu1 %v19509_v62  ;;  %v11303_v30 = vadd.f32 %v11302_v52, %v11301_v47  ;;  %v19872_v26 = vsub.f32 %v19780_v38, %v26841_v21  ;;  %v26844_v21 = vand.u32 4294901760, %v19761_v51 }
 0x227   :  { %v19861_v44 = vsub.f32 %v19767_v37, %v26837_v57  ;;  %v19866_v10 = vsub.f32 %v19772_v1, %v26839_v50  ;;  %v14229_v50 = vpack.c.bf16 %v19039_v56, %v19034_v63  ;;  %v26845_v57 = vand.u32 4294901760, %v19797_v23 }
 0x228   :  { %14224 = vmatpush3.bf16.msra.mxu0 %v14223_v12  ;;  %26842 = vst [vmem:[#allocation56_spill] sm:$0xff] %v19872_v26  ;;  %v2166_v47 = vadd.f32 %v11303_v30, %v19519_v33  ;;  %v26850_v63 = vand.u32 4294901760, %v19824_v5  ;;  %v26851_v56 = vand.u32 4294901760, %v19833_v25  ;;  %v26853_v33 = vld [vmem:[#allocation61_spill] sm:$0xff] }
 0x229   :  { %26838 = vst [vmem:[#allocation54_spill] sm:$0xff] %v19861_v44  ;;  %26840 = vst [vmem:[#allocation55_spill] sm:$0xff] %v19866_v10  ;;  %14264 = vmatpush3.bf16.msra.mxu1 %v19517_v36  ;;  %14226 = vmatprep.subr.bf16.mxu0 %v14225_v11  ;;  %v19890_v7 = vpack.c.bf16 %v26845_v57, %v26844_v21  ;;  %v26848_v11 = vand.u32 4294901760, %v19819_v3  ;;  %v25526_v30 = vand.u32 4294901760, %v19861_v44  ;;  %v25525_v21 = vand.u32 4294901760, %v19866_v10 }
 0x22a   :  { %14298 = vmatprep.subr.bf16.mxu1 %v19325_v41  ;;  %v19902_v52 = vpack.c.bf16 %v26851_v56, %v26850_v63  ;;  %v14231_v41 = vpack.c.bf16 %v19052_v35, %v26853_v33  ;;  %v26854_v57 = vand.u32 4294901760, %v19482_v43  ;;  %v19910_v12 = vadd.f32 %v11338_v18, %v2166_v47  ;;  %v26858_v35 = vld [vmem:[#allocation24_spill] sm:$0xff] }
 0x22b   :  { %26846 = vst [vmem:[#allocation57_spill] sm:$0xff] %v19890_v7  ;;  %v19896_v34 = vpack.c.bf16 %v26848_v11, %v26847_v48  ;;  %v25528_v48 = vand.u32 4294901760, %v19872_v26  ;;  %v25527_v11 = vand.u32 4294901760, %v19877_v53  ;;  %v26855_v63 = vand.u32 4294901760, %v19843_v46 }
 0x22c   :  { %26852 = vst [vmem:[#allocation67_spill] sm:$0xff] %v19902_v52  ;;  %4366 = vmatmul.mubr.f32.vlgmr.msra.gmra.mrb[26].mxu1 %v26854_v57  ;;  %14228 = vmatpush3.bf16.msra.mxu0 %v14227_v15  ;;  %v26856_v56 = vand.u32 4294901760, %v19848_v24  ;;  %v26859_v33 = vand.u32 4294901760, %v26775_v54  ;;  %v26860_v15 = vand.u32 4294901760, %v26776_v0  ;;  %v19930_v47 = vpack.c.bf16 %v25525_v21, %v25526_v30  ;;  %v19941_v54 = vld [vmem:[%s25149_s5 + $0x588] sm:$0xff] }
 0x22d   :  { %26849 = vst [vmem:[#allocation37_spill] sm:$0xff] %v19896_v34  ;;  %14300 = vmatpush3.bf16.msra.mxu1 %v19352_v39  ;;  %4636 = vmatprep.mubr.f32.mxu1 %v26858_v35  ;;  %v19936_v39 = vld [vmem:[%s25149_s5 + $0x580] sm:$0xff]  ;;  %v19947_v0 = vpack.c.bf16 %v25527_v11, %v25528_v48  ;;  %v26878_v11 = vand.u32 4294901760, %v19277_v2  ;;  %v26882_v2 = vld [vmem:[#allocation18_spill] sm:$0xff] }
 0x22e   :  { %v19918_v52 = vpack.c.bf16 %v26856_v56, %v26855_v63  ;;  %v14265_v18 = vpack.c.bf16 %v26860_v15, %v26859_v33  ;;  %26861 = vst [vmem:[#allocation38_spill] sm:$0xff] %v19930_v47  ;;  %14230 = vmatprep.subr.bf16.mxu0 %v14229_v50  ;;  %14302 = vmatprep.subr.bf16.mxu1 %v19359_v8  ;;  %v26863_v50 = vand.u32 4294901760, %v26779_v16  ;;  %v26864_v8 = vand.u32 4294901760, %v26780_v32  ;;  %v26865_v63 = vld [vmem:[#allocation39_spill] sm:$0xff]  ;;  %v26867_v33 = vld [vmem:[#allocation30_spill] sm:$0xff]  ;;  %v26869_v16 = vld [vmem:[#allocation44_spill] sm:$0xff] }
 0x22f   :  { %26862 = vst [vmem:[#allocation19_spill] sm:$0xff] %v19947_v0  ;;  %v26866_v56 = vand.u32 4294901760, %v26865_v63  ;;  %v26868_v15 = vand.u32 4294901760, %v26867_v33  ;;  %v25534_v30 = vand.u32 4294901760, %v19936_v39  ;;  %v25529_v47 = vand.u32 4294901760, %v19941_v54  ;;  %v19975_v32 = vld [vmem:[%s25149_s5 + $0x590] sm:$0xff] }
 0x230   :  { %26857 = vst [vmem:[#allocation20_spill] sm:$0xff] %v19918_v52  ;;  %14232 = vmatpush3.bf16.msra.mxu0 %v14231_v41  ;;  %v14267_v57 = vpack.c.bf16 %v26864_v8, %v26863_v50  ;;  %v19963_v41 = vld [vmem:[%s25149_s5 + $0x500] sm:$0xff]  ;;  %v26870_v8 = vld [vmem:[#allocation21_spill] sm:$0xff]  ;;  %v26885_v52 = vld [vmem:[#allocation58_spill] sm:$0xff] }
 0x231   :  { %14304 = vmatpush3.bf16.msra.mxu1 %v19379_v61  ;;  %14266 = vmatprep.subr.bf16.mxu0 %v14265_v18  ;;  %v14269_v21 = vpack.c.bf16 %v26868_v15, %v26866_v56  ;;  %v19969_v61 = vld [vmem:[%s25149_s5 + $0x508] sm:$0xff]  ;;  %v19980_v18 = vld [vmem:[%s25149_s5 + $0x598] sm:$0xff]  ;;  %v25530_v50 = vand.u32 4294901760, %v19963_v41  ;;  %v19993_v63 = vsub.f32 %v19941_v54, %v25529_v47 }
 0x232   :  { %14306 = vmatprep.subr.bf16.mxu1 %v26869_v16  ;;  %v25533_v56 = vand.u32 4294901760, %v19969_v61  ;;  %v25532_v33 = vand.u32 4294901760, %v19980_v18  ;;  %v26874_v15 = vld [vmem:[#allocation49_spill] sm:$0xff]  ;;  %v55_v16 = vld [vmem:[%s25145_s1 + $0x58] sm:$0xff] }
 0x233   :  { %4258 = vmatmul.mubr.f32.vlgmr.msra.gmra.mrb[26].mxu0 %v19482_v43  ;;  %v19988_v43 = vsub.f32 %v19936_v39, %v25534_v30  ;;  %26872 = vst [vmem:[#allocation7_spill] sm:$0xff] %v19993_v63  ;;  %v25536_v47 = vand.u32 4294901760, %v19993_v63 }
 0x234   :  { %14268 = vmatpush3.bf16.msra.mxu0 %v14267_v57  ;;  %4532 = vmatprep.mubr.f32.mxu0 %v26858_v35  ;;  %v26873_v57 = vld [vmem:[#allocation10_spill] sm:$0xff]  ;;  %v25531_v35 = vand.u32 4294901760, %v19975_v32 }
 0x235   :  { %14308 = vmatpush3.bf16.msra.mxu1 %v26870_v8  ;;  %14270 = vmatprep.subr.bf16.mxu0 %v14269_v21  ;;  %26871 = vst [vmem:[#allocation8_spill] sm:$0xff] %v19988_v43  ;;  %v20003_v21 = vsub.f32 %v19963_v41, %v25530_v50  ;;  %v26876_v8 = vld [vmem:[#allocation40_spill] sm:$0xff]  ;;  %v20019_v50 = vsub.f32 %v19969_v61, %v25533_v56 }
 0x236   :  { %14310 = vmatprep.subr.bf16.mxu1 %v26873_v57  ;;  %v26877_v57 = vand.u32 4294901760, %v19272_v59  ;;  %v20030_v59 = vsub.f32 %v19980_v18, %v25532_v33  ;;  %v4878_v33 = vsub.f32 %v19993_v63, %v25536_v47 }
 0x237   :  { %26875 = vst [vmem:[#allocation61_spill] sm:$0xff] %v20003_v21  ;;  %26879 = vst [vmem:[#allocation24_spill] sm:$0xff] %v20019_v50  ;;  %v26886_v47 = vand.u32 4294901760, %v20003_v21 }
 0x238   :  { %14272 = vmatpush3.bf16.msra.mxu0 %v26874_v15  ;;  %v14277_v48 = vpack.c.bf16 %v26878_v11, %v26877_v57  ;;  %v25535_v15 = vand.u32 4294901760, %v19988_v43  ;;  %26881 = vst [vmem:[#allocation30_spill] sm:$0xff] %v20030_v59  ;;  %v71_v11 = vmul.f32 %v55_v16, %v26882_v2  ;;  %v26883_v57 = vld [vmem:[#allocation9_spill] sm:$0xff]  ;;  %v4879_v30 = vand.u32 4294901760, %v4878_v33 }
 0x239   :  { %14312 = vmatpush3.bf16.msra.mxu1 %v19435_v17  ;;  %14274 = vmatprep.subr.bf16.mxu0 %v26876_v8  ;;  %v20025_v17 = vsub.f32 %v19975_v32, %v25531_v35  ;;  %v20036_v8 = vld [vmem:[%s25149_s5 + $0x5b0] sm:$0xff]  ;;  %v4759_v56 = vsub.f32 %v20003_v21, %v26886_v47  ;;  %v26888_v35 = vand.u32 4294901760, %v20019_v50  ;;  %v26890_v63 = vand.u32 4294901760, %v20030_v59 }
 0x23a   :  { %14314 = vmatprep.subr.bf16.mxu1 %v19441_v13  ;;  %v20041_v13 = vld [vmem:[%s25149_s5 + $0x5b8] sm:$0xff]  ;;  %v4871_v16 = vsub.f32 %v19988_v43, %v25535_v15  ;;  %v20058_v0 = vand.u32 4294901760, %v71_v11 }
 0x23b   :  { %26880 = vst [vmem:[#allocation39_spill] sm:$0xff] %v20025_v17  ;;  %v26889_v7 = vand.u32 4294901760, %v20025_v17  ;;  %v4892_v47 = vsub.f32 %v20030_v59, %v26890_v63  ;;  %v26892_v33 = vand.u32 4294901760, %v20041_v13  ;;  %v4760_v63 = vand.u32 4294901760, %v4759_v56  ;;  %v26896_v59 = vld [vmem:[#allocation62_spill] sm:$0xff] }
 0x23c   :  { %14276 = vmatpush3.bf16.msra.mxu0 %v26883_v57  ;;  %26884 = vst [vmem:[#allocation44_spill] sm:$0xff] %v20058_v0  ;;  %v4872_v57 = vand.u32 4294901760, %v4871_v16 }
 0x23d   :  { %14316 = vmatpush3.bf16.msra.mxu1 %v19456_v45  ;;  %14278 = vmatprep.subr.bf16.mxu0 %v14277_v48  ;;  %v11406_v48 = vpop.f32.mrb[14].mxu1  ;;  %v4766_v45 = vsub.f32 %v20019_v50, %v26888_v35  ;;  %v20084_v16 = vsub.f32 %v20041_v13, %v26892_v33  ;;  %v26897_v50 = vand.u32 4294901760, %v19579_v27  ;;  %v4893_v21 = vand.u32 4294901760, %v4892_v47  ;;  %v26904_v47 = vld [vmem:[#allocation64_spill] sm:$0xff] }
 0x23e   :  { %14318 = vmatprep.subr.bf16.mxu1 %v19462_v31  ;;  %v11407_v15 = vpop.f32.mrb[15].mxu1  ;;  %v26887_v31 = vld [vmem:[#allocation59_spill] sm:$0xff]  ;;  %v14361_v33 = vpack.c.bf16 %v4879_v30, %v4872_v57 }
 0x23f   :  { %v11408_v34 = vadd.f32 %v11407_v15, %v11406_v48  ;;  %v26894_v48 = vld [vmem:[#allocation60_spill] sm:$0xff] }
 0x240   :  { %14280 = vmatpush3.bf16.msra.mxu0 %v26885_v52  ;;  %v4885_v52 = vsub.f32 %v20025_v17, %v26889_v7  ;;  %v20090_v7 = vsub.f32 %v71_v11, %v20058_v0  ;;  %v4767_v17 = vand.u32 4294901760, %v4766_v45  ;;  %v26898_v11 = vand.u32 4294901760, %v19584_v55 }
 0x241   :  { %14320 = vmatpush3.bf16.msra.mxu1 %v19472_v4  ;;  %14282 = vmatprep.subr.bf16.mxu0 %v26887_v31  ;;  %v26891_v4 = vand.u32 4294901760, %v20036_v8  ;;  %v26895_v31 = vand.u32 4294901760, %v19566_v42 }
 0x242   :  { %14322 = vmatprep.subr.bf16.mxu1 %v19479_v49  ;;  %v26893_v49 = vand.u32 4294901760, %v19561_v29  ;;  %v4886_v56 = vand.u32 4294901760, %v4885_v52 }
 0x243   :  { %v20079_v15 = vsub.f32 %v20036_v8, %v26891_v4  ;;  %v4780_v4 = vsub.f32 %v19566_v42, %v26895_v31  ;;  %v26899_v42 = vld [vmem:[#allocation63_spill] sm:$0xff] }
 0x244   :  { %v4773_v35 = vsub.f32 %v19561_v29, %v26893_v49  ;;  %14284 = vmatpush3.bf16.msra.mxu0 %v26894_v48  ;;  %v4899_v49 = vsub.f32 %v19579_v27, %v26897_v50  ;;  %v4906_v29 = vsub.f32 %v19584_v55, %v26898_v11  ;;  %v11371_v48 = vpop.f32.mrb[14].mxu0  ;;  %v26900_v27 = vld [vmem:[#allocation42_spill] sm:$0xff]  ;;  %v26902_v55 = vld [vmem:[#allocation5_spill] sm:$0xff] }
 0x245   :  { %14324 = vmatpush3.bf16.msra.mxu1 %v19489_v22  ;;  %14286 = vmatprep.subr.bf16.mxu0 %v26896_v59  ;;  %v11372_v59 = vpop.f32.mrb[15].mxu0  ;;  %v4781_v50 = vand.u32 4294901760, %v4780_v4  ;;  %v26901_v43 = vand.u32 4294901760, %v26900_v27  ;;  %v14363_v22 = vpack.c.bf16 %v4767_v17, %v4760_v63  ;;  %v26905_v4 = vand.u32 4294901760, %v20079_v15  ;;  %v26910_v17 = vld [vmem:[#allocation11_spill] sm:$0xff] }
 0x246   :  { %14326 = vmatprep.subr.bf16.mxu1 %v19509_v62  ;;  %v4774_v30 = vand.u32 4294901760, %v4773_v35  ;;  %v11373_v45 = vadd.f32 %v11372_v59, %v11371_v48  ;;  %v26903_v62 = vand.u32 4294901760, %v26902_v55  ;;  %v4900_v35 = vand.u32 4294901760, %v4899_v49 }
 0x247   :  { %v4787_v11 = vsub.f32 %v26900_v27, %v26901_v43  ;;  %v4907_v31 = vand.u32 4294901760, %v4906_v29  ;;  %v4913_v59 = vsub.f32 %v20079_v15, %v26905_v4  ;;  %v26906_v43 = vand.u32 4294901760, %v20084_v16 }
 0x248   :  { %14288 = vmatpush3.bf16.msra.mxu0 %v26899_v42  ;;  %v4794_v52 = vsub.f32 %v26902_v55, %v26903_v62  ;;  %v2536_v48 = vadd.f32 %v11373_v45, %v19910_v12  ;;  %v14365_v42 = vpack.c.bf16 %v4893_v21, %v4886_v56  ;;  %v26907_v62 = vand.u32 4294901760, %v19936_v39  ;;  %v26911_v21 = vld [vmem:[#allocation65_spill] sm:$0xff] }
 0x249   :  { %14328 = vmatpush3.bf16.msra.mxu1 %v19517_v36  ;;  %14290 = vmatprep.subr.bf16.mxu0 %v26904_v47  ;;  %v4920_v57 = vsub.f32 %v20084_v16, %v26906_v43  ;;  %v26908_v36 = vand.u32 4294901760, %v19941_v54  ;;  %v26909_v29 = vand.u32 4294901760, %v20090_v7  ;;  %v14367_v63 = vpack.c.bf16 %v4781_v50, %v4774_v30  ;;  %v26912_v54 = vld [vmem:[#allocation15_spill] sm:$0xff] }
 0x24a   :  { %14362 = vmatprep.subr.bf16.mxu1 %v14361_v33  ;;  %v4788_v33 = vand.u32 4294901760, %v4787_v11  ;;  %v4795_v49 = vand.u32 4294901760, %v4794_v52  ;;  %v20135_v56 = vadd.f32 %v11408_v34, %v2536_v48  ;;  %v14369_v39 = vpack.c.bf16 %v4907_v31, %v4900_v35  ;;  %v26917_v11 = vld [vmem:[#allocation28_spill] sm:$0xff] }
 0x24b   :  { %v20128_v47 = vpack.c.bf16 %v26908_v36, %v26907_v62  ;;  %v4742_v12 = vsub.f32 %v20090_v7, %v26909_v29  ;;  %v26913_v45 = vand.u32 4294901760, %v26912_v54  ;;  %v26914_v43 = vand.u32 4294901760, %v19674_v14  ;;  %v26915_v36 = vld [vmem:[#allocation16_spill] sm:$0xff] }
 0x24c   :  { %4638 = vmatmul.mubr.f32.vlgmr.msra.gmra.mrb[28].mxu1 %v26910_v17  ;;  %14292 = vmatpush3.bf16.msra.mxu0 %v26911_v21  ;;  %v4914_v30 = vand.u32 4294901760, %v4913_v59  ;;  %v4921_v50 = vand.u32 4294901760, %v4920_v57  ;;  %v26916_v34 = vand.u32 4294901760, %v19685_v58  ;;  %v26918_v52 = vand.u32 4294901760, %v26917_v11  ;;  %v26921_v21 = vld [vmem:[#allocation66_spill] sm:$0xff] }
 0x24d   :  { %14364 = vmatpush3.bf16.msra.mxu1 %v14363_v22  ;;  %4980 = vmatprep.mubr.f32.mxu1 %v20058_v0  ;;  %v4801_v4 = vsub.f32 %v26912_v54, %v26913_v45  ;;  %v4808_v62 = vsub.f32 %v19674_v14, %v26914_v43  ;;  %v26919_v35 = vand.u32 4294901760, %v19963_v41  ;;  %v26920_v48 = vand.u32 4294901760, %v19969_v61 }
 0x24e   :  { %14294 = vmatprep.subr.bf16.mxu0 %v26915_v36  ;;  %14366 = vmatprep.subr.bf16.mxu1 %v14365_v42  ;;  %v4927_v22 = vsub.f32 %v19685_v58, %v26916_v34  ;;  %v4934_v31 = vsub.f32 %v26917_v11, %v26918_v52  ;;  %v14371_v45 = vpack.c.bf16 %v4795_v49, %v4788_v33  ;;  %v26922_v42 = vand.u32 4294901760, %v19975_v32 }
 0x24f   :  { %v20155_v29 = vpack.c.bf16 %v26920_v48, %v26919_v35  ;;  %v26923_v57 = vand.u32 4294901760, %v19980_v18  ;;  %v26924_v43 = vand.u32 4294901760, %v19707_v20  ;;  %v26925_v34 = vand.u32 4294901760, %v19712_v19 }
 0x250   :  { %14296 = vmatpush3.bf16.msra.mxu0 %v26921_v21  ;;  %v4802_v61 = vand.u32 4294901760, %v4801_v4  ;;  %v4809_v52 = vand.u32 4294901760, %v4808_v62  ;;  %v26926_v33 = vand.u32 4294901760, %v19761_v51  ;;  %v26927_v18 = vand.u32 4294901760, %v19797_v23 }
 0x251   :  { %v20162_v59 = vpack.c.bf16 %v26923_v57, %v26922_v42  ;;  %v4815_v36 = vsub.f32 %v19707_v20, %v26924_v43  ;;  %v4822_v41 = vsub.f32 %v19712_v19, %v26925_v34  ;;  %14368 = vmatpush3.bf16.msra.mxu1 %v14367_v63  ;;  %14330 = vmatprep.subr.bf16.mxu0 %v20128_v47  ;;  %v4743_v35 = vand.u32 4294901760, %v4742_v12  ;;  %v26928_v63 = vld [vmem:[#allocation22_spill] sm:$0xff]  ;;  %v26930_v43 = vld [vmem:[#allocation31_spill] sm:$0xff] }
 0x252   :  { %v4941_v32 = vsub.f32 %v19761_v51, %v26926_v33  ;;  %v4948_v49 = vsub.f32 %v19797_v23, %v26927_v18  ;;  %14370 = vmatprep.subr.bf16.mxu1 %v14369_v39  ;;  %v14373_v48 = vpack.c.bf16 %v4921_v50, %v4914_v30  ;;  %v4928_v21 = vand.u32 4294901760, %v4927_v22  ;;  %v26934_v50 = vld [vmem:[#allocation32_spill] sm:$0xff] }
 0x253   :  { %v4935_v42 = vand.u32 4294901760, %v4934_v31  ;;  %4534 = vmatmul.mubr.f32.vlgmr.msra.gmra.mrb[28].mxu0 %v26910_v17  ;;  %v26929_v57 = vand.u32 4294901760, %v26928_v63  ;;  %v26931_v4 = vand.u32 4294901760, %v26930_v43  ;;  %v4816_v34 = vand.u32 4294901760, %v4815_v36  ;;  %v26936_v31 = vld [vmem:[#allocation33_spill] sm:$0xff] }
 0x254   :  { %14332 = vmatpush3.bf16.msra.mxu0 %v20155_v29  ;;  %4744 = vmatprep.mubr.f32.mxu0 %v4743_v35  ;;  %v4823_v33 = vand.u32 4294901760, %v4822_v41  ;;  %v26932_v18 = vand.u32 4294901760, %v19802_v9  ;;  %v26933_v39 = vand.u32 4294901760, %v19819_v3  ;;  %v14375_v17 = vpack.c.bf16 %v4809_v52, %v4802_v61  ;;  %v26943_v52 = vld [vmem:[#allocation17_spill] sm:$0xff] }
 0x255   :  { %v20182_v62 = vpack.c.bf16 %v26931_v4, %v26929_v57  ;;  %14372 = vmatpush3.bf16.msra.mxu1 %v14371_v45  ;;  %14334 = vmatprep.subr.bf16.mxu0 %v20162_v59  ;;  %v26935_v22 = vand.u32 4294901760, %v26934_v50  ;;  %v26937_v63 = vand.u32 4294901760, %v26936_v31  ;;  %v4942_v36 = vand.u32 4294901760, %v4941_v32 }
 0x256   :  { %v4829_v12 = vsub.f32 %v19802_v9, %v26932_v18  ;;  %v4836_v30 = vsub.f32 %v19819_v3, %v26933_v39  ;;  %v4949_v41 = vand.u32 4294901760, %v4948_v49  ;;  %14374 = vmatprep.subr.bf16.mxu1 %v14373_v48  ;;  %v14377_v35 = vpack.c.bf16 %v4935_v42, %v4928_v21  ;;  %v26941_v39 = vld [vmem:[#allocation34_spill] sm:$0xff] }
 0x257   :  { %v20196_v57 = vpack.c.bf16 %v26937_v63, %v26935_v22  ;;  %v26939_v43 = vand.u32 4294901760, %v19824_v5  ;;  %v26940_v18 = vand.u32 4294901760, %v19833_v25  ;;  %v26942_v61 = vand.u32 4294901760, %v26941_v39 }
 0x258   :  { %v26944_v50 = vand.u32 4294901760, %v26943_v52  ;;  %14336 = vmatpush3.bf16.msra.mxu0 %v20182_v62  ;;  %v14379_v32 = vpack.c.bf16 %v4823_v33, %v4816_v34  ;;  %v26946_v49 = vand.u32 4294901760, %v20036_v8  ;;  %v26947_v48 = vand.u32 4294901760, %v20041_v13  ;;  %v54_v8 = vld [vmem:[%s25145_s1 + $0x50] sm:$0xff] }
 0x259   :  { %26938 = vst [vmem:[#allocation21_spill] sm:$0xff] %v20196_v57  ;;  %v4955_v4 = vsub.f32 %v19824_v5, %v26939_v43  ;;  %v4962_v45 = vsub.f32 %v19833_v25, %v26940_v18  ;;  %v4830_v42 = vand.u32 4294901760, %v4829_v12  ;;  %v4837_v22 = vand.u32 4294901760, %v4836_v30  ;;  %14376 = vmatpush3.bf16.msra.mxu1 %v14375_v17  ;;  %14338 = vmatprep.subr.bf16.mxu0 %v20196_v57 }
 0x25a   :  { %v20208_v0 = vpack.c.bf16 %v26944_v50, %v26942_v61  ;;  %v20215_v21 = vpack.c.bf16 %v26947_v48, %v26946_v49  ;;  %v14381_v31 = vpack.c.bf16 %v4949_v41, %v4942_v36  ;;  %v26948_v63 = vand.u32 4294901760, %v19843_v46  ;;  %14378 = vmatprep.subr.bf16.mxu1 %v14377_v35  ;;  %v26952_v41 = vld [vmem:[#allocation6_spill] sm:$0xff]  ;;  %v26954_v61 = vld [vmem:[#allocation41_spill] sm:$0xff]  ;;  %v26956_v35 = vld [vmem:[#allocation51_spill] sm:$0xff] }
 0x25b   :  { %v26949_v18 = vand.u32 4294901760, %v19848_v24  ;;  %v4956_v13 = vand.u32 4294901760, %v4955_v4  ;;  %v4963_v33 = vand.u32 4294901760, %v4962_v45  ;;  %v26950_v12 = vand.u32 4294901760, %v19861_v44  ;;  %v26958_v45 = vld [vmem:[#allocation25_spill] sm:$0xff] }
 0x25c   :  { %26945 = vst [vmem:[#allocation10_spill] sm:$0xff] %v20208_v0  ;;  %v4843_v43 = vsub.f32 %v19843_v46, %v26948_v63  ;;  %v26951_v17 = vand.u32 4294901760, %v19866_v10  ;;  %14340 = vmatpush3.bf16.msra.mxu0 %v20208_v0  ;;  %v26953_v39 = vand.u32 4294901760, %v26952_v41  ;;  %v26955_v52 = vand.u32 4294901760, %v26954_v61 }
 0x25d   :  { %v4850_v34 = vsub.f32 %v19848_v24, %v26949_v18  ;;  %v4969_v30 = vsub.f32 %v19861_v44, %v26950_v12  ;;  %v14383_v49 = vpack.c.bf16 %v4837_v22, %v4830_v42  ;;  %v26957_v4 = vand.u32 4294901760, %v26956_v35  ;;  %14380 = vmatpush3.bf16.msra.mxu1 %v14379_v32  ;;  %14342 = vmatprep.subr.bf16.mxu0 %v20215_v21  ;;  %v26962_v32 = vld [vmem:[#allocation36_spill] sm:$0xff] }
 0x25e   :  { %v4976_v36 = vsub.f32 %v19866_v10, %v26951_v17  ;;  %v20238_v50 = vpack.c.bf16 %v26955_v52, %v26953_v39  ;;  %v26959_v48 = vand.u32 4294901760, %v26958_v45  ;;  %v70_v18 = vmul.f32 %v54_v8, %v26882_v2  ;;  %14382 = vmatprep.subr.bf16.mxu1 %v14381_v31  ;;  %v26966_v2 = vld [vmem:[#allocation13_spill] sm:$0xff] }
 0x25f   :  { %v4844_v12 = vand.u32 4294901760, %v4843_v43  ;;  %v4851_v17 = vand.u32 4294901760, %v4850_v34  ;;  %v26960_v41 = vand.u32 4294901760, %v19872_v26  ;;  %v26961_v39 = vand.u32 4294901760, %v19877_v53  ;;  %v26964_v43 = vld [vmem:[#allocation43_spill] sm:$0xff] }
 0x260   :  { %v20244_v63 = vpack.c.bf16 %v26959_v48, %v26957_v4  ;;  %v14385_v22 = vpack.c.bf16 %v4963_v33, %v4956_v13  ;;  %v4970_v52 = vand.u32 4294901760, %v4969_v30  ;;  %v4977_v35 = vand.u32 4294901760, %v4976_v36  ;;  %v11476_v4 = vpop.f32.mrb[16].mxu1  ;;  %14344 = vmatpush3.bf16.msra.mxu0 %v20238_v50 }
 0x261   :  { %v4857_v61 = vsub.f32 %v19872_v26, %v26960_v41  ;;  %v4864_v42 = vsub.f32 %v19877_v53, %v26961_v39  ;;  %v11477_v45 = vpop.f32.mrb[17].mxu1  ;;  %v26963_v8 = vand.u32 4294901760, %v26962_v32  ;;  %v26965_v34 = vand.u32 4294901760, %v26964_v43  ;;  %v26968_v26 = vld [vmem:[#allocation45_spill] sm:$0xff]  ;;  %14384 = vmatpush3.bf16.msra.mxu1 %v14383_v49  ;;  %v26971_v32 = vld [vmem:[#allocation46_spill] sm:$0xff]  ;;  %v20314_v43 = vld [vmem:[%s25149_s5 + $0x618] sm:$0xff] }
 0x262   :  { %v26967_v41 = vand.u32 4294901760, %v26966_v2  ;;  %v26969_v10 = vand.u32 4294901760, %v26968_v26  ;;  %v20267_v31 = vand.u32 4294901760, %v70_v18  ;;  %v11478_v13 = vadd.f32 %v11477_v45, %v11476_v4  ;;  %14346 = vmatprep.subr.bf16.mxu0 %v20244_v63  ;;  %14386 = vmatprep.subr.bf16.mxu1 %v14385_v22  ;;  %26982 = vst [vmem:[#allocation59_spill] sm:$0xff] %v20314_v43 }
 0x263   :  { %v20259_v48 = vpack.c.bf16 %v26965_v34, %v26963_v8  ;;  %v14387_v33 = vpack.c.bf16 %v4851_v17, %v4844_v12  ;;  %v4858_v30 = vand.u32 4294901760, %v4857_v61  ;;  %v4865_v36 = vand.u32 4294901760, %v4864_v42  ;;  %v11441_v42 = vpop.f32.mrb[16].mxu0 }
 0x264   :  { %v20265_v44 = vpack.c.bf16 %v26969_v10, %v26967_v41  ;;  %26970 = vst [vmem:[#allocation49_spill] sm:$0xff] %v20267_v31  ;;  %v14389_v39 = vpack.c.bf16 %v4977_v35, %v4970_v52  ;;  %v26972_v8 = vand.u32 4294901760, %v26971_v32  ;;  %v26973_v2 = vand.u32 4294901760, %v19718_v6  ;;  %v11442_v22 = vpop.f32.mrb[17].mxu0  ;;  %v26977_v35 = vld [vmem:[#allocation47_spill] sm:$0xff] }
 0x265   :  { %14348 = vmatpush3.bf16.msra.mxu0 %v20259_v48  ;;  %14388 = vmatpush3.bf16.msra.mxu1 %v14387_v33  ;;  %v14391_v10 = vpack.c.bf16 %v4865_v36, %v4858_v30  ;;  %v26974_v49 = vand.u32 4294901760, %v19723_v28  ;;  %v26975_v12 = vand.u32 4294901760, %v19735_v40  ;;  %v20285_v61 = vsub.f32 %v70_v18, %v20267_v31  ;;  %v20297_v28 = vld [vmem:[%s25149_s5 + $0x690] sm:$0xff]  ;;  %v20302_v40 = vld [vmem:[%s25149_s5 + $0x698] sm:$0xff] }
 0x266   :  { %v20275_v26 = vpack.c.bf16 %v26973_v2, %v26972_v8  ;;  %14350 = vmatprep.subr.bf16.mxu0 %v20265_v44  ;;  %14390 = vmatprep.subr.bf16.mxu1 %v14389_v39  ;;  %v11443_v52 = vadd.f32 %v11442_v22, %v11441_v42  ;;  %v26976_v6 = vand.u32 4294901760, %v19745_v60  ;;  %v26978_v4 = vand.u32 4294901760, %v26977_v35  ;;  %26979 = vst [vmem:[#allocation40_spill] sm:$0xff] %v20297_v28  ;;  %v20309_v60 = vld [vmem:[%s25149_s5 + $0x610] sm:$0xff]  ;;  %v26986_v8 = vld [vmem:[#allocation48_spill] sm:$0xff]  ;;  %v26992_v22 = vld [vmem:[#allocation7_spill] sm:$0xff] }
 0x267   :  { %v20282_v17 = vpack.c.bf16 %v26975_v12, %v26974_v49  ;;  %26980 = vst [vmem:[#allocation9_spill] sm:$0xff] %v20302_v40  ;;  %v25560_v18 = vand.u32 4294901760, %v20285_v61  ;;  %26981 = vst [vmem:[#allocation58_spill] sm:$0xff] %v20309_v60  ;;  %v26983_v41 = vand.u32 4294901760, %v19767_v37  ;;  %v26984_v33 = vand.u32 4294901760, %v19772_v1  ;;  %v20341_v49 = vld [vmem:[%s25149_s5 + $0x6a0] sm:$0xff] }
 0x268   :  { %v20292_v45 = vpack.c.bf16 %v26978_v4, %v26976_v6  ;;  %v2812_v34 = vadd.f32 %v11443_v52, %v20135_v56  ;;  %v25559_v36 = vand.u32 4294901760, %v20297_v28  ;;  %v25561_v39 = vand.u32 4294901760, %v20302_v40  ;;  %26988 = vst [vmem:[#allocation60_spill] sm:$0xff] %v20341_v49  ;;  %v20346_v12 = vld [vmem:[%s25149_s5 + $0x6a8] sm:$0xff]  ;;  %v26991_v42 = vld [vmem:[#allocation8_spill] sm:$0xff] }
 0x269   :  { %14352 = vmatpush3.bf16.msra.mxu0 %v20275_v26  ;;  %14392 = vmatpush3.bf16.msra.mxu1 %v14391_v10  ;;  %v20322_v30 = vpack.c.bf16 %v26984_v33, %v26983_v41  ;;  %v26985_v32 = vand.u32 4294901760, %v19780_v38  ;;  %v26987_v56 = vand.u32 4294901760, %v26986_v8  ;;  %v25564_v37 = vand.u32 4294901760, %v20309_v60  ;;  %26989 = vst [vmem:[#allocation62_spill] sm:$0xff] %v20346_v12  ;;  %v20359_v6 = vld [vmem:[%s25149_s5 + $0x620] sm:$0xff]  ;;  %v20364_v35 = vld [vmem:[%s25149_s5 + $0x628] sm:$0xff] }
 0x26a   :  { %14354 = vmatprep.subr.bf16.mxu0 %v20282_v17  ;;  %14426 = vmatprep.subr.bf16.mxu1 %v20128_v47  ;;  %v20334_v10 = vadd.f32 %v11478_v13, %v2812_v34  ;;  %v25568_v1 = vand.u32 4294901760, %v20314_v43  ;;  %v26990_v38 = vand.u32 4294901760, %v20090_v7  ;;  %v4748_v13 = vsub.f32 %v20285_v61, %v25560_v18  ;;  %26993 = vst [vmem:[#allocation63_spill] sm:$0xff] %v20359_v6  ;;  %v26995_v4 = vld [vmem:[#allocation61_spill] sm:$0xff]  ;;  %v26996_v34 = vld [vmem:[#allocation24_spill] sm:$0xff] }
 0x26b   :  { %v20332_v2 = vpack.c.bf16 %v26987_v56, %v26985_v32  ;;  %v14393_v52 = vpack.c.bf16 %v26992_v22, %v26991_v42  ;;  %26994 = vst [vmem:[#allocation42_spill] sm:$0xff] %v20364_v35  ;;  %v14395_v41 = vpack.c.bf16 %v26996_v34, %v26995_v4  ;;  %v20373_v33 = vsub.f32 %v20297_v28, %v25559_v36  ;;  %v27001_v56 = vld [vmem:[#allocation39_spill] sm:$0xff] }
 0x26c   :  { %4982 = vmatmul.mubr.f32.vlgmr.msra.gmra.mrb[30].mxu1 %v20267_v31  ;;  %v20378_v32 = vsub.f32 %v20302_v40, %v25561_v39  ;;  %v20391_v36 = vsub.f32 %v20314_v43, %v25568_v1  ;;  %v4749_v8 = vand.u32 4294901760, %v4748_v13  ;;  %v27002_v40 = vld [vmem:[#allocation30_spill] sm:$0xff]  ;;  %v27005_v18 = vand.u32 4294901760, %v20341_v49 }
 0x26d   :  { %14356 = vmatpush3.bf16.msra.mxu0 %v20292_v45  ;;  %14428 = vmatpush3.bf16.msra.mxu1 %v20155_v29  ;;  %26997 = vst [vmem:[#allocation5_spill] sm:$0xff] %v20373_v33  ;;  %v14397_v28 = vpack.c.bf16 %v27002_v40, %v27001_v56  ;;  %v27007_v13 = vand.u32 4294901760, %v20346_v12  ;;  %v27013_v43 = vand.u32 4294901760, %v20364_v35 }
 0x26e   :  { %5224 = vmatprep.mubr.f32.mxu1 %v26990_v38  ;;  %14358 = vmatprep.subr.bf16.mxu0 %v20322_v30  ;;  %26998 = vst [vmem:[#allocation64_spill] sm:$0xff] %v20378_v32  ;;  %v20386_v38 = vsub.f32 %v20309_v60, %v25564_v37  ;;  %27000 = vst [vmem:[#allocation65_spill] sm:$0xff] %v20391_v36  ;;  %v27003_v37 = vld [vmem:[#allocation35_spill] sm:$0xff]  ;;  %v27004_v60 = vld [vmem:[#allocation26_spill] sm:$0xff]  ;;  %v20406_v39 = vsub.f32 %v20341_v49, %v27005_v18  ;;  %v27025_v40 = vand.u32 4294901760, %v20391_v36 }
 0x26f   :  { %14430 = vmatprep.subr.bf16.mxu1 %v20162_v59  ;;  %v14399_v31 = vpack.c.bf16 %v27004_v60, %v27003_v37  ;;  %v20421_v60 = vld [vmem:[%s25149_s5 + $0x638] sm:$0xff]  ;;  %v20434_v1 = vsub.f32 %v20364_v35, %v27013_v43  ;;  %v20452_v43 = vld [vmem:[%s25149_s5 + $0x640] sm:$0xff]  ;;  %v20457_v35 = vld [vmem:[%s25149_s5 + $0x648] sm:$0xff] }
 0x270   :  { %26999 = vst [vmem:[#allocation11_spill] sm:$0xff] %v20386_v38  ;;  %27006 = vst [vmem:[#allocation15_spill] sm:$0xff] %v20406_v39  ;;  %v27018_v37 = vld [vmem:[#allocation23_spill] sm:$0xff] }
 0x271   :  { %14360 = vmatpush3.bf16.msra.mxu0 %v20332_v2  ;;  %14432 = vmatpush3.bf16.msra.mxu1 %v20182_v62  ;;  %27010 = vst [vmem:[#allocation66_spill] sm:$0xff] %v20421_v60  ;;  %27014 = vst [vmem:[#allocation31_spill] sm:$0xff] %v20434_v1 }
 0x272   :  { %14394 = vmatprep.subr.bf16.mxu0 %v14393_v52  ;;  %14434 = vmatprep.subr.bf16.mxu1 %v20196_v57  ;;  %v20411_v52 = vsub.f32 %v20346_v12, %v27007_v13  ;;  %v20416_v57 = vld [vmem:[%s25149_s5 + $0x630] sm:$0xff]  ;;  %27019 = vst [vmem:[#allocation34_spill] sm:$0xff] %v20452_v43  ;;  %27020 = vst [vmem:[#allocation17_spill] sm:$0xff] %v20457_v35  ;;  %v27022_v12 = vand.u32 4294901760, %v20378_v32 }
 0x273   :  { %27009 = vst [vmem:[#allocation28_spill] sm:$0xff] %v20416_v57 }
 0x274   :  { %4750 = vmatmul.mubr.f32.vlgmr.msra.gmra.mrb[30].mxu0 %v4749_v8  ;;  %27008 = vst [vmem:[#allocation16_spill] sm:$0xff] %v20411_v52  ;;  %v27011_v8 = vand.u32 4294901760, %v20359_v6 }
 0x275   :  { %14396 = vmatpush3.bf16.msra.mxu0 %v14395_v41  ;;  %5117 = vmatprep.mubr.f32.mxu0 %v20090_v7  ;;  %v20439_v41 = vld [vmem:[%s25149_s5 + $0x6c0] sm:$0xff]  ;;  %v20444_v7 = vld [vmem:[%s25149_s5 + $0x6c8] sm:$0xff] }
 0x276   :  { %v20429_v13 = vsub.f32 %v20359_v6, %v27011_v8  ;;  %27015 = vst [vmem:[#allocation32_spill] sm:$0xff] %v20439_v41  ;;  %27016 = vst [vmem:[#allocation33_spill] sm:$0xff] %v20444_v7  ;;  %14436 = vmatpush3.bf16.msra.mxu1 %v20208_v0  ;;  %14398 = vmatprep.subr.bf16.mxu0 %v14397_v28  ;;  %v27017_v8 = vld [vmem:[#allocation29_spill] sm:$0xff]  ;;  %v27021_v6 = vand.u32 4294901760, %v20373_v33  ;;  %v14403_v28 = vpack.c.bf16 %v26902_v55, %v26900_v27 }
 0x277   :  { %v14401_v18 = vpack.c.bf16 %v27018_v37, %v27017_v8  ;;  %14438 = vmatprep.subr.bf16.mxu1 %v20215_v21  ;;  %v27024_v0 = vand.u32 4294901760, %v20386_v38  ;;  %v25579_v33 = vand.u32 4294901760, %v20406_v39  ;;  %v25580_v55 = vand.u32 4294901760, %v20434_v1  ;;  %v20613_v1 = vld [vmem:[%s25149_s5 + $0x670] sm:$0xff] }
 0x278   :  { %27012 = vst [vmem:[#allocation22_spill] sm:$0xff] %v20429_v13  ;;  %v20463_v49 = vpack.c.bf16 %v27022_v12, %v27021_v6  ;;  %v25578_v12 = vand.u32 4294901760, %v20411_v52  ;;  %v25581_v27 = vand.u32 4294901760, %v20429_v13  ;;  %v27029_v37 = vand.u32 4294901760, %v20416_v57  ;;  %27044 = vst [vmem:[#allocation7_spill] sm:$0xff] %v20613_v1 }
 0x279   :  { %v20474_v56 = vpack.c.bf16 %v27025_v40, %v27024_v0  ;;  %14400 = vmatpush3.bf16.msra.mxu0 %v14399_v31  ;;  %v14405_v0 = vpack.c.bf16 %v20084_v16, %v20079_v15  ;;  %v20490_v40 = vld [vmem:[%s25149_s5 + $0x6d0] sm:$0xff]  ;;  %v27031_v8 = vand.u32 4294901760, %v20421_v60 }
 0x27a   :  { %27023 = vst [vmem:[#allocation6_spill] sm:$0xff] %v20463_v49  ;;  %14440 = vmatpush3.bf16.msra.mxu1 %v20238_v50  ;;  %14402 = vmatprep.subr.bf16.mxu0 %v14401_v18  ;;  %27027 = vst [vmem:[#allocation51_spill] sm:$0xff] %v20490_v40  ;;  %v20496_v31 = vpack.c.bf16 %v25578_v12, %v25579_v33  ;;  %v20502_v18 = vsub.f32 %v20416_v57, %v27029_v37  ;;  %v27033_v12 = vand.u32 4294901760, %v20439_v41 }
 0x27b   :  { %27026 = vst [vmem:[#allocation41_spill] sm:$0xff] %v20474_v56  ;;  %14442 = vmatprep.subr.bf16.mxu1 %v20244_v63  ;;  %v20507_v49 = vsub.f32 %v20421_v60, %v27031_v8  ;;  %v20513_v6 = vpack.c.bf16 %v25580_v55, %v25581_v27  ;;  %v20528_v8 = vld [vmem:[%s25149_s5 + $0x6d8] sm:$0xff]  ;;  %v20533_v55 = vld [vmem:[%s25149_s5 + $0x650] sm:$0xff]  ;;  %v27038_v27 = vand.u32 4294901760, %v20452_v43  ;;  %v27041_v60 = vand.u32 4294901760, %v20490_v40 }
 0x27c   :  { %27028 = vst [vmem:[#allocation25_spill] sm:$0xff] %v20496_v31  ;;  %27030 = vst [vmem:[#allocation36_spill] sm:$0xff] %v20502_v18  ;;  %v20518_v33 = vsub.f32 %v20439_v41, %v27033_v12  ;;  %v27034_v31 = vand.u32 4294901760, %v20444_v7  ;;  %v14407_v12 = vpack.c.bf16 %v19674_v14, %v26912_v54  ;;  %v20551_v41 = vld [vmem:[%s25149_s5 + $0x658] sm:$0xff]  ;;  %v20556_v14 = vld [vmem:[%s25149_s5 + $0x6e0] sm:$0xff]  ;;  %v14409_v54 = vpack.c.bf16 %v26917_v11, %v19685_v58 }
 0x27d   :  { %27032 = vst [vmem:[#allocation43_spill] sm:$0xff] %v20513_v6  ;;  %27036 = vst [vmem:[#allocation45_spill] sm:$0xff] %v20528_v8  ;;  %14404 = vmatpush3.bf16.msra.mxu0 %v14403_v28  ;;  %v20540_v6 = vsub.f32 %v20452_v43, %v27038_v27  ;;  %v14411_v28 = vpack.c.bf16 %v19712_v19, %v19707_v20  ;;  %v14413_v27 = vpack.c.bf16 %v19797_v23, %v19761_v51  ;;  %v20578_v19 = vld [vmem:[%s25149_s5 + $0x660] sm:$0xff]  ;;  %v20583_v20 = vld [vmem:[%s25149_s5 + $0x668] sm:$0xff]  ;;  %v11546_v51 = vpop.f32.mrb[18].mxu1 }
 0x27e   :  { %v20523_v37 = vsub.f32 %v20444_v7, %v27034_v31  ;;  %27037 = vst [vmem:[#allocation46_spill] sm:$0xff] %v20533_v55  ;;  %v27039_v31 = vand.u32 4294901760, %v20457_v35  ;;  %14444 = vmatpush3.bf16.msra.mxu1 %v20259_v48  ;;  %14406 = vmatprep.subr.bf16.mxu0 %v14405_v0  ;;  %27040 = vst [vmem:[#allocation47_spill] sm:$0xff] %v20583_v20  ;;  %v11547_v58 = vpop.f32.mrb[19].mxu1  ;;  %v20594_v57 = vsub.f32 %v20490_v40, %v27041_v60  ;;  %v20600_v11 = vld [vmem:[%s25149_s5 + $0x6f0] sm:$0xff]  ;;  %v20618_v43 = vld [vmem:[%s25149_s5 + $0x678] sm:$0xff] }
 0x27f   :  { %14446 = vmatprep.subr.bf16.mxu1 %v20265_v44  ;;  %27045 = vst [vmem:[#allocation61_spill] sm:$0xff] %v20618_v43  ;;  %v27046_v7 = vand.u32 4294901760, %v20502_v18  ;;  %v27050_v0 = vand.u32 4294901760, %v20533_v55  ;;  %v27052_v40 = vand.u32 4294901760, %v20518_v33 }
 0x280   :  { %27035 = vst [vmem:[#allocation13_spill] sm:$0xff] %v20523_v37  ;;  %v20545_v56 = vsub.f32 %v20457_v35, %v27039_v31  ;;  %v20568_v31 = vld [vmem:[%s25149_s5 + $0x6e8] sm:$0xff]  ;;  %27042 = vst [vmem:[#allocation48_spill] sm:$0xff] %v20594_v57  ;;  %v11548_v35 = vadd.f32 %v11547_v58, %v11546_v51  ;;  %v27047_v58 = vand.u32 4294901760, %v20507_v49  ;;  %v27053_v18 = vand.u32 4294901760, %v20523_v37 }
 0x281   :  { %14408 = vmatpush3.bf16.msra.mxu0 %v14407_v12  ;;  %v20605_v12 = vld [vmem:[%s25149_s5 + $0x6f8] sm:$0xff]  ;;  %v20635_v23 = vsub.f32 %v20533_v55, %v27050_v0  ;;  %v27060_v0 = vand.u32 4294901760, %v20556_v14  ;;  %v27068_v37 = vand.u32 4294901760, %v20618_v43 }
 0x282   :  { %27043 = vst [vmem:[#allocation8_spill] sm:$0xff] %v20605_v12  ;;  %14448 = vmatpush3.bf16.msra.mxu1 %v20275_v26  ;;  %14410 = vmatprep.subr.bf16.mxu0 %v14409_v54  ;;  %v20624_v51 = vpack.c.bf16 %v27047_v58, %v27046_v7  ;;  %v27049_v54 = vand.u32 4294901760, %v20528_v8  ;;  %v20641_v13 = vpack.c.bf16 %v27053_v18, %v27052_v40  ;;  %v27055_v7 = vand.u32 4294901760, %v20540_v6 }
 0x283   :  { %14450 = vmatprep.subr.bf16.mxu1 %v20282_v17  ;;  %27051 = vst [vmem:[#allocation35_spill] sm:$0xff] %v20635_v23  ;;  %v27056_v58 = vand.u32 4294901760, %v20545_v56  ;;  %v20657_v55 = vsub.f32 %v20556_v14, %v27060_v0  ;;  %v14415_v18 = vpack.c.bf16 %v19819_v3, %v19802_v9  ;;  %v14417_v0 = vpack.c.bf16 %v19833_v25, %v19824_v5 }
 0x284   :  { %27048 = vst [vmem:[#allocation24_spill] sm:$0xff] %v20624_v51  ;;  %v20630_v60 = vsub.f32 %v20528_v8, %v27049_v54  ;;  %27054 = vst [vmem:[#allocation26_spill] sm:$0xff] %v20641_v13  ;;  %v27058_v54 = vand.u32 4294901760, %v20551_v41  ;;  %v27063_v3 = vand.u32 4294901760, %v20583_v20  ;;  %v27066_v25 = vand.u32 4294901760, %v20613_v1 }
 0x285   :  { %v20647_v51 = vpack.c.bf16 %v27056_v58, %v27055_v7  ;;  %14412 = vmatpush3.bf16.msra.mxu0 %v14411_v28  ;;  %v27061_v7 = vand.u32 4294901760, %v20568_v31  ;;  %v27062_v28 = vand.u32 4294901760, %v20578_v19 }
 0x286   :  { %v20652_v8 = vsub.f32 %v20551_v41, %v27058_v54  ;;  %14452 = vmatpush3.bf16.msra.mxu1 %v20292_v45  ;;  %14414 = vmatprep.subr.bf16.mxu0 %v14413_v27  ;;  %v20681_v9 = vsub.f32 %v20583_v20, %v27063_v3  ;;  %v27064_v3 = vand.u32 4294901760, %v20600_v11  ;;  %v27065_v20 = vand.u32 4294901760, %v20605_v12 }
 0x287   :  { %27057 = vst [vmem:[#allocation29_spill] sm:$0xff] %v20647_v51  ;;  %v20666_v58 = vsub.f32 %v20568_v31, %v27061_v7  ;;  %v20676_v40 = vsub.f32 %v20578_v19, %v27062_v28  ;;  %v11511_v7 = vpop.f32.mrb[18].mxu0  ;;  %14454 = vmatprep.subr.bf16.mxu1 %v20322_v30  ;;  %v14419_v51 = vpack.c.bf16 %v19848_v24, %v19843_v46  ;;  %v27073_v5 = vand.u32 4294901760, %v20630_v60 }
 0x288   :  { %27059 = vst [vmem:[#allocation23_spill] sm:$0xff] %v20652_v8  ;;  %v11512_v54 = vpop.f32.mrb[19].mxu0  ;;  %v20694_v13 = vsub.f32 %v20600_v11, %v27064_v3  ;;  %v20699_v46 = vsub.f32 %v20605_v12, %v27065_v20  ;;  %v20705_v28 = vsub.f32 %v20613_v1, %v27066_v25  ;;  %v20710_v27 = vsub.f32 %v20618_v43, %v27068_v37  ;;  %v27070_v3 = vld [vmem:[#allocation54_spill] sm:$0xff]  ;;  %v27071_v20 = vld [vmem:[#allocation55_spill] sm:$0xff] }
 0x289   :  { %v11513_v24 = vadd.f32 %v11512_v54, %v11511_v7  ;;  %14416 = vmatpush3.bf16.msra.mxu0 %v14415_v18  ;;  %v14421_v12 = vpack.c.bf16 %v27071_v20, %v27070_v3  ;;  %v27072_v25 = vand.u32 4294901760, %v20594_v57  ;;  %v27075_v43 = vand.u32 4294901760, %v20635_v23 }
 0x28a   :  { %27067 = vst [vmem:[#allocation68_spill] sm:$0xff] %v20705_v28  ;;  %27069 = vst [vmem:[#allocation69_spill] sm:$0xff] %v20710_v27  ;;  %14456 = vmatpush3.bf16.msra.mxu1 %v20332_v2  ;;  %14418 = vmatprep.subr.bf16.mxu0 %v14417_v0  ;;  %v27076_v0 = vand.u32 4294901760, %v20652_v8  ;;  %v27078_v3 = vand.u32 4294901760, %v20657_v55  ;;  %v27079_v20 = vand.u32 4294901760, %v20666_v58 }
 0x28b   :  { %v3028_v7 = vadd.f32 %v11513_v24, %v20334_v10  ;;  %14490 = vmatprep.subr.bf16.mxu1 %v20128_v47  ;;  %v20723_v37 = vpack.c.bf16 %v27073_v5, %v27072_v25  ;;  %v27081_v10 = vld [vmem:[#allocation56_spill] sm:$0xff]  ;;  %v25604_v24 = vand.u32 4294901760, %v20694_v13  ;;  %v25603_v5 = vand.u32 4294901760, %v20699_v46 }
 0x28c   :  { %v20729_v1 = vpack.c.bf16 %v27076_v0, %v27075_v43  ;;  %v20735_v54 = vpack.c.bf16 %v27079_v20, %v27078_v3  ;;  %v14423_v47 = vpack.c.bf16 %v19877_v53, %v27081_v10  ;;  %v27082_v25 = vand.u32 4294901760, %v20285_v61  ;;  %v27086_v53 = vld [vmem:[#allocation44_spill] sm:$0xff] }
 0x28d   :  { %27074 = vst [vmem:[#allocation54_spill] sm:$0xff] %v20723_v37  ;;  %14420 = vmatpush3.bf16.msra.mxu0 %v14419_v51  ;;  %v20743_v18 = vadd.f32 %v11548_v35, %v3028_v7  ;;  %v25606_v43 = vand.u32 4294901760, %v20705_v28  ;;  %v25605_v0 = vand.u32 4294901760, %v20710_v27  ;;  %v27083_v3 = vand.u32 4294901760, %v20676_v40 }
 0x28e   :  { %27077 = vst [vmem:[#allocation55_spill] sm:$0xff] %v20729_v1  ;;  %27080 = vst [vmem:[#allocation70_spill] sm:$0xff] %v20735_v54  ;;  %5228 = vmatmul.mubr.f32.vlgmr.msra.gmra.mrb[32].mxu1 %v27082_v25  ;;  %v27084_v20 = vand.u32 4294901760, %v20681_v9  ;;  %v27087_v10 = vand.u32 4294901760, %v26991_v42  ;;  %v27088_v51 = vand.u32 4294901760, %v26992_v22  ;;  %v20763_v7 = vpack.c.bf16 %v25603_v5, %v25604_v24  ;;  %14422 = vmatprep.subr.bf16.mxu0 %v14421_v12  ;;  %v20774_v42 = vld [vmem:[%s25149_s5 + $0x688] sm:$0xff] }
 0x28f   :  { %14492 = vmatpush3.bf16.msra.mxu1 %v20155_v29  ;;  %5498 = vmatprep.mubr.f32.mxu1 %v27086_v53  ;;  %v20769_v29 = vld [vmem:[%s25149_s5 + $0x680] sm:$0xff]  ;;  %v20780_v22 = vpack.c.bf16 %v25605_v0, %v25606_v43  ;;  %v27091_v12 = vand.u32 4294901760, %v26995_v4  ;;  %v27097_v4 = vld [vmem:[#allocation21_spill] sm:$0xff]  ;;  %v27121_v37 = vand.u32 4294901760, %v20406_v39 }
 0x290   :  { %v20751_v54 = vpack.c.bf16 %v27084_v20, %v27083_v3  ;;  %v14457_v35 = vpack.c.bf16 %v27088_v51, %v27087_v10  ;;  %27089 = vst [vmem:[#allocation44_spill] sm:$0xff] %v20763_v7  ;;  %14494 = vmatprep.subr.bf16.mxu1 %v20162_v59  ;;  %v27092_v59 = vand.u32 4294901760, %v26996_v34  ;;  %v27093_v3 = vld [vmem:[#allocation39_spill] sm:$0xff]  ;;  %v27095_v10 = vld [vmem:[#allocation30_spill] sm:$0xff]  ;;  %v25612_v24 = vand.u32 4294901760, %v20769_v29 }
 0x291   :  { %27090 = vst [vmem:[#allocation71_spill] sm:$0xff] %v20780_v22  ;;  %14424 = vmatpush3.bf16.msra.mxu0 %v14423_v47  ;;  %v27094_v20 = vand.u32 4294901760, %v27093_v3  ;;  %v27096_v51 = vand.u32 4294901760, %v27095_v10  ;;  %v25611_v7 = vand.u32 4294901760, %v20774_v42  ;;  %v20796_v47 = vld [vmem:[%s25149_s5 + $0x600] sm:$0xff]  ;;  %v27103_v3 = vld [vmem:[#allocation14_spill] sm:$0xff] }
 0x292   :  { %27085 = vst [vmem:[#allocation56_spill] sm:$0xff] %v20751_v54  ;;  %v14459_v25 = vpack.c.bf16 %v27092_v59, %v27091_v12  ;;  %14458 = vmatprep.subr.bf16.mxu0 %v14457_v35  ;;  %v25609_v34 = vand.u32 4294901760, %v20796_v47  ;;  %v27098_v35 = vld [vmem:[#allocation10_spill] sm:$0xff]  ;;  %v20811_v12 = vsub.f32 %v20769_v29, %v25612_v24  ;;  %v27105_v10 = vand.u32 4294901760, %v20084_v16  ;;  %v20852_v16 = vld [vmem:[%s25149_s5 + $0x6b8] sm:$0xff]  ;;  %v27120_v54 = vld [vmem:[#allocation57_spill] sm:$0xff] }
 0x293   :  { %14496 = vmatpush3.bf16.msra.mxu1 %v20182_v62  ;;  %v14461_v5 = vpack.c.bf16 %v27096_v51, %v27094_v20  ;;  %v20802_v62 = vld [vmem:[%s25149_s5 + $0x608] sm:$0xff]  ;;  %v20816_v59 = vsub.f32 %v20774_v42, %v25611_v7  ;;  %v27104_v20 = vand.u32 4294901760, %v20079_v15  ;;  %v20847_v15 = vld [vmem:[%s25149_s5 + $0x6b0] sm:$0xff]  ;;  %v27114_v22 = vand.u32 4294901760, %v20378_v32 }
 0x294   :  { %14498 = vmatprep.subr.bf16.mxu1 %v27097_v4  ;;  %5120 = vmatmul.mubr.f32.vlgmr.msra.gmra.mrb[32].mxu0 %v20285_v61  ;;  %27099 = vst [vmem:[#allocation39_spill] sm:$0xff] %v20811_v12  ;;  %v25607_v61 = vand.u32 4294901760, %v20802_v62  ;;  %v25608_v51 = vand.u32 4294901760, %v20811_v12 }
 0x295   :  { %14460 = vmatpush3.bf16.msra.mxu0 %v14459_v25  ;;  %5394 = vmatprep.mubr.f32.mxu0 %v27086_v53  ;;  %27100 = vst [vmem:[#allocation30_spill] sm:$0xff] %v20816_v59  ;;  %v27101_v53 = vld [vmem:[#allocation12_spill] sm:$0xff]  ;;  %v57_v25 = vld [vmem:[%s25145_s1 + $0x68] sm:$0xff]  ;;  %v25610_v4 = vand.u32 4294901760, %v20816_v59 }
 0x296   :  { %14462 = vmatprep.subr.bf16.mxu0 %v14461_v5  ;;  %v20824_v5 = vsub.f32 %v20796_v47, %v25609_v34 }
 0x297   :  { %14500 = vmatpush3.bf16.msra.mxu1 %v27098_v35  ;;  %v20840_v35 = vsub.f32 %v20802_v62, %v25607_v61 }
 0x298   :  { %14502 = vmatprep.subr.bf16.mxu1 %v20215_v21  ;;  %27102 = vst [vmem:[#allocation21_spill] sm:$0xff] %v20824_v5  ;;  %v14469_v21 = vpack.c.bf16 %v27105_v10, %v27104_v20  ;;  %v25614_v20 = vand.u32 4294901760, %v20824_v5 }
 0x299   :  { %14464 = vmatpush3.bf16.msra.mxu0 %v27101_v53  ;;  %27106 = vst [vmem:[#allocation10_spill] sm:$0xff] %v20840_v35  ;;  %v27107_v53 = vld [vmem:[#allocation18_spill] sm:$0xff]  ;;  %v25613_v10 = vand.u32 4294901760, %v20840_v35 }
 0x29a   :  { %14466 = vmatprep.subr.bf16.mxu0 %v27103_v3  ;;  %v27108_v3 = vld [vmem:[#allocation27_spill] sm:$0xff] }
 0x29b   :  { %14504 = vmatpush3.bf16.msra.mxu1 %v20238_v50  ;;  %v73_v50 = vmul.f32 %v57_v25, %v27107_v53  ;;  %v5740_v25 = vsub.f32 %v20816_v59, %v25610_v4  ;;  %v27111_v4 = vld [vmem:[#allocation52_spill] sm:$0xff]  ;;  %v5628_v24 = vsub.f32 %v20840_v35, %v25613_v10  ;;  %v27118_v10 = vld [vmem:[#allocation53_spill] sm:$0xff] }
 0x29c   :  { %14506 = vmatprep.subr.bf16.mxu1 %v20244_v63  ;;  %v5733_v63 = vsub.f32 %v20811_v12, %v25608_v51  ;;  %v5621_v51 = vsub.f32 %v20824_v5, %v25614_v20  ;;  %v27119_v20 = vand.u32 4294901760, %v20391_v36 }
 0x29d   :  { %14468 = vmatpush3.bf16.msra.mxu0 %v27108_v3  ;;  %v11616_v43 = vpop.f32.mrb[20].mxu1  ;;  %v20867_v61 = vand.u32 4294901760, %v73_v50  ;;  %v5741_v7 = vand.u32 4294901760, %v5740_v25  ;;  %v27112_v3 = vld [vmem:[#allocation5_spill] sm:$0xff]  ;;  %v5629_v1 = vand.u32 4294901760, %v5628_v24 }
 0x29e   :  { %14470 = vmatprep.subr.bf16.mxu0 %v14469_v21  ;;  %v27110_v21 = vld [vmem:[#allocation50_spill] sm:$0xff]  ;;  %v27113_v0 = vand.u32 4294901760, %v27112_v3 }
 0x29f   :  { %14508 = vmatpush3.bf16.msra.mxu1 %v20259_v48  ;;  %27109 = vst [vmem:[#allocation12_spill] sm:$0xff] %v20867_v61  ;;  %v11617_v48 = vpop.f32.mrb[21].mxu1 }
 0x2a0   :  { %14510 = vmatprep.subr.bf16.mxu1 %v20265_v44  ;;  %v11618_v34 = vadd.f32 %v11617_v48, %v11616_v43  ;;  %v5734_v44 = vand.u32 4294901760, %v5733_v63  ;;  %v5754_v43 = vsub.f32 %v20378_v32, %v27114_v22  ;;  %v27116_v63 = vand.u32 4294901760, %v20852_v16 }
 0x2a1   :  { %14472 = vmatpush3.bf16.msra.mxu0 %v27110_v21  ;;  %v5747_v21 = vsub.f32 %v27112_v3, %v27113_v0  ;;  %v20899_v0 = vsub.f32 %v73_v50, %v20867_v61  ;;  %v5622_v22 = vand.u32 4294901760, %v5621_v51  ;;  %v27122_v50 = vand.u32 4294901760, %v20411_v52 }
 0x2a2   :  { %14474 = vmatprep.subr.bf16.mxu0 %v27111_v4  ;;  %v20893_v25 = vsub.f32 %v20852_v16, %v27116_v63  ;;  %v14553_v63 = vpack.c.bf16 %v5741_v7, %v5734_v44  ;;  %v5755_v32 = vand.u32 4294901760, %v5754_v43  ;;  %v27128_v43 = vld [vmem:[#allocation67_spill] sm:$0xff] }
 0x2a3   :  { %14512 = vmatpush3.bf16.msra.mxu1 %v20275_v26  ;;  %v27115_v26 = vand.u32 4294901760, %v20847_v15  ;;  %v5748_v51 = vand.u32 4294901760, %v5747_v21 }
 0x2a4   :  { %14514 = vmatprep.subr.bf16.mxu1 %v20282_v17  ;;  %v27117_v17 = vand.u32 4294901760, %v20386_v38 }
 0x2a5   :  { %v20888_v4 = vsub.f32 %v20847_v15, %v27115_v26  ;;  %14476 = vmatpush3.bf16.msra.mxu0 %v27118_v10  ;;  %v5642_v26 = vsub.f32 %v20391_v36, %v27119_v20  ;;  %v11581_v10 = vpop.f32.mrb[20].mxu0  ;;  %v27123_v36 = vld [vmem:[#allocation37_spill] sm:$0xff] }
 0x2a6   :  { %v5635_v48 = vsub.f32 %v20386_v38, %v27117_v17  ;;  %14478 = vmatprep.subr.bf16.mxu0 %v27120_v54  ;;  %v5761_v17 = vsub.f32 %v20406_v39, %v27121_v37  ;;  %v5768_v38 = vsub.f32 %v20411_v52, %v27122_v50  ;;  %v11582_v54 = vpop.f32.mrb[21].mxu0  ;;  %v27124_v39 = vld [vmem:[#allocation22_spill] sm:$0xff]  ;;  %v27126_v52 = vld [vmem:[#allocation31_spill] sm:$0xff] }
 0x2a7   :  { %14516 = vmatpush3.bf16.msra.mxu1 %v20292_v45  ;;  %v11583_v44 = vadd.f32 %v11582_v54, %v11581_v10  ;;  %v5643_v37 = vand.u32 4294901760, %v5642_v26  ;;  %v27125_v3 = vand.u32 4294901760, %v27124_v39  ;;  %v14555_v45 = vpack.c.bf16 %v5629_v1, %v5622_v22 }
 0x2a8   :  { %14518 = vmatprep.subr.bf16.mxu1 %v20322_v30  ;;  %v5636_v7 = vand.u32 4294901760, %v5635_v48  ;;  %v27127_v30 = vand.u32 4294901760, %v27126_v52  ;;  %v5762_v48 = vand.u32 4294901760, %v5761_v17  ;;  %v5769_v20 = vand.u32 4294901760, %v5768_v38 }
 0x2a9   :  { %14480 = vmatpush3.bf16.msra.mxu0 %v27123_v36  ;;  %v5649_v50 = vsub.f32 %v27124_v39, %v27125_v3  ;;  %v3398_v10 = vadd.f32 %v11583_v44, %v20743_v18  ;;  %v14557_v36 = vpack.c.bf16 %v5755_v32, %v5748_v51  ;;  %v27129_v26 = vand.u32 4294901760, %v20888_v4  ;;  %v27134_v18 = vld [vmem:[#allocation49_spill] sm:$0xff]  ;;  %v27135_v32 = vld [vmem:[#allocation20_spill] sm:$0xff] }
 0x2aa   :  { %v5656_v21 = vsub.f32 %v27126_v52, %v27127_v30  ;;  %14482 = vmatprep.subr.bf16.mxu0 %v27128_v43  ;;  %v27130_v3 = vand.u32 4294901760, %v20893_v25  ;;  %v27131_v30 = vand.u32 4294901760, %v20769_v29  ;;  %v27133_v1 = vand.u32 4294901760, %v20899_v0 }
 0x2ab   :  { %14520 = vmatpush3.bf16.msra.mxu1 %v20332_v2  ;;  %v5775_v54 = vsub.f32 %v20888_v4, %v27129_v26  ;;  %v27132_v2 = vand.u32 4294901760, %v20774_v42  ;;  %v14559_v22 = vpack.c.bf16 %v5643_v37, %v5636_v7  ;;  %v20944_v51 = vadd.f32 %v11618_v34, %v3398_v10  ;;  %v27136_v42 = vld [vmem:[#allocation36_spill] sm:$0xff] }
 0x2ac   :  { %14554 = vmatprep.subr.bf16.mxu1 %v14553_v63  ;;  %v5782_v24 = vsub.f32 %v20893_v25, %v27130_v3  ;;  %v5604_v38 = vsub.f32 %v20899_v0, %v27133_v1  ;;  %v5650_v63 = vand.u32 4294901760, %v5649_v50  ;;  %v5657_v17 = vand.u32 4294901760, %v5656_v21  ;;  %v27141_v50 = vld [vmem:[#allocation13_spill] sm:$0xff] }
 0x2ad   :  { %v20937_v43 = vpack.c.bf16 %v27132_v2, %v27131_v30  ;;  %14484 = vmatpush3.bf16.msra.mxu0 %v27135_v32  ;;  %v14561_v29 = vpack.c.bf16 %v5769_v20, %v5762_v48  ;;  %v27137_v44 = vand.u32 4294901760, %v27136_v42  ;;  %v27138_v3 = vand.u32 4294901760, %v20507_v49  ;;  %v27139_v2 = vld [vmem:[#allocation38_spill] sm:$0xff]  ;;  %v27145_v32 = vld [vmem:[#allocation19_spill] sm:$0xff] }
 0x2ae   :  { %5500 = vmatmul.mubr.f32.vlgmr.msra.gmra.mrb[34].mxu1 %v27134_v18  ;;  %14486 = vmatprep.subr.bf16.mxu0 %v27139_v2  ;;  %v5776_v7 = vand.u32 4294901760, %v5775_v54  ;;  %v5783_v37 = vand.u32 4294901760, %v5782_v24  ;;  %v27140_v34 = vand.u32 4294901760, %v20518_v33  ;;  %v27142_v21 = vand.u32 4294901760, %v27141_v50  ;;  %v27148_v24 = vld [vmem:[#allocation9_spill] sm:$0xff] }
 0x2af   :  { %14556 = vmatpush3.bf16.msra.mxu1 %v14555_v45  ;;  %5842 = vmatprep.mubr.f32.mxu1 %v20867_v61  ;;  %v5663_v26 = vsub.f32 %v27136_v42, %v27137_v44  ;;  %v5670_v30 = vsub.f32 %v20507_v49, %v27138_v3  ;;  %v27143_v48 = vand.u32 4294901760, %v20796_v47  ;;  %v27144_v10 = vand.u32 4294901760, %v20802_v62 }
 0x2b0   :  { %14558 = vmatprep.subr.bf16.mxu1 %v14557_v36  ;;  %v5789_v45 = vsub.f32 %v20518_v33, %v27140_v34  ;;  %v5796_v20 = vsub.f32 %v27141_v50, %v27142_v21  ;;  %v14563_v44 = vpack.c.bf16 %v5657_v17, %v5650_v63  ;;  %v27146_v36 = vld [vmem:[#allocation40_spill] sm:$0xff]  ;;  %v27149_v3 = vand.u32 4294901760, %v27148_v24 }
 0x2b1   :  { %v20964_v1 = vpack.c.bf16 %v27144_v10, %v27143_v48  ;;  %14488 = vmatpush3.bf16.msra.mxu0 %v27145_v32  ;;  %v27147_v54 = vand.u32 4294901760, %v27146_v36  ;;  %v27151_v34 = vand.u32 4294901760, %v20540_v6  ;;  %v27152_v21 = vand.u32 4294901760, %v20545_v56 }
 0x2b2   :  { %14522 = vmatprep.subr.bf16.mxu0 %v20937_v43  ;;  %v5664_v62 = vand.u32 4294901760, %v5663_v26  ;;  %v5671_v48 = vand.u32 4294901760, %v5670_v30  ;;  %v27153_v63 = vand.u32 4294901760, %v20594_v57  ;;  %v27154_v10 = vand.u32 4294901760, %v20630_v60 }
 0x2b3   :  { %v20971_v2 = vpack.c.bf16 %v27149_v3, %v27147_v54  ;;  %v5677_v61 = vsub.f32 %v20540_v6, %v27151_v34  ;;  %v5684_v47 = vsub.f32 %v20545_v56, %v27152_v21  ;;  %14560 = vmatpush3.bf16.msra.mxu1 %v14559_v22  ;;  %v5605_v36 = vand.u32 4294901760, %v5604_v38  ;;  %v27155_v22 = vld [vmem:[#allocation58_spill] sm:$0xff]  ;;  %v27157_v21 = vld [vmem:[#allocation59_spill] sm:$0xff] }
 0x2b4   :  { %v5803_v17 = vsub.f32 %v20594_v57, %v27153_v63  ;;  %v5810_v32 = vsub.f32 %v20630_v60, %v27154_v10  ;;  %14562 = vmatprep.subr.bf16.mxu1 %v14561_v29  ;;  %v14565_v54 = vpack.c.bf16 %v5783_v37, %v5776_v7  ;;  %v5790_v24 = vand.u32 4294901760, %v5789_v45  ;;  %5396 = vmatmul.mubr.f32.vlgmr.msra.gmra.mrb[34].mxu0 %v27134_v18  ;;  %v56_v18 = vld [vmem:[%s25145_s1 + $0x60] sm:$0xff] }
 0x2b5   :  { %27150 = vst [vmem:[#allocation14_spill] sm:$0xff] %v20971_v2  ;;  %v5797_v3 = vand.u32 4294901760, %v5796_v20  ;;  %v27156_v34 = vand.u32 4294901760, %v27155_v22  ;;  %v27158_v26 = vand.u32 4294901760, %v27157_v21  ;;  %14524 = vmatpush3.bf16.msra.mxu0 %v20964_v1  ;;  %5606 = vmatprep.mubr.f32.mxu0 %v5605_v36  ;;  %v5678_v63 = vand.u32 4294901760, %v5677_v61  ;;  %v27162_v45 = vld [vmem:[#allocation60_spill] sm:$0xff] }
 0x2b6   :  { %v5685_v57 = vand.u32 4294901760, %v5684_v47  ;;  %v27160_v10 = vand.u32 4294901760, %v20635_v23  ;;  %v27161_v29 = vand.u32 4294901760, %v20652_v8  ;;  %14526 = vmatprep.subr.bf16.mxu0 %v20971_v2  ;;  %v14567_v37 = vpack.c.bf16 %v5671_v48, %v5664_v62  ;;  %v27164_v61 = vld [vmem:[#allocation62_spill] sm:$0xff] }
 0x2b7   :  { %v20991_v30 = vpack.c.bf16 %v27158_v26, %v27156_v34  ;;  %14564 = vmatpush3.bf16.msra.mxu1 %v14563_v44  ;;  %v27163_v20 = vand.u32 4294901760, %v27162_v45  ;;  %v27165_v47 = vand.u32 4294901760, %v27164_v61  ;;  %v5804_v22 = vand.u32 4294901760, %v5803_v17  ;;  %v27171_v48 = vld [vmem:[#allocation42_spill] sm:$0xff] }
 0x2b8   :  { %v5691_v38 = vsub.f32 %v20635_v23, %v27160_v10  ;;  %v5698_v7 = vsub.f32 %v20652_v8, %v27161_v29  ;;  %v5811_v34 = vand.u32 4294901760, %v5810_v32  ;;  %14566 = vmatprep.subr.bf16.mxu1 %v14565_v54  ;;  %v14569_v21 = vpack.c.bf16 %v5797_v3, %v5790_v24  ;;  %v27169_v8 = vld [vmem:[#allocation63_spill] sm:$0xff] }
 0x2b9   :  { %27159 = vst [vmem:[#allocation27_spill] sm:$0xff] %v20991_v30  ;;  %v21008_v36 = vpack.c.bf16 %v27165_v47, %v27163_v20  ;;  %v27167_v26 = vand.u32 4294901760, %v20657_v55  ;;  %v27168_v29 = vand.u32 4294901760, %v20666_v58  ;;  %v27170_v62 = vand.u32 4294901760, %v27169_v8  ;;  %14528 = vmatpush3.bf16.msra.mxu0 %v20991_v30 }
 0x2ba   :  { %v27172_v45 = vand.u32 4294901760, %v27171_v48  ;;  %v72_v20 = vmul.f32 %v56_v18, %v27107_v53  ;;  %v14571_v17 = vpack.c.bf16 %v5685_v57, %v5678_v63  ;;  %v27173_v32 = vand.u32 4294901760, %v20847_v15  ;;  %v27194_v53 = vld [vmem:[#allocation51_spill] sm:$0xff] }
 0x2bb   :  { %27166 = vst [vmem:[#allocation50_spill] sm:$0xff] %v21008_v36  ;;  %v5817_v10 = vsub.f32 %v20657_v55, %v27167_v26  ;;  %v5824_v44 = vsub.f32 %v20666_v58, %v27168_v29  ;;  %v27174_v54 = vand.u32 4294901760, %v20852_v16  ;;  %v5692_v3 = vand.u32 4294901760, %v5691_v38  ;;  %14568 = vmatpush3.bf16.msra.mxu1 %v14567_v37  ;;  %14530 = vmatprep.subr.bf16.mxu0 %v21008_v36 }
 0x2bc   :  { %v21020_v23 = vpack.c.bf16 %v27172_v45, %v27170_v62  ;;  %v5699_v61 = vand.u32 4294901760, %v5698_v7  ;;  %v14573_v8 = vpack.c.bf16 %v5811_v34, %v5804_v22  ;;  %v27175_v47 = vand.u32 4294901760, %v20676_v40  ;;  %14570 = vmatprep.subr.bf16.mxu1 %v14569_v21  ;;  %v27180_v34 = vld [vmem:[#allocation28_spill] sm:$0xff]  ;;  %v27182_v62 = vld [vmem:[#allocation66_spill] sm:$0xff] }
 0x2bd   :  { %v21028_v24 = vpack.c.bf16 %v27174_v54, %v27173_v32  ;;  %v27176_v18 = vand.u32 4294901760, %v20681_v9  ;;  %v5818_v15 = vand.u32 4294901760, %v5817_v10  ;;  %v5825_v63 = vand.u32 4294901760, %v5824_v44  ;;  %v27184_v10 = vld [vmem:[#allocation32_spill] sm:$0xff]  ;;  %v27186_v32 = vld [vmem:[#allocation33_spill] sm:$0xff] }
 0x2be   :  { %v5705_v26 = vsub.f32 %v20676_v40, %v27175_v47  ;;  %v27177_v16 = vand.u32 4294901760, %v20694_v13  ;;  %v27178_v7 = vand.u32 4294901760, %v20699_v46  ;;  %v21043_v22 = vand.u32 4294901760, %v72_v20  ;;  %14532 = vmatpush3.bf16.msra.mxu0 %v21020_v23 }
 0x2bf   :  { %v5712_v57 = vsub.f32 %v20681_v9, %v27176_v18  ;;  %v27181_v29 = vand.u32 4294901760, %v27180_v34  ;;  %v27183_v48 = vand.u32 4294901760, %v27182_v62  ;;  %v14575_v21 = vpack.c.bf16 %v5699_v61, %v5692_v3  ;;  %14572 = vmatpush3.bf16.msra.mxu1 %v14571_v17  ;;  %14534 = vmatprep.subr.bf16.mxu0 %v21028_v24 }
 0x2c0   :  { %v5831_v38 = vsub.f32 %v20694_v13, %v27177_v16  ;;  %v5838_v37 = vsub.f32 %v20699_v46, %v27178_v7  ;;  %27179 = vst [vmem:[#allocation52_spill] sm:$0xff] %v21043_v22  ;;  %v27185_v44 = vand.u32 4294901760, %v27184_v10  ;;  %v27187_v54 = vand.u32 4294901760, %v27186_v32  ;;  %14574 = vmatprep.subr.bf16.mxu1 %v14573_v8  ;;  %v11686_v10 = vpop.f32.mrb[22].mxu1  ;;  %v27192_v32 = vld [vmem:[#allocation17_spill] sm:$0xff] }
 0x2c1   :  { %v21050_v45 = vpack.c.bf16 %v27183_v48, %v27181_v29  ;;  %v5706_v18 = vand.u32 4294901760, %v5705_v26  ;;  %v5713_v16 = vand.u32 4294901760, %v5712_v57  ;;  %v27188_v7 = vand.u32 4294901760, %v20705_v28  ;;  %v11687_v17 = vpop.f32.mrb[23].mxu1  ;;  %v27190_v26 = vld [vmem:[#allocation34_spill] sm:$0xff] }
 0x2c2   :  { %v21056_v47 = vpack.c.bf16 %v27187_v54, %v27185_v44  ;;  %v27189_v62 = vand.u32 4294901760, %v20710_v27  ;;  %v14577_v3 = vpack.c.bf16 %v5825_v63, %v5818_v15  ;;  %v5832_v61 = vand.u32 4294901760, %v5831_v38 }
 0x2c3   :  { %v5719_v34 = vsub.f32 %v20705_v28, %v27188_v7  ;;  %v5839_v48 = vand.u32 4294901760, %v5838_v37  ;;  %v21066_v44 = vsub.f32 %v72_v20, %v21043_v22  ;;  %14536 = vmatpush3.bf16.msra.mxu0 %v21050_v45  ;;  %v27191_v57 = vand.u32 4294901760, %v27190_v26  ;;  %14576 = vmatpush3.bf16.msra.mxu1 %v14575_v21 }
 0x2c4   :  { %v5726_v29 = vsub.f32 %v20710_v27, %v27189_v62  ;;  %v27193_v54 = vand.u32 4294901760, %v27192_v32  ;;  %v27195_v28 = vand.u32 4294901760, %v27194_v53  ;;  %v27196_v62 = vld [vmem:[#allocation45_spill] sm:$0xff]  ;;  %v11688_v63 = vadd.f32 %v11687_v17, %v11686_v10  ;;  %14538 = vmatprep.subr.bf16.mxu0 %v21056_v47  ;;  %14578 = vmatprep.subr.bf16.mxu1 %v14577_v3  ;;  %v21120_v3 = vld [vmem:[%s25149_s5 + $0x790] sm:$0xff]  ;;  %v21140_v17 = vld [vmem:[%s25149_s5 + $0x718] sm:$0xff] }
 0x2c5   :  { %v27197_v8 = vand.u32 4294901760, %v27196_v62  ;;  %v14579_v20 = vpack.c.bf16 %v5713_v16, %v5706_v18  ;;  %v5720_v38 = vand.u32 4294901760, %v5719_v34  ;;  %v14581_v27 = vpack.c.bf16 %v5839_v48, %v5832_v61  ;;  %v21100_v34 = vld [vmem:[%s25149_s5 + $0x780] sm:$0xff]  ;;  %27207 = vst [vmem:[#allocation31_spill] sm:$0xff] %v21120_v3  ;;  %v21130_v48 = vld [vmem:[%s25149_s5 + $0x798] sm:$0xff]  ;;  %v21135_v10 = vld [vmem:[%s25149_s5 + $0x710] sm:$0xff] }
 0x2c6   :  { %v21073_v7 = vpack.c.bf16 %v27193_v54, %v27191_v57  ;;  %v5727_v37 = vand.u32 4294901760, %v5726_v29  ;;  %v25629_v26 = vand.u32 4294901760, %v21066_v44  ;;  %v27198_v57 = vld [vmem:[#allocation46_spill] sm:$0xff]  ;;  %v27200_v53 = vand.u32 4294901760, %v20551_v41  ;;  %27203 = vst [vmem:[#allocation53_spill] sm:$0xff] %v21100_v34  ;;  %v21105_v41 = vld [vmem:[%s25149_s5 + $0x788] sm:$0xff] }
 0x2c7   :  { %v21079_v15 = vpack.c.bf16 %v27197_v8, %v27195_v28  ;;  %v27199_v32 = vand.u32 4294901760, %v27198_v57  ;;  %14580 = vmatpush3.bf16.msra.mxu1 %v14579_v20  ;;  %v27201_v21 = vand.u32 4294901760, %v20556_v14  ;;  %v27202_v18 = vand.u32 4294901760, %v20568_v31  ;;  %27204 = vst [vmem:[#allocation57_spill] sm:$0xff] %v21105_v41  ;;  %v11651_v29 = vpop.f32.mrb[22].mxu0  ;;  %v21110_v14 = vld [vmem:[%s25149_s5 + $0x700] sm:$0xff] }
 0x2c8   :  { %14540 = vmatpush3.bf16.msra.mxu0 %v21073_v7  ;;  %v14583_v28 = vpack.c.bf16 %v5727_v37, %v5720_v38  ;;  %14582 = vmatprep.subr.bf16.mxu1 %v14581_v27  ;;  %27205 = vst [vmem:[#allocation37_spill] sm:$0xff] %v21110_v14  ;;  %v21115_v31 = vld [vmem:[%s25149_s5 + $0x708] sm:$0xff]  ;;  %v11652_v61 = vpop.f32.mrb[23].mxu0  ;;  %v21125_v27 = vsub.f32 %v21066_v44, %v25629_v26  ;;  %27208 = vst [vmem:[#allocation67_spill] sm:$0xff] %v21130_v48  ;;  %v27211_v8 = vand.u32 4294901760, %v20578_v19  ;;  %v27212_v20 = vld [vmem:[#allocation47_spill] sm:$0xff] }
 0x2c9   :  { %v21088_v54 = vpack.c.bf16 %v27200_v53, %v27199_v32  ;;  %14542 = vmatprep.subr.bf16.mxu0 %v21079_v15  ;;  %v21095_v16 = vpack.c.bf16 %v27202_v18, %v27201_v21  ;;  %27206 = vst [vmem:[#allocation22_spill] sm:$0xff] %v21115_v31  ;;  %27209 = vst [vmem:[#allocation49_spill] sm:$0xff] %v21135_v10  ;;  %v11653_v62 = vadd.f32 %v11652_v61, %v11651_v29  ;;  %v27215_v21 = vld [vmem:[#allocation8_spill] sm:$0xff]  ;;  %v27217_v26 = vld [vmem:[#allocation7_spill] sm:$0xff] }
 0x2ca   :  { %27210 = vst [vmem:[#allocation20_spill] sm:$0xff] %v21140_v17  ;;  %v27213_v38 = vand.u32 4294901760, %v27212_v20  ;;  %v25630_v57 = vand.u32 4294901760, %v21100_v34  ;;  %v27214_v53 = vand.u32 4294901760, %v20600_v11  ;;  %v27216_v18 = vand.u32 4294901760, %v27215_v21 }
 0x2cb   :  { %14584 = vmatpush3.bf16.msra.mxu1 %v14583_v28  ;;  %v25631_v61 = vand.u32 4294901760, %v21110_v14  ;;  %v3674_v20 = vadd.f32 %v11653_v62, %v20944_v51  ;;  %v27218_v21 = vand.u32 4294901760, %v27217_v26  ;;  %v14585_v19 = vpack.c.bf16 %v20816_v59, %v20811_v12  ;;  %v21177_v51 = vld [vmem:[%s25149_s5 + $0x7a0] sm:$0xff] }
 0x2cc   :  { %14544 = vmatpush3.bf16.msra.mxu0 %v21088_v54  ;;  %v21147_v37 = vpack.c.bf16 %v27213_v38, %v27211_v8  ;;  %v21156_v29 = vpack.c.bf16 %v27216_v18, %v27214_v53  ;;  %v25633_v8 = vand.u32 4294901760, %v21120_v3  ;;  %14618 = vmatprep.subr.bf16.mxu1 %v20937_v43  ;;  %v27219_v53 = vld [vmem:[#allocation61_spill] sm:$0xff]  ;;  %27221 = vst [vmem:[#allocation36_spill] sm:$0xff] %v21177_v51  ;;  %v27228_v11 = vand.u32 4294901760, %v21115_v31 }
 0x2cd   :  { %14546 = vmatprep.subr.bf16.mxu0 %v21095_v16  ;;  %v27220_v18 = vand.u32 4294901760, %v27219_v53  ;;  %v21181_v62 = vadd.f32 %v11688_v63, %v3674_v20  ;;  %v21186_v26 = vsub.f32 %v21100_v34, %v25630_v57  ;;  %v21201_v63 = vld [vmem:[%s25149_s5 + $0x720] sm:$0xff]  ;;  %v27227_v20 = vand.u32 4294901760, %v20899_v0 }
 0x2ce   :  { %5844 = vmatmul.mubr.f32.vlgmr.msra.gmra.mrb[36].mxu1 %v21043_v22  ;;  %27226 = vst [vmem:[#allocation40_spill] sm:$0xff] %v21201_v63  ;;  %v5611_v57 = vand.u32 4294901760, %v21125_v27  ;;  %v21215_v38 = vsub.f32 %v21115_v31, %v27228_v11  ;;  %v21220_v28 = vsub.f32 %v21120_v3, %v25633_v8  ;;  %v27230_v27 = vand.u32 4294901760, %v21130_v48  ;;  %v27235_v34 = vld [vmem:[#allocation64_spill] sm:$0xff] }
 0x2cf   :  { %v21170_v32 = vpack.c.bf16 %v27220_v18, %v27218_v21  ;;  %27222 = vst [vmem:[#allocation38_spill] sm:$0xff] %v21186_v26  ;;  %v27223_v21 = vand.u32 4294901760, %v21105_v41  ;;  %v21196_v18 = vld [vmem:[%s25149_s5 + $0x7a8] sm:$0xff]  ;;  %14620 = vmatpush3.bf16.msra.mxu1 %v20964_v1  ;;  %6086 = vmatprep.mubr.f32.mxu1 %v27227_v20  ;;  %v27231_v11 = vand.u32 4294901760, %v21135_v10  ;;  %v27232_v8 = vand.u32 4294901760, %v21140_v17 }
 0x2d0   :  { %14548 = vmatpush3.bf16.msra.mxu0 %v21147_v37  ;;  %27225 = vst [vmem:[#allocation19_spill] sm:$0xff] %v21196_v18  ;;  %v21225_v20 = vld [vmem:[%s25149_s5 + $0x728] sm:$0xff]  ;;  %14622 = vmatprep.subr.bf16.mxu1 %v20971_v2  ;;  %v14587_v22 = vpack.c.bf16 %v20840_v35, %v20824_v5  ;;  %v27238_v35 = vld [vmem:[#allocation15_spill] sm:$0xff] }
 0x2d1   :  { %v21191_v53 = vsub.f32 %v21105_v41, %v27223_v21  ;;  %v21210_v21 = vsub.f32 %v21110_v14, %v25631_v61  ;;  %27229 = vst [vmem:[#allocation9_spill] sm:$0xff] %v21225_v20  ;;  %14550 = vmatprep.subr.bf16.mxu0 %v21156_v29  ;;  %v21232_v61 = vsub.f32 %v21130_v48, %v27230_v27  ;;  %v27234_v41 = vld [vmem:[#allocation5_spill] sm:$0xff]  ;;  %v27243_v14 = vand.u32 4294901760, %v21177_v51  ;;  %v21290_v27 = vld [vmem:[%s25149_s5 + $0x738] sm:$0xff] }
 0x2d2   :  { %v21237_v31 = vsub.f32 %v21135_v10, %v27231_v11  ;;  %v21242_v3 = vsub.f32 %v21140_v17, %v27232_v8  ;;  %v14589_v2 = vpack.c.bf16 %v27235_v34, %v27234_v41  ;;  %v27236_v11 = vld [vmem:[#allocation11_spill] sm:$0xff]  ;;  %v27237_v10 = vld [vmem:[#allocation65_spill] sm:$0xff]  ;;  %v27239_v34 = vld [vmem:[#allocation16_spill] sm:$0xff]  ;;  %27245 = vst [vmem:[#allocation42_spill] sm:$0xff] %v21290_v27 }
 0x2d3   :  { %27224 = vst [vmem:[#allocation13_spill] sm:$0xff] %v21191_v53  ;;  %v14591_v59 = vpack.c.bf16 %v27237_v10, %v27236_v11  ;;  %14624 = vmatpush3.bf16.msra.mxu1 %v20991_v30  ;;  %v14593_v41 = vpack.c.bf16 %v27239_v34, %v27238_v35  ;;  %v21266_v10 = vld [vmem:[%s25149_s5 + $0x7b0] sm:$0xff]  ;;  %v21271_v11 = vld [vmem:[%s25149_s5 + $0x7b8] sm:$0xff]  ;;  %v21285_v48 = vsub.f32 %v21177_v51, %v27243_v14  ;;  %v21295_v17 = vld [vmem:[%s25149_s5 + $0x7c0] sm:$0xff]  ;;  %v27247_v34 = vand.u32 4294901760, %v21196_v18 }
 0x2d4   :  { %27233 = vst [vmem:[#allocation58_spill] sm:$0xff] %v21242_v3  ;;  %14552 = vmatpush3.bf16.msra.mxu0 %v21170_v32  ;;  %27240 = vst [vmem:[#allocation59_spill] sm:$0xff] %v21266_v10  ;;  %v21276_v35 = vld [vmem:[%s25149_s5 + $0x730] sm:$0xff]  ;;  %14626 = vmatprep.subr.bf16.mxu1 %v21008_v36  ;;  %v21310_v8 = vld [vmem:[%s25149_s5 + $0x7c8] sm:$0xff]  ;;  %v27256_v36 = vand.u32 4294901760, %v21210_v21  ;;  %v27259_v30 = vand.u32 4294901760, %v21225_v20 }
 0x2d5   :  { %14586 = vmatprep.subr.bf16.mxu0 %v14585_v19  ;;  %27241 = vst [vmem:[#allocation60_spill] sm:$0xff] %v21271_v11  ;;  %27242 = vst [vmem:[#allocation62_spill] sm:$0xff] %v21276_v35  ;;  %v21300_v5 = vsub.f32 %v21196_v18, %v27247_v34  ;;  %v27249_v19 = vand.u32 4294901760, %v21201_v63  ;;  %v21315_v51 = vld [vmem:[%s25149_s5 + $0x740] sm:$0xff]  ;;  %v27254_v34 = vand.u32 4294901760, %v21191_v53  ;;  %v14597_v53 = vpack.c.bf16 %v20893_v25, %v20888_v4 }
 0x2d6   :  { %27244 = vst [vmem:[#allocation63_spill] sm:$0xff] %v21285_v48  ;;  %27246 = vst [vmem:[#allocation28_spill] sm:$0xff] %v21295_v17  ;;  %v21333_v12 = vsub.f32 %v21225_v20, %v27259_v30  ;;  %v25659_v30 = vand.u32 4294901760, %v21285_v48  ;;  %v21511_v20 = vld [vmem:[%s25149_s5 + $0x778] sm:$0xff] }
 0x2d7   :  { %5612 = vmatmul.mubr.f32.vlgmr.msra.gmra.mrb[36].mxu0 %v5611_v57  ;;  %27248 = vst [vmem:[#allocation66_spill] sm:$0xff] %v21300_v5  ;;  %v21305_v14 = vsub.f32 %v21201_v63, %v27249_v19  ;;  %27251 = vst [vmem:[#allocation33_spill] sm:$0xff] %v21310_v8  ;;  %v27253_v57 = vand.u32 4294901760, %v21186_v26  ;;  %v27257_v19 = vand.u32 4294901760, %v21215_v38  ;;  %14628 = vmatpush3.bf16.msra.mxu1 %v21020_v23 }
 0x2d8   :  { %27252 = vst [vmem:[#allocation34_spill] sm:$0xff] %v21315_v51  ;;  %14588 = vmatpush3.bf16.msra.mxu0 %v14587_v22  ;;  %5979 = vmatprep.mubr.f32.mxu0 %v20899_v0  ;;  %27260 = vst [vmem:[#allocation45_spill] sm:$0xff] %v21333_v12  ;;  %v14595_v0 = vpack.c.bf16 %v27126_v52, %v27124_v39  ;;  %v27262_v22 = vand.u32 4294901760, %v21220_v28  ;;  %v27265_v39 = vand.u32 4294901760, %v21237_v31  ;;  %v27266_v52 = vand.u32 4294901760, %v21242_v3 }
 0x2d9   :  { %27250 = vst [vmem:[#allocation32_spill] sm:$0xff] %v21305_v14  ;;  %v21321_v18 = vpack.c.bf16 %v27254_v34, %v27253_v57  ;;  %v21327_v63 = vpack.c.bf16 %v27257_v19, %v27256_v36  ;;  %v21341_v34 = vld [vmem:[%s25149_s5 + $0x748] sm:$0xff]  ;;  %14590 = vmatprep.subr.bf16.mxu0 %v14589_v2  ;;  %v27263_v19 = vand.u32 4294901760, %v21232_v61  ;;  %14630 = vmatprep.subr.bf16.mxu1 %v21028_v24  ;;  %v27268_v2 = vand.u32 4294901760, %v21266_v10 }
 0x2da   :  { %27261 = vst [vmem:[#allocation46_spill] sm:$0xff] %v21341_v34  ;;  %v21363_v36 = vpack.c.bf16 %v27266_v52, %v27265_v39  ;;  %v27270_v52 = vand.u32 4294901760, %v21276_v35 }
 0x2db   :  { %27255 = vst [vmem:[#allocation17_spill] sm:$0xff] %v21321_v18  ;;  %27258 = vst [vmem:[#allocation51_spill] sm:$0xff] %v21327_v63  ;;  %v21352_v57 = vpack.c.bf16 %v27263_v19, %v27262_v22  ;;  %v21373_v26 = vsub.f32 %v21266_v10, %v27268_v2  ;;  %v27269_v18 = vand.u32 4294901760, %v21271_v11  ;;  %14632 = vmatpush3.bf16.msra.mxu1 %v21050_v45  ;;  %v27272_v2 = vand.u32 4294901760, %v21295_v17 }
 0x2dc   :  { %27267 = vst [vmem:[#allocation8_spill] sm:$0xff] %v21363_v36  ;;  %14592 = vmatpush3.bf16.msra.mxu0 %v14591_v59  ;;  %v21383_v22 = vsub.f32 %v21276_v35, %v27270_v52  ;;  %v27271_v59 = vand.u32 4294901760, %v21290_v27  ;;  %14634 = vmatprep.subr.bf16.mxu1 %v21056_v47 }
 0x2dd   :  { %27264 = vst [vmem:[#allocation47_spill] sm:$0xff] %v21352_v57  ;;  %v21378_v39 = vsub.f32 %v21271_v11, %v27269_v18  ;;  %14594 = vmatprep.subr.bf16.mxu0 %v14593_v41  ;;  %v21394_v63 = vsub.f32 %v21295_v17, %v27272_v2  ;;  %v27273_v18 = vand.u32 4294901760, %v21300_v5  ;;  %v27275_v41 = vand.u32 4294901760, %v21310_v8 }
 0x2de   :  { %v21389_v57 = vsub.f32 %v21290_v27, %v27271_v59  ;;  %v27276_v59 = vand.u32 4294901760, %v21315_v51  ;;  %v27277_v2 = vand.u32 4294901760, %v21305_v14  ;;  %v27278_v17 = vand.u32 4294901760, %v21333_v12  ;;  %v11756_v35 = vpop.f32.mrb[24].mxu1 }
 0x2df   :  { %v21400_v19 = vpack.c.bf16 %v27273_v18, %v25659_v30  ;;  %v21406_v52 = vsub.f32 %v21310_v8, %v27275_v41  ;;  %v14599_v18 = vpack.c.bf16 %v20507_v49, %v27136_v42  ;;  %v14601_v30 = vpack.c.bf16 %v27141_v50, %v20518_v33  ;;  %v21441_v49 = vld [vmem:[%s25149_s5 + $0x750] sm:$0xff]  ;;  %v27282_v42 = vld [vmem:[#allocation48_spill] sm:$0xff]  ;;  %14636 = vmatpush3.bf16.msra.mxu1 %v21073_v7  ;;  %v21478_v8 = vld [vmem:[%s25149_s5 + $0x768] sm:$0xff] }
 0x2e0   :  { %v21411_v36 = vsub.f32 %v21315_v51, %v27276_v59  ;;  %v21417_v27 = vpack.c.bf16 %v27278_v17, %v27277_v2  ;;  %v27280_v41 = vand.u32 4294901760, %v21341_v34  ;;  %v21431_v59 = vld [vmem:[%s25149_s5 + $0x7d0] sm:$0xff]  ;;  %v21436_v17 = vld [vmem:[%s25149_s5 + $0x7d8] sm:$0xff]  ;;  %14596 = vmatpush3.bf16.msra.mxu0 %v14595_v0  ;;  %v14603_v33 = vpack.c.bf16 %v20545_v56, %v20540_v6  ;;  %v21462_v56 = vld [vmem:[%s25149_s5 + $0x7e8] sm:$0xff]  ;;  %27289 = vst [vmem:[#allocation16_spill] sm:$0xff] %v21478_v8 }
 0x2e1   :  { %27274 = vst [vmem:[#allocation7_spill] sm:$0xff] %v21400_v19  ;;  %27281 = vst [vmem:[#allocation5_spill] sm:$0xff] %v21431_v59  ;;  %v14605_v50 = vpack.c.bf16 %v20630_v60, %v27282_v42  ;;  %14598 = vmatprep.subr.bf16.mxu0 %v14597_v53  ;;  %v27286_v6 = vld [vmem:[#allocation35_spill] sm:$0xff]  ;;  %v21473_v51 = vld [vmem:[%s25149_s5 + $0x760] sm:$0xff]  ;;  %14638 = vmatprep.subr.bf16.mxu1 %v21079_v15  ;;  %v27293_v2 = vand.u32 4294901760, %v21378_v39  ;;  %v27295_v14 = vand.u32 4294901760, %v21383_v22 }
 0x2e2   :  { %27279 = vst [vmem:[#allocation61_spill] sm:$0xff] %v21417_v27  ;;  %v21426_v19 = vsub.f32 %v21341_v34, %v27280_v41  ;;  %v21452_v27 = vld [vmem:[%s25149_s5 + $0x758] sm:$0xff]  ;;  %v21457_v34 = vld [vmem:[%s25149_s5 + $0x7e0] sm:$0xff]  ;;  %27285 = vst [vmem:[#allocation65_spill] sm:$0xff] %v21462_v56  ;;  %v11757_v41 = vpop.f32.mrb[25].mxu1  ;;  %v27296_v11 = vand.u32 4294901760, %v21389_v57 }
 0x2e3   :  { %27283 = vst [vmem:[#allocation64_spill] sm:$0xff] %v21452_v27  ;;  %27284 = vst [vmem:[#allocation11_spill] sm:$0xff] %v21457_v34  ;;  %v27287_v60 = vld [vmem:[#allocation23_spill] sm:$0xff]  ;;  %v21483_v53 = vld [vmem:[%s25149_s5 + $0x7f0] sm:$0xff]  ;;  %14640 = vmatpush3.bf16.msra.mxu1 %v21088_v54  ;;  %v27300_v10 = vand.u32 4294901760, %v21394_v63 }
 0x2e4   :  { %v14607_v0 = vpack.c.bf16 %v27287_v60, %v27286_v6  ;;  %27288 = vst [vmem:[#allocation15_spill] sm:$0xff] %v21473_v51  ;;  %27290 = vst [vmem:[#allocation48_spill] sm:$0xff] %v21483_v53  ;;  %v21493_v42 = vld [vmem:[%s25149_s5 + $0x7f8] sm:$0xff]  ;;  %v21502_v60 = vld [vmem:[%s25149_s5 + $0x770] sm:$0xff]  ;;  %14600 = vmatpush3.bf16.msra.mxu0 %v14599_v18  ;;  %v11758_v6 = vadd.f32 %v11757_v41, %v11756_v35  ;;  %v27292_v18 = vand.u32 4294901760, %v21373_v26  ;;  %14642 = vmatprep.subr.bf16.mxu1 %v21095_v16 }
 0x2e5   :  { %27291 = vst [vmem:[#allocation35_spill] sm:$0xff] %v21493_v42  ;;  %14602 = vmatprep.subr.bf16.mxu0 %v14601_v30  ;;  %v21525_v5 = vpack.c.bf16 %v27296_v11, %v27295_v14  ;;  %v14609_v35 = vpack.c.bf16 %v20666_v58, %v20657_v55  ;;  %v27298_v30 = vand.u32 4294901760, %v21431_v59  ;;  %v27304_v11 = vand.u32 4294901760, %v21426_v19 }
 0x2e6   :  { %v21519_v12 = vpack.c.bf16 %v27293_v2, %v27292_v18  ;;  %v27301_v2 = vand.u32 4294901760, %v21406_v52  ;;  %v27307_v58 = vand.u32 4294901760, %v21441_v49 }
 0x2e7   :  { %27297 = vst [vmem:[#allocation72_spill] sm:$0xff] %v21525_v5  ;;  %v21533_v41 = vsub.f32 %v21431_v59, %v27298_v30  ;;  %v27306_v5 = vand.u32 4294901760, %v21436_v17  ;;  %v27312_v59 = vand.u32 4294901760, %v21473_v51  ;;  %14644 = vmatpush3.bf16.msra.mxu1 %v21147_v37 }
 0x2e8   :  { %27294 = vst [vmem:[#allocation23_spill] sm:$0xff] %v21519_v12  ;;  %v21539_v18 = vpack.c.bf16 %v27301_v2, %v27300_v10  ;;  %v27303_v12 = vand.u32 4294901760, %v21411_v36  ;;  %v21555_v30 = vsub.f32 %v21441_v49, %v27307_v58  ;;  %14604 = vmatpush3.bf16.msra.mxu0 %v14603_v33  ;;  %v27308_v2 = vand.u32 4294901760, %v21452_v27  ;;  %14646 = vmatprep.subr.bf16.mxu1 %v21156_v29 }
 0x2e9   :  { %27299 = vst [vmem:[#allocation73_spill] sm:$0xff] %v21533_v41  ;;  %v21550_v55 = vsub.f32 %v21436_v17, %v27306_v5  ;;  %v21577_v10 = vsub.f32 %v21473_v51, %v27312_v59  ;;  %14606 = vmatprep.subr.bf16.mxu0 %v14605_v50  ;;  %v27313_v33 = vand.u32 4294901760, %v21478_v8  ;;  %v11721_v59 = vpop.f32.mrb[24].mxu0  ;;  %v14611_v50 = vpack.c.bf16 %v20681_v9, %v20676_v40 }
 0x2ea   :  { %27302 = vst [vmem:[#allocation74_spill] sm:$0xff] %v21539_v18  ;;  %v21545_v14 = vpack.c.bf16 %v27304_v11, %v27303_v12  ;;  %v21562_v12 = vsub.f32 %v21452_v27, %v27308_v2  ;;  %v27310_v11 = vand.u32 4294901760, %v21457_v34  ;;  %v11722_v51 = vpop.f32.mrb[25].mxu0 }
 0x2eb   :  { %v21583_v2 = vsub.f32 %v21478_v8, %v27313_v33  ;;  %v14613_v33 = vpack.c.bf16 %v20699_v46, %v20694_v13  ;;  %v25681_v8 = vand.u32 4294901760, %v21533_v41  ;;  %v11723_v40 = vadd.f32 %v11722_v51, %v11721_v59  ;;  %14648 = vmatpush3.bf16.msra.mxu1 %v21170_v32 }
 0x2ec   :  { %27305 = vst [vmem:[#allocation75_spill] sm:$0xff] %v21545_v14  ;;  %27309 = vst [vmem:[#allocation76_spill] sm:$0xff] %v21562_v12  ;;  %v21567_v5 = vsub.f32 %v21457_v34, %v27310_v11  ;;  %v27311_v14 = vand.u32 4294901760, %v21462_v56  ;;  %v27315_v11 = vand.u32 4294901760, %v21483_v53  ;;  %v27319_v34 = vand.u32 4294901760, %v21502_v60  ;;  %14608 = vmatpush3.bf16.msra.mxu0 %v14607_v0  ;;  %14682 = vmatprep.subr.bf16.mxu1 %v20937_v43  ;;  %v27328_v43 = vld [vmem:[#allocation69_spill] sm:$0xff] }
 0x2ed   :  { %27314 = vst [vmem:[#allocation77_spill] sm:$0xff] %v21583_v2  ;;  %v25682_v13 = vand.u32 4294901760, %v21562_v12  ;;  %14610 = vmatprep.subr.bf16.mxu0 %v14609_v35  ;;  %v3890_v51 = vadd.f32 %v11723_v40, %v21181_v62  ;;  %v27322_v0 = vand.u32 4294901760, %v21550_v55  ;;  %v27324_v35 = vand.u32 4294901760, %v21555_v30  ;;  %v27327_v62 = vld [vmem:[#allocation68_spill] sm:$0xff] }
 0x2ee   :  { %v21572_v58 = vsub.f32 %v21462_v56, %v27311_v14  ;;  %v21588_v18 = vsub.f32 %v21483_v53, %v27315_v11  ;;  %v27317_v14 = vand.u32 4294901760, %v21493_v42  ;;  %v25684_v9 = vand.u32 4294901760, %v21567_v5 }
 0x2ef   :  { %v21627_v59 = vpack.c.bf16 %v27322_v0, %v25681_v8  ;;  %v21633_v53 = vpack.c.bf16 %v25682_v13, %v27324_v35  ;;  %v14615_v40 = vpack.c.bf16 %v27328_v43, %v27327_v62  ;;  %v27329_v8 = vand.u32 4294901760, %v21066_v44 }
 0x2f0   :  { %27316 = vst [vmem:[#allocation78_spill] sm:$0xff] %v21588_v18  ;;  %v21593_v56 = vsub.f32 %v21493_v42, %v27317_v14  ;;  %v21606_v14 = vsub.f32 %v21502_v60, %v27319_v34  ;;  %v27321_v42 = vand.u32 4294901760, %v21511_v20  ;;  %v25683_v46 = vand.u32 4294901760, %v21572_v58  ;;  %14612 = vmatpush3.bf16.msra.mxu0 %v14611_v50 }
 0x2f1   :  { %27323 = vst [vmem:[#allocation81_spill] sm:$0xff] %v21627_v59  ;;  %27325 = vst [vmem:[#allocation82_spill] sm:$0xff] %v21633_v53  ;;  %6090 = vmatmul.mubr.f32.vlgmr.msra.gmra.mrb[38].mxu1 %v27329_v8  ;;  %v21647_v34 = vadd.f32 %v11758_v6, %v3890_v51  ;;  %v27330_v35 = vand.u32 4294901760, %v21577_v10  ;;  %v27331_v13 = vand.u32 4294901760, %v21583_v2  ;;  %v27337_v8 = vld [vmem:[#allocation39_spill] sm:$0xff]  ;;  %v27339_v6 = vld [vmem:[#allocation30_spill] sm:$0xff]  ;;  %14614 = vmatprep.subr.bf16.mxu0 %v14613_v33 }
 0x2f2   :  { %27318 = vst [vmem:[#allocation79_spill] sm:$0xff] %v21593_v56  ;;  %27320 = vst [vmem:[#allocation80_spill] sm:$0xff] %v21606_v14  ;;  %v21611_v27 = vsub.f32 %v21511_v20, %v27321_v42  ;;  %v21639_v42 = vpack.c.bf16 %v25683_v46, %v25684_v9  ;;  %v25685_v11 = vand.u32 4294901760, %v21606_v14  ;;  %v27333_v46 = vand.u32 4294901760, %v21588_v18  ;;  %14684 = vmatpush3.bf16.msra.mxu1 %v20964_v1  ;;  %v27336_v9 = vld [vmem:[#allocation12_spill] sm:$0xff]  ;;  %v27346_v1 = vld [vmem:[#allocation10_spill] sm:$0xff] }
 0x2f3   :  { %v21653_v53 = vpack.c.bf16 %v27331_v13, %v27330_v35  ;;  %v27334_v62 = vand.u32 4294901760, %v21593_v56  ;;  %6360 = vmatprep.mubr.f32.mxu1 %v27336_v9  ;;  %v27338_v50 = vand.u32 4294901760, %v27337_v8  ;;  %v27340_v51 = vand.u32 4294901760, %v27339_v6  ;;  %v27348_v59 = vld [vmem:[#allocation27_spill] sm:$0xff]  ;;  %v27349_v8 = vld [vmem:[#allocation50_spill] sm:$0xff]  ;;  %v27359_v6 = vld [vmem:[#allocation13_spill] sm:$0xff] }
 0x2f4   :  { %27326 = vst [vmem:[#allocation83_spill] sm:$0xff] %v21639_v42  ;;  %v27341_v13 = vand.u32 4294901760, %v21611_v27  ;;  %14616 = vmatpush3.bf16.msra.mxu0 %v14615_v40  ;;  %v27350_v33 = vld [vmem:[#allocation6_spill] sm:$0xff]  ;;  %v27352_v40 = vld [vmem:[#allocation25_spill] sm:$0xff] }
 0x2f5   :  { %27332 = vst [vmem:[#allocation68_spill] sm:$0xff] %v21653_v53  ;;  %v21659_v43 = vpack.c.bf16 %v27334_v62, %v27333_v46  ;;  %v14649_v0 = vpack.c.bf16 %v27340_v51, %v27338_v50  ;;  %v27343_v53 = vld [vmem:[#allocation14_spill] sm:$0xff]  ;;  %v27344_v46 = vld [vmem:[#allocation21_spill] sm:$0xff] }
 0x2f6   :  { %v21671_v35 = vpack.c.bf16 %v27341_v13, %v25685_v11  ;;  %14686 = vmatprep.subr.bf16.mxu1 %v27343_v53  ;;  %v27345_v62 = vand.u32 4294901760, %v27344_v46  ;;  %v27351_v53 = vld [vmem:[#allocation41_spill] sm:$0xff]  ;;  %v27362_v46 = vld [vmem:[#allocation24_spill] sm:$0xff] }
 0x2f7   :  { %27335 = vst [vmem:[#allocation69_spill] sm:$0xff] %v21659_v43  ;;  %v27347_v43 = vand.u32 4294901760, %v27346_v1  ;;  %14688 = vmatpush3.bf16.msra.mxu1 %v27348_v59  ;;  %14650 = vmatprep.subr.bf16.mxu0 %v14649_v0  ;;  %v59_v59 = vld [vmem:[%s25145_s1 + $0x78] sm:$0xff] }
 0x2f8   :  { %27342 = vst [vmem:[#allocation12_spill] sm:$0xff] %v21671_v35  ;;  %14690 = vmatprep.subr.bf16.mxu1 %v27349_v8  ;;  %5982 = vmatmul.mubr.f32.vlgmr.msra.gmra.mrb[38].mxu0 %v21066_v44  ;;  %v27353_v44 = vand.u32 4294901760, %v20888_v4  ;;  %v27360_v4 = vand.u32 4294901760, %v27359_v6  ;;  %v27365_v8 = vand.u32 4294901760, %v21215_v38  ;;  %v27376_v35 = vld [vmem:[#allocation32_spill] sm:$0xff] }
 0x2f9   :  { %v14651_v42 = vpack.c.bf16 %v27347_v43, %v27345_v62  ;;  %6256 = vmatprep.mubr.f32.mxu0 %v27336_v9  ;;  %v27354_v9 = vand.u32 4294901760, %v20893_v25  ;;  %v27357_v43 = vld [vmem:[#allocation38_spill] sm:$0xff] }
 0x2fa   :  { %v6602_v25 = vsub.f32 %v27359_v6, %v27360_v4  ;;  %v27369_v4 = vld [vmem:[#allocation29_spill] sm:$0xff] }
 0x2fb   :  { %14652 = vmatpush3.bf16.msra.mxu0 %v14651_v42  ;;  %14692 = vmatpush3.bf16.msra.mxu1 %v21020_v23  ;;  %v14661_v42 = vpack.c.bf16 %v27354_v9, %v27353_v44  ;;  %v27355_v23 = vld [vmem:[#allocation18_spill] sm:$0xff] }
 0x2fc   :  { %14654 = vmatprep.subr.bf16.mxu0 %v27350_v33  ;;  %14694 = vmatprep.subr.bf16.mxu1 %v21028_v24  ;;  %v75_v0 = vmul.f32 %v59_v59, %v27355_v23  ;;  %v27356_v24 = vld [vmem:[#allocation43_spill] sm:$0xff]  ;;  %v6490_v33 = vsub.f32 %v21215_v38, %v27365_v8  ;;  %v6603_v59 = vand.u32 4294901760, %v6602_v25  ;;  %v27371_v25 = vld [vmem:[#allocation54_spill] sm:$0xff] }
 0x2fe   :  { %v21706_v13 = vand.u32 4294901760, %v75_v0 }
 0x2ff   :  { %14656 = vmatpush3.bf16.msra.mxu0 %v27351_v53  ;;  %14696 = vmatpush3.bf16.msra.mxu1 %v21050_v45  ;;  %v27358_v45 = vand.u32 4294901760, %v27357_v43  ;;  %v11826_v51 = vpop.f32.mrb[26].mxu1 }
 0x300   :  { %14658 = vmatprep.subr.bf16.mxu0 %v27352_v40  ;;  %14698 = vmatprep.subr.bf16.mxu1 %v21056_v47  ;;  %27361 = vst [vmem:[#allocation39_spill] sm:$0xff] %v21706_v13  ;;  %v11827_v47 = vpop.f32.mrb[27].mxu1  ;;  %v27366_v40 = vand.u32 4294901760, %v21220_v28 }
 0x301   :  { %v6595_v50 = vsub.f32 %v27357_v43, %v27358_v45  ;;  %v11828_v62 = vadd.f32 %v11827_v47, %v11826_v51  ;;  %v21728_v45 = vsub.f32 %v75_v0, %v21706_v13  ;;  %v6491_v47 = vand.u32 4294901760, %v6490_v33  ;;  %v27375_v33 = vld [vmem:[#allocation55_spill] sm:$0xff] }
 0x302   :  { %v6609_v44 = vsub.f32 %v21220_v28, %v27366_v40 }
 0x303   :  { %14660 = vmatpush3.bf16.msra.mxu0 %v27356_v24  ;;  %14700 = vmatpush3.bf16.msra.mxu1 %v21073_v7  ;;  %v27363_v7 = vld [vmem:[#allocation26_spill] sm:$0xff]  ;;  %v6596_v53 = vand.u32 4294901760, %v6595_v50 }
 0x304   :  { %14662 = vmatprep.subr.bf16.mxu0 %v14661_v42  ;;  %14702 = vmatprep.subr.bf16.mxu1 %v21079_v15  ;;  %v27364_v15 = vand.u32 4294901760, %v21210_v21  ;;  %v27368_v42 = vand.u32 4294901760, %v21237_v31 }
 0x306   :  { %v6483_v1 = vsub.f32 %v21210_v21, %v27364_v15  ;;  %v6497_v24 = vsub.f32 %v21237_v31, %v27368_v42  ;;  %v27373_v15 = vld [vmem:[#allocation66_spill] sm:$0xff]  ;;  %v11791_v40 = vpop.f32.mrb[26].mxu0  ;;  %v6610_v42 = vand.u32 4294901760, %v6609_v44 }
 0x307   :  { %14664 = vmatpush3.bf16.msra.mxu0 %v27362_v46  ;;  %14704 = vmatpush3.bf16.msra.mxu1 %v21088_v54  ;;  %v27367_v54 = vand.u32 4294901760, %v21232_v61  ;;  %v27372_v46 = vand.u32 4294901760, %v21285_v48  ;;  %v27374_v8 = vand.u32 4294901760, %v27373_v15 }
 0x308   :  { %14666 = vmatprep.subr.bf16.mxu0 %v27363_v7  ;;  %14706 = vmatprep.subr.bf16.mxu1 %v21095_v16  ;;  %v27370_v16 = vand.u32 4294901760, %v21242_v3  ;;  %v6484_v51 = vand.u32 4294901760, %v6483_v1 }
 0x309   :  { %v6616_v9 = vsub.f32 %v21232_v61, %v27367_v54  ;;  %v6623_v7 = vsub.f32 %v21285_v48, %v27372_v46  ;;  %v6630_v0 = vsub.f32 %v27373_v15, %v27374_v8  ;;  %v14745_v54 = vpack.c.bf16 %v6603_v59, %v6596_v53 }
 0x30a   :  { %v6504_v50 = vsub.f32 %v21242_v3, %v27370_v16  ;;  %v11792_v16 = vpop.f32.mrb[27].mxu0  ;;  %v27377_v46 = vand.u32 4294901760, %v27376_v35  ;;  %v27378_v3 = vld [vmem:[#allocation45_spill] sm:$0xff]  ;;  %v14747_v53 = vpack.c.bf16 %v6491_v47, %v6484_v51  ;;  %v27387_v51 = vand.u32 4294901760, %v21728_v45  ;;  %v27388_v47 = vld [vmem:[#allocation52_spill] sm:$0xff] }
 0x30b   :  { %14668 = vmatpush3.bf16.msra.mxu0 %v27369_v4  ;;  %14708 = vmatpush3.bf16.msra.mxu1 %v21147_v37  ;;  %v6617_v4 = vand.u32 4294901760, %v6616_v9  ;;  %v6498_v37 = vand.u32 4294901760, %v6497_v24  ;;  %v11793_v1 = vadd.f32 %v11792_v16, %v11791_v40  ;;  %v27379_v8 = vand.u32 4294901760, %v27378_v3 }
 0x30c   :  { %14670 = vmatprep.subr.bf16.mxu0 %v27371_v25  ;;  %14710 = vmatprep.subr.bf16.mxu1 %v21156_v29  ;;  %v6505_v11 = vand.u32 4294901760, %v6504_v50  ;;  %v6511_v48 = vsub.f32 %v27376_v35, %v27377_v46  ;;  %v27380_v29 = vld [vmem:[#allocation70_spill] sm:$0xff]  ;;  %v6624_v59 = vand.u32 4294901760, %v6623_v7  ;;  %v6631_v44 = vand.u32 4294901760, %v6630_v0  ;;  %v27383_v46 = vld [vmem:[#allocation53_spill] sm:$0xff]  ;;  %v27389_v7 = vld [vmem:[#allocation56_spill] sm:$0xff] }
 0x30d   :  { %v6518_v15 = vsub.f32 %v27378_v3, %v27379_v8  ;;  %v4260_v9 = vadd.f32 %v11793_v1, %v21647_v34  ;;  %v14749_v24 = vpack.c.bf16 %v6617_v4, %v6610_v42  ;;  %v27381_v50 = vand.u32 4294901760, %v21373_v26 }
 0x30e   :  { %v27382_v16 = vand.u32 4294901760, %v21378_v39  ;;  %v27384_v8 = vand.u32 4294901760, %v27383_v46  ;;  %v6466_v34 = vsub.f32 %v21728_v45, %v27387_v51  ;;  %v14751_v0 = vpack.c.bf16 %v6505_v11, %v6498_v37 }
 0x30f   :  { %14672 = vmatpush3.bf16.msra.mxu0 %v27375_v33  ;;  %14712 = vmatpush3.bf16.msra.mxu1 %v21170_v32  ;;  %v6637_v40 = vsub.f32 %v21373_v26, %v27381_v50  ;;  %v27385_v32 = vld [vmem:[#allocation57_spill] sm:$0xff]  ;;  %v6519_v42 = vand.u32 4294901760, %v6518_v15  ;;  %v21771_v4 = vadd.f32 %v11828_v62, %v4260_v9  ;;  %v14753_v1 = vpack.c.bf16 %v6631_v44, %v6624_v59  ;;  %v27397_v9 = vld [vmem:[#allocation22_spill] sm:$0xff] }
 0x310   :  { %14674 = vmatprep.subr.bf16.mxu0 %v27380_v29  ;;  %14746 = vmatprep.subr.bf16.mxu1 %v14745_v54  ;;  %v6644_v33 = vsub.f32 %v21378_v39, %v27382_v16  ;;  %v27386_v25 = vand.u32 4294901760, %v27385_v32  ;;  %v6512_v54 = vand.u32 4294901760, %v6511_v48  ;;  %v27391_v16 = vand.u32 4294901760, %v21389_v57  ;;  %v27395_v59 = vld [vmem:[#allocation37_spill] sm:$0xff] }
 0x311   :  { %v6638_v11 = vand.u32 4294901760, %v6637_v40  ;;  %v27393_v62 = vand.u32 4294901760, %v21394_v63  ;;  %v27394_v37 = vand.u32 4294901760, %v21406_v52  ;;  %v27396_v44 = vand.u32 4294901760, %v27395_v59 }
 0x312   :  { %v21764_v29 = vpack.c.bf16 %v27386_v25, %v27384_v8  ;;  %6362 = vmatmul.mubr.f32.vlgmr.msra.gmra.mrb[40].mxu1 %v27388_v47  ;;  %v27390_v25 = vand.u32 4294901760, %v21383_v22  ;;  %v6532_v46 = vsub.f32 %v21389_v57, %v27391_v16  ;;  %v27392_v8 = vld [vmem:[#allocation44_spill] sm:$0xff]  ;;  %v6645_v48 = vand.u32 4294901760, %v6644_v33  ;;  %v27402_v33 = vld [vmem:[#allocation67_spill] sm:$0xff] }
 0x313   :  { %14676 = vmatpush3.bf16.msra.mxu0 %v27389_v7  ;;  %14748 = vmatpush3.bf16.msra.mxu1 %v14747_v53  ;;  %v6651_v15 = vsub.f32 %v21394_v63, %v27393_v62  ;;  %v6658_v53 = vsub.f32 %v21406_v52, %v27394_v37  ;;  %v27398_v32 = vand.u32 4294901760, %v27397_v9  ;;  %v27399_v7 = vld [vmem:[#allocation71_spill] sm:$0xff]  ;;  %v27403_v16 = vand.u32 4294901760, %v27402_v33 }
 0x314   :  { %6704 = vmatprep.mubr.f32.mxu1 %v21706_v13  ;;  %v6525_v50 = vsub.f32 %v21383_v22, %v27390_v25  ;;  %14678 = vmatprep.subr.bf16.mxu0 %v27392_v8  ;;  %v14755_v25 = vpack.c.bf16 %v6519_v42, %v6512_v54  ;;  %v27404_v62 = vand.u32 4294901760, %v21411_v36  ;;  %v27405_v37 = vand.u32 4294901760, %v21426_v19 }
 0x315   :  { %14750 = vmatprep.subr.bf16.mxu1 %v14749_v24  ;;  %v21791_v51 = vpack.c.bf16 %v27398_v32, %v27396_v44  ;;  %v27400_v24 = vld [vmem:[#allocation31_spill] sm:$0xff]  ;;  %v6533_v9 = vand.u32 4294901760, %v6532_v46  ;;  %v27406_v54 = vand.u32 4294901760, %v21533_v41  ;;  %v27407_v32 = vand.u32 4294901760, %v21550_v55 }
 0x316   :  { %v27401_v40 = vand.u32 4294901760, %v27400_v24  ;;  %v6539_v13 = vsub.f32 %v21411_v36, %v27404_v62  ;;  %v6546_v59 = vsub.f32 %v21426_v19, %v27405_v37  ;;  %v6526_v44 = vand.u32 4294901760, %v6525_v50  ;;  %v27410_v37 = vld [vmem:[#allocation20_spill] sm:$0xff] }
 0x317   :  { %14680 = vmatpush3.bf16.msra.mxu0 %v27399_v7  ;;  %14752 = vmatpush3.bf16.msra.mxu1 %v14751_v0  ;;  %v6665_v42 = vsub.f32 %v21533_v41, %v27406_v54  ;;  %v6672_v7 = vsub.f32 %v21550_v55, %v27407_v32  ;;  %v6467_v24 = vand.u32 4294901760, %v6466_v34  ;;  %v6652_v33 = vand.u32 4294901760, %v6651_v15  ;;  %v27408_v0 = vld [vmem:[#allocation49_spill] sm:$0xff] }
 0x318   :  { %v21798_v8 = vpack.c.bf16 %v27403_v16, %v27401_v40  ;;  %14714 = vmatprep.subr.bf16.mxu0 %v21764_v29  ;;  %14754 = vmatprep.subr.bf16.mxu1 %v14753_v1  ;;  %v14757_v40 = vpack.c.bf16 %v6645_v48, %v6638_v11  ;;  %v6659_v16 = vand.u32 4294901760, %v6658_v53  ;;  %v27409_v62 = vand.u32 4294901760, %v27408_v0  ;;  %v27414_v48 = vld [vmem:[#allocation36_spill] sm:$0xff]  ;;  %v27416_v53 = vld [vmem:[#allocation19_spill] sm:$0xff] }
 0x319   :  { %v27411_v50 = vand.u32 4294901760, %v27410_v37  ;;  %v6540_v54 = vand.u32 4294901760, %v6539_v13  ;;  %v6547_v41 = vand.u32 4294901760, %v6546_v59  ;;  %v27412_v32 = vand.u32 4294901760, %v21555_v30 }
 0x31a   :  { %6258 = vmatmul.mubr.f32.vlgmr.msra.gmra.mrb[40].mxu0 %v27388_v47  ;;  %v27413_v1 = vand.u32 4294901760, %v21562_v12  ;;  %v14759_v47 = vpack.c.bf16 %v6533_v9, %v6526_v44  ;;  %v27415_v15 = vand.u32 4294901760, %v27414_v48  ;;  %v27417_v0 = vand.u32 4294901760, %v27416_v53  ;;  %v27422_v9 = vld [vmem:[#allocation9_spill] sm:$0xff] }
 0x31b   :  { %v21818_v46 = vpack.c.bf16 %v27411_v50, %v27409_v62  ;;  %14716 = vmatpush3.bf16.msra.mxu0 %v21791_v51  ;;  %6468 = vmatprep.mubr.f32.mxu0 %v6467_v24  ;;  %v6553_v34 = vsub.f32 %v21555_v30, %v27412_v32  ;;  %v6666_v13 = vand.u32 4294901760, %v6665_v42  ;;  %v6673_v59 = vand.u32 4294901760, %v6672_v7  ;;  %v27424_v7 = vld [vmem:[#allocation59_spill] sm:$0xff] }
 0x31c   :  { %v6560_v11 = vsub.f32 %v21562_v12, %v27413_v1  ;;  %14756 = vmatpush3.bf16.msra.mxu1 %v14755_v25  ;;  %14718 = vmatprep.subr.bf16.mxu0 %v21798_v8  ;;  %v21832_v62 = vpack.c.bf16 %v27417_v0, %v27415_v15  ;;  %v14761_v24 = vpack.c.bf16 %v6659_v16, %v6652_v33  ;;  %v27418_v37 = vand.u32 4294901760, %v21567_v5  ;;  %v27420_v1 = vld [vmem:[#allocation40_spill] sm:$0xff] }
 0x31d   :  { %14758 = vmatprep.subr.bf16.mxu1 %v14757_v40  ;;  %v27419_v32 = vand.u32 4294901760, %v21572_v58  ;;  %v27421_v44 = vand.u32 4294901760, %v27420_v1  ;;  %v27423_v48 = vand.u32 4294901760, %v27422_v9  ;;  %v14763_v42 = vpack.c.bf16 %v6547_v41, %v6540_v54  ;;  %v27426_v33 = vld [vmem:[#allocation60_spill] sm:$0xff]  ;;  %v58_v54 = vld [vmem:[%s25145_s1 + $0x70] sm:$0xff] }
 0x31e   :  { %v6679_v50 = vsub.f32 %v21567_v5, %v27418_v37  ;;  %v27425_v40 = vand.u32 4294901760, %v27424_v7  ;;  %v27427_v16 = vand.u32 4294901760, %v27426_v33  ;;  %v6554_v53 = vand.u32 4294901760, %v6553_v34 }
 0x31f   :  { %v6686_v25 = vsub.f32 %v21572_v58, %v27419_v32  ;;  %v21844_v12 = vpack.c.bf16 %v27423_v48, %v27421_v44  ;;  %14720 = vmatpush3.bf16.msra.mxu0 %v21818_v46  ;;  %v6561_v0 = vand.u32 4294901760, %v6560_v11  ;;  %v14765_v37 = vpack.c.bf16 %v6673_v59, %v6666_v13  ;;  %v27432_v48 = vld [vmem:[#allocation62_spill] sm:$0xff] }
 0x320   :  { %v21851_v15 = vpack.c.bf16 %v27427_v16, %v27425_v40  ;;  %14760 = vmatpush3.bf16.msra.mxu1 %v14759_v47  ;;  %14722 = vmatprep.subr.bf16.mxu0 %v21832_v62  ;;  %v27428_v32 = vand.u32 4294901760, %v21577_v10  ;;  %v27429_v44 = vand.u32 4294901760, %v21583_v2  ;;  %v6680_v9 = vand.u32 4294901760, %v6679_v50  ;;  %v27434_v40 = vld [vmem:[#allocation42_spill] sm:$0xff] }
 0x321   :  { %14762 = vmatprep.subr.bf16.mxu1 %v14761_v24  ;;  %v6687_v34 = vand.u32 4294901760, %v6686_v25  ;;  %v27430_v11 = vand.u32 4294901760, %v21588_v18  ;;  %v27431_v13 = vand.u32 4294901760, %v21593_v56  ;;  %v27433_v7 = vand.u32 4294901760, %v27432_v48  ;;  %v27436_v24 = vld [vmem:[#allocation28_spill] sm:$0xff]  ;;  %v27438_v25 = vld [vmem:[#allocation33_spill] sm:$0xff] }
 0x322   :  { %v6567_v1 = vsub.f32 %v21577_v10, %v27428_v32  ;;  %v6574_v41 = vsub.f32 %v21583_v2, %v27429_v44  ;;  %v27435_v33 = vand.u32 4294901760, %v27434_v40  ;;  %v14767_v32 = vpack.c.bf16 %v6561_v0, %v6554_v53 }
 0x323   :  { %v6693_v47 = vsub.f32 %v21588_v18, %v27430_v11  ;;  %v6700_v59 = vsub.f32 %v21593_v56, %v27431_v13  ;;  %14724 = vmatpush3.bf16.msra.mxu0 %v21844_v12  ;;  %v27437_v50 = vand.u32 4294901760, %v27436_v24  ;;  %v27439_v44 = vand.u32 4294901760, %v27438_v25 }
 0x324   :  { %v21874_v16 = vpack.c.bf16 %v27435_v33, %v27433_v7  ;;  %v74_v11 = vmul.f32 %v58_v54, %v27355_v23  ;;  %14764 = vmatpush3.bf16.msra.mxu1 %v14763_v42  ;;  %14726 = vmatprep.subr.bf16.mxu0 %v21851_v15  ;;  %v6568_v13 = vand.u32 4294901760, %v6567_v1  ;;  %v6575_v56 = vand.u32 4294901760, %v6574_v41  ;;  %v27442_v23 = vld [vmem:[#allocation34_spill] sm:$0xff] }
 0x325   :  { %v21880_v2 = vpack.c.bf16 %v27439_v44, %v27437_v50  ;;  %v27440_v48 = vand.u32 4294901760, %v21606_v14  ;;  %v27441_v7 = vand.u32 4294901760, %v21611_v27  ;;  %14766 = vmatprep.subr.bf16.mxu1 %v14765_v37  ;;  %v14769_v0 = vpack.c.bf16 %v6687_v34, %v6680_v9  ;;  %v11896_v50 = vpop.f32.mrb[28].mxu1  ;;  %v27444_v1 = vld [vmem:[#allocation46_spill] sm:$0xff]  ;;  %v27446_v44 = vld [vmem:[#allocation5_spill] sm:$0xff] }
 0x326   :  { %v6694_v33 = vand.u32 4294901760, %v6693_v47  ;;  %v6701_v24 = vand.u32 4294901760, %v6700_v59  ;;  %v11897_v25 = vpop.f32.mrb[29].mxu1  ;;  %v27443_v42 = vand.u32 4294901760, %v27442_v23  ;;  %v27445_v41 = vand.u32 4294901760, %v27444_v1 }
 0x327   :  { %v6581_v40 = vsub.f32 %v21606_v14, %v27440_v48  ;;  %v6588_v53 = vsub.f32 %v21611_v27, %v27441_v7  ;;  %14728 = vmatpush3.bf16.msra.mxu0 %v21874_v16  ;;  %v27447_v48 = vand.u32 4294901760, %v27446_v44  ;;  %v27448_v14 = vand.u32 4294901760, %v21436_v17 }
 0x328   :  { %v21895_v54 = vpack.c.bf16 %v27445_v41, %v27443_v42  ;;  %v21903_v37 = vand.u32 4294901760, %v74_v11  ;;  %v11898_v9 = vadd.f32 %v11897_v25, %v11896_v50  ;;  %14768 = vmatpush3.bf16.msra.mxu1 %v14767_v32  ;;  %14730 = vmatprep.subr.bf16.mxu0 %v21880_v2  ;;  %v14771_v34 = vpack.c.bf16 %v6575_v56, %v6568_v13  ;;  %v27450_v42 = vld [vmem:[#allocation64_spill] sm:$0xff]  ;;  %v27452_v32 = vld [vmem:[#allocation11_spill] sm:$0xff]  ;;  %v27454_v25 = vld [vmem:[#allocation65_spill] sm:$0xff] }
 0x329   :  { %v21901_v18 = vpack.c.bf16 %v27448_v14, %v27447_v48  ;;  %v6582_v47 = vand.u32 4294901760, %v6581_v40  ;;  %v6589_v59 = vand.u32 4294901760, %v6588_v53  ;;  %14770 = vmatprep.subr.bf16.mxu1 %v14769_v0  ;;  %v14773_v7 = vpack.c.bf16 %v6701_v24, %v6694_v33  ;;  %v11861_v53 = vpop.f32.mrb[28].mxu0  ;;  %v27456_v33 = vld [vmem:[#allocation15_spill] sm:$0xff]  ;;  %v27458_v41 = vld [vmem:[#allocation16_spill] sm:$0xff] }
 0x32a   :  { %v27449_v23 = vand.u32 4294901760, %v21441_v49  ;;  %v27451_v1 = vand.u32 4294901760, %v27450_v42  ;;  %v27453_v50 = vand.u32 4294901760, %v27452_v32  ;;  %v27455_v56 = vand.u32 4294901760, %v27454_v25  ;;  %v11862_v49 = vpop.f32.mrb[29].mxu0 }
 0x32b   :  { %14732 = vmatpush3.bf16.msra.mxu0 %v21895_v54  ;;  %v14775_v14 = vpack.c.bf16 %v6589_v59, %v6582_v47  ;;  %v21921_v40 = vsub.f32 %v74_v11, %v21903_v37  ;;  %v11863_v0 = vadd.f32 %v11862_v49, %v11861_v53  ;;  %v27457_v24 = vand.u32 4294901760, %v27456_v33  ;;  %v27460_v47 = vld [vmem:[#allocation48_spill] sm:$0xff]  ;;  %v27470_v49 = vld [vmem:[#allocation73_spill] sm:$0xff] }
 0x32c   :  { %v21911_v17 = vpack.c.bf16 %v27451_v1, %v27449_v23  ;;  %14772 = vmatpush3.bf16.msra.mxu1 %v14771_v34  ;;  %14734 = vmatprep.subr.bf16.mxu0 %v21901_v18  ;;  %v21918_v13 = vpack.c.bf16 %v27455_v56, %v27453_v50  ;;  %v27459_v44 = vand.u32 4294901760, %v27458_v41  ;;  %v27461_v59 = vand.u32 4294901760, %v27460_v47  ;;  %v27474_v41 = vld [vmem:[#allocation79_spill] sm:$0xff]  ;;  %v27484_v47 = vld [vmem:[#allocation72_spill] sm:$0xff] }
 0x32d   :  { %14774 = vmatprep.subr.bf16.mxu1 %v14773_v7  ;;  %v6471_v34 = vand.u32 4294901760, %v21921_v40  ;;  %v4536_v11 = vadd.f32 %v11863_v0, %v21771_v4  ;;  %v27462_v7 = vld [vmem:[#allocation35_spill] sm:$0xff]  ;;  %v27464_v1 = vand.u32 4294901760, %v21502_v60  ;;  %v27466_v4 = vand.u32 4294901760, %v21728_v45 }
 0x32e   :  { %v21928_v48 = vpack.c.bf16 %v27459_v44, %v27457_v24  ;;  %v27463_v23 = vand.u32 4294901760, %v27462_v7  ;;  %v14777_v56 = vpack.c.bf16 %v27359_v6, %v27357_v43  ;;  %v27467_v43 = vld [vmem:[#allocation58_spill] sm:$0xff] }
 0x32f   :  { %14736 = vmatpush3.bf16.msra.mxu0 %v21911_v17  ;;  %v4640_v50 = vadd.f32 %v11898_v9, %v4536_v11  ;;  %v6472_v25 = vsub.f32 %v21921_v40, %v6471_v34  ;;  %v14781_v9 = vpack.c.bf16 %v21232_v61, %v21220_v28  ;;  %v14783_v6 = vpack.c.bf16 %v27467_v43, %v21237_v31 }
 0x330   :  { %14776 = vmatpush3.bf16.msra.mxu1 %v14775_v14  ;;  %14738 = vmatprep.subr.bf16.mxu0 %v21918_v13  ;;  %v21938_v42 = vpack.c.bf16 %v27463_v23, %v27461_v59  ;;  %v27465_v14 = vand.u32 4294901760, %v21511_v20  ;;  %v14779_v20 = vpack.c.bf16 %v21215_v38, %v21210_v21  ;;  %v27468_v38 = vld [vmem:[#allocation63_spill] sm:$0xff]  ;;  %v27469_v21 = vld [vmem:[#allocation66_spill] sm:$0xff]  ;;  %v14787_v61 = vpack.c.bf16 %v27378_v3, %v27376_v35 }
 0x331   :  { %14810 = vmatprep.subr.bf16.mxu1 %v21764_v29  ;;  %v6473_v60 = vand.u32 4294901760, %v6472_v25  ;;  %v14785_v53 = vpack.c.bf16 %v27469_v21, %v27468_v38  ;;  %v14789_v28 = vpack.c.bf16 %v21378_v39, %v21373_v26  ;;  %v14791_v31 = vpack.c.bf16 %v21389_v57, %v21383_v22  ;;  %v27488_v23 = vld [vmem:[#allocation82_spill] sm:$0xff] }
 0x332   :  { %v21946_v32 = vpack.c.bf16 %v27465_v14, %v27464_v1  ;;  %v14795_v26 = vpack.c.bf16 %v21426_v19, %v21411_v36  ;;  %v14797_v57 = vpack.c.bf16 %v21550_v55, %v27470_v49  ;;  %v27472_v55 = vld [vmem:[#allocation77_spill] sm:$0xff] }
 0x333   :  { %6706 = vmatmul.mubr.f32.vlgmr.msra.gmra.mrb[42].mxu1 %v21903_v37  ;;  %14740 = vmatpush3.bf16.msra.mxu0 %v21928_v48  ;;  %v14803_v33 = vpack.c.bf16 %v27472_v55, %v21577_v10  ;;  %v27476_v10 = vld [vmem:[#allocation39_spill] sm:$0xff] }
 0x334   :  { %14812 = vmatpush3.bf16.msra.mxu1 %v21791_v51  ;;  %6948 = vmatprep.mubr.f32.mxu1 %v27466_v4 }
 0x335   :  { %14742 = vmatprep.subr.bf16.mxu0 %v21938_v42  ;;  %14814 = vmatprep.subr.bf16.mxu1 %v21798_v8 }
 0x337   :  { %14744 = vmatpush3.bf16.msra.mxu0 %v21946_v32 }
 0x338   :  { %14816 = vmatpush3.bf16.msra.mxu1 %v21818_v46  ;;  %14778 = vmatprep.subr.bf16.mxu0 %v14777_v56 }
 0x339   :  { %14818 = vmatprep.subr.bf16.mxu1 %v21832_v62 }
 0x33a   :  { %6474 = vmatmul.mubr.f32.vlgmr.msra.gmra.mrb[42].mxu0 %v6473_v60 }
 0x33b   :  { %14780 = vmatpush3.bf16.msra.mxu0 %v14779_v20  ;;  %6841 = vmatprep.mubr.f32.mxu0 %v21728_v45  ;;  %v14793_v45 = vpack.c.bf16 %v21406_v52, %v21394_v63  ;;  %v27471_v63 = vld [vmem:[#allocation76_spill] sm:$0xff]  ;;  %v14801_v52 = vpack.c.bf16 %v21572_v58, %v21567_v5 }
 0x33c   :  { %14820 = vmatpush3.bf16.msra.mxu1 %v21844_v12  ;;  %14782 = vmatprep.subr.bf16.mxu0 %v14781_v9  ;;  %v14799_v22 = vpack.c.bf16 %v27471_v63, %v21555_v30  ;;  %v27473_v30 = vld [vmem:[#allocation78_spill] sm:$0xff]  ;;  %v27475_v5 = vld [vmem:[#allocation80_spill] sm:$0xff] }
 0x33d   :  { %14822 = vmatprep.subr.bf16.mxu1 %v21851_v15  ;;  %v14805_v44 = vpack.c.bf16 %v27474_v41, %v27473_v30  ;;  %v14807_v58 = vpack.c.bf16 %v21611_v27, %v27475_v5  ;;  %v27479_v27 = vld [vmem:[#allocation47_spill] sm:$0xff]  ;;  %v7269_v63 = vld [vmem:[%s25150_s6 + $0x80] sm:$0xff]  ;;  %v22071_v5 = vld [vmem:[%s25150_s6 + $0x10] sm:$0xff] }
 0x33f   :  { %14784 = vmatpush3.bf16.msra.mxu0 %v14783_v6  ;;  %v11966_v3 = vpop.f32.mrb[30].mxu1 }
 0x340   :  { %14824 = vmatpush3.bf16.msra.mxu1 %v21874_v16  ;;  %14786 = vmatprep.subr.bf16.mxu0 %v14785_v53  ;;  %v11967_v35 = vpop.f32.mrb[31].mxu1 }
 0x341   :  { %14826 = vmatprep.subr.bf16.mxu1 %v21880_v2  ;;  %v11968_v39 = vadd.f32 %v11967_v35, %v11966_v3 }
 0x343   :  { %14788 = vmatpush3.bf16.msra.mxu0 %v14787_v61 }
 0x344   :  { %14828 = vmatpush3.bf16.msra.mxu1 %v21895_v54  ;;  %14790 = vmatprep.subr.bf16.mxu0 %v14789_v28 }
 0x345   :  { %14830 = vmatprep.subr.bf16.mxu1 %v21901_v18 }
 0x347   :  { %14792 = vmatpush3.bf16.msra.mxu0 %v14791_v31  ;;  %v11931_v36 = vpop.f32.mrb[30].mxu0 }
 0x348   :  { %14832 = vmatpush3.bf16.msra.mxu1 %v21911_v17  ;;  %14794 = vmatprep.subr.bf16.mxu0 %v14793_v45  ;;  %v11932_v19 = vpop.f32.mrb[31].mxu0 }
 0x349   :  { %14834 = vmatprep.subr.bf16.mxu1 %v21918_v13  ;;  %v11933_v0 = vadd.f32 %v11932_v19, %v11931_v36  ;;  %v7431_v36 = vand.u32 4294901760, %v7269_v63 }
 0x34b   :  { %14796 = vmatpush3.bf16.msra.mxu0 %v14795_v26  ;;  %v4752_v24 = vadd.f32 %v11933_v0, %v4640_v50  ;;  %v27492_v50 = vld [vmem:[#allocation12_spill] sm:$0xff]  ;;  %v7254_v0 = vld [vmem:[%s25150_s6 + $0x8] sm:$0xff] }
 0x34c   :  { %14836 = vmatpush3.bf16.msra.mxu1 %v21928_v48  ;;  %14798 = vmatprep.subr.bf16.mxu0 %v14797_v57  ;;  %v7386_v30 = vand.u32 4294901760, %v7254_v0 }
 0x34d   :  { %14838 = vmatprep.subr.bf16.mxu1 %v21938_v42  ;;  %v4984_v11 = vadd.f32 %v11968_v39, %v4752_v24  ;;  %v22064_v24 = vld [vmem:[%s25150_s6 + $0x98] sm:$0xff] }
 0x34f   :  { %14800 = vmatpush3.bf16.msra.mxu0 %v14799_v22  ;;  %v7270_v22 = vld [vmem:[%s25150_s6 + $0x88] sm:$0xff] }
 0x350   :  { %14840 = vmatpush3.bf16.msra.mxu1 %v21946_v32  ;;  %14802 = vmatprep.subr.bf16.mxu0 %v14801_v52  ;;  %v7253_v52 = vld [vmem:[%s25150_s6] sm:$0xff]  ;;  %v7434_v19 = vand.u32 4294901760, %v7270_v22 }
 0x351   :  { %14874 = vmatprep.subr.bf16.mxu1 %v21764_v29  ;;  %v27477_v29 = vld [vmem:[#allocation17_spill] sm:$0xff]  ;;  %v7383_v55 = vand.u32 4294901760, %v7253_v52 }
 0x353   :  { %6952 = vmatmul.mubr.f32.vlgmr.msra.gmra.mrb[44].mxu1 %v6471_v34  ;;  %14804 = vmatpush3.bf16.msra.mxu0 %v14803_v33  ;;  %v27478_v34 = vld [vmem:[#allocation51_spill] sm:$0xff]  ;;  %v22059_v33 = vld [vmem:[%s25150_s6 + $0x90] sm:$0xff] }
 0x354   :  { %14876 = vmatpush3.bf16.msra.mxu1 %v21791_v51  ;;  %7222 = vmatprep.mubr.f32.mxu1 %v27476_v10  ;;  %v27480_v51 = vld [vmem:[#allocation8_spill] sm:$0xff]  ;;  %v7437_v41 = vand.u32 4294901760, %v22059_v33 }
 0x355   :  { %14806 = vmatprep.subr.bf16.mxu0 %v14805_v44  ;;  %14878 = vmatprep.subr.bf16.mxu1 %v21798_v8  ;;  %v27481_v8 = vld [vmem:[#allocation7_spill] sm:$0xff]  ;;  %v7440_v44 = vand.u32 4294901760, %v22064_v24 }
 0x357   :  { %14808 = vmatpush3.bf16.msra.mxu0 %v14807_v58  ;;  %v22076_v58 = vld [vmem:[%s25150_s6 + $0x18] sm:$0xff] }
 0x358   :  { %14880 = vmatpush3.bf16.msra.mxu1 %v21818_v46  ;;  %14842 = vmatprep.subr.bf16.mxu0 %v27477_v29  ;;  %v27482_v46 = vld [vmem:[#allocation61_spill] sm:$0xff]  ;;  %v22082_v29 = vsub.f32 %v7253_v52, %v7383_v55 }
 0x359   :  { %14882 = vmatprep.subr.bf16.mxu1 %v21832_v62  ;;  %v27483_v62 = vld [vmem:[#allocation23_spill] sm:$0xff] }
 0x35a   :  { %6844 = vmatmul.mubr.f32.vlgmr.msra.gmra.mrb[44].mxu0 %v21921_v40  ;;  %27495 = vst [vmem:[#allocation21_spill] sm:$0xff] %v22082_v29 }
 0x35b   :  { %14844 = vmatpush3.bf16.msra.mxu0 %v27478_v34  ;;  %7118 = vmatprep.mubr.f32.mxu0 %v27476_v10  ;;  %v22080_v10 = vsub.f32 %v7270_v22, %v7434_v19  ;;  %v7389_v34 = vand.u32 4294901760, %v22071_v5 }
 0x35c   :  { %14884 = vmatpush3.bf16.msra.mxu1 %v21844_v12  ;;  %14846 = vmatprep.subr.bf16.mxu0 %v27479_v27  ;;  %v22085_v27 = vsub.f32 %v7254_v0, %v7386_v30 }
 0x35d   :  { %14886 = vmatprep.subr.bf16.mxu1 %v21851_v15  ;;  %27494 = vst [vmem:[#allocation14_spill] sm:$0xff] %v22080_v10 }
 0x35e   :  { %27496 = vst [vmem:[#allocation10_spill] sm:$0xff] %v22085_v27 }
 0x35f   :  { %14848 = vmatpush3.bf16.msra.mxu0 %v27480_v51  ;;  %v22088_v51 = vsub.f32 %v22059_v33, %v7437_v41 }
 0x360   :  { %14888 = vmatpush3.bf16.msra.mxu1 %v21874_v16  ;;  %14850 = vmatprep.subr.bf16.mxu0 %v27481_v8  ;;  %v27485_v16 = vld [vmem:[#allocation74_spill] sm:$0xff]  ;;  %v22091_v8 = vsub.f32 %v22064_v24, %v7440_v44 }
 0x361   :  { %14890 = vmatprep.subr.bf16.mxu1 %v21880_v2  ;;  %v12036_v12 = vpop.f32.mrb[32].mxu1  ;;  %v27486_v2 = vld [vmem:[#allocation75_spill] sm:$0xff]  ;;  %27497 = vst [vmem:[#allocation27_spill] sm:$0xff] %v22088_v51 }
 0x362   :  { %v12037_v40 = vpop.f32.mrb[33].mxu1  ;;  %27498 = vst [vmem:[#allocation50_spill] sm:$0xff] %v22091_v8 }
 0x363   :  { %14852 = vmatpush3.bf16.msra.mxu0 %v27482_v46  ;;  %v12038_v15 = vadd.f32 %v12037_v40, %v12036_v12  ;;  %v7392_v46 = vand.u32 4294901760, %v22076_v58  ;;  %v25717_v12 = vand.u32 4294901760, %v22080_v10  ;;  %v25716_v40 = vand.u32 4294901760, %v22082_v29 }
 0x364   :  { %14892 = vmatpush3.bf16.msra.mxu1 %v21895_v54  ;;  %14854 = vmatprep.subr.bf16.mxu0 %v27483_v62  ;;  %v27487_v54 = vld [vmem:[#allocation81_spill] sm:$0xff] }
 0x365   :  { %14894 = vmatprep.subr.bf16.mxu1 %v21901_v18 }
 0x367   :  { %14856 = vmatpush3.bf16.msra.mxu0 %v27484_v47  ;;  %v12001_v59 = vpop.f32.mrb[32].mxu0  ;;  %v22100_v47 = vsub.f32 %v22071_v5, %v7389_v34 }
 0x368   :  { %14896 = vmatpush3.bf16.msra.mxu1 %v21911_v17  ;;  %14858 = vmatprep.subr.bf16.mxu0 %v27485_v16  ;;  %v12002_v18 = vpop.f32.mrb[33].mxu0  ;;  %v27489_v17 = vld [vmem:[#allocation83_spill] sm:$0xff]  ;;  %v25712_v16 = vand.u32 4294901760, %v22088_v51 }
 0x369   :  { %14898 = vmatprep.subr.bf16.mxu1 %v21918_v13  ;;  %v12003_v7 = vadd.f32 %v12002_v18, %v12001_v59  ;;  %v27490_v13 = vld [vmem:[#allocation68_spill] sm:$0xff]  ;;  %v7617_v18 = vsub.f32 %v22080_v10, %v25717_v12 }
 0x36b   :  { %14860 = vmatpush3.bf16.msra.mxu0 %v27486_v2  ;;  %v5122_v1 = vadd.f32 %v12003_v7, %v4984_v11  ;;  %v22078_v11 = vsub.f32 %v7269_v63, %v7431_v36  ;;  %v25711_v2 = vand.u32 4294901760, %v22091_v8  ;;  %v7498_v7 = vsub.f32 %v22082_v29, %v25716_v40 }
 0x36c   :  { %14900 = vmatpush3.bf16.msra.mxu1 %v21928_v48  ;;  %14862 = vmatprep.subr.bf16.mxu0 %v27487_v54  ;;  %v27491_v48 = vld [vmem:[#allocation69_spill] sm:$0xff]  ;;  %v22108_v54 = vsub.f32 %v22076_v58, %v7392_v46 }
 0x36d   :  { %14902 = vmatprep.subr.bf16.mxu1 %v21938_v42  ;;  %v5230_v14 = vadd.f32 %v12038_v15, %v5122_v1  ;;  %27493 = vst [vmem:[#allocation30_spill] sm:$0xff] %v22078_v11  ;;  %v25718_v62 = vand.u32 4294901760, %v22078_v11  ;;  %v25713_v15 = vand.u32 4294901760, %v22085_v27  ;;  %v7624_v1 = vsub.f32 %v22088_v51, %v25712_v16 }
 0x36f   :  { %14864 = vmatpush3.bf16.msra.mxu0 %v27488_v23  ;;  %v7610_v59 = vsub.f32 %v22078_v11, %v25718_v62  ;;  %v25710_v23 = vand.u32 4294901760, %v22100_v47 }
 0x370   :  { %14904 = vmatpush3.bf16.msra.mxu1 %v21946_v32  ;;  %14866 = vmatprep.subr.bf16.mxu0 %v27489_v17  ;;  %v7505_v17 = vsub.f32 %v22085_v27, %v25713_v15 }
 0x373   :  { %7224 = vmatmul.mubr.f32.vlgmr.msra.gmra.mrb[46].mxu1 %v21903_v37  ;;  %14868 = vmatpush3.bf16.msra.mxu0 %v27490_v13  ;;  %v7631_v13 = vsub.f32 %v22091_v8, %v25711_v2 }
 0x374   :  { %14870 = vmatprep.subr.bf16.mxu0 %v27491_v48  ;;  %v22133_v48 = vld [vmem:[%s25150_s6 + $0xa0] sm:$0xff] }
 0x377   :  { %14872 = vmatpush3.bf16.msra.mxu0 %v27492_v50  ;;  %v7611_v50 = vand.u32 4294901760, %v7610_v59 }
 0x37a   :  { %7120 = vmatmul.mubr.f32.vlgmr.msra.gmra.mrb[46].mxu0 %v21903_v37 }
 0x381   :  { %v12106_v42 = vpop.f32.mrb[34].mxu1 }
 0x382   :  { %v12107_v4 = vpop.f32.mrb[35].mxu1 }
 0x383   :  { %v12108_v25 = vadd.f32 %v12107_v4, %v12106_v42  ;;  %v7618_v42 = vand.u32 4294901760, %v7617_v18  ;;  %v7499_v4 = vand.u32 4294901760, %v7498_v7 }
 0x387   :  { %v12071_v56 = vpop.f32.mrb[34].mxu0 }
 0x388   :  { %v12072_v20 = vpop.f32.mrb[35].mxu0 }
 0x389   :  { %v12073_v32 = vadd.f32 %v12072_v20, %v12071_v56  ;;  %v22141_v56 = vld [vmem:[%s25150_s6 + $0xa8] sm:$0xff]  ;;  %v7506_v20 = vand.u32 4294901760, %v7505_v17 }
 0x38b   :  { %v5398_v60 = vadd.f32 %v12073_v32, %v5230_v14  ;;  %v25709_v14 = vand.u32 4294901760, %v22108_v54  ;;  %v7625_v32 = vand.u32 4294901760, %v7624_v1  ;;  %v22216_v1 = vpack.c.bf16 %v7392_v46, %v7389_v34 }
 0x38d   :  { %v5502_v9 = vadd.f32 %v12108_v25, %v5398_v60  ;;  %v7512_v25 = vsub.f32 %v22100_v47, %v25710_v23  ;;  %v7632_v60 = vand.u32 4294901760, %v7631_v13  ;;  %27500 = vst [vmem:[#allocation41_spill] sm:$0xff] %v22216_v1 }
 0x3a1   :  { %v12176_v43 = vpop.f32.mrb[36].mxu1 }
 0x3a2   :  { %v12177_v6 = vpop.f32.mrb[37].mxu1 }
 0x3a3   :  { %v12178_v38 = vadd.f32 %v12177_v6, %v12176_v43  ;;  %v22149_v43 = vld [vmem:[%s25150_s6 + $0x20] sm:$0xff]  ;;  %v22154_v6 = vld [vmem:[%s25150_s6 + $0x28] sm:$0xff] }
 0x3a4   :  { %v7398_v63 = vand.u32 4294901760, %v22154_v6 }
 0x3aa   :  { %v12141_v21 = vpop.f32.mrb[36].mxu0 }
 0x3ab   :  { %v12142_v53 = vpop.f32.mrb[37].mxu0 }
 0x3ac   :  { %v12143_v61 = vadd.f32 %v12142_v53, %v12141_v21  ;;  %v7513_v21 = vand.u32 4294901760, %v7512_v25  ;;  %v22156_v53 = vpack.c.bf16 %v7434_v19, %v7431_v36  ;;  %v22181_v19 = vpack.c.bf16 %v7440_v44, %v7437_v41  ;;  %v22198_v41 = vld [vmem:[%s25150_s6 + $0x30] sm:$0xff]  ;;  %v22203_v44 = vld [vmem:[%s25150_s6 + $0x38] sm:$0xff] }
 0x3ad   :  { %v7401_v34 = vand.u32 4294901760, %v22198_v41  ;;  %v7404_v46 = vand.u32 4294901760, %v22203_v44 }
 0x3ae   :  { %v5614_v28 = vadd.f32 %v12143_v61, %v5502_v9  ;;  %v7519_v9 = vsub.f32 %v22108_v54, %v25709_v14  ;;  %v7443_v61 = vand.u32 4294901760, %v22133_v48  ;;  %14906 = vmatprep.subr.bf16.mxu0 %v22156_v53  ;;  %27499 = vst [vmem:[#allocation6_spill] sm:$0xff] %v22181_v19 }
 0x3b0   :  { %v5846_v31 = vadd.f32 %v12178_v38, %v5614_v28  ;;  %v14937_v38 = vpack.c.bf16 %v7618_v42, %v7611_v50  ;;  %v22162_v28 = vld [vmem:[%s25150_s6 + $0xb0] sm:$0xff] }
 0x3b1   :  { %v7449_v0 = vand.u32 4294901760, %v22162_v28 }
 0x3b2   :  { %14938 = vmatprep.subr.bf16.mxu1 %v14937_v38  ;;  %v22254_v38 = vld [vmem:[%s25150_s6 + $0xc0] sm:$0xff] }
 0x3b3   :  { %v22210_v17 = vsub.f32 %v22162_v28, %v7449_v0  ;;  %v22336_v28 = vld [vmem:[%s25150_s6 + $0x58] sm:$0xff] }
 0x3b5   :  { %v25700_v58 = vand.u32 4294901760, %v22210_v17 }
 0x3c4   :  { %v12246_v45 = vpop.f32.mrb[38].mxu1 }
 0x3c5   :  { %v12247_v3 = vpop.f32.mrb[39].mxu1 }
 0x3c6   :  { %v12248_v35 = vadd.f32 %v12247_v3, %v12246_v45  ;;  %v14941_v45 = vpack.c.bf16 %v7632_v60, %v7625_v32  ;;  %v7520_v3 = vand.u32 4294901760, %v7519_v9  ;;  %v7652_v60 = vsub.f32 %v22210_v17, %v25700_v58 }
 0x3c7   :  { %v22246_v9 = vsub.f32 %v22198_v41, %v7401_v34 }
 0x3c8   :  { %v14943_v52 = vpack.c.bf16 %v7520_v3, %v7513_v21 }
 0x3cb   :  { %v12211_v37 = vpop.f32.mrb[38].mxu0 }
 0x3cc   :  { %v12212_v26 = vpop.f32.mrb[39].mxu0 }
 0x3cd   :  { %v12213_v39 = vadd.f32 %v12212_v26, %v12211_v37  ;;  %v22168_v37 = vld [vmem:[%s25150_s6 + $0xb8] sm:$0xff]  ;;  %v22172_v26 = vsub.f32 %v22133_v48, %v7443_v61 }
 0x3ce   :  { %v7452_v59 = vand.u32 4294901760, %v22168_v37 }
 0x3cf   :  { %v5984_v49 = vadd.f32 %v12213_v39, %v5846_v31  ;;  %v14939_v31 = vpack.c.bf16 %v7506_v20, %v7499_v4  ;;  %v22174_v39 = vpack.c.bf16 %v7386_v30, %v7383_v55  ;;  %v25708_v24 = vand.u32 4294901760, %v22172_v26 }
 0x3d0   :  { %v22192_v30 = vsub.f32 %v22154_v6, %v7398_v63  ;;  %v22226_v42 = vsub.f32 %v22168_v37, %v7452_v59  ;;  %v22249_v6 = vsub.f32 %v22203_v44, %v7404_v46  ;;  %v7653_v44 = vand.u32 4294901760, %v7652_v60 }
 0x3d1   :  { %v22042_v57 = vadd.f32 %v12248_v35, %v5984_v49  ;;  %v7446_v35 = vand.u32 4294901760, %v22141_v56  ;;  %v7395_v49 = vand.u32 4294901760, %v22149_v43  ;;  %14940 = vmatpush3.bf16.msra.mxu1 %v14939_v31  ;;  %14908 = vmatpush3.bf16.msra.mxu0 %v22174_v39  ;;  %v7638_v13 = vsub.f32 %v22172_v26, %v25708_v24 }
 0x3d2   :  { %14942 = vmatprep.subr.bf16.mxu1 %v14941_v45  ;;  %14910 = vmatprep.subr.bf16.mxu0 %v22181_v19  ;;  %v25704_v50 = vand.u32 4294901760, %v22192_v30  ;;  %v25697_v20 = vand.u32 4294901760, %v22226_v42 }
 0x3d3   :  { %v22179_v36 = vsub.f32 %v22141_v56, %v7446_v35  ;;  %v22189_v55 = vsub.f32 %v22149_v43, %v7395_v49  ;;  %v7639_v4 = vand.u32 4294901760, %v7638_v13  ;;  %v25698_v13 = vand.u32 4294901760, %v22246_v9 }
 0x3d4   :  { %v7533_v56 = vsub.f32 %v22192_v30, %v25704_v50  ;;  %v7659_v3 = vsub.f32 %v22226_v42, %v25697_v20  ;;  %v7455_v20 = vand.u32 4294901760, %v22254_v38 }
 0x3d5   :  { %v25707_v7 = vand.u32 4294901760, %v22179_v36  ;;  %v25706_v48 = vand.u32 4294901760, %v22189_v55  ;;  %14944 = vmatpush3.bf16.msra.mxu1 %v14943_v52  ;;  %14912 = vmatpush3.bf16.msra.mxu0 %v22216_v1  ;;  %v22264_v52 = vld [vmem:[%s25150_s6 + $0xc8] sm:$0xff] }
 0x3d6   :  { %v7534_v45 = vand.u32 4294901760, %v7533_v56 }
 0x3d7   :  { %v7645_v5 = vsub.f32 %v22179_v36, %v25707_v7  ;;  %v7526_v25 = vsub.f32 %v22189_v55, %v25706_v48 }
 0x3d9   :  { %v7646_v32 = vand.u32 4294901760, %v7645_v5  ;;  %v7527_v31 = vand.u32 4294901760, %v7526_v25  ;;  %v25699_v5 = vand.u32 4294901760, %v22249_v6  ;;  %v22271_v25 = vld [vmem:[%s25150_s6 + $0x40] sm:$0xff] }
 0x3db   :  { %v14945_v41 = vpack.c.bf16 %v7646_v32, %v7639_v4  ;;  %v22278_v4 = vld [vmem:[%s25150_s6 + $0x48] sm:$0xff]  ;;  %v7540_v32 = vsub.f32 %v22246_v9, %v25698_v13  ;;  %v7547_v60 = vsub.f32 %v22249_v6, %v25699_v5  ;;  %v22299_v13 = vld [vmem:[%s25150_s6 + $0xd0] sm:$0xff] }
 0x3dd   :  { %14946 = vmatprep.subr.bf16.mxu1 %v14945_v41  ;;  %v7407_v41 = vand.u32 4294901760, %v22271_v25  ;;  %v7541_v5 = vand.u32 4294901760, %v7540_v32  ;;  %v7548_v58 = vand.u32 4294901760, %v7547_v60 }
 0x3e5   :  { %v12316_v22 = vpop.f32.mrb[40].mxu1 }
 0x3e6   :  { %v12317_v33 = vpop.f32.mrb[41].mxu1 }
 0x3e7   :  { %v12318_v18 = vadd.f32 %v12317_v33, %v12316_v22  ;;  %v22259_v22 = vpack.c.bf16 %v7446_v35, %v7443_v61  ;;  %v14947_v61 = vpack.c.bf16 %v7534_v45, %v7527_v31  ;;  %v7660_v35 = vand.u32 4294901760, %v7659_v3 }
 0x3e8   :  { %v22289_v31 = vpack.c.bf16 %v7398_v63, %v7395_v49  ;;  %v22309_v49 = vld [vmem:[%s25150_s6 + $0xd8] sm:$0xff] }
 0x3e9   :  { %27501 = vst [vmem:[#allocation25_spill] sm:$0xff] %v22259_v22  ;;  %14914 = vmatprep.subr.bf16.mxu0 %v22259_v22  ;;  %14948 = vmatpush3.bf16.msra.mxu1 %v14947_v61  ;;  %v14949_v3 = vpack.c.bf16 %v7660_v35, %v7653_v44  ;;  %v22315_v44 = vsub.f32 %v22271_v25, %v7407_v41  ;;  %v25730_v25 = vand.u32 4294901760, %v22299_v13 }
 0x3ea   :  { %14916 = vmatpush3.bf16.msra.mxu0 %v22289_v31  ;;  %v14951_v61 = vpack.c.bf16 %v7548_v58, %v7541_v5  ;;  %v22344_v58 = vpack.c.bf16 %v7404_v46, %v7401_v34 }
 0x3eb   :  { %14950 = vmatprep.subr.bf16.mxu1 %v14949_v3  ;;  %v22353_v32 = vsub.f32 %v22299_v13, %v25730_v25  ;;  %v25726_v3 = vand.u32 4294901760, %v22336_v28 }
 0x3ed   :  { %v12281_v21 = vpop.f32.mrb[40].mxu0  ;;  %14952 = vmatpush3.bf16.msra.mxu1 %v14951_v61  ;;  %v22389_v48 = vsub.f32 %v22336_v28, %v25726_v3 }
 0x3ee   :  { %v12282_v33 = vpop.f32.mrb[41].mxu0 }
 0x3ef   :  { %v12283_v56 = vadd.f32 %v12282_v33, %v12281_v21  ;;  %v7458_v21 = vand.u32 4294901760, %v22264_v52  ;;  %v22293_v33 = vsub.f32 %v22254_v38, %v7455_v20  ;;  %27502 = vst [vmem:[#allocation18_spill] sm:$0xff] %v22389_v48  ;;  %v25719_v16 = vand.u32 4294901760, %v22389_v48 }
 0x3f1   :  { %v6260_v45 = vadd.f32 %v12283_v56, %v22042_v57  ;;  %v22302_v43 = vsub.f32 %v22264_v52, %v7458_v21  ;;  %v7410_v57 = vand.u32 4294901760, %v22278_v4  ;;  %v25703_v38 = vand.u32 4294901760, %v22293_v33  ;;  %v22326_v56 = vld [vmem:[%s25150_s6 + $0x50] sm:$0xff] }
 0x3f2   :  { %v22321_v52 = vpack.c.bf16 %v7452_v59, %v7449_v0  ;;  %v25702_v0 = vand.u32 4294901760, %v22315_v44  ;;  %v25729_v59 = vand.u32 4294901760, %v22309_v49  ;;  %v25728_v60 = vand.u32 4294901760, %v22326_v56 }
 0x3f3   :  { %v22311_v63 = vadd.f32 %v12318_v18, %v6260_v45  ;;  %v25701_v18 = vand.u32 4294901760, %v22302_v43  ;;  %v22330_v35 = vsub.f32 %v22278_v4, %v7410_v57  ;;  %v7666_v37 = vsub.f32 %v22293_v33, %v25703_v38  ;;  %v22378_v38 = vld [vmem:[%s25150_s6 + $0xe0] sm:$0xff] }
 0x3f4   :  { %14918 = vmatprep.subr.bf16.mxu0 %v22321_v52  ;;  %v7554_v34 = vsub.f32 %v22315_v44, %v25702_v0  ;;  %v22362_v46 = vsub.f32 %v22309_v49, %v25729_v59  ;;  %v22373_v0 = vsub.f32 %v22326_v56, %v25728_v60  ;;  %v22391_v7 = vpack.c.bf16 %v7458_v21, %v7455_v20  ;;  %v22407_v21 = vld [vmem:[%s25150_s6 + $0x60] sm:$0xff] }
 0x3f5   :  { %v7673_v5 = vsub.f32 %v22302_v43, %v25701_v18  ;;  %v25705_v4 = vand.u32 4294901760, %v22330_v35  ;;  %v7667_v45 = vand.u32 4294901760, %v7666_v37  ;;  %14920 = vmatpush3.bf16.msra.mxu0 %v22344_v58  ;;  %v25715_v37 = vand.u32 4294901760, %v22353_v32 }
 0x3f6   :  { %v7555_v50 = vand.u32 4294901760, %v7554_v34  ;;  %v25720_v2 = vand.u32 4294901760, %v22373_v0  ;;  %14922 = vmatprep.subr.bf16.mxu0 %v22391_v7  ;;  %v25723_v15 = vand.u32 4294901760, %v22378_v38  ;;  %v7575_v12 = vsub.f32 %v22389_v48, %v25719_v16 }
 0x3f7   :  { %v7674_v61 = vand.u32 4294901760, %v7673_v5  ;;  %v7561_v18 = vsub.f32 %v22330_v35, %v25705_v4  ;;  %v22383_v5 = vld [vmem:[%s25150_s6 + $0xe8] sm:$0xff]  ;;  %v25714_v4 = vand.u32 4294901760, %v22362_v46  ;;  %v7680_v23 = vsub.f32 %v22353_v32, %v25715_v37 }
 0x3f8   :  { %v25722_v20 = vand.u32 4294901760, %v22383_v5  ;;  %v22417_v37 = vpack.c.bf16 %v7410_v57, %v7407_v41  ;;  %v22425_v62 = vsub.f32 %v22378_v38, %v25723_v15  ;;  %v7576_v57 = vand.u32 4294901760, %v7575_v12 }
 0x3f9   :  { %v14953_v24 = vpack.c.bf16 %v7674_v61, %v7667_v45  ;;  %v7562_v14 = vand.u32 4294901760, %v7561_v18  ;;  %v7687_v34 = vsub.f32 %v22362_v46, %v25714_v4  ;;  %v22412_v18 = vld [vmem:[%s25150_s6 + $0x68] sm:$0xff]  ;;  %v7681_v61 = vand.u32 4294901760, %v7680_v23 }
 0x3fa   :  { %v7568_v4 = vsub.f32 %v22373_v0, %v25720_v2  ;;  %27503 = vst [vmem:[#allocation43_spill] sm:$0xff] %v22425_v62  ;;  %v22430_v23 = vsub.f32 %v22383_v5, %v25722_v20  ;;  %14924 = vmatpush3.bf16.msra.mxu0 %v22417_v37 }
 0x3fb   :  { %14954 = vmatprep.subr.bf16.mxu1 %v14953_v24  ;;  %v14955_v45 = vpack.c.bf16 %v7562_v14, %v7555_v50  ;;  %v7688_v40 = vand.u32 4294901760, %v7687_v34  ;;  %v25721_v24 = vand.u32 4294901760, %v22407_v21  ;;  %v25725_v50 = vand.u32 4294901760, %v22412_v18 }
 0x3fc   :  { %27504 = vst [vmem:[#allocation38_spill] sm:$0xff] %v22430_v23  ;;  %v7569_v14 = vand.u32 4294901760, %v7568_v4  ;;  %v25724_v34 = vand.u32 4294901760, %v22425_v62  ;;  %v25727_v16 = vand.u32 4294901760, %v22430_v23 }
 0x3fd   :  { %14956 = vmatpush3.bf16.msra.mxu1 %v14955_v45  ;;  %v14957_v41 = vpack.c.bf16 %v7688_v40, %v7681_v61  ;;  %v22440_v2 = vsub.f32 %v22407_v21, %v25721_v24  ;;  %v22445_v4 = vsub.f32 %v22412_v18, %v25725_v50 }
 0x3fe   :  { %v14959_v45 = vpack.c.bf16 %v7576_v57, %v7569_v14  ;;  %v7694_v12 = vsub.f32 %v22425_v62, %v25724_v34  ;;  %v7701_v40 = vsub.f32 %v22430_v23, %v25727_v16 }
 0x3ff   :  { %27505 = vst [vmem:[#allocation13_spill] sm:$0xff] %v22440_v2  ;;  %27506 = vst [vmem:[#allocation24_spill] sm:$0xff] %v22445_v4  ;;  %14958 = vmatprep.subr.bf16.mxu1 %v14957_v41  ;;  %v25733_v61 = vand.u32 4294901760, %v22440_v2  ;;  %v25740_v24 = vand.u32 4294901760, %v22445_v4 }
 0x400   :  { %v7695_v20 = vand.u32 4294901760, %v7694_v12  ;;  %v7702_v15 = vand.u32 4294901760, %v7701_v40 }
 0x401   :  { %14960 = vmatpush3.bf16.msra.mxu1 %v14959_v45  ;;  %v7582_v41 = vsub.f32 %v22440_v2, %v25733_v61  ;;  %v7589_v14 = vsub.f32 %v22445_v4, %v25740_v24 }
 0x402   :  { %v14961_v57 = vpack.c.bf16 %v7702_v15, %v7695_v20 }
 0x403   :  { %v7583_v50 = vand.u32 4294901760, %v7582_v41  ;;  %v7590_v3 = vand.u32 4294901760, %v7589_v14 }
 0x404   :  { %14962 = vmatprep.subr.bf16.mxu1 %v14961_v57 }
 0x405   :  { %v14963_v59 = vpack.c.bf16 %v7590_v3, %v7583_v50 }
 0x406   :  { %v12386_v34 = vpop.f32.mrb[42].mxu1 }
 0x407   :  { %v12387_v16 = vpop.f32.mrb[43].mxu1  ;;  %14964 = vmatpush3.bf16.msra.mxu1 %v14963_v59  ;;  %v27508_v59 = vand.u32 4294901760, %v22309_v49  ;;  %v27511_v49 = vand.u32 4294901760, %v22378_v38 }
 0x408   :  { %v12388_v60 = vadd.f32 %v12387_v16, %v12386_v34  ;;  %v27507_v16 = vand.u32 4294901760, %v22299_v13  ;;  %v7267_v13 = vld [vmem:[%s25150_s6 + $0x70] sm:$0xff] }
 0x409   :  { %v7425_v34 = vand.u32 4294901760, %v7267_v13 }
 0x40a   :  { %v22466_v3 = vpack.c.bf16 %v27508_v59, %v27507_v16  ;;  %v27515_v16 = vand.u32 4294901760, %v22407_v21  ;;  %v27516_v59 = vand.u32 4294901760, %v22412_v18 }
 0x40b   :  { %v22498_v38 = vsub.f32 %v7267_v13, %v7425_v34 }
 0x40c   :  { %14926 = vmatprep.subr.bf16.mxu0 %v22466_v3 }
 0x40d   :  { %v12351_v45 = vpop.f32.mrb[42].mxu0  ;;  %27513 = vst [vmem:[#allocation26_spill] sm:$0xff] %v22498_v38 }
 0x40e   :  { %v12352_v12 = vpop.f32.mrb[43].mxu0 }
 0x40f   :  { %v12353_v40 = vadd.f32 %v12352_v12, %v12351_v45 }
 0x411   :  { %v6476_v25 = vadd.f32 %v12353_v40, %v22311_v63  ;;  %v7283_v63 = vld [vmem:[%s25150_s6 + $0xf0] sm:$0xff] }
 0x413   :  { %v6708_v23 = vadd.f32 %v12388_v60, %v6476_v25  ;;  %v27512_v60 = vand.u32 4294901760, %v22383_v5 }
 0x426   :  { %v12456_v61 = vpop.f32.mrb[44].mxu1 }
 0x427   :  { %v12457_v2 = vpop.f32.mrb[45].mxu1 }
 0x428   :  { %v12458_v62 = vadd.f32 %v12457_v2, %v12456_v61  ;;  %v7284_v2 = vld [vmem:[%s25150_s6 + $0xf8] sm:$0xff] }
 0x429   :  { %v7476_v50 = vand.u32 4294901760, %v7284_v2 }
 0x42b   :  { %v22495_v12 = vsub.f32 %v7284_v2, %v7476_v50 }
 0x42d   :  { %v12421_v48 = vpop.f32.mrb[44].mxu0 }
 0x42e   :  { %v12422_v24 = vpop.f32.mrb[45].mxu0 }
 0x42f   :  { %v12423_v15 = vadd.f32 %v12422_v24, %v12421_v48  ;;  %v27509_v48 = vand.u32 4294901760, %v22326_v56  ;;  %v7473_v24 = vand.u32 4294901760, %v7283_v63  ;;  %v7268_v56 = vld [vmem:[%s25150_s6 + $0x78] sm:$0xff] }
 0x431   :  { %v6846_v20 = vadd.f32 %v12423_v15, %v6708_v23  ;;  %v22487_v23 = vpack.c.bf16 %v27512_v60, %v27511_v49  ;;  %v22493_v45 = vsub.f32 %v7283_v63, %v7473_v24  ;;  %v22510_v63 = vpack.c.bf16 %v27516_v59, %v27515_v16 }
 0x432   :  { %v22523_v21 = vpack.c.bf16 %v7476_v50, %v7473_v24 }
 0x433   :  { %v6954_v41 = vadd.f32 %v12458_v62, %v6846_v20  ;;  %v27510_v62 = vand.u32 4294901760, %v22336_v28  ;;  %v25746_v15 = vand.u32 4294901760, %v22493_v45  ;;  %v25745_v20 = vand.u32 4294901760, %v22495_v12 }
 0x435   :  { %v22478_v25 = vpack.c.bf16 %v27510_v62, %v27509_v48  ;;  %v7708_v62 = vsub.f32 %v22493_v45, %v25746_v15  ;;  %v7715_v13 = vsub.f32 %v22495_v12, %v25745_v20 }
 0x437   :  { %14928 = vmatpush3.bf16.msra.mxu0 %v22478_v25  ;;  %v7709_v60 = vand.u32 4294901760, %v7708_v62  ;;  %v7237_v62 = vld [vmem:[%s25147_s3] sm:$0xff] }
 0x438   :  { %14930 = vmatprep.subr.bf16.mxu0 %v22487_v23 }
 0x43b   :  { %14932 = vmatpush3.bf16.msra.mxu0 %v22510_v63 }
 0x43c   :  { %14934 = vmatprep.subr.bf16.mxu0 %v22523_v21 }
 0x446   :  { %v12526_v14 = vpop.f32.mrb[46].mxu1 }
 0x447   :  { %v12527_v4 = vpop.f32.mrb[47].mxu1 }
 0x448   :  { %v12528_v57 = vadd.f32 %v12527_v4, %v12526_v14  ;;  %v7428_v4 = vand.u32 4294901760, %v7268_v56  ;;  %v25744_v14 = vand.u32 4294901760, %v22498_v38 }
 0x44a   :  { %v22500_v40 = vsub.f32 %v7268_v56, %v7428_v4  ;;  %v7596_v49 = vsub.f32 %v22498_v38, %v25744_v14  ;;  %v7716_v56 = vand.u32 4294901760, %v7715_v13 }
 0x44c   :  { %27514 = vst [vmem:[#allocation29_spill] sm:$0xff] %v22500_v40  ;;  %v25743_v48 = vand.u32 4294901760, %v22500_v40  ;;  %v14965_v59 = vpack.c.bf16 %v7716_v56, %v7709_v60 }
 0x44d   :  { %v12491_v28 = vpop.f32.mrb[46].mxu0 }
 0x44e   :  { %v12492_v61 = vpop.f32.mrb[47].mxu0  ;;  %14966 = vmatprep.subr.bf16.mxu1 %v14965_v59 }
 0x44f   :  { %v12493_v5 = vadd.f32 %v12492_v61, %v12491_v28  ;;  %v7597_v28 = vand.u32 4294901760, %v7596_v49  ;;  %v22529_v61 = vpack.c.bf16 %v7428_v4, %v7425_v34  ;;  %v22549_v49 = vld [vmem:[%s25150_s6 + $0x180] sm:$0xff]  ;;  %v14971_v34 = vpack.c.bf16 %v22085_v27, %v22082_v29 }
 0x450   :  { %27517 = vst [vmem:[#allocation54_spill] sm:$0xff] %v22549_v49  ;;  %v25751_v59 = vand.u32 4294901760, %v22549_v49 }
 0x451   :  { %v7122_v2 = vadd.f32 %v12493_v5, %v6954_v41  ;;  %v7603_v41 = vsub.f32 %v22500_v40, %v25743_v48  ;;  %14936 = vmatpush3.bf16.msra.mxu0 %v22529_v61  ;;  %v22611_v48 = vld [vmem:[%s25150_s6 + $0x1a0] sm:$0xff] }
 0x452   :  { %27527 = vst [vmem:[#allocation37_spill] sm:$0xff] %v22611_v48  ;;  %v22617_v20 = vsub.f32 %v22549_v49, %v25751_v59  ;;  %v14973_v49 = vpack.c.bf16 %v22091_v8, %v22088_v51  ;;  %v22693_v51 = vld [vmem:[%s25150_s6 + $0x1b8] sm:$0xff] }
 0x453   :  { %v7226_v18 = vadd.f32 %v12528_v57, %v7122_v2  ;;  %v7604_v16 = vand.u32 4294901760, %v7603_v41  ;;  %v14969_v57 = vpack.c.bf16 %v22080_v10, %v22078_v11  ;;  %v7238_v2 = vld [vmem:[%s25147_s3 + $0x8] sm:$0xff]  ;;  %27547 = vst [vmem:[#allocation60_spill] sm:$0xff] %v22693_v51 }
 0x455   :  { %vm7229_vm3 = vcmp.ge.f32.partialorder %v7226_v18, 0.0  ;;  %v7230_v5 = vmul.f32 0.01, %v7226_v18  ;;  %v14967_v50 = vpack.c.bf16 %v7604_v16, %v7597_v28  ;;  %14970 = vmatprep.subr.bf16.mxu0 %v14969_v57  ;;  %v22564_v28 = vld [vmem:[%s25150_s6 + $0x100] sm:$0xff]  ;;  %v22574_v16 = vld [vmem:[%s25150_s6 + $0x190] sm:$0xff] }
 0x456   :  { %27520 = vst [vmem:[#allocation45_spill] sm:$0xff] %v22564_v28  ;;  %27522 = vst [vmem:[#allocation53_spill] sm:$0xff] %v22574_v16  ;;  %v27535_v59 = vand.u32 4294901760, %v22574_v16 }
 0x457   :  { %v7231_v24 = vsel %vm7229_vm3, %v7226_v18, %v7230_v5  ;;  %14968 = vmatpush3.bf16.msra.mxu1 %v14967_v50  ;;  %v22554_v18 = vld [vmem:[%s25150_s6 + $0x188] sm:$0xff]  ;;  %v22581_v50 = vld [vmem:[%s25150_s6 + $0x198] sm:$0xff] }
 0x458   :  { %7233 = vrot.lane.b32.xlu1 %v7231_v24, %s15703_s20  ;;  %15002 = vmatprep.subr.bf16.mxu1 %v22156_v53  ;;  %27518 = vst [vmem:[#allocation55_spill] sm:$0xff] %v22554_v18  ;;  %v22569_v5 = vld [vmem:[%s25150_s6 + $0x108] sm:$0xff]  ;;  %27523 = vst [vmem:[#allocation57_spill] sm:$0xff] %v22581_v50  ;;  %v22651_v29 = vsub.f32 %v22574_v16, %v27535_v59  ;;  %v27540_v59 = vand.u32 4294901760, %v22581_v50 }
 0x459   :  { %27521 = vst [vmem:[#allocation70_spill] sm:$0xff] %v22569_v5 }
 0x45a   :  { %27536 = vst [vmem:[#allocation49_spill] sm:$0xff] %v22651_v29  ;;  %v22670_v8 = vsub.f32 %v22581_v50, %v27540_v59  ;;  %v22688_v59 = vld [vmem:[%s25150_s6 + $0x1b0] sm:$0xff] }
 0x45b   :  { %27546 = vst [vmem:[#allocation59_spill] sm:$0xff] %v22688_v59 }
 0x45c   :  { %27541 = vst [vmem:[#allocation19_spill] sm:$0xff] %v22670_v8 }
 0x4ca   :  { %v7234_v13 = vpop.permute.xlu1 %7233 }
 0x4cb   :  { %v22557_v41 = vsel %vm40_vm1, %v7231_v24, %v7234_v13  ;;  %v22595_v13 = vld [vmem:[%s25150_s6 + $0x118] sm:$0xff]  ;;  %v27531_v24 = vand.u32 4294901760, %v22564_v28 }
 0x4cc   :  { %27519 = vst [vmem:[#allocation32_spill] sm:$0xff] %v22557_v41  ;;  %v7246_v60 = vmul.f32 %v7238_v2, %v22557_v41  ;;  %v7245_v56 = vmul.f32 %v7237_v62, %v22557_v41  ;;  %v22590_v62 = vld [vmem:[%s25150_s6 + $0x110] sm:$0xff]  ;;  %27526 = vst [vmem:[#allocation44_spill] sm:$0xff] %v22595_v13  ;;  %v22629_v41 = vld [vmem:[%s25150_s6 + $0x1a8] sm:$0xff] }
 0x4cd   :  { %27525 = vst [vmem:[#allocation56_spill] sm:$0xff] %v22590_v62  ;;  %27530 = vst [vmem:[#allocation71_spill] sm:$0xff] %v22629_v41  ;;  %v22641_v14 = vsub.f32 %v22564_v28, %v27531_v24  ;;  %v22662_v24 = vld [vmem:[%s25150_s6 + $0x128] sm:$0xff]  ;;  %v27542_v40 = vand.u32 4294901760, %v22590_v62  ;;  %v27552_v10 = vand.u32 4294901760, %v22629_v41 }
 0x4ce   :  { %v22583_v57 = vand.u32 4294901760, %v7246_v60  ;;  %v22585_v2 = vand.u32 4294901760, %v7245_v56  ;;  %27538 = vst [vmem:[#allocation36_spill] sm:$0xff] %v22662_v24 }
 0x4cf   :  { %27532 = vst [vmem:[#allocation31_spill] sm:$0xff] %v22641_v14  ;;  %v22721_v11 = vsub.f32 %v22629_v41, %v27552_v10 }
 0x4d0   :  { %27524 = vst [vmem:[#allocation52_spill] sm:$0xff] %v22585_v2  ;;  %7719 = vmatprep.mubr.f32.mxu1 %v22583_v57  ;;  %v22602_v15 = vsub.f32 %v7245_v56, %v22585_v2  ;;  %v7479_v4 = vsub.f32 %v7246_v60, %v22583_v57  ;;  %v27528_v56 = vand.u32 4294901760, %v22554_v18 }
 0x4d1   :  { %7721 = vmatmul.mubr.f32.vlgmr.msra.gmra.mrb[48].mxu1 %v22585_v2  ;;  %27553 = vst [vmem:[#allocation33_spill] sm:$0xff] %v22721_v11 }
 0x4d2   :  { %v22622_v60 = vsub.f32 %v22554_v18, %v27528_v56  ;;  %15004 = vmatpush3.bf16.msra.mxu1 %v22174_v39  ;;  %v7480_v2 = vand.u32 4294901760, %v7479_v4  ;;  %v27533_v18 = vand.u32 4294901760, %v22569_v5  ;;  %v22657_v56 = vld [vmem:[%s25150_s6 + $0x120] sm:$0xff] }
 0x4d3   :  { %15006 = vmatprep.subr.bf16.mxu1 %v22181_v19  ;;  %27537 = vst [vmem:[#allocation20_spill] sm:$0xff] %v22657_v56  ;;  %v22678_v19 = vsub.f32 %v22590_v62, %v27542_v40  ;;  %v27550_v62 = vand.u32 4294901760, %v22611_v48 }
 0x4d4   :  { %27529 = vst [vmem:[#allocation22_spill] sm:$0xff] %v22622_v60  ;;  %v22646_v27 = vsub.f32 %v22569_v5, %v27533_v18  ;;  %7963 = vmatprep.mubr.f32.mxu1 %v7480_v2  ;;  %v7481_v18 = vsub.f32 %v7479_v4, %v7480_v2  ;;  %v27539_v5 = vand.u32 4294901760, %v22602_v15  ;;  %v27544_v2 = vand.u32 4294901760, %v22595_v13 }
 0x4d5   :  { %27543 = vst [vmem:[#allocation40_spill] sm:$0xff] %v22678_v19  ;;  %v22715_v16 = vsub.f32 %v22611_v48, %v27550_v62  ;;  %v27554_v62 = vand.u32 4294901760, %v22617_v20 }
 0x4d6   :  { %27534 = vst [vmem:[#allocation67_spill] sm:$0xff] %v22646_v27  ;;  %v7487_v28 = vsub.f32 %v22602_v15, %v27539_v5  ;;  %v22683_v5 = vsub.f32 %v22595_v13, %v27544_v2  ;;  %15008 = vmatpush3.bf16.msra.mxu1 %v22216_v1  ;;  %v7482_v38 = vand.u32 4294901760, %v7481_v18  ;;  %v22701_v2 = vld [vmem:[%s25150_s6 + $0x130] sm:$0xff]  ;;  %v22706_v13 = vld [vmem:[%s25150_s6 + $0x138] sm:$0xff]  ;;  %v27557_v1 = vand.u32 4294901760, %v22641_v14  ;;  %v22770_v18 = vld [vmem:[%s25150_s6 + $0x140] sm:$0xff] }
 0x4d7   :  { %27548 = vst [vmem:[#allocation62_spill] sm:$0xff] %v22701_v2  ;;  %27549 = vst [vmem:[#allocation42_spill] sm:$0xff] %v22706_v13  ;;  %15010 = vmatprep.subr.bf16.mxu1 %v22259_v22  ;;  %v27558_v10 = vand.u32 4294901760, %v22646_v27 }
 0x4d8   :  { %27545 = vst [vmem:[#allocation9_spill] sm:$0xff] %v22683_v5  ;;  %v7488_v40 = vand.u32 4294901760, %v7487_v28  ;;  %27551 = vst [vmem:[#allocation28_spill] sm:$0xff] %v22715_v16  ;;  %7483 = vmatprep.mubr.f32.mxu0 %v7482_v38  ;;  %v27555_v38 = vand.u32 4294901760, %v22622_v60  ;;  %v27560_v28 = vand.u32 4294901760, %v22657_v56 }
 0x4d9   :  { %v22737_v41 = vpack.c.bf16 %v27558_v10, %v27557_v1  ;;  %v22755_v1 = vld [vmem:[%s25150_s6 + $0x1c0] sm:$0xff]  ;;  %v14979_v10 = vpack.c.bf16 %v22192_v30, %v22189_v55  ;;  %27566 = vst [vmem:[#allocation15_spill] sm:$0xff] %v22770_v18 }
 0x4da   :  { %7489 = vmatmul.mubr.f32.vlgmr.msra.gmra.mrb[48].mxu0 %v7488_v40  ;;  %v22731_v48 = vpack.c.bf16 %v27555_v38, %v27554_v62  ;;  %15012 = vmatpush3.bf16.msra.mxu1 %v22289_v31  ;;  %v22745_v50 = vsub.f32 %v22657_v56, %v27560_v28  ;;  %v27562_v62 = vand.u32 4294901760, %v22662_v24  ;;  %27564 = vst [vmem:[#allocation11_spill] sm:$0xff] %v22755_v1  ;;  %v22775_v40 = vld [vmem:[%s25150_s6 + $0x148] sm:$0xff] }
 0x4db   :  { %27559 = vst [vmem:[#allocation46_spill] sm:$0xff] %v22737_v41  ;;  %14972 = vmatpush3.bf16.msra.mxu0 %v14971_v34  ;;  %v22760_v34 = vld [vmem:[%s25150_s6 + $0x1c8] sm:$0xff]  ;;  %7856 = vmatprep.mubr.f32.mxu0 %v7479_v4  ;;  %v14977_v28 = vpack.c.bf16 %v22179_v36, %v22172_v26  ;;  %27567 = vst [vmem:[#allocation16_spill] sm:$0xff] %v22775_v40  ;;  %v27568_v4 = vand.u32 4294901760, %v22651_v29  ;;  %v27571_v41 = vand.u32 4294901760, %v22688_v59 }
 0x4dc   :  { %27556 = vst [vmem:[#allocation34_spill] sm:$0xff] %v22731_v48  ;;  %27561 = vst [vmem:[#allocation5_spill] sm:$0xff] %v22745_v50  ;;  %v22750_v38 = vsub.f32 %v22662_v24, %v27562_v62  ;;  %14974 = vmatprep.subr.bf16.mxu0 %v14973_v49  ;;  %v27569_v49 = vand.u32 4294901760, %v22670_v8  ;;  %15014 = vmatprep.subr.bf16.mxu1 %v22321_v52  ;;  %v27573_v24 = vand.u32 4294901760, %v22693_v51  ;;  %v22798_v8 = vld [vmem:[%s25150_s6 + $0x1d0] sm:$0xff] }
 0x4dd   :  { %27565 = vst [vmem:[#allocation65_spill] sm:$0xff] %v22760_v34  ;;  %v22788_v48 = vsub.f32 %v22688_v59, %v27571_v41  ;;  %27575 = vst [vmem:[#allocation63_spill] sm:$0xff] %v22798_v8  ;;  %v27581_v59 = vand.u32 4294901760, %v22706_v13  ;;  %v14981_v29 = vpack.c.bf16 %v22226_v42, %v22210_v17 }
 0x4de   :  { %27563 = vst [vmem:[#allocation64_spill] sm:$0xff] %v22750_v38  ;;  %v22781_v22 = vpack.c.bf16 %v27569_v49, %v27568_v4  ;;  %v22793_v56 = vsub.f32 %v22693_v51, %v27573_v24  ;;  %v27576_v4 = vand.u32 4294901760, %v22678_v19  ;;  %v27577_v49 = vand.u32 4294901760, %v22683_v5  ;;  %v22821_v5 = vld [vmem:[%s25150_s6 + $0x1d8] sm:$0xff]  ;;  %15016 = vmatpush3.bf16.msra.mxu1 %v22344_v58 }
 0x4df   :  { %27572 = vst [vmem:[#allocation35_spill] sm:$0xff] %v22788_v48  ;;  %v22814_v24 = vsub.f32 %v22706_v13, %v27581_v59  ;;  %27583 = vst [vmem:[#allocation77_spill] sm:$0xff] %v22821_v5  ;;  %15018 = vmatprep.subr.bf16.mxu1 %v22391_v7  ;;  %v22845_v51 = vld [vmem:[%s25150_s6 + $0x158] sm:$0xff]  ;;  %v25804_v13 = vand.u32 4294901760, %v22788_v48  ;;  %v27590_v19 = vand.u32 4294901760, %v22745_v50  ;;  %v27591_v27 = vand.u32 4294901760, %v22750_v38 }
 0x4e0   :  { %27570 = vst [vmem:[#allocation48_spill] sm:$0xff] %v22781_v22  ;;  %27574 = vst [vmem:[#allocation58_spill] sm:$0xff] %v22793_v56  ;;  %v22804_v62 = vpack.c.bf16 %v27577_v49, %v27576_v4  ;;  %v27579_v22 = vand.u32 4294901760, %v22701_v2  ;;  %v27584_v4 = vpack.c.bf16 %v22108_v54, %v22100_v47  ;;  %v27588_v49 = vand.u32 4294901760, %v22721_v11 }
 0x4e1   :  { %27582 = vst [vmem:[#allocation76_spill] sm:$0xff] %v22814_v24  ;;  %27586 = vst [vmem:[#allocation79_spill] sm:$0xff] %v22845_v51  ;;  %v22860_v14 = vpack.c.bf16 %v27591_v27, %v27590_v19  ;;  %v27593_v11 = vand.u32 4294901760, %v22755_v1  ;;  %v27596_v27 = vand.u32 4294901760, %v22770_v18 }
 0x4e2   :  { %27578 = vst [vmem:[#allocation66_spill] sm:$0xff] %v22804_v62  ;;  %v22809_v41 = vsub.f32 %v22701_v2, %v27579_v22  ;;  %14976 = vmatpush3.bf16.msra.mxu0 %v27584_v4  ;;  %v14983_v62 = vpack.c.bf16 %v22249_v6, %v22246_v9  ;;  %v22840_v22 = vld [vmem:[%s25150_s6 + $0x150] sm:$0xff]  ;;  %15020 = vmatpush3.bf16.msra.mxu1 %v22417_v37 }
 0x4e3   :  { %14978 = vmatprep.subr.bf16.mxu0 %v14977_v28  ;;  %27585 = vst [vmem:[#allocation78_spill] sm:$0xff] %v22840_v22  ;;  %v27587_v28 = vand.u32 4294901760, %v22715_v16  ;;  %27592 = vst [vmem:[#allocation39_spill] sm:$0xff] %v22860_v14  ;;  %v22878_v19 = vsub.f32 %v22770_v18, %v27596_v27  ;;  %v27597_v16 = vand.u32 4294901760, %v22775_v40  ;;  %15022 = vmatprep.subr.bf16.mxu1 %v22466_v3  ;;  %v27600_v27 = vand.u32 4294901760, %v22798_v8 }
 0x4e4   :  { %27580 = vst [vmem:[#allocation73_spill] sm:$0xff] %v22809_v41  ;;  %v27605_v18 = vand.u32 4294901760, %v22809_v41 }
 0x4e5   :  { %v22851_v59 = vpack.c.bf16 %v27588_v49, %v27587_v28  ;;  %v22867_v49 = vsub.f32 %v22755_v1, %v27593_v11  ;;  %v27595_v28 = vand.u32 4294901760, %v22760_v34  ;;  %v22883_v60 = vsub.f32 %v22775_v40, %v27597_v16 }
 0x4e6   :  { %14980 = vmatpush3.bf16.msra.mxu0 %v14979_v10  ;;  %v22890_v10 = vld [vmem:[%s25150_s6 + $0x1e0] sm:$0xff]  ;;  %v14985_v16 = vpack.c.bf16 %v22302_v43, %v22293_v33  ;;  %v22903_v2 = vsub.f32 %v22798_v8, %v27600_v27  ;;  %v27601_v11 = vand.u32 4294901760, %v22793_v56  ;;  %15024 = vmatpush3.bf16.msra.mxu1 %v22478_v25  ;;  %v27611_v1 = vand.u32 4294901760, %v22845_v51 }
 0x4e7   :  { %27589 = vst [vmem:[#allocation80_spill] sm:$0xff] %v22851_v59  ;;  %27594 = vst [vmem:[#allocation17_spill] sm:$0xff] %v22867_v49  ;;  %v22872_v4 = vsub.f32 %v22760_v34, %v27595_v28  ;;  %v22895_v28 = vld [vmem:[%s25150_s6 + $0x1e8] sm:$0xff]  ;;  %14982 = vmatprep.subr.bf16.mxu0 %v14981_v29  ;;  %v14987_v59 = vpack.c.bf16 %v22330_v35, %v22315_v44  ;;  %v27603_v29 = vand.u32 4294901760, %v22821_v5  ;;  %v27606_v34 = vand.u32 4294901760, %v22814_v24 }
 0x4e8   :  { %27598 = vst [vmem:[#allocation51_spill] sm:$0xff] %v22890_v10  ;;  %27599 = vst [vmem:[#allocation47_spill] sm:$0xff] %v22895_v28  ;;  %v22909_v14 = vpack.c.bf16 %v27601_v11, %v25804_v13  ;;  %v27610_v11 = vand.u32 4294901760, %v22840_v22  ;;  %v22949_v8 = vsub.f32 %v22845_v51, %v27611_v1  ;;  %15026 = vmatprep.subr.bf16.mxu1 %v22487_v23  ;;  %v22970_v51 = vld [vmem:[%s25150_s6 + $0x170] sm:$0xff]  ;;  %v27620_v48 = vand.u32 4294901760, %v22878_v19 }
 0x4e9   :  { %v22916_v40 = vsub.f32 %v22821_v5, %v27603_v29  ;;  %v22922_v27 = vpack.c.bf16 %v27606_v34, %v27605_v18  ;;  %v22936_v29 = vld [vmem:[%s25150_s6 + $0x168] sm:$0xff]  ;;  %v22959_v18 = vld [vmem:[%s25150_s6 + $0x1f8] sm:$0xff]  ;;  %v27614_v34 = vld [vmem:[#allocation18_spill] sm:$0xff]  ;;  %27615 = vst [vmem:[#allocation81_spill] sm:$0xff] %v22970_v51  ;;  %v27618_v5 = vand.u32 4294901760, %v22872_v4  ;;  %v27621_v38 = vand.u32 4294901760, %v22883_v60 }
 0x4ea   :  { %27602 = vst [vmem:[#allocation8_spill] sm:$0xff] %v22909_v14  ;;  %v22931_v14 = vld [vmem:[%s25150_s6 + $0x160] sm:$0xff]  ;;  %27609 = vst [vmem:[#allocation72_spill] sm:$0xff] %v22936_v29  ;;  %14984 = vmatpush3.bf16.msra.mxu0 %v14983_v62  ;;  %v22944_v13 = vsub.f32 %v22840_v22, %v27610_v11  ;;  %v22954_v62 = vld [vmem:[%s25150_s6 + $0x1f0] sm:$0xff]  ;;  %v14989_v11 = vpack.c.bf16 %v22362_v46, %v22353_v32  ;;  %v14991_v1 = vpack.c.bf16 %v27614_v34, %v22373_v0 }
 0x4eb   :  { %27604 = vst [vmem:[#allocation7_spill] sm:$0xff] %v22916_v40  ;;  %27607 = vst [vmem:[#allocation61_spill] sm:$0xff] %v22922_v27  ;;  %14986 = vmatprep.subr.bf16.mxu0 %v14985_v16  ;;  %v22975_v22 = vld [vmem:[%s25150_s6 + $0x178] sm:$0xff]  ;;  %v27617_v16 = vand.u32 4294901760, %v22867_v49  ;;  %v22990_v50 = vpack.c.bf16 %v27621_v38, %v27620_v48  ;;  %v27623_v34 = vand.u32 4294901760, %v22890_v10  ;;  %15028 = vmatpush3.bf16.msra.mxu1 %v22510_v63  ;;  %v27628_v27 = vand.u32 4294901760, %v22903_v2 }
 0x4ec   :  { %27608 = vst [vmem:[#allocation23_spill] sm:$0xff] %v22931_v14  ;;  %27612 = vst [vmem:[#allocation74_spill] sm:$0xff] %v22954_v62  ;;  %15030 = vmatprep.subr.bf16.mxu1 %v22523_v21  ;;  %v27631_v48 = vand.u32 4294901760, %v22931_v14  ;;  %v27633_v41 = vand.u32 4294901760, %v22936_v29 }
 0x4ed   :  { %27613 = vst [vmem:[#allocation75_spill] sm:$0xff] %v22959_v18  ;;  %27616 = vst [vmem:[#allocation82_spill] sm:$0xff] %v22975_v22  ;;  %v22981_v24 = vpack.c.bf16 %v27618_v5, %v27617_v16  ;;  %v22995_v49 = vsub.f32 %v22890_v10, %v27623_v34  ;;  %v27624_v5 = vand.u32 4294901760, %v22895_v28  ;;  %v27635_v34 = vand.u32 4294901760, %v22944_v13 }
 0x4ee   :  { %27622 = vst [vmem:[#allocation68_spill] sm:$0xff] %v22990_v50  ;;  %14988 = vmatpush3.bf16.msra.mxu0 %v14987_v59  ;;  %v27627_v50 = vld [vmem:[#allocation38_spill] sm:$0xff]  ;;  %v27629_v59 = vand.u32 4294901760, %v22916_v40  ;;  %v23021_v38 = vsub.f32 %v22931_v14, %v27631_v48  ;;  %v27644_v40 = vand.u32 4294901760, %v22970_v51 }
 0x4ef   :  { %27619 = vst [vmem:[#allocation83_spill] sm:$0xff] %v22981_v24  ;;  %v23000_v16 = vsub.f32 %v22895_v28, %v27624_v5  ;;  %14990 = vmatprep.subr.bf16.mxu0 %v14989_v11  ;;  %v27626_v5 = vld [vmem:[#allocation43_spill] sm:$0xff]  ;;  %v23026_v11 = vsub.f32 %v22936_v29, %v27633_v41  ;;  %v27636_v28 = vand.u32 4294901760, %v22949_v8  ;;  %15032 = vmatpush3.bf16.msra.mxu1 %v22529_v61  ;;  %v27642_v29 = vld [vmem:[#allocation13_spill] sm:$0xff] }
 0x4f0   :  { %v14993_v24 = vpack.c.bf16 %v27627_v50, %v27626_v5  ;;  %v23016_v56 = vpack.c.bf16 %v27629_v59, %v27628_v27  ;;  %27632 = vst [vmem:[#allocation43_spill] sm:$0xff] %v23021_v38  ;;  %v27638_v59 = vand.u32 4294901760, %v22954_v62  ;;  %v23052_v27 = vsub.f32 %v22970_v51, %v27644_v40  ;;  %15066 = vmatprep.subr.bf16.mxu1 %v22156_v53 }
 0x4f1   :  { %27625 = vst [vmem:[#allocation69_spill] sm:$0xff] %v23000_v16  ;;  %27634 = vst [vmem:[#allocation38_spill] sm:$0xff] %v23026_v11  ;;  %v23032_v10 = vpack.c.bf16 %v27636_v28, %v27635_v34  ;;  %v27643_v28 = vld [vmem:[#allocation24_spill] sm:$0xff]  ;;  %v25832_v14 = vand.u32 4294901760, %v23026_v11  ;;  %v27651_v40 = vand.u32 4294901760, %v22602_v15  ;;  %v27666_v11 = vld [vmem:[#allocation26_spill] sm:$0xff] }
 0x4f2   :  { %27630 = vst [vmem:[#allocation12_spill] sm:$0xff] %v23016_v56  ;;  %v23039_v48 = vsub.f32 %v22954_v62, %v27638_v59  ;;  %v27640_v56 = vand.u32 4294901760, %v22959_v18  ;;  %14992 = vmatpush3.bf16.msra.mxu0 %v14991_v1  ;;  %v14995_v34 = vpack.c.bf16 %v27643_v28, %v27642_v29  ;;  %27645 = vst [vmem:[#allocation13_spill] sm:$0xff] %v23052_v27  ;;  %v27649_v1 = vand.u32 4294901760, %v23000_v16 }
 0x4f3   :  { %27637 = vst [vmem:[#allocation84_spill] sm:$0xff] %v23032_v10  ;;  %v27646_v10 = vand.u32 4294901760, %v22975_v22  ;;  %14994 = vmatprep.subr.bf16.mxu0 %v14993_v24  ;;  %v25833_v62 = vand.u32 4294901760, %v23021_v38  ;;  %7967 = vmatmul.mubr.f32.vlgmr.msra.gmra.mrb[50].mxu1 %v27651_v40  ;;  %v27654_v40 = vld [vmem:[#allocation30_spill] sm:$0xff] }
 0x4f4   :  { %27639 = vst [vmem:[#allocation85_spill] sm:$0xff] %v23039_v48  ;;  %v23044_v41 = vsub.f32 %v22959_v18, %v27640_v56  ;;  %v27648_v56 = vand.u32 4294901760, %v22995_v49  ;;  %15068 = vmatpush3.bf16.msra.mxu1 %v22174_v39  ;;  %8237 = vmatprep.mubr.f32.mxu1 %v22583_v57  ;;  %v27658_v53 = vand.u32 4294901760, %v23039_v48  ;;  %v27671_v48 = vld [vmem:[#allocation10_spill] sm:$0xff] }
 0x4f5   :  { %v23057_v59 = vsub.f32 %v22975_v22, %v27646_v10  ;;  %v27656_v10 = vld [vmem:[#allocation14_spill] sm:$0xff] }
 0x4f6   :  { %27641 = vst [vmem:[#allocation86_spill] sm:$0xff] %v23044_v41  ;;  %v23064_v18 = vpack.c.bf16 %v27649_v1, %v27648_v56  ;;  %14996 = vmatpush3.bf16.msra.mxu0 %v14995_v34  ;;  %v23079_v56 = vpack.c.bf16 %v25832_v14, %v25833_v62  ;;  %v27653_v1 = vpack.c.bf16 %v22495_v12, %v22493_v45  ;;  %v27655_v34 = vand.u32 4294901760, %v27654_v40  ;;  %v27661_v22 = vld [vmem:[#allocation6_spill] sm:$0xff] }
 0x4f7   :  { %27647 = vst [vmem:[#allocation24_spill] sm:$0xff] %v23057_v59  ;;  %v27657_v39 = vand.u32 4294901760, %v27656_v10  ;;  %v27659_v24 = vand.u32 4294901760, %v23044_v41  ;;  %15070 = vmatprep.subr.bf16.mxu1 %v27661_v22  ;;  %v27662_v14 = vand.u32 4294901760, %v23052_v27  ;;  %v27663_v62 = vand.u32 4294901760, %v23057_v59  ;;  %v27668_v10 = vld [vmem:[#allocation41_spill] sm:$0xff] }
 0x4f8   :  { %27650 = vst [vmem:[#allocation87_spill] sm:$0xff] %v23064_v18  ;;  %27652 = vst [vmem:[#allocation88_spill] sm:$0xff] %v23079_v56  ;;  %14998 = vmatprep.subr.bf16.mxu0 %v27653_v1  ;;  %v27665_v1 = vld [vmem:[#allocation29_spill] sm:$0xff]  ;;  %15072 = vmatpush3.bf16.msra.mxu1 %v27668_v10  ;;  %v27672_v41 = vand.u32 4294901760, %v27671_v48  ;;  %v27674_v22 = vld [vmem:[#allocation27_spill] sm:$0xff]  ;;  %v27681_v48 = vand.u32 4294901760, %v22179_v36 }
 0x4f9   :  { %v15033_v51 = vpack.c.bf16 %v27657_v39, %v27655_v34  ;;  %v23093_v18 = vpack.c.bf16 %v27659_v24, %v27658_v53  ;;  %v23100_v56 = vpack.c.bf16 %v27663_v62, %v27662_v14  ;;  %v27667_v40 = vpack.c.bf16 %v27665_v1, %v27666_v11  ;;  %v27669_v34 = vld [vmem:[#allocation21_spill] sm:$0xff]  ;;  %v27676_v27 = vld [vmem:[#allocation50_spill] sm:$0xff] }
 0x4fa   :  { %v27670_v39 = vand.u32 4294901760, %v27669_v34  ;;  %v27673_v24 = vld [vmem:[#allocation25_spill] sm:$0xff]  ;;  %v27677_v59 = vand.u32 4294901760, %v27676_v27  ;;  %v27678_v62 = vand.u32 4294901760, %v22100_v47  ;;  %v27684_v47 = vand.u32 4294901760, %v22210_v17  ;;  %v27691_v27 = vld [vmem:[#allocation22_spill] sm:$0xff] }
 0x4fb   :  { %27660 = vst [vmem:[#allocation30_spill] sm:$0xff] %v23093_v18  ;;  %27664 = vst [vmem:[#allocation14_spill] sm:$0xff] %v23100_v56  ;;  %15000 = vmatpush3.bf16.msra.mxu0 %v27667_v40  ;;  %15074 = vmatprep.subr.bf16.mxu1 %v27673_v24  ;;  %v27675_v18 = vand.u32 4294901760, %v27674_v22  ;;  %v27679_v40 = vand.u32 4294901760, %v22108_v54  ;;  %v27685_v54 = vand.u32 4294901760, %v22226_v42  ;;  %v27686_v36 = vand.u32 4294901760, %v22246_v9 }
 0x4fc   :  { %v15035_v53 = vpack.c.bf16 %v27672_v41, %v27670_v39  ;;  %15034 = vmatprep.subr.bf16.mxu0 %v15033_v51  ;;  %15076 = vmatpush3.bf16.msra.mxu1 %v22289_v31  ;;  %v27680_v51 = vand.u32 4294901760, %v22172_v26  ;;  %v7240_v26 = vld [vmem:[%s25147_s3 + $0x18] sm:$0xff]  ;;  %v27688_v17 = vand.u32 4294901760, %v22293_v33  ;;  %v27689_v42 = vand.u32 4294901760, %v22302_v43 }
 0x4fd   :  { %v15037_v14 = vpack.c.bf16 %v27677_v59, %v27675_v18  ;;  %v15039_v10 = vpack.c.bf16 %v27679_v40, %v27678_v62  ;;  %15078 = vmatprep.subr.bf16.mxu1 %v22321_v52  ;;  %v15045_v31 = vpack.c.bf16 %v27685_v54, %v27684_v47  ;;  %v27692_v59 = vand.u32 4294901760, %v27691_v27  ;;  %v27698_v22 = vld [vmem:[#allocation31_spill] sm:$0xff] }
 0x4fe   :  { %7859 = vmatmul.mubr.f32.vlgmr.msra.gmra.mrb[50].mxu0 %v22602_v15  ;;  %v15041_v41 = vpack.c.bf16 %v27681_v48, %v27680_v51  ;;  %v27682_v15 = vand.u32 4294901760, %v22189_v55  ;;  %v27687_v55 = vand.u32 4294901760, %v22249_v6  ;;  %v15049_v52 = vpack.c.bf16 %v27689_v42, %v27688_v17  ;;  %v27693_v6 = vld [vmem:[#allocation32_spill] sm:$0xff]  ;;  %v27700_v40 = vld [vmem:[#allocation67_spill] sm:$0xff]  ;;  %v27714_v17 = vld [vmem:[#allocation9_spill] sm:$0xff] }
 0x4ff   :  { %15036 = vmatpush3.bf16.msra.mxu0 %v15035_v53  ;;  %8133 = vmatprep.mubr.f32.mxu0 %v22583_v57  ;;  %v27683_v57 = vand.u32 4294901760, %v22192_v30  ;;  %v8479_v9 = vsub.f32 %v27691_v27, %v27692_v59  ;;  %v7248_v34 = vmul.f32 %v7240_v26, %v27693_v6  ;;  %v27695_v33 = vand.u32 4294901760, %v22330_v35 }
 0x500   :  { %15038 = vmatprep.subr.bf16.mxu0 %v15037_v14  ;;  %15080 = vmatpush3.bf16.msra.mxu1 %v22344_v58  ;;  %v15047_v30 = vpack.c.bf16 %v27687_v55, %v27686_v36  ;;  %v27696_v43 = vand.u32 4294901760, %v22353_v32  ;;  %v27697_v53 = vand.u32 4294901760, %v22362_v46  ;;  %v27699_v14 = vand.u32 4294901760, %v27698_v22  ;;  %v27705_v46 = vld [vmem:[#allocation19_spill] sm:$0xff]  ;;  %v27712_v36 = vld [vmem:[#allocation40_spill] sm:$0xff] }
 0x501   :  { %v15043_v18 = vpack.c.bf16 %v27683_v57, %v27682_v15  ;;  %15082 = vmatprep.subr.bf16.mxu1 %v22391_v7  ;;  %v27690_v7 = vand.u32 4294901760, %v22617_v20  ;;  %v8480_v35 = vand.u32 4294901760, %v8479_v9  ;;  %v23173_v51 = vand.u32 4294901760, %v7248_v34  ;;  %v27718_v9 = vld [vmem:[#allocation33_spill] sm:$0xff] }
 0x502   :  { %v8360_v62 = vsub.f32 %v27698_v22, %v27699_v14  ;;  %v27707_v57 = vand.u32 4294901760, %v22373_v0  ;;  %v27713_v55 = vand.u32 4294901760, %v27712_v36  ;;  %v27715_v42 = vand.u32 4294901760, %v27714_v17 }
 0x503   :  { %15040 = vmatpush3.bf16.msra.mxu0 %v15039_v10  ;;  %v8472_v58 = vsub.f32 %v22617_v20, %v27690_v7  ;;  %v27701_v10 = vand.u32 4294901760, %v27700_v40  ;;  %27702 = vst [vmem:[#allocation6_spill] sm:$0xff] %v23173_v51 }
 0x504   :  { %15042 = vmatprep.subr.bf16.mxu0 %v15041_v41  ;;  %15084 = vmatpush3.bf16.msra.mxu1 %v22417_v37  ;;  %v27694_v37 = vand.u32 4294901760, %v22315_v44  ;;  %v27706_v41 = vand.u32 4294901760, %v27705_v46  ;;  %v8361_v0 = vand.u32 4294901760, %v8360_v62 }
 0x505   :  { %15086 = vmatprep.subr.bf16.mxu1 %v22466_v3  ;;  %v15053_v3 = vpack.c.bf16 %v27697_v53, %v27696_v43  ;;  %v8473_v24 = vand.u32 4294901760, %v8472_v58  ;;  %v8367_v44 = vsub.f32 %v27700_v40, %v27701_v10  ;;  %v27716_v58 = vld [vmem:[#allocation28_spill] sm:$0xff]  ;;  %v23204_v53 = vsub.f32 %v7248_v34, %v23173_v51 }
 0x506   :  { %v15051_v39 = vpack.c.bf16 %v27695_v33, %v27694_v37  ;;  %v8493_v15 = vsub.f32 %v27705_v46, %v27706_v41  ;;  %v27717_v59 = vand.u32 4294901760, %v27716_v58 }
 0x507   :  { %15044 = vmatpush3.bf16.msra.mxu0 %v15043_v18  ;;  %v27708_v18 = vld [vmem:[#allocation18_spill] sm:$0xff]  ;;  %v8368_v7 = vand.u32 4294901760, %v8367_v44  ;;  %v15129_v33 = vpack.c.bf16 %v8480_v35, %v8473_v24  ;;  %v27722_v44 = vld [vmem:[#allocation5_spill] sm:$0xff] }
 0x508   :  { %15046 = vmatprep.subr.bf16.mxu0 %v15045_v31  ;;  %15088 = vmatpush3.bf16.msra.mxu1 %v22478_v25  ;;  %v27703_v25 = vld [vmem:[#allocation49_spill] sm:$0xff]  ;;  %v27709_v47 = vand.u32 4294901760, %v27708_v18  ;;  %v27710_v31 = vand.u32 4294901760, %v27626_v5  ;;  %v8500_v5 = vsub.f32 %v27716_v58, %v27717_v59  ;;  %v8494_v43 = vand.u32 4294901760, %v8493_v15 }
 0x509   :  { %15090 = vmatprep.subr.bf16.mxu1 %v22487_v23  ;;  %v27704_v48 = vand.u32 4294901760, %v27703_v25  ;;  %v27711_v23 = vand.u32 4294901760, %v27627_v50  ;;  %v27719_v50 = vand.u32 4294901760, %v27718_v9  ;;  %v15131_v34 = vpack.c.bf16 %v8368_v7, %v8361_v0  ;;  %v27734_v0 = vld [vmem:[#allocation52_spill] sm:$0xff] }
 0x50a   :  { %v15055_v54 = vpack.c.bf16 %v27709_v47, %v27707_v57  ;;  %v27724_v57 = vld [vmem:[#allocation64_spill] sm:$0xff]  ;;  %v8501_v35 = vand.u32 4294901760, %v8500_v5  ;;  %v27728_v18 = vand.u32 4294901760, %v22493_v45  ;;  %v27729_v47 = vand.u32 4294901760, %v22495_v12  ;;  %v27735_v45 = vld [vmem:[#allocation54_spill] sm:$0xff]  ;;  %v27737_v12 = vld [vmem:[#allocation55_spill] sm:$0xff] }
 0x50b   :  { %15048 = vmatpush3.bf16.msra.mxu0 %v15047_v30  ;;  %v8486_v32 = vsub.f32 %v27703_v25, %v27704_v48  ;;  %v15057_v26 = vpack.c.bf16 %v27711_v23, %v27710_v31  ;;  %v8374_v30 = vsub.f32 %v27712_v36, %v27713_v55  ;;  %v8507_v37 = vsub.f32 %v27718_v9, %v27719_v50  ;;  %v27730_v55 = vld [vmem:[#allocation58_spill] sm:$0xff] }
 0x50c   :  { %15050 = vmatprep.subr.bf16.mxu0 %v15049_v52  ;;  %v8381_v52 = vsub.f32 %v27714_v17, %v27715_v42  ;;  %15092 = vmatpush3.bf16.msra.mxu1 %v22510_v63  ;;  %v27720_v63 = vand.u32 4294901760, %v27642_v29  ;;  %v27723_v48 = vand.u32 4294901760, %v27722_v44  ;;  %v25844_v23 = vand.u32 4294901760, %v23204_v53 }
 0x50d   :  { %15094 = vmatprep.subr.bf16.mxu1 %v22523_v21  ;;  %v8375_v62 = vand.u32 4294901760, %v8374_v30  ;;  %v27725_v21 = vand.u32 4294901760, %v27724_v57  ;;  %v8508_v29 = vand.u32 4294901760, %v8507_v37  ;;  %v27731_v30 = vand.u32 4294901760, %v27730_v55 }
 0x50e   :  { %v8382_v10 = vand.u32 4294901760, %v8381_v52  ;;  %v8388_v41 = vsub.f32 %v27722_v44, %v27723_v48  ;;  %v27733_v42 = vand.u32 4294901760, %v27665_v1  ;;  %v27736_v59 = vand.u32 4294901760, %v27735_v45 }
 0x50f   :  { %15052 = vmatpush3.bf16.msra.mxu0 %v15051_v39  ;;  %v8487_v39 = vand.u32 4294901760, %v8486_v32  ;;  %v8395_v24 = vsub.f32 %v27724_v57, %v27725_v21  ;;  %v27726_v32 = vld [vmem:[#allocation35_spill] sm:$0xff]  ;;  %v27738_v5 = vand.u32 4294901760, %v27737_v12  ;;  %v27754_v45 = vand.u32 4294901760, %v22878_v19 }
 0x510   :  { %15054 = vmatprep.subr.bf16.mxu0 %v15053_v3  ;;  %v27721_v3 = vand.u32 4294901760, %v27643_v28  ;;  %15096 = vmatpush3.bf16.msra.mxu1 %v22529_v61  ;;  %v27727_v28 = vand.u32 4294901760, %v27726_v32  ;;  %v8521_v61 = vsub.f32 %v27730_v55, %v27731_v30  ;;  %v15135_v7 = vpack.c.bf16 %v8382_v10, %v8375_v62 }
 0x511   :  { %15130 = vmatprep.subr.bf16.mxu1 %v15129_v33  ;;  %v15133_v31 = vpack.c.bf16 %v8494_v43, %v8487_v39  ;;  %v23237_v50 = vpack.c.bf16 %v27738_v5, %v27736_v59  ;;  %v8389_v37 = vand.u32 4294901760, %v8388_v41  ;;  %v8396_v33 = vand.u32 4294901760, %v8395_v24  ;;  %v27739_v43 = vld [vmem:[#allocation73_spill] sm:$0xff] }
 0x512   :  { %v15059_v14 = vpack.c.bf16 %v27721_v3, %v27720_v63  ;;  %v8514_v15 = vsub.f32 %v27726_v32, %v27727_v28  ;;  %v15137_v39 = vpack.c.bf16 %v8508_v29, %v8501_v35  ;;  %v27740_v1 = vand.u32 4294901760, %v27739_v43  ;;  %v27741_v3 = vld [vmem:[#allocation76_spill] sm:$0xff]  ;;  %v27743_v41 = vld [vmem:[#allocation17_spill] sm:$0xff] }
 0x513   :  { %15056 = vmatpush3.bf16.msra.mxu0 %v15055_v54  ;;  %v15061_v54 = vpack.c.bf16 %v27729_v47, %v27728_v18  ;;  %8239 = vmatmul.mubr.f32.vlgmr.msra.gmra.mrb[52].mxu1 %v27734_v0  ;;  %v8343_v10 = vsub.f32 %v23204_v53, %v25844_v23  ;;  %v8522_v48 = vand.u32 4294901760, %v8521_v61  ;;  %v27744_v21 = vand.u32 4294901760, %v27743_v41  ;;  %v27746_v29 = vld [vmem:[#allocation45_spill] sm:$0xff] }
 0x514   :  { %15058 = vmatprep.subr.bf16.mxu0 %v15057_v26  ;;  %v27732_v26 = vand.u32 4294901760, %v27666_v11  ;;  %15132 = vmatpush3.bf16.msra.mxu1 %v15131_v34  ;;  %v8515_v11 = vand.u32 4294901760, %v8514_v15  ;;  %v8402_v63 = vsub.f32 %v27739_v43, %v27740_v1  ;;  %v27745_v34 = vand.u32 4294901760, %v22872_v4  ;;  %v27748_v15 = vld [vmem:[#allocation70_spill] sm:$0xff] }
 0x515   :  { %8581 = vmatprep.mubr.f32.mxu1 %v23173_v51  ;;  %15134 = vmatprep.subr.bf16.mxu1 %v15133_v31  ;;  %v8528_v24 = vsub.f32 %v27743_v41, %v27744_v21  ;;  %v27747_v28 = vand.u32 4294901760, %v27746_v29  ;;  %v27749_v18 = vand.u32 4294901760, %v27748_v15  ;;  %v27750_v31 = vld [vmem:[#allocation53_spill] sm:$0xff]  ;;  %v8416_v59 = vsub.f32 %v22878_v19, %v27754_v45 }
 0x516   :  { %v15063_v52 = vpack.c.bf16 %v27733_v42, %v27732_v26  ;;  %v8535_v35 = vsub.f32 %v22872_v4, %v27745_v34  ;;  %v27751_v30 = vand.u32 4294901760, %v27750_v31  ;;  %v27752_v26 = vld [vmem:[#allocation57_spill] sm:$0xff]  ;;  %v27755_v12 = vand.u32 4294901760, %v22883_v60 }
 0x517   :  { %15060 = vmatpush3.bf16.msra.mxu0 %v15059_v14  ;;  %v27742_v14 = vand.u32 4294901760, %v27741_v3  ;;  %v23259_v47 = vpack.c.bf16 %v27749_v18, %v27747_v28  ;;  %v27753_v61 = vand.u32 4294901760, %v27752_v26  ;;  %v8403_v1 = vand.u32 4294901760, %v8402_v63 }
 0x518   :  { %15062 = vmatprep.subr.bf16.mxu0 %v15061_v54  ;;  %v15139_v54 = vpack.c.bf16 %v8396_v33, %v8389_v37  ;;  %v8423_v5 = vsub.f32 %v22883_v60, %v27755_v12  ;;  %15136 = vmatpush3.bf16.msra.mxu1 %v15135_v7  ;;  %v27756_v37 = vand.u32 4294901760, %v22903_v2  ;;  %v8344_v29 = vand.u32 4294901760, %v8343_v10  ;;  %v27759_v7 = vld [vmem:[#allocation56_spill] sm:$0xff] }
 0x519   :  { %v8409_v62 = vsub.f32 %v27741_v3, %v27742_v14  ;;  %v23265_v42 = vpack.c.bf16 %v27753_v61, %v27751_v30  ;;  %v27757_v14 = vld [vmem:[#allocation7_spill] sm:$0xff]  ;;  %15138 = vmatprep.subr.bf16.mxu1 %v15137_v39  ;;  %v15141_v28 = vpack.c.bf16 %v8522_v48, %v8515_v11  ;;  %v8529_v15 = vand.u32 4294901760, %v8528_v24  ;;  %v27761_v30 = vld [vmem:[#allocation44_spill] sm:$0xff]  ;;  %v27765_v48 = vld [vmem:[#allocation37_spill] sm:$0xff] }
 0x51a   :  { %v8542_v33 = vsub.f32 %v22903_v2, %v27756_v37  ;;  %v27758_v21 = vand.u32 4294901760, %v27757_v14  ;;  %v8536_v18 = vand.u32 4294901760, %v8535_v35  ;;  %v27760_v31 = vand.u32 4294901760, %v27759_v7  ;;  %v27767_v35 = vld [vmem:[#allocation71_spill] sm:$0xff] }
 0x51b   :  { %15064 = vmatpush3.bf16.msra.mxu0 %v15063_v52  ;;  %v8410_v52 = vand.u32 4294901760, %v8409_v62  ;;  %v27762_v63 = vand.u32 4294901760, %v27761_v30  ;;  %v8417_v26 = vand.u32 4294901760, %v8416_v59  ;;  %v8424_v61 = vand.u32 4294901760, %v8423_v5  ;;  %v27771_v30 = vld [vmem:[#allocation20_spill] sm:$0xff] }
 0x51c   :  { %15098 = vmatprep.subr.bf16.mxu0 %v23237_v50  ;;  %v8549_v34 = vsub.f32 %v27757_v14, %v27758_v21  ;;  %v27763_v45 = vand.u32 4294901760, %v22944_v13  ;;  %v27764_v11 = vand.u32 4294901760, %v22949_v8  ;;  %15140 = vmatpush3.bf16.msra.mxu1 %v15139_v54  ;;  %v27766_v24 = vand.u32 4294901760, %v27765_v48 }
 0x51d   :  { %v23285_v62 = vpack.c.bf16 %v27762_v63, %v27760_v31  ;;  %v27768_v12 = vand.u32 4294901760, %v27767_v35  ;;  %v8543_v59 = vand.u32 4294901760, %v8542_v33  ;;  %15142 = vmatprep.subr.bf16.mxu1 %v15141_v28  ;;  %v15145_v21 = vpack.c.bf16 %v8536_v18, %v8529_v15  ;;  %v27777_v15 = vld [vmem:[#allocation60_spill] sm:$0xff] }
 0x51e   :  { %8135 = vmatmul.mubr.f32.vlgmr.msra.gmra.mrb[52].mxu0 %v27734_v0  ;;  %v8430_v39 = vsub.f32 %v22944_v13, %v27763_v45  ;;  %v8437_v10 = vsub.f32 %v22949_v8, %v27764_v11  ;;  %v15143_v0 = vpack.c.bf16 %v8410_v52, %v8403_v1  ;;  %v8550_v5 = vand.u32 4294901760, %v8549_v34  ;;  %v27773_v52 = vld [vmem:[#allocation36_spill] sm:$0xff]  ;;  %v27775_v34 = vld [vmem:[#allocation59_spill] sm:$0xff] }
 0x51f   :  { %15100 = vmatpush3.bf16.msra.mxu0 %v23259_v47  ;;  %8345 = vmatprep.mubr.f32.mxu0 %v8344_v29  ;;  %v23299_v37 = vpack.c.bf16 %v27768_v12, %v27766_v24  ;;  %v27769_v29 = vand.u32 4294901760, %v22995_v49  ;;  %v27770_v31 = vand.u32 4294901760, %v23000_v16  ;;  %v27772_v1 = vand.u32 4294901760, %v27771_v30 }
 0x520   :  { %15102 = vmatprep.subr.bf16.mxu0 %v23265_v42  ;;  %v27774_v63 = vand.u32 4294901760, %v27773_v52  ;;  %v15147_v33 = vpack.c.bf16 %v8424_v61, %v8417_v26  ;;  %v27776_v28 = vand.u32 4294901760, %v27775_v34  ;;  %v27778_v18 = vand.u32 4294901760, %v27777_v15  ;;  %15144 = vmatpush3.bf16.msra.mxu1 %v15143_v0  ;;  %v7239_v61 = vld [vmem:[%s25147_s3 + $0x10] sm:$0xff] }
 0x521   :  { %v8556_v7 = vsub.f32 %v22995_v49, %v27769_v29  ;;  %v8563_v54 = vsub.f32 %v23000_v16, %v27770_v31  ;;  %v8431_v48 = vand.u32 4294901760, %v8430_v39  ;;  %v8438_v24 = vand.u32 4294901760, %v8437_v10  ;;  %v27780_v31 = vld [vmem:[#allocation38_spill] sm:$0xff]  ;;  %15146 = vmatprep.subr.bf16.mxu1 %v15145_v21  ;;  %v27782_v10 = vld [vmem:[#allocation85_spill] sm:$0xff]  ;;  %v27790_v21 = vld [vmem:[#allocation11_spill] sm:$0xff] }
 0x522   :  { %v23311_v45 = vpack.c.bf16 %v27774_v63, %v27772_v1  ;;  %v23318_v11 = vpack.c.bf16 %v27778_v18, %v27776_v28  ;;  %v15149_v35 = vpack.c.bf16 %v8550_v5, %v8543_v59  ;;  %v27779_v12 = vand.u32 4294901760, %v23021_v38  ;;  %v27784_v59 = vld [vmem:[#allocation86_spill] sm:$0xff] }
 0x523   :  { %15104 = vmatpush3.bf16.msra.mxu0 %v23285_v62  ;;  %v27781_v30 = vand.u32 4294901760, %v27780_v31  ;;  %v8557_v1 = vand.u32 4294901760, %v8556_v7  ;;  %v8564_v39 = vand.u32 4294901760, %v8563_v54  ;;  %v27783_v0 = vand.u32 4294901760, %v27782_v10  ;;  %v27786_v34 = vld [vmem:[#allocation62_spill] sm:$0xff]  ;;  %v27792_v54 = vld [vmem:[#allocation65_spill] sm:$0xff] }
 0x524   :  { %15106 = vmatprep.subr.bf16.mxu0 %v23299_v37  ;;  %v8444_v29 = vsub.f32 %v23021_v38, %v27779_v12  ;;  %v27785_v5 = vand.u32 4294901760, %v27784_v59  ;;  %v27787_v28 = vand.u32 4294901760, %v27786_v34  ;;  %v27788_v15 = vld [vmem:[#allocation42_spill] sm:$0xff]  ;;  %v27791_v7 = vand.u32 4294901760, %v27790_v21  ;;  %15148 = vmatpush3.bf16.msra.mxu1 %v15147_v33 }
 0x525   :  { %v8451_v26 = vsub.f32 %v27780_v31, %v27781_v30  ;;  %v8570_v52 = vsub.f32 %v27782_v10, %v27783_v0  ;;  %v27789_v18 = vand.u32 4294901760, %v27788_v15  ;;  %v15151_v30 = vpack.c.bf16 %v8438_v24, %v8431_v48  ;;  %15150 = vmatprep.subr.bf16.mxu1 %v15149_v35  ;;  %v27805_v35 = vld [vmem:[#allocation77_spill] sm:$0xff]  ;;  %v27833_v38 = vld [vmem:[#allocation82_spill] sm:$0xff] }
 0x526   :  { %v8577_v63 = vsub.f32 %v27784_v59, %v27785_v5  ;;  %v27793_v23 = vand.u32 4294901760, %v27792_v54  ;;  %v7247_v0 = vmul.f32 %v7239_v61, %v27693_v6  ;;  %v8445_v5 = vand.u32 4294901760, %v8444_v29  ;;  %v27794_v59 = vld [vmem:[#allocation13_spill] sm:$0xff]  ;;  %v27798_v61 = vld [vmem:[#allocation15_spill] sm:$0xff] }
 0x527   :  { %15108 = vmatpush3.bf16.msra.mxu0 %v23311_v45  ;;  %v23341_v12 = vpack.c.bf16 %v27789_v18, %v27787_v28  ;;  %v8452_v51 = vand.u32 4294901760, %v8451_v26  ;;  %v27795_v34 = vand.u32 4294901760, %v27794_v59  ;;  %v27796_v28 = vld [vmem:[#allocation24_spill] sm:$0xff]  ;;  %v15153_v24 = vpack.c.bf16 %v8564_v39, %v8557_v1  ;;  %v27803_v6 = vld [vmem:[#allocation63_spill] sm:$0xff]  ;;  %v27831_v31 = vld [vmem:[#allocation81_spill] sm:$0xff] }
 0x528   :  { %v23347_v56 = vpack.c.bf16 %v27793_v23, %v27791_v7  ;;  %15110 = vmatprep.subr.bf16.mxu0 %v23318_v11  ;;  %v27797_v18 = vand.u32 4294901760, %v27796_v28  ;;  %v8571_v21 = vand.u32 4294901760, %v8570_v52  ;;  %v8578_v23 = vand.u32 4294901760, %v8577_v63  ;;  %v27800_v7 = vld [vmem:[#allocation16_spill] sm:$0xff]  ;;  %15152 = vmatpush3.bf16.msra.mxu1 %v15151_v30 }
 0x529   :  { %v8458_v15 = vsub.f32 %v27794_v59, %v27795_v34  ;;  %v27799_v33 = vand.u32 4294901760, %v27798_v61  ;;  %v27801_v54 = vand.u32 4294901760, %v27800_v7  ;;  %v23364_v26 = vand.u32 4294901760, %v7247_v0  ;;  %15154 = vmatprep.subr.bf16.mxu1 %v15153_v24 }
 0x52a   :  { %v8465_v48 = vsub.f32 %v27796_v28, %v27797_v18  ;;  %v15155_v34 = vpack.c.bf16 %v8452_v51, %v8445_v5  ;;  %v27804_v18 = vand.u32 4294901760, %v27803_v6  ;;  %v27806_v1 = vand.u32 4294901760, %v27805_v35  ;;  %v27811_v5 = vld [vmem:[#allocation51_spill] sm:$0xff] }
 0x52b   :  { %15112 = vmatpush3.bf16.msra.mxu0 %v23341_v12  ;;  %v23362_v29 = vpack.c.bf16 %v27801_v54, %v27799_v33  ;;  %27802 = vst [vmem:[#allocation29_spill] sm:$0xff] %v23364_v26  ;;  %v8459_v52 = vand.u32 4294901760, %v8458_v15  ;;  %v15157_v61 = vpack.c.bf16 %v8578_v23, %v8571_v21  ;;  %v27807_v33 = vld [vmem:[#allocation78_spill] sm:$0xff]  ;;  %v27809_v54 = vld [vmem:[#allocation79_spill] sm:$0xff]  ;;  %v23381_v51 = vsub.f32 %v7247_v0, %v23364_v26  ;;  %v23393_v23 = vld [vmem:[%s25150_s6 + $0x280] sm:$0xff] }
 0x52c   :  { %15114 = vmatprep.subr.bf16.mxu0 %v23347_v56  ;;  %v23371_v39 = vpack.c.bf16 %v27806_v1, %v27804_v18  ;;  %v8466_v63 = vand.u32 4294901760, %v8465_v48  ;;  %v27808_v7 = vand.u32 4294901760, %v27807_v33  ;;  %v27810_v28 = vand.u32 4294901760, %v27809_v54  ;;  %15156 = vmatpush3.bf16.msra.mxu1 %v15155_v34  ;;  %v27813_v48 = vld [vmem:[#allocation47_spill] sm:$0xff]  ;;  %27815 = vst [vmem:[#allocation26_spill] sm:$0xff] %v23393_v23  ;;  %v23398_v0 = vld [vmem:[%s25150_s6 + $0x288] sm:$0xff] }
 0x52d   :  { %v27812_v15 = vand.u32 4294901760, %v27811_v5  ;;  %v27814_v24 = vand.u32 4294901760, %v27813_v48  ;;  %27816 = vst [vmem:[#allocation41_spill] sm:$0xff] %v23398_v0  ;;  %15158 = vmatprep.subr.bf16.mxu1 %v15157_v61  ;;  %v23408_v34 = vld [vmem:[%s25150_s6 + $0x208] sm:$0xff]  ;;  %v23413_v18 = vld [vmem:[%s25150_s6 + $0x290] sm:$0xff]  ;;  %v23418_v35 = vld [vmem:[%s25150_s6 + $0x298] sm:$0xff]  ;;  %v15161_v10 = vpack.c.bf16 %v27691_v27, %v22617_v20 }
 0x52e   :  { %v23378_v30 = vpack.c.bf16 %v27810_v28, %v27808_v7  ;;  %v15159_v6 = vpack.c.bf16 %v8466_v63, %v8459_v52  ;;  %v23403_v28 = vld [vmem:[%s25150_s6 + $0x200] sm:$0xff]  ;;  %27818 = vst [vmem:[#allocation10_spill] sm:$0xff] %v23408_v34  ;;  %27819 = vst [vmem:[#allocation25_spill] sm:$0xff] %v23413_v18  ;;  %v23423_v1 = vld [vmem:[%s25150_s6 + $0x210] sm:$0xff]  ;;  %v27834_v59 = vand.u32 4294901760, %v27833_v38 }
 0x52f   :  { %15116 = vmatpush3.bf16.msra.mxu0 %v23362_v29  ;;  %v23388_v21 = vpack.c.bf16 %v27814_v24, %v27812_v15  ;;  %27817 = vst [vmem:[#allocation21_spill] sm:$0xff] %v23403_v28  ;;  %27820 = vst [vmem:[#allocation27_spill] sm:$0xff] %v23418_v35  ;;  %v23428_v52 = vld [vmem:[%s25150_s6 + $0x218] sm:$0xff]  ;;  %v27825_v33 = vld [vmem:[#allocation72_spill] sm:$0xff]  ;;  %v25860_v15 = vand.u32 4294901760, %v23418_v35  ;;  %v27832_v24 = vand.u32 4294901760, %v27831_v31 }
 0x530   :  { %15118 = vmatprep.subr.bf16.mxu0 %v23371_v39  ;;  %27821 = vst [vmem:[#allocation50_spill] sm:$0xff] %v23423_v1  ;;  %27822 = vst [vmem:[#allocation22_spill] sm:$0xff] %v23428_v52  ;;  %v27823_v63 = vld [vmem:[#allocation23_spill] sm:$0xff]  ;;  %v27826_v7 = vand.u32 4294901760, %v27825_v33  ;;  %15160 = vmatpush3.bf16.msra.mxu1 %v15159_v6  ;;  %v27836_v31 = vand.u32 4294901760, %v23393_v23  ;;  %v23482_v27 = vld [vmem:[%s25150_s6 + $0x2a0] sm:$0xff] }
 0x531   :  { %v27824_v61 = vand.u32 4294901760, %v27823_v63  ;;  %15194 = vmatprep.subr.bf16.mxu1 %v23237_v50  ;;  %v27827_v63 = vld [vmem:[#allocation74_spill] sm:$0xff]  ;;  %v27829_v33 = vld [vmem:[#allocation75_spill] sm:$0xff]  ;;  %v23458_v16 = vpack.c.bf16 %v27834_v59, %v27832_v24  ;;  %v27837_v59 = vand.u32 4294901760, %v23398_v0  ;;  %27839 = vst [vmem:[#allocation67_spill] sm:$0xff] %v23482_v27  ;;  %v27842_v24 = vand.u32 4294901760, %v23403_v28 }
 0x532   :  { %v23472_v38 = vsub.f32 %v23393_v23, %v27836_v31  ;;  %v23510_v6 = vld [vmem:[%s25150_s6 + $0x220] sm:$0xff]  ;;  %v25863_v23 = vand.u32 4294901760, %v23482_v27 }
 0x533   :  { %15120 = vmatpush3.bf16.msra.mxu0 %v23378_v30  ;;  %v23435_v54 = vpack.c.bf16 %v27826_v7, %v27824_v61  ;;  %v27828_v61 = vand.u32 4294901760, %v27827_v63  ;;  %v27830_v7 = vand.u32 4294901760, %v27829_v33  ;;  %v15163_v63 = vpack.c.bf16 %v27700_v40, %v27698_v22  ;;  %8583 = vmatmul.mubr.f32.vlgmr.msra.gmra.mrb[54].mxu1 %v23364_v26  ;;  %v23487_v22 = vld [vmem:[%s25150_s6 + $0x2a8] sm:$0xff] }
 0x534   :  { %15122 = vmatprep.subr.bf16.mxu0 %v23388_v21  ;;  %v23477_v20 = vsub.f32 %v23398_v0, %v27837_v59  ;;  %27840 = vst [vmem:[#allocation49_spill] sm:$0xff] %v23487_v22  ;;  %15196 = vmatpush3.bf16.msra.mxu1 %v23259_v47  ;;  %v27841_v40 = vand.u32 4294901760, %v23204_v53  ;;  %v27844_v59 = vand.u32 4294901760, %v23413_v18  ;;  %v15167_v0 = vpack.c.bf16 %v27714_v17, %v27712_v36  ;;  %v23568_v17 = vld [vmem:[%s25150_s6 + $0x230] sm:$0xff]  ;;  %v23573_v36 = vld [vmem:[%s25150_s6 + $0x238] sm:$0xff] }
 0x535   :  { %v23449_v5 = vpack.c.bf16 %v27830_v7, %v27828_v61  ;;  %v27835_v61 = vand.u32 4294901760, %v23381_v51  ;;  %v23495_v7 = vsub.f32 %v23403_v28, %v27842_v24  ;;  %15198 = vmatprep.subr.bf16.mxu1 %v23265_v42  ;;  %v23522_v24 = vsub.f32 %v23418_v35, %v25860_v15  ;;  %27849 = vst [vmem:[#allocation40_spill] sm:$0xff] %v23568_v17 }
 0x536   :  { %27838 = vst [vmem:[#allocation31_spill] sm:$0xff] %v23477_v20  ;;  %8825 = vmatprep.mubr.f32.mxu1 %v27841_v40  ;;  %v23505_v48 = vsub.f32 %v23413_v18, %v27844_v59  ;;  %v23515_v40 = vld [vmem:[%s25150_s6 + $0x228] sm:$0xff]  ;;  %v27846_v18 = vand.u32 4294901760, %v23428_v52  ;;  %v15165_v28 = vpack.c.bf16 %v27705_v46, %v27703_v25  ;;  %v25864_v15 = vand.u32 4294901760, %v23487_v22  ;;  %27850 = vst [vmem:[#allocation9_spill] sm:$0xff] %v23573_v36 }
 0x537   :  { %15124 = vmatpush3.bf16.msra.mxu0 %v23435_v54  ;;  %v8349_v33 = vsub.f32 %v23381_v51, %v27835_v61  ;;  %v27843_v61 = vand.u32 4294901760, %v23408_v34  ;;  %v25873_v25 = vand.u32 4294901760, %v23472_v38  ;;  %v25872_v46 = vand.u32 4294901760, %v23477_v20 }
 0x538   :  { %15126 = vmatprep.subr.bf16.mxu0 %v23449_v5  ;;  %15200 = vmatpush3.bf16.msra.mxu1 %v23285_v62  ;;  %v27858_v26 = vand.u32 4294901760, %v23515_v40 }
 0x539   :  { %v23500_v31 = vsub.f32 %v23408_v34, %v27843_v61  ;;  %v27845_v61 = vand.u32 4294901760, %v23423_v1  ;;  %v23532_v34 = vsub.f32 %v23428_v52, %v27846_v18  ;;  %v8350_v35 = vand.u32 4294901760, %v8349_v33  ;;  %v23553_v33 = vld [vmem:[%s25150_s6 + $0x2b0] sm:$0xff]  ;;  %15202 = vmatprep.subr.bf16.mxu1 %v23299_v37  ;;  %v23588_v18 = vld [vmem:[%s25150_s6 + $0x2c0] sm:$0xff] }
 0x53a   :  { %27847 = vst [vmem:[#allocation19_spill] sm:$0xff] %v23553_v33  ;;  %27851 = vst [vmem:[#allocation28_spill] sm:$0xff] %v23588_v18  ;;  %v23616_v20 = vsub.f32 %v23515_v40, %v27858_v26  ;;  %v15171_v26 = vpack.c.bf16 %v27724_v57, %v27722_v44 }
 0x53b   :  { %v23527_v59 = vsub.f32 %v23423_v1, %v27845_v61  ;;  %15128 = vmatpush3.bf16.msra.mxu0 %v23458_v16  ;;  %v15169_v61 = vpack.c.bf16 %v27718_v9, %v27716_v58  ;;  %v23558_v58 = vld [vmem:[%s25150_s6 + $0x2b8] sm:$0xff]  ;;  %v23578_v9 = vsub.f32 %v23482_v27, %v25863_v23  ;;  %v23583_v1 = vsub.f32 %v23487_v22, %v25864_v15 }
 0x53c   :  { %15162 = vmatprep.subr.bf16.mxu0 %v15161_v10  ;;  %27848 = vst [vmem:[#allocation18_spill] sm:$0xff] %v23558_v58  ;;  %v23593_v10 = vld [vmem:[%s25150_s6 + $0x2c8] sm:$0xff]  ;;  %v27854_v23 = vand.u32 4294901760, %v23495_v7  ;;  %v27855_v15 = vand.u32 4294901760, %v23500_v31  ;;  %v27857_v27 = vand.u32 4294901760, %v23510_v6  ;;  %15204 = vmatpush3.bf16.msra.mxu1 %v23311_v45  ;;  %v27865_v57 = vand.u32 4294901760, %v23532_v34 }
 0x53d   :  { %27852 = vst [vmem:[#allocation33_spill] sm:$0xff] %v23593_v10  ;;  %15206 = vmatprep.subr.bf16.mxu1 %v23318_v11  ;;  %v27864_v44 = vand.u32 4294901760, %v23527_v59 }
 0x53e   :  { %8351 = vmatmul.mubr.f32.vlgmr.msra.gmra.mrb[54].mxu0 %v8350_v35  ;;  %v23599_v35 = vpack.c.bf16 %v25872_v46, %v25873_v25  ;;  %v23605_v22 = vpack.c.bf16 %v27855_v15, %v27854_v23  ;;  %v23611_v52 = vsub.f32 %v23510_v6, %v27857_v27  ;;  %v23623_v23 = vld [vmem:[%s25150_s6 + $0x240] sm:$0xff]  ;;  %v27861_v27 = vand.u32 4294901760, %v23505_v48 }
 0x53f   :  { %15164 = vmatpush3.bf16.msra.mxu0 %v15163_v63  ;;  %8718 = vmatprep.mubr.f32.mxu0 %v23204_v53  ;;  %27859 = vst [vmem:[#allocation35_spill] sm:$0xff] %v23623_v23  ;;  %v23628_v53 = vld [vmem:[%s25150_s6 + $0x248] sm:$0xff]  ;;  %v27862_v25 = vand.u32 4294901760, %v23522_v24  ;;  %v23650_v63 = vpack.c.bf16 %v27865_v57, %v27864_v44  ;;  %v25876_v15 = vand.u32 4294901760, %v23578_v9  ;;  %v27868_v44 = vand.u32 4294901760, %v23558_v58 }
 0x540   :  { %27853 = vst [vmem:[#allocation5_spill] sm:$0xff] %v23599_v35  ;;  %27856 = vst [vmem:[#allocation64_spill] sm:$0xff] %v23605_v22  ;;  %15166 = vmatprep.subr.bf16.mxu0 %v15165_v28  ;;  %v15173_v22 = vpack.c.bf16 %v27730_v55, %v27726_v32  ;;  %v27867_v35 = vand.u32 4294901760, %v23553_v33  ;;  %15208 = vmatpush3.bf16.msra.mxu1 %v23341_v12 }
 0x541   :  { %27860 = vst [vmem:[#allocation58_spill] sm:$0xff] %v23628_v53  ;;  %v23639_v46 = vpack.c.bf16 %v27862_v25, %v27861_v27  ;;  %27866 = vst [vmem:[#allocation54_spill] sm:$0xff] %v23650_v63  ;;  %v25875_v25 = vand.u32 4294901760, %v23583_v1  ;;  %v23666_v57 = vsub.f32 %v23558_v58, %v27868_v44  ;;  %v27870_v27 = vand.u32 4294901760, %v23573_v36  ;;  %15210 = vmatprep.subr.bf16.mxu1 %v23347_v56 }
 0x542   :  { %v23661_v28 = vsub.f32 %v23553_v33, %v27867_v35  ;;  %v27876_v63 = vand.u32 4294901760, %v23616_v20  ;;  %v15183_v58 = vpack.c.bf16 %v22949_v8, %v22944_v13  ;;  %v27910_v33 = vld [vmem:[#allocation69_spill] sm:$0xff] }
 0x543   :  { %27863 = vst [vmem:[#allocation52_spill] sm:$0xff] %v23639_v46  ;;  %15168 = vmatpush3.bf16.msra.mxu0 %v15167_v0  ;;  %v27869_v46 = vand.u32 4294901760, %v23568_v17  ;;  %v23677_v55 = vsub.f32 %v23573_v36, %v27870_v27  ;;  %v23683_v35 = vpack.c.bf16 %v25875_v25, %v25876_v15  ;;  %v27875_v27 = vand.u32 4294901760, %v23611_v52 }
 0x544   :  { %15170 = vmatprep.subr.bf16.mxu0 %v15169_v61  ;;  %v27872_v61 = vand.u32 4294901760, %v23588_v18  ;;  %v27878_v25 = vand.u32 4294901760, %v23623_v23  ;;  %15212 = vmatpush3.bf16.msra.mxu1 %v23362_v29 }
 0x545   :  { %v23672_v0 = vsub.f32 %v23568_v17, %v27869_v46  ;;  %27871 = vst [vmem:[#allocation55_spill] sm:$0xff] %v23683_v35  ;;  %v27874_v46 = vand.u32 4294901760, %v23593_v10  ;;  %v23700_v36 = vpack.c.bf16 %v27876_v63, %v27875_v27  ;;  %v27879_v35 = vand.u32 4294901760, %v23628_v53  ;;  %v23720_v63 = vld [vmem:[%s25150_s6 + $0x2d8] sm:$0xff]  ;;  %15214 = vmatprep.subr.bf16.mxu1 %v23371_v39 }
 0x546   :  { %v23689_v44 = vsub.f32 %v23588_v18, %v27872_v61  ;;  %v23705_v15 = vsub.f32 %v23623_v23, %v27878_v25  ;;  %27881 = vst [vmem:[#allocation45_spill] sm:$0xff] %v23720_v63  ;;  %v15175_v25 = vpack.c.bf16 %v27741_v3, %v27739_v43  ;;  %v15177_v27 = vpack.c.bf16 %v22872_v4, %v27743_v41  ;;  %v23751_v41 = vld [vmem:[%s25150_s6 + $0x2e8] sm:$0xff]  ;;  %v23761_v4 = vld [vmem:[%s25150_s6 + $0x260] sm:$0xff]  ;;  %v23777_v43 = vld [vmem:[%s25150_s6 + $0x2f0] sm:$0xff] }
 0x547   :  { %v23694_v32 = vsub.f32 %v23593_v10, %v27874_v46  ;;  %27877 = vst [vmem:[#allocation76_spill] sm:$0xff] %v23700_v36  ;;  %v23710_v61 = vsub.f32 %v23628_v53, %v27879_v35  ;;  %v23715_v46 = vld [vmem:[%s25150_s6 + $0x2d0] sm:$0xff]  ;;  %15172 = vmatpush3.bf16.msra.mxu0 %v15171_v26  ;;  %v15179_v35 = vpack.c.bf16 %v22883_v60, %v22878_v19  ;;  %v23736_v53 = vld [vmem:[%s25150_s6 + $0x258] sm:$0xff]  ;;  %v23746_v19 = vld [vmem:[%s25150_s6 + $0x2e0] sm:$0xff]  ;;  %v27889_v18 = vand.u32 4294901760, %v23661_v28 }
 0x548   :  { %27873 = vst [vmem:[#allocation73_spill] sm:$0xff] %v23689_v44  ;;  %27880 = vst [vmem:[#allocation17_spill] sm:$0xff] %v23715_v46  ;;  %v23731_v36 = vld [vmem:[%s25150_s6 + $0x250] sm:$0xff]  ;;  %15174 = vmatprep.subr.bf16.mxu0 %v15173_v22  ;;  %v23770_v26 = vld [vmem:[%s25150_s6 + $0x268] sm:$0xff]  ;;  %v27890_v23 = vand.u32 4294901760, %v23666_v57  ;;  %v27893_v3 = vand.u32 4294901760, %v23677_v55  ;;  %15216 = vmatpush3.bf16.msra.mxu1 %v23378_v30  ;;  %v15181_v17 = vpack.c.bf16 %v27757_v14, %v22903_v2 }
 0x549   :  { %27882 = vst [vmem:[#allocation70_spill] sm:$0xff] %v23736_v53  ;;  %27883 = vst [vmem:[#allocation53_spill] sm:$0xff] %v23746_v19  ;;  %v23782_v10 = vld [vmem:[%s25150_s6 + $0x2f8] sm:$0xff]  ;;  %15218 = vmatprep.subr.bf16.mxu1 %v23388_v21  ;;  %v27900_v8 = vand.u32 4294901760, %v23715_v46  ;;  %v27902_v14 = vand.u32 4294901760, %v23720_v63 }
 0x54a   :  { %27884 = vst [vmem:[#allocation57_spill] sm:$0xff] %v23751_v41  ;;  %27885 = vst [vmem:[#allocation7_spill] sm:$0xff] %v23761_v4  ;;  %v23788_v22 = vpack.c.bf16 %v27890_v23, %v27889_v18  ;;  %v23805_v18 = vld [vmem:[%s25150_s6 + $0x270] sm:$0xff]  ;;  %v23810_v23 = vld [vmem:[%s25150_s6 + $0x278] sm:$0xff] }
 0x54b   :  { %27886 = vst [vmem:[#allocation56_spill] sm:$0xff] %v23770_v26  ;;  %15176 = vmatpush3.bf16.msra.mxu0 %v15175_v25  ;;  %27887 = vst [vmem:[#allocation44_spill] sm:$0xff] %v23777_v43  ;;  %v27892_v25 = vand.u32 4294901760, %v23672_v0  ;;  %v23822_v13 = vsub.f32 %v23715_v46, %v27900_v8  ;;  %v27907_v8 = vand.u32 4294901760, %v23736_v53 }
 0x54c   :  { %27888 = vst [vmem:[#allocation37_spill] sm:$0xff] %v23782_v10  ;;  %27891 = vst [vmem:[#allocation71_spill] sm:$0xff] %v23788_v22  ;;  %15178 = vmatprep.subr.bf16.mxu0 %v15177_v27  ;;  %v27897_v27 = vand.u32 4294901760, %v23689_v44  ;;  %v27904_v22 = vand.u32 4294901760, %v23710_v61  ;;  %15220 = vmatpush3.bf16.msra.mxu1 %v23435_v54 }
 0x54d   :  { %v23794_v60 = vpack.c.bf16 %v27893_v3, %v27892_v25  ;;  %27895 = vst [vmem:[#allocation36_spill] sm:$0xff] %v23805_v18  ;;  %27896 = vst [vmem:[#allocation59_spill] sm:$0xff] %v23810_v23  ;;  %v27898_v3 = vand.u32 4294901760, %v23694_v32  ;;  %v23827_v25 = vsub.f32 %v23720_v63, %v27902_v14  ;;  %v23844_v46 = vsub.f32 %v23736_v53, %v27907_v8 }
 0x54e   :  { %27901 = vst [vmem:[#allocation62_spill] sm:$0xff] %v23822_v13  ;;  %v27908_v63 = vand.u32 4294901760, %v23746_v19  ;;  %v27911_v14 = vand.u32 4294901760, %v23761_v4  ;;  %15222 = vmatprep.subr.bf16.mxu1 %v23449_v5  ;;  %v27914_v53 = vand.u32 4294901760, %v23770_v26 }
 0x54f   :  { %27894 = vst [vmem:[#allocation20_spill] sm:$0xff] %v23794_v60  ;;  %v23816_v2 = vpack.c.bf16 %v27898_v3, %v27897_v27  ;;  %v27903_v60 = vand.u32 4294901760, %v23705_v15  ;;  %v27906_v3 = vand.u32 4294901760, %v23731_v36  ;;  %15180 = vmatpush3.bf16.msra.mxu0 %v15179_v35  ;;  %v15185_v35 = vpack.c.bf16 %v27910_v33, %v22995_v49 }
 0x550   :  { %15182 = vmatprep.subr.bf16.mxu0 %v15181_v17  ;;  %v23876_v17 = vsub.f32 %v23770_v26, %v27914_v53  ;;  %v27922_v33 = vand.u32 4294901760, %v23810_v23  ;;  %15224 = vmatpush3.bf16.msra.mxu1 %v23458_v16  ;;  %v27935_v26 = vand.u32 4294901760, %v23381_v51  ;;  %v27941_v53 = vld [vmem:[#allocation6_spill] sm:$0xff] }
 0x551   :  { %27899 = vst [vmem:[#allocation60_spill] sm:$0xff] %v23816_v2  ;;  %v23834_v27 = vpack.c.bf16 %v27904_v22, %v27903_v60  ;;  %v23839_v2 = vsub.f32 %v23731_v36, %v27906_v3  ;;  %v23851_v60 = vsub.f32 %v23746_v19, %v27908_v63  ;;  %v27909_v22 = vand.u32 4294901760, %v23751_v41  ;;  %v27912_v19 = vld [vmem:[#allocation43_spill] sm:$0xff]  ;;  %15258 = vmatprep.subr.bf16.mxu1 %v23237_v50 }
 0x552   :  { %v23866_v63 = vsub.f32 %v23761_v4, %v27911_v14  ;;  %27915 = vst [vmem:[#allocation11_spill] sm:$0xff] %v23876_v17  ;;  %v27916_v14 = vand.u32 4294901760, %v23777_v43 }
 0x553   :  { %27905 = vst [vmem:[#allocation42_spill] sm:$0xff] %v23834_v27  ;;  %v23856_v3 = vsub.f32 %v23751_v41, %v27909_v22  ;;  %v27913_v22 = vld [vmem:[#allocation38_spill] sm:$0xff]  ;;  %15184 = vmatpush3.bf16.msra.mxu0 %v15183_v58  ;;  %v27920_v27 = vand.u32 4294901760, %v23805_v18  ;;  %8829 = vmatmul.mubr.f32.vlgmr.msra.gmra.mrb[56].mxu1 %v27935_v26 }
 0x554   :  { %v15187_v41 = vpack.c.bf16 %v27913_v22, %v27912_v19  ;;  %v23883_v4 = vsub.f32 %v23777_v43, %v27916_v14  ;;  %v27918_v19 = vand.u32 4294901760, %v23782_v10  ;;  %v23900_v14 = vsub.f32 %v23810_v23, %v27922_v33  ;;  %15186 = vmatprep.subr.bf16.mxu0 %v15185_v35  ;;  %15260 = vmatpush3.bf16.msra.mxu1 %v23259_v47  ;;  %v27945_v47 = vld [vmem:[#allocation34_spill] sm:$0xff] }
 0x555   :  { %v23895_v49 = vsub.f32 %v23805_v18, %v27920_v27  ;;  %v27926_v27 = vand.u32 4294901760, %v23822_v13  ;;  %v27927_v18 = vand.u32 4294901760, %v23827_v25  ;;  %v27929_v33 = vand.u32 4294901760, %v23839_v2  ;;  %9099 = vmatprep.mubr.f32.mxu1 %v27941_v53  ;;  %15262 = vmatprep.subr.bf16.mxu1 %v23265_v42  ;;  %v27947_v42 = vld [vmem:[#allocation48_spill] sm:$0xff] }
 0x556   :  { %27917 = vst [vmem:[#allocation65_spill] sm:$0xff] %v23883_v4  ;;  %v23888_v22 = vsub.f32 %v23782_v10, %v27918_v19  ;;  %27923 = vst [vmem:[#allocation63_spill] sm:$0xff] %v23900_v14  ;;  %v27924_v19 = vld [vmem:[#allocation85_spill] sm:$0xff]  ;;  %v27925_v10 = vld [vmem:[#allocation86_spill] sm:$0xff]  ;;  %v27930_v23 = vand.u32 4294901760, %v23844_v46  ;;  %v25897_v50 = vand.u32 4294901760, %v23883_v4 }
 0x557   :  { %27921 = vst [vmem:[#allocation16_spill] sm:$0xff] %v23895_v49  ;;  %v15189_v58 = vpack.c.bf16 %v27925_v10, %v27924_v19  ;;  %v23912_v43 = vpack.c.bf16 %v27927_v18, %v27926_v27  ;;  %v27932_v10 = vand.u32 4294901760, %v23851_v60  ;;  %v27933_v19 = vand.u32 4294901760, %v23856_v3  ;;  %15188 = vmatpush3.bf16.msra.mxu0 %v15187_v41  ;;  %v27936_v18 = vld [vmem:[#allocation13_spill] sm:$0xff]  ;;  %v27937_v27 = vld [vmem:[#allocation24_spill] sm:$0xff] }
 0x558   :  { %27919 = vst [vmem:[#allocation15_spill] sm:$0xff] %v23888_v22  ;;  %v23918_v35 = vpack.c.bf16 %v27930_v23, %v27929_v33  ;;  %v25896_v23 = vand.u32 4294901760, %v23895_v49  ;;  %v25895_v33 = vand.u32 4294901760, %v23900_v14  ;;  %v27942_v41 = vand.u32 4294901760, %v23888_v22  ;;  %15264 = vmatpush3.bf16.msra.mxu1 %v23285_v62  ;;  %v7242_v62 = vld [vmem:[%s25147_s3 + $0x28] sm:$0xff] }
 0x559   :  { %27928 = vst [vmem:[#allocation77_spill] sm:$0xff] %v23912_v43  ;;  %v23924_v8 = vpack.c.bf16 %v27933_v19, %v27932_v10  ;;  %v15191_v43 = vpack.c.bf16 %v27937_v27, %v27936_v18  ;;  %v27939_v10 = vand.u32 4294901760, %v23876_v17  ;;  %15190 = vmatprep.subr.bf16.mxu0 %v15189_v58  ;;  %15266 = vmatprep.subr.bf16.mxu1 %v23299_v37  ;;  %v27948_v58 = vld [vmem:[#allocation66_spill] sm:$0xff]  ;;  %v27949_v37 = vld [vmem:[#allocation80_spill] sm:$0xff] }
 0x55a   :  { %27931 = vst [vmem:[#allocation78_spill] sm:$0xff] %v23918_v35  ;;  %v27938_v35 = vand.u32 4294901760, %v23866_v63  ;;  %v23946_v26 = vpack.c.bf16 %v27942_v41, %v25897_v50  ;;  %v23953_v18 = vpack.c.bf16 %v25895_v33, %v25896_v23 }
 0x55b   :  { %27934 = vst [vmem:[#allocation79_spill] sm:$0xff] %v23924_v8  ;;  %15192 = vmatpush3.bf16.msra.mxu0 %v15191_v43 }
 0x55c   :  { %v23938_v19 = vpack.c.bf16 %v27939_v10, %v27938_v35  ;;  %27943 = vst [vmem:[#allocation47_spill] sm:$0xff] %v23946_v26  ;;  %27944 = vst [vmem:[#allocation23_spill] sm:$0xff] %v23953_v18  ;;  %15226 = vmatprep.subr.bf16.mxu0 %v27945_v47  ;;  %v27946_v35 = vld [vmem:[#allocation46_spill] sm:$0xff]  ;;  %15268 = vmatpush3.bf16.msra.mxu1 %v23311_v45  ;;  %v27952_v45 = vld [vmem:[#allocation8_spill] sm:$0xff] }
 0x55d   :  { %15270 = vmatprep.subr.bf16.mxu1 %v23318_v11  ;;  %v27953_v11 = vand.u32 4294901760, %v23472_v38  ;;  %v27954_v10 = vld [vmem:[#allocation31_spill] sm:$0xff] }
 0x55e   :  { %27940 = vst [vmem:[#allocation51_spill] sm:$0xff] %v23938_v19  ;;  %8721 = vmatmul.mubr.f32.vlgmr.msra.gmra.mrb[56].mxu0 %v23381_v51  ;;  %v27950_v51 = vld [vmem:[#allocation32_spill] sm:$0xff]  ;;  %v27982_v19 = vand.u32 4294901760, %v23677_v55 }
 0x55f   :  { %15228 = vmatpush3.bf16.msra.mxu0 %v27946_v35  ;;  %8995 = vmatprep.mubr.f32.mxu0 %v27941_v53  ;;  %v7250_v43 = vmul.f32 %v7242_v62, %v27950_v51  ;;  %v27951_v53 = vld [vmem:[#allocation39_spill] sm:$0xff]  ;;  %v9334_v27 = vsub.f32 %v23472_v38, %v27953_v11 }
 0x560   :  { %15230 = vmatprep.subr.bf16.mxu0 %v27947_v42  ;;  %15272 = vmatpush3.bf16.msra.mxu1 %v23341_v12  ;;  %v27955_v12 = vand.u32 4294901760, %v27954_v10  ;;  %v27958_v35 = vld [vmem:[#allocation83_spill] sm:$0xff]  ;;  %v27960_v42 = vand.u32 4294901760, %v23500_v31 }
 0x561   :  { %15274 = vmatprep.subr.bf16.mxu1 %v23347_v56  ;;  %v23982_v47 = vand.u32 4294901760, %v7250_v43  ;;  %v27957_v56 = vld [vmem:[#allocation61_spill] sm:$0xff]  ;;  %v9335_v62 = vand.u32 4294901760, %v9334_v27 }
 0x562   :  { %v9341_v41 = vsub.f32 %v27954_v10, %v27955_v12 }
 0x563   :  { %15232 = vmatpush3.bf16.msra.mxu0 %v27948_v58  ;;  %27956 = vst [vmem:[#allocation72_spill] sm:$0xff] %v23982_v47  ;;  %v9229_v58 = vsub.f32 %v23500_v31, %v27960_v42  ;;  %v24001_v12 = vsub.f32 %v7250_v43, %v23982_v47 }
 0x564   :  { %15234 = vmatprep.subr.bf16.mxu0 %v27949_v37  ;;  %15276 = vmatpush3.bf16.msra.mxu1 %v23362_v29  ;;  %v27959_v29 = vand.u32 4294901760, %v23495_v7  ;;  %v9342_v37 = vand.u32 4294901760, %v9341_v41  ;;  %v27966_v41 = vld [vmem:[#allocation12_spill] sm:$0xff] }
 0x565   :  { %15278 = vmatprep.subr.bf16.mxu1 %v23371_v39 }
 0x566   :  { %v9222_v39 = vsub.f32 %v23495_v7, %v27959_v29 }
 0x567   :  { %15236 = vmatpush3.bf16.msra.mxu0 %v27951_v53  ;;  %v27961_v53 = vand.u32 4294901760, %v23505_v48 }
 0x568   :  { %15238 = vmatprep.subr.bf16.mxu0 %v27952_v45  ;;  %15280 = vmatpush3.bf16.msra.mxu1 %v23378_v30  ;;  %v27962_v30 = vand.u32 4294901760, %v23522_v24  ;;  %v9223_v42 = vand.u32 4294901760, %v9222_v39 }
 0x569   :  { %15282 = vmatprep.subr.bf16.mxu1 %v23388_v21  ;;  %v9348_v45 = vsub.f32 %v23505_v48, %v27961_v53  ;;  %v27965_v21 = vand.u32 4294901760, %v23532_v34  ;;  %v9230_v53 = vand.u32 4294901760, %v9229_v58  ;;  %v27970_v58 = vand.u32 4294901760, %v23611_v52 }
 0x56a   :  { %v9355_v11 = vsub.f32 %v23522_v24, %v27962_v30  ;;  %v27967_v30 = vand.u32 4294901760, %v23578_v9 }
 0x56b   :  { %15240 = vmatpush3.bf16.msra.mxu0 %v27957_v56  ;;  %v27963_v56 = vld [vmem:[#allocation68_spill] sm:$0xff]  ;;  %v9243_v27 = vsub.f32 %v23532_v34, %v27965_v21  ;;  %v9349_v23 = vand.u32 4294901760, %v9348_v45  ;;  %v25898_v21 = vand.u32 4294901760, %v24001_v12  ;;  %v9250_v18 = vsub.f32 %v23611_v52, %v27970_v58 }
 0x56c   :  { %15242 = vmatprep.subr.bf16.mxu0 %v27958_v35  ;;  %v27964_v35 = vand.u32 4294901760, %v23527_v59  ;;  %15284 = vmatpush3.bf16.msra.mxu1 %v23435_v54  ;;  %v9362_v43 = vsub.f32 %v23578_v9, %v27967_v30  ;;  %v9356_v50 = vand.u32 4294901760, %v9355_v11  ;;  %v27969_v54 = vld [vmem:[#allocation84_spill] sm:$0xff]  ;;  %v27971_v30 = vand.u32 4294901760, %v23616_v20 }
 0x56d   :  { %15286 = vmatprep.subr.bf16.mxu1 %v23449_v5  ;;  %v9244_v39 = vand.u32 4294901760, %v9243_v27  ;;  %v27972_v5 = vld [vmem:[#allocation87_spill] sm:$0xff]  ;;  %v9205_v58 = vsub.f32 %v24001_v12, %v25898_v21 }
 0x56e   :  { %v9236_v29 = vsub.f32 %v23527_v59, %v27964_v35  ;;  %v15321_v35 = vpack.c.bf16 %v9342_v37, %v9335_v62  ;;  %v9257_v26 = vsub.f32 %v23616_v20, %v27971_v30  ;;  %v15323_v62 = vpack.c.bf16 %v9230_v53, %v9223_v42  ;;  %v27976_v30 = vld [vmem:[#allocation88_spill] sm:$0xff] }
 0x56f   :  { %15244 = vmatpush3.bf16.msra.mxu0 %v27963_v56  ;;  %v27968_v56 = vand.u32 4294901760, %v23583_v1  ;;  %v9363_v37 = vand.u32 4294901760, %v9362_v43  ;;  %v15325_v11 = vpack.c.bf16 %v9356_v50, %v9349_v23  ;;  %v27979_v50 = vld [vmem:[#allocation41_spill] sm:$0xff] }
 0x570   :  { %15246 = vmatprep.subr.bf16.mxu0 %v27966_v41  ;;  %v9237_v41 = vand.u32 4294901760, %v9236_v29  ;;  %15288 = vmatpush3.bf16.msra.mxu1 %v23458_v16  ;;  %v27973_v29 = vand.u32 4294901760, %v23661_v28  ;;  %v27975_v16 = vld [vmem:[#allocation29_spill] sm:$0xff]  ;;  %v27980_v23 = vand.u32 4294901760, %v27979_v50  ;;  %v27988_v50 = vld [vmem:[#allocation10_spill] sm:$0xff] }
 0x571   :  { %v9369_v33 = vsub.f32 %v23583_v1, %v27968_v56  ;;  %15322 = vmatprep.subr.bf16.mxu1 %v15321_v35  ;;  %v27974_v56 = vand.u32 4294901760, %v23666_v57  ;;  %v9251_v35 = vand.u32 4294901760, %v9250_v18  ;;  %v27984_v18 = vand.u32 4294901760, %v23689_v44 }
 0x572   :  { %v9376_v27 = vsub.f32 %v23661_v28, %v27973_v29  ;;  %v15327_v42 = vpack.c.bf16 %v9244_v39, %v9237_v41  ;;  %v9271_v41 = vsub.f32 %v23677_v55, %v27982_v19  ;;  %v27983_v39 = vld [vmem:[#allocation30_spill] sm:$0xff] }
 0x573   :  { %15248 = vmatpush3.bf16.msra.mxu0 %v27969_v54  ;;  %v9370_v45 = vand.u32 4294901760, %v9369_v33  ;;  %v9383_v54 = vsub.f32 %v23666_v57, %v27974_v56  ;;  %9101 = vmatmul.mubr.f32.vlgmr.msra.gmra.mrb[58].mxu1 %v27975_v16  ;;  %v27977_v33 = vld [vmem:[#allocation26_spill] sm:$0xff]  ;;  %v27981_v56 = vand.u32 4294901760, %v23672_v0 }
 0x574   :  { %15250 = vmatprep.subr.bf16.mxu0 %v27972_v5  ;;  %v27978_v53 = vand.u32 4294901760, %v27977_v33  ;;  %v9258_v5 = vand.u32 4294901760, %v9257_v26  ;;  %15324 = vmatpush3.bf16.msra.mxu1 %v15323_v62  ;;  %v9390_v26 = vsub.f32 %v23689_v44, %v27984_v18  ;;  %v27985_v62 = vand.u32 4294901760, %v23694_v32  ;;  %v27990_v19 = vld [vmem:[#allocation14_spill] sm:$0xff] }
 0x575   :  { %9443 = vmatprep.mubr.f32.mxu1 %v23982_v47  ;;  %v15329_v29 = vpack.c.bf16 %v9370_v45, %v9363_v37  ;;  %v9264_v21 = vsub.f32 %v23672_v0, %v27981_v56  ;;  %15326 = vmatprep.subr.bf16.mxu1 %v15325_v11  ;;  %v9384_v33 = vand.u32 4294901760, %v9383_v54  ;;  %v27986_v45 = vld [vmem:[#allocation21_spill] sm:$0xff]  ;;  %v27993_v54 = vld [vmem:[#allocation27_spill] sm:$0xff]  ;;  %v27995_v18 = vand.u32 4294901760, %v23705_v15 }
 0x576   :  { %v24044_v43 = vpack.c.bf16 %v27980_v23, %v27978_v53  ;;  %v9397_v37 = vsub.f32 %v23694_v32, %v27985_v62  ;;  %v27987_v53 = vand.u32 4294901760, %v27986_v45  ;;  %v27989_v23 = vand.u32 4294901760, %v27988_v50  ;;  %v27991_v11 = vld [vmem:[#allocation25_spill] sm:$0xff] }
 0x577   :  { %15252 = vmatpush3.bf16.msra.mxu0 %v27976_v30  ;;  %v9377_v30 = vand.u32 4294901760, %v9376_v27  ;;  %v27992_v27 = vand.u32 4294901760, %v27991_v11  ;;  %v27994_v8 = vand.u32 4294901760, %v27993_v54  ;;  %v9278_v44 = vsub.f32 %v23705_v15, %v27995_v18 }
 0x578   :  { %15254 = vmatprep.subr.bf16.mxu0 %v27983_v39  ;;  %v24064_v56 = vpack.c.bf16 %v27989_v23, %v27987_v53  ;;  %v15331_v39 = vpack.c.bf16 %v9258_v5, %v9251_v35  ;;  %v27996_v62 = vand.u32 4294901760, %v23710_v61  ;;  %15328 = vmatpush3.bf16.msra.mxu1 %v15327_v42  ;;  %v9265_v53 = vand.u32 4294901760, %v9264_v21  ;;  %v27999_v42 = vld [vmem:[#allocation50_spill] sm:$0xff] }
 0x579   :  { %v24071_v47 = vpack.c.bf16 %v27994_v8, %v27992_v27  ;;  %v9272_v50 = vand.u32 4294901760, %v9271_v41  ;;  %v27997_v35 = vand.u32 4294901760, %v23822_v13  ;;  %v27998_v8 = vand.u32 4294901760, %v23827_v25  ;;  %15330 = vmatprep.subr.bf16.mxu1 %v15329_v29 }
 0x57a   :  { %v9285_v45 = vsub.f32 %v23710_v61, %v27996_v62  ;;  %v15333_v11 = vpack.c.bf16 %v9384_v33, %v9377_v30  ;;  %v9391_v27 = vand.u32 4294901760, %v9390_v26  ;;  %v9398_v54 = vand.u32 4294901760, %v9397_v37  ;;  %v28001_v62 = vld [vmem:[#allocation22_spill] sm:$0xff]  ;;  %v28005_v26 = vld [vmem:[#allocation67_spill] sm:$0xff] }
 0x57b   :  { %15256 = vmatpush3.bf16.msra.mxu0 %v27990_v19  ;;  %v9404_v5 = vsub.f32 %v23822_v13, %v27997_v35  ;;  %v9411_v23 = vsub.f32 %v23827_v25, %v27998_v8  ;;  %v9206_v19 = vand.u32 4294901760, %v9205_v58  ;;  %v28000_v18 = vand.u32 4294901760, %v27999_v42 }
 0x57c   :  { %15290 = vmatprep.subr.bf16.mxu0 %v24044_v43  ;;  %v28002_v21 = vand.u32 4294901760, %v28001_v62  ;;  %v9279_v35 = vand.u32 4294901760, %v9278_v44  ;;  %v9286_v13 = vand.u32 4294901760, %v9285_v45  ;;  %v28003_v8 = vand.u32 4294901760, %v23839_v2  ;;  %15332 = vmatpush3.bf16.msra.mxu1 %v15331_v39  ;;  %v28007_v44 = vld [vmem:[#allocation49_spill] sm:$0xff] }
 0x57d   :  { %v28004_v29 = vand.u32 4294901760, %v23844_v46  ;;  %v15335_v33 = vpack.c.bf16 %v9272_v50, %v9265_v53  ;;  %v28006_v37 = vand.u32 4294901760, %v28005_v26  ;;  %v28008_v45 = vand.u32 4294901760, %v28007_v44  ;;  %15334 = vmatprep.subr.bf16.mxu1 %v15333_v11 }
 0x57e   :  { %8997 = vmatmul.mubr.f32.vlgmr.msra.gmra.mrb[58].mxu0 %v27975_v16  ;;  %v24091_v41 = vpack.c.bf16 %v28002_v21, %v28000_v18  ;;  %v9292_v58 = vsub.f32 %v23839_v2, %v28003_v8  ;;  %v7241_v16 = vld [vmem:[%s25147_s3 + $0x20] sm:$0xff]  ;;  %v9405_v42 = vand.u32 4294901760, %v9404_v5  ;;  %v9412_v18 = vand.u32 4294901760, %v9411_v23  ;;  %v28014_v23 = vld [vmem:[#allocation19_spill] sm:$0xff] }
 0x57f   :  { %15292 = vmatpush3.bf16.msra.mxu0 %v24064_v56  ;;  %9207 = vmatprep.mubr.f32.mxu0 %v9206_v19  ;;  %v9299_v30 = vsub.f32 %v23844_v46, %v28004_v29  ;;  %v24108_v19 = vpack.c.bf16 %v28008_v45, %v28006_v37  ;;  %v15337_v62 = vpack.c.bf16 %v9398_v54, %v9391_v27  ;;  %v28010_v21 = vand.u32 4294901760, %v23851_v60  ;;  %v28016_v27 = vld [vmem:[#allocation18_spill] sm:$0xff] }
 0x580   :  { %15294 = vmatprep.subr.bf16.mxu0 %v24071_v47  ;;  %v28011_v29 = vand.u32 4294901760, %v23856_v3  ;;  %v28012_v53 = vand.u32 4294901760, %v23510_v6  ;;  %v28013_v50 = vand.u32 4294901760, %v23515_v40  ;;  %v7249_v37 = vmul.f32 %v7241_v16, %v27950_v51  ;;  %15336 = vmatpush3.bf16.msra.mxu1 %v15335_v33 }
 0x581   :  { %28009 = vst [vmem:[#allocation74_spill] sm:$0xff] %v24108_v19  ;;  %v9418_v8 = vsub.f32 %v23851_v60, %v28010_v21  ;;  %v15339_v5 = vpack.c.bf16 %v9286_v13, %v9279_v35  ;;  %v28015_v11 = vand.u32 4294901760, %v28014_v23  ;;  %v28017_v54 = vand.u32 4294901760, %v28016_v27  ;;  %15338 = vmatprep.subr.bf16.mxu1 %v15337_v62  ;;  %v28024_v23 = vld [vmem:[#allocation9_spill] sm:$0xff]  ;;  %v28026_v62 = vld [vmem:[#allocation28_spill] sm:$0xff] }
 0x582   :  { %v9425_v39 = vsub.f32 %v23856_v3, %v28011_v29  ;;  %v24120_v26 = vpack.c.bf16 %v28013_v50, %v28012_v53  ;;  %v9293_v45 = vand.u32 4294901760, %v9292_v58  ;;  %v9300_v21 = vand.u32 4294901760, %v9299_v30 }
 0x583   :  { %15296 = vmatpush3.bf16.msra.mxu0 %v24091_v41  ;;  %v24128_v44 = vpack.c.bf16 %v28017_v54, %v28015_v11  ;;  %v15341_v6 = vpack.c.bf16 %v9412_v18, %v9405_v42  ;;  %v28018_v40 = vand.u32 4294901760, %v23866_v63  ;;  %v28019_v16 = vand.u32 4294901760, %v23876_v17  ;;  %v28022_v42 = vld [vmem:[#allocation40_spill] sm:$0xff] }
 0x584   :  { %15298 = vmatprep.subr.bf16.mxu0 %v24108_v19  ;;  %v9419_v35 = vand.u32 4294901760, %v9418_v8  ;;  %v9426_v53 = vand.u32 4294901760, %v9425_v39  ;;  %v28020_v50 = vand.u32 4294901760, %v23883_v4  ;;  %v28021_v30 = vand.u32 4294901760, %v23888_v22  ;;  %v28028_v39 = vld [vmem:[#allocation33_spill] sm:$0xff]  ;;  %15340 = vmatpush3.bf16.msra.mxu1 %v15339_v5 }
 0x585   :  { %v9306_v29 = vsub.f32 %v23866_v63, %v28018_v40  ;;  %v9313_v13 = vsub.f32 %v23876_v17, %v28019_v16  ;;  %v28023_v18 = vand.u32 4294901760, %v28022_v42  ;;  %v28025_v11 = vand.u32 4294901760, %v28024_v23  ;;  %15342 = vmatprep.subr.bf16.mxu1 %v15341_v6 }
 0x586   :  { %v9432_v58 = vsub.f32 %v23883_v4, %v28020_v50  ;;  %v9439_v33 = vsub.f32 %v23888_v22, %v28021_v30  ;;  %v15343_v54 = vpack.c.bf16 %v9300_v21, %v9293_v45  ;;  %v28027_v8 = vand.u32 4294901760, %v28026_v62  ;;  %v28065_v4 = vld [vmem:[#allocation36_spill] sm:$0xff] }
 0x587   :  { %15300 = vmatpush3.bf16.msra.mxu0 %v24120_v26  ;;  %v24148_v27 = vpack.c.bf16 %v28025_v11, %v28023_v18  ;;  %v28029_v40 = vand.u32 4294901760, %v28028_v39  ;;  %v24156_v50 = vand.u32 4294901760, %v7249_v37  ;;  %v9307_v30 = vand.u32 4294901760, %v9306_v29  ;;  %v28035_v39 = vld [vmem:[#allocation58_spill] sm:$0xff] }
 0x588   :  { %15302 = vmatprep.subr.bf16.mxu0 %v24128_v44  ;;  %v9314_v51 = vand.u32 4294901760, %v9313_v13  ;;  %v28031_v42 = vand.u32 4294901760, %v23895_v49  ;;  %v28032_v18 = vand.u32 4294901760, %v23900_v14  ;;  %v15345_v21 = vpack.c.bf16 %v9426_v53, %v9419_v35  ;;  %15344 = vmatpush3.bf16.msra.mxu1 %v15343_v54  ;;  %v28040_v35 = vld [vmem:[#allocation45_spill] sm:$0xff] }
 0x589   :  { %v24154_v16 = vpack.c.bf16 %v28029_v40, %v28027_v8  ;;  %28030 = vst [vmem:[#allocation75_spill] sm:$0xff] %v24156_v50  ;;  %v9433_v11 = vand.u32 4294901760, %v9432_v58  ;;  %v9440_v62 = vand.u32 4294901760, %v9439_v33  ;;  %v28033_v8 = vld [vmem:[#allocation35_spill] sm:$0xff]  ;;  %v28036_v40 = vand.u32 4294901760, %v28035_v39 }
 0x58a   :  { %v9320_v23 = vsub.f32 %v23895_v49, %v28031_v42  ;;  %v9327_v45 = vsub.f32 %v23900_v14, %v28032_v18  ;;  %v28034_v5 = vand.u32 4294901760, %v28033_v8  ;;  %v24173_v13 = vsub.f32 %v7249_v37, %v24156_v50  ;;  %v28038_v18 = vld [vmem:[#allocation17_spill] sm:$0xff]  ;;  %15346 = vmatprep.subr.bf16.mxu1 %v15345_v21  ;;  %v28043_v37 = vld [vmem:[#allocation70_spill] sm:$0xff] }
 0x58b   :  { %15304 = vmatpush3.bf16.msra.mxu0 %v24148_v27  ;;  %v15347_v42 = vpack.c.bf16 %v9314_v51, %v9307_v30  ;;  %v28039_v6 = vand.u32 4294901760, %v28038_v18  ;;  %v28041_v53 = vand.u32 4294901760, %v28040_v35  ;;  %v15349_v8 = vpack.c.bf16 %v9440_v62, %v9433_v11  ;;  %v28045_v30 = vld [vmem:[#allocation53_spill] sm:$0xff]  ;;  %v24220_v62 = vld [vmem:[%s25150_s6 + $0x390] sm:$0xff] }
 0x58c   :  { %v24170_v29 = vpack.c.bf16 %v28036_v40, %v28034_v5  ;;  %28037 = vst [vmem:[#allocation81_spill] sm:$0xff] %v24173_v13  ;;  %15306 = vmatprep.subr.bf16.mxu0 %v24154_v16  ;;  %v9321_v33 = vand.u32 4294901760, %v9320_v23  ;;  %v9328_v14 = vand.u32 4294901760, %v9327_v45  ;;  %v28042_v5 = vand.u32 4294901760, %v23731_v36  ;;  %v28047_v18 = vld [vmem:[#allocation57_spill] sm:$0xff]  ;;  %v24200_v36 = vld [vmem:[%s25150_s6 + $0x380] sm:$0xff] }
 0x58d   :  { %v24180_v58 = vpack.c.bf16 %v28041_v53, %v28039_v6  ;;  %v28044_v39 = vand.u32 4294901760, %v28043_v37  ;;  %15348 = vmatpush3.bf16.msra.mxu1 %v15347_v42  ;;  %v28046_v40 = vand.u32 4294901760, %v28045_v30  ;;  %v28048_v6 = vand.u32 4294901760, %v28047_v18  ;;  %28049 = vst [vmem:[#allocation82_spill] sm:$0xff] %v24200_v36  ;;  %v24205_v21 = vld [vmem:[%s25150_s6 + $0x388] sm:$0xff]  ;;  %28053 = vst [vmem:[#allocation85_spill] sm:$0xff] %v24220_v62 }
 0x58e   :  { %v15351_v51 = vpack.c.bf16 %v9328_v14, %v9321_v33  ;;  %v25908_v45 = vand.u32 4294901760, %v24173_v13  ;;  %28050 = vst [vmem:[#allocation69_spill] sm:$0xff] %v24205_v21  ;;  %v24210_v14 = vld [vmem:[%s25150_s6 + $0x300] sm:$0xff]  ;;  %15350 = vmatprep.subr.bf16.mxu1 %v15349_v8  ;;  %v24215_v11 = vld [vmem:[%s25150_s6 + $0x308] sm:$0xff]  ;;  %v24225_v42 = vld [vmem:[%s25150_s6 + $0x398] sm:$0xff] }
 0x58f   :  { %15308 = vmatpush3.bf16.msra.mxu0 %v24170_v29  ;;  %v24187_v54 = vpack.c.bf16 %v28044_v39, %v28042_v5  ;;  %v24194_v23 = vpack.c.bf16 %v28048_v6, %v28046_v40  ;;  %28051 = vst [vmem:[#allocation43_spill] sm:$0xff] %v24210_v14  ;;  %28052 = vst [vmem:[#allocation38_spill] sm:$0xff] %v24215_v11  ;;  %v24230_v35 = vld [vmem:[%s25150_s6 + $0x310] sm:$0xff]  ;;  %v24235_v53 = vld [vmem:[%s25150_s6 + $0x318] sm:$0xff]  ;;  %v28078_v22 = vand.u32 4294901760, %v24215_v11 }
 0x590   :  { %15310 = vmatprep.subr.bf16.mxu0 %v24180_v58  ;;  %28054 = vst [vmem:[#allocation86_spill] sm:$0xff] %v24225_v42  ;;  %28055 = vst [vmem:[#allocation13_spill] sm:$0xff] %v24230_v35  ;;  %v28057_v33 = vld [vmem:[#allocation7_spill] sm:$0xff]  ;;  %v28059_v5 = vld [vmem:[#allocation56_spill] sm:$0xff]  ;;  %v9211_v6 = vsub.f32 %v24173_v13, %v25908_v45  ;;  %v28066_v45 = vand.u32 4294901760, %v28065_v4  ;;  %v28071_v4 = vand.u32 4294901760, %v24200_v36 }
 0x591   :  { %28056 = vst [vmem:[#allocation24_spill] sm:$0xff] %v24235_v53  ;;  %v28058_v8 = vand.u32 4294901760, %v28057_v33  ;;  %v28060_v37 = vand.u32 4294901760, %v28059_v5  ;;  %15352 = vmatpush3.bf16.msra.mxu1 %v15351_v51  ;;  %v25916_v33 = vand.u32 4294901760, %v24220_v62  ;;  %v28061_v5 = vld [vmem:[#allocation44_spill] sm:$0xff]  ;;  %v28063_v40 = vld [vmem:[#allocation37_spill] sm:$0xff] }
 0x592   :  { %15386 = vmatprep.subr.bf16.mxu1 %v24044_v43  ;;  %v28064_v30 = vand.u32 4294901760, %v28063_v40  ;;  %v28067_v13 = vld [vmem:[#allocation59_spill] sm:$0xff]  ;;  %v24301_v40 = vld [vmem:[%s25150_s6 + $0x320] sm:$0xff] }
 0x593   :  { %15312 = vmatpush3.bf16.msra.mxu0 %v24187_v54  ;;  %v24242_v39 = vpack.c.bf16 %v28060_v37, %v28058_v8  ;;  %v28062_v37 = vand.u32 4294901760, %v28061_v5  ;;  %v28068_v49 = vand.u32 4294901760, %v28067_v13  ;;  %v15353_v8 = vpack.c.bf16 %v27954_v10, %v23472_v38  ;;  %v24274_v5 = vld [vmem:[%s25150_s6 + $0x3a0] sm:$0xff]  ;;  %28075 = vst [vmem:[#allocation48_spill] sm:$0xff] %v24301_v40 }
 0x594   :  { %15314 = vmatprep.subr.bf16.mxu0 %v24194_v23  ;;  %28069 = vst [vmem:[#allocation6_spill] sm:$0xff] %v24274_v5  ;;  %9445 = vmatmul.mubr.f32.vlgmr.msra.gmra.mrb[60].mxu1 %v24156_v50  ;;  %v28073_v38 = vand.u32 4294901760, %v24205_v21  ;;  %v28074_v13 = vand.u32 4294901760, %v24210_v14  ;;  %v24319_v51 = vsub.f32 %v24220_v62, %v25916_v33  ;;  %v24371_v62 = vld [vmem:[%s25150_s6 + $0x330] sm:$0xff] }
 0x595   :  { %v24259_v18 = vpack.c.bf16 %v28064_v30, %v28062_v37  ;;  %v24267_v17 = vpack.c.bf16 %v28068_v49, %v28066_v45  ;;  %v24279_v30 = vld [vmem:[%s25150_s6 + $0x3a8] sm:$0xff]  ;;  %v24286_v49 = vsub.f32 %v24200_v36, %v28071_v4  ;;  %15388 = vmatpush3.bf16.msra.mxu1 %v24064_v56  ;;  %v28077_v4 = vand.u32 4294901760, %v24001_v12  ;;  %28084 = vst [vmem:[#allocation8_spill] sm:$0xff] %v24371_v62 }
 0x596   :  { %28070 = vst [vmem:[#allocation34_spill] sm:$0xff] %v24279_v30  ;;  %v24291_v10 = vsub.f32 %v24205_v21, %v28073_v38  ;;  %v24296_v45 = vsub.f32 %v24210_v14, %v28074_v13  ;;  %v24306_v37 = vld [vmem:[%s25150_s6 + $0x328] sm:$0xff]  ;;  %v9212_v38 = vand.u32 4294901760, %v9211_v6  ;;  %v24314_v13 = vsub.f32 %v24215_v11, %v28078_v22  ;;  %15390 = vmatprep.subr.bf16.mxu1 %v24071_v47 }
 0x597   :  { %15316 = vmatpush3.bf16.msra.mxu0 %v24242_v39  ;;  %28072 = vst [vmem:[#allocation46_spill] sm:$0xff] %v24286_v49  ;;  %28076 = vst [vmem:[#allocation66_spill] sm:$0xff] %v24306_v37  ;;  %9687 = vmatprep.mubr.f32.mxu1 %v28077_v4  ;;  %v28079_v14 = vand.u32 4294901760, %v24225_v42  ;;  %v28080_v6 = vand.u32 4294901760, %v24230_v35  ;;  %v28081_v22 = vand.u32 4294901760, %v24235_v53  ;;  %v25922_v21 = vand.u32 4294901760, %v24301_v40 }
 0x598   :  { %15318 = vmatprep.subr.bf16.mxu0 %v24259_v18 }
 0x599   :  { %v24324_v50 = vsub.f32 %v24225_v42, %v28079_v14  ;;  %v24331_v4 = vsub.f32 %v24230_v35, %v28080_v6  ;;  %v24336_v11 = vsub.f32 %v24235_v53, %v28081_v22  ;;  %v15355_v14 = vpack.c.bf16 %v23500_v31, %v23495_v7  ;;  %v24355_v7 = vld [vmem:[%s25150_s6 + $0x3b0] sm:$0xff]  ;;  %15392 = vmatpush3.bf16.msra.mxu1 %v24091_v41  ;;  %v24394_v53 = vld [vmem:[%s25150_s6 + $0x3c0] sm:$0xff] }
 0x59a   :  { %v15357_v42 = vpack.c.bf16 %v23522_v24, %v23505_v48  ;;  %v25925_v6 = vand.u32 4294901760, %v24306_v37  ;;  %v15359_v22 = vpack.c.bf16 %v23532_v34, %v23527_v59  ;;  %28082 = vst [vmem:[#allocation80_spill] sm:$0xff] %v24355_v7  ;;  %v15361_v48 = vpack.c.bf16 %v23583_v1, %v23578_v9  ;;  %v24366_v59 = vld [vmem:[%s25150_s6 + $0x3b8] sm:$0xff]  ;;  %15394 = vmatprep.subr.bf16.mxu1 %v24108_v19  ;;  %v24399_v9 = vld [vmem:[%s25150_s6 + $0x3c8] sm:$0xff] }
 0x59b   :  { %15320 = vmatpush3.bf16.msra.mxu0 %v24267_v17  ;;  %28083 = vst [vmem:[#allocation39_spill] sm:$0xff] %v24366_v59  ;;  %v24376_v1 = vld [vmem:[%s25150_s6 + $0x338] sm:$0xff]  ;;  %v28086_v24 = vand.u32 4294901760, %v24274_v5  ;;  %v28087_v31 = vand.u32 4294901760, %v24279_v30  ;;  %28089 = vst [vmem:[#allocation83_spill] sm:$0xff] %v24394_v53  ;;  %v25932_v35 = vand.u32 4294901760, %v24355_v7 }
 0x59c   :  { %15354 = vmatprep.subr.bf16.mxu0 %v15353_v8  ;;  %28085 = vst [vmem:[#allocation31_spill] sm:$0xff] %v24376_v1  ;;  %28090 = vst [vmem:[#allocation68_spill] sm:$0xff] %v24399_v9  ;;  %v24414_v8 = vld [vmem:[%s25150_s6 + $0x340] sm:$0xff] }
 0x59d   :  { %v24384_v34 = vsub.f32 %v24274_v5, %v28086_v24  ;;  %v24389_v33 = vsub.f32 %v24279_v30, %v28087_v31  ;;  %v24404_v24 = vsub.f32 %v24301_v40, %v25922_v21  ;;  %v24409_v31 = vsub.f32 %v24306_v37, %v25925_v6  ;;  %28092 = vst [vmem:[#allocation84_spill] sm:$0xff] %v24414_v8  ;;  %v24419_v30 = vld [vmem:[%s25150_s6 + $0x348] sm:$0xff] }
 0x59e   :  { %9213 = vmatmul.mubr.f32.vlgmr.msra.gmra.mrb[60].mxu0 %v9212_v38  ;;  %28093 = vst [vmem:[#allocation87_spill] sm:$0xff] %v24419_v30  ;;  %v28094_v38 = vand.u32 4294901760, %v24286_v49  ;;  %v28095_v21 = vand.u32 4294901760, %v24291_v10  ;;  %v28097_v5 = vand.u32 4294901760, %v24296_v45  ;;  %v28098_v6 = vand.u32 4294901760, %v24314_v13  ;;  %15396 = vmatpush3.bf16.msra.mxu1 %v24120_v26 }
 0x59f   :  { %28088 = vst [vmem:[#allocation61_spill] sm:$0xff] %v24389_v33  ;;  %28091 = vst [vmem:[#allocation12_spill] sm:$0xff] %v24409_v31  ;;  %15356 = vmatpush3.bf16.msra.mxu0 %v15355_v14  ;;  %9580 = vmatprep.mubr.f32.mxu0 %v24001_v12  ;;  %v28100_v12 = vand.u32 4294901760, %v24319_v51  ;;  %v15365_v49 = vpack.c.bf16 %v23666_v57, %v23661_v28  ;;  %v24467_v28 = vsub.f32 %v24355_v7, %v25932_v35  ;;  %v24600_v7 = vld [vmem:[%s25150_s6 + $0x370] sm:$0xff] }
 0x5a0   :  { %v24425_v40 = vpack.c.bf16 %v28095_v21, %v28094_v38  ;;  %v24431_v37 = vpack.c.bf16 %v28098_v6, %v28097_v5  ;;  %15358 = vmatprep.subr.bf16.mxu0 %v15357_v42  ;;  %v15363_v21 = vpack.c.bf16 %v23616_v20, %v23611_v52  ;;  %v28101_v6 = vand.u32 4294901760, %v24324_v50  ;;  %15398 = vmatprep.subr.bf16.mxu1 %v24128_v44 }
 0x5a1   :  { %v28103_v52 = vand.u32 4294901760, %v24331_v4  ;;  %v28104_v20 = vand.u32 4294901760, %v24336_v11  ;;  %v25934_v5 = vand.u32 4294901760, %v24384_v34  ;;  %v28106_v57 = vand.u32 4294901760, %v24366_v59  ;;  %28127 = vst [vmem:[#allocation19_spill] sm:$0xff] %v24600_v7 }
 0x5a2   :  { %28096 = vst [vmem:[#allocation29_spill] sm:$0xff] %v24425_v40  ;;  %28099 = vst [vmem:[#allocation88_spill] sm:$0xff] %v24431_v37  ;;  %v24447_v38 = vpack.c.bf16 %v28101_v6, %v28100_v12  ;;  %v25933_v12 = vand.u32 4294901760, %v24389_v33  ;;  %v28108_v6 = vand.u32 4294901760, %v24376_v1  ;;  %15400 = vmatpush3.bf16.msra.mxu1 %v24148_v27  ;;  %v24566_v40 = vld [vmem:[%s25150_s6 + $0x360] sm:$0xff] }
 0x5a3   :  { %v24458_v14 = vpack.c.bf16 %v28104_v20, %v28103_v52  ;;  %15360 = vmatpush3.bf16.msra.mxu0 %v15359_v22  ;;  %v24472_v19 = vsub.f32 %v24366_v59, %v28106_v57  ;;  %v28107_v52 = vand.u32 4294901760, %v24371_v62  ;;  %v28109_v22 = vand.u32 4294901760, %v24394_v53  ;;  %15402 = vmatprep.subr.bf16.mxu1 %v24154_v16  ;;  %28123 = vst [vmem:[#allocation50_spill] sm:$0xff] %v24566_v40 }
 0x5a4   :  { %28102 = vst [vmem:[#allocation26_spill] sm:$0xff] %v24447_v38  ;;  %v24482_v36 = vsub.f32 %v24376_v1, %v28108_v6  ;;  %15362 = vmatprep.subr.bf16.mxu0 %v15361_v48  ;;  %v28110_v57 = vand.u32 4294901760, %v24399_v9  ;;  %v28112_v48 = vand.u32 4294901760, %v24414_v8  ;;  %v28115_v38 = vand.u32 4294901760, %v24409_v31 }
 0x5a5   :  { %28105 = vst [vmem:[#allocation41_spill] sm:$0xff] %v24458_v14  ;;  %v24477_v20 = vsub.f32 %v24371_v62, %v28107_v52  ;;  %v24488_v35 = vsub.f32 %v24394_v53, %v28109_v22  ;;  %v24499_v52 = vpack.c.bf16 %v25933_v12, %v25934_v5  ;;  %v28113_v22 = vand.u32 4294901760, %v24419_v30  ;;  %v28117_v5 = vld [vmem:[#allocation73_spill] sm:$0xff]  ;;  %v24605_v62 = vld [vmem:[%s25150_s6 + $0x378] sm:$0xff] }
 0x5a6   :  { %v24493_v42 = vsub.f32 %v24399_v9, %v28110_v57  ;;  %v24505_v6 = vsub.f32 %v24414_v8, %v28112_v48  ;;  %v28114_v57 = vand.u32 4294901760, %v24404_v24  ;;  %v15367_v12 = vpack.c.bf16 %v23677_v55, %v23672_v0  ;;  %v24525_v48 = vld [vmem:[%s25150_s6 + $0x3d0] sm:$0xff]  ;;  %15404 = vmatpush3.bf16.msra.mxu1 %v24170_v29  ;;  %v24586_v8 = vld [vmem:[%s25150_s6 + $0x3f8] sm:$0xff]  ;;  %28128 = vst [vmem:[#allocation18_spill] sm:$0xff] %v24605_v62 }
 0x5a7   :  { %28111 = vst [vmem:[#allocation30_spill] sm:$0xff] %v24499_v52  ;;  %v24510_v14 = vsub.f32 %v24419_v30, %v28113_v22  ;;  %v15369_v52 = vpack.c.bf16 %v23694_v32, %v28117_v5  ;;  %v24530_v22 = vld [vmem:[%s25150_s6 + $0x3d8] sm:$0xff]  ;;  %15364 = vmatpush3.bf16.msra.mxu0 %v15363_v21  ;;  %v15371_v55 = vpack.c.bf16 %v23710_v61, %v23705_v15  ;;  %v24555_v15 = vld [vmem:[%s25150_s6 + $0x3e8] sm:$0xff]  ;;  %v28122_v61 = vld [vmem:[#allocation62_spill] sm:$0xff]  ;;  %v28132_v5 = vand.u32 4294901760, %v24477_v20 }
 0x5a8   :  { %v24516_v37 = vpack.c.bf16 %v28115_v38, %v28114_v57  ;;  %v24535_v38 = vld [vmem:[%s25150_s6 + $0x350] sm:$0xff]  ;;  %v24545_v57 = vld [vmem:[%s25150_s6 + $0x358] sm:$0xff]  ;;  %28121 = vst [vmem:[#allocation27_spill] sm:$0xff] %v24555_v15  ;;  %15366 = vmatprep.subr.bf16.mxu0 %v15365_v49  ;;  %v15373_v21 = vpack.c.bf16 %v23827_v25, %v28122_v61  ;;  %v24571_v30 = vld [vmem:[%s25150_s6 + $0x368] sm:$0xff]  ;;  %v12596_v49 = vpop.f32.mrb[48].mxu1  ;;  %15406 = vmatprep.subr.bf16.mxu1 %v24180_v58  ;;  %v28133_v32 = vand.u32 4294901760, %v24482_v36 }
 0x5a9   :  { %28118 = vst [vmem:[#allocation10_spill] sm:$0xff] %v24535_v38  ;;  %28119 = vst [vmem:[#allocation14_spill] sm:$0xff] %v24545_v57  ;;  %v24576_v25 = vld [vmem:[%s25150_s6 + $0x3f0] sm:$0xff]  ;;  %v12597_v9 = vpop.f32.mrb[49].mxu1  ;;  %v28135_v1 = vand.u32 4294901760, %v24488_v35  ;;  %v28136_v53 = vand.u32 4294901760, %v24493_v42 }
 0x5aa   :  { %28116 = vst [vmem:[#allocation21_spill] sm:$0xff] %v24516_v37  ;;  %v24550_v37 = vld [vmem:[%s25150_s6 + $0x3e0] sm:$0xff]  ;;  %28124 = vst [vmem:[#allocation22_spill] sm:$0xff] %v24571_v30  ;;  %v24592_v59 = vadd.f32 %v12597_v9, %v12596_v49  ;;  %15408 = vmatpush3.bf16.msra.mxu1 %v24187_v54  ;;  %v28130_v49 = vand.u32 4294901760, %v24472_v19  ;;  %v24619_v61 = vpack.c.bf16 %v28133_v32, %v28132_v5  ;;  %v28140_v32 = vand.u32 4294901760, %v24505_v6 }
 0x5ab   :  { %28120 = vst [vmem:[#allocation25_spill] sm:$0xff] %v24550_v37  ;;  %28125 = vst [vmem:[#allocation67_spill] sm:$0xff] %v24576_v25  ;;  %15368 = vmatpush3.bf16.msra.mxu0 %v15367_v12  ;;  %v28129_v12 = vand.u32 4294901760, %v24467_v28  ;;  %v24625_v31 = vpack.c.bf16 %v28136_v53, %v28135_v1  ;;  %15410 = vmatprep.subr.bf16.mxu1 %v24194_v23  ;;  %v28141_v5 = vand.u32 4294901760, %v24510_v14  ;;  %v28143_v53 = vand.u32 4294901760, %v24530_v22 }
 0x5ac   :  { %28126 = vst [vmem:[#allocation49_spill] sm:$0xff] %v24586_v8  ;;  %15370 = vmatprep.subr.bf16.mxu0 %v15369_v52  ;;  %28134 = vst [vmem:[#allocation9_spill] sm:$0xff] %v24619_v61  ;;  %v15375_v52 = vpack.c.bf16 %v23844_v46, %v23839_v2  ;;  %v28144_v46 = vand.u32 4294901760, %v24535_v38 }
 0x5ad   :  { %v24613_v0 = vpack.c.bf16 %v28130_v49, %v28129_v12  ;;  %28137 = vst [vmem:[#allocation28_spill] sm:$0xff] %v24625_v31  ;;  %v15377_v12 = vpack.c.bf16 %v23856_v3, %v23851_v60  ;;  %v28138_v49 = vand.u32 4294901760, %v24525_v48  ;;  %v24641_v61 = vpack.c.bf16 %v28141_v5, %v28140_v32 }
 0x5ae   :  { %v24646_v1 = vsub.f32 %v24530_v22, %v28143_v53  ;;  %v24651_v2 = vsub.f32 %v24535_v38, %v28144_v46  ;;  %v28147_v5 = vand.u32 4294901760, %v24550_v37  ;;  %v28149_v60 = vand.u32 4294901760, %v24566_v40  ;;  %15412 = vmatpush3.bf16.msra.mxu1 %v24242_v39 }
 0x5af   :  { %28131 = vst [vmem:[#allocation40_spill] sm:$0xff] %v24613_v0  ;;  %v24635_v9 = vsub.f32 %v24525_v48, %v28138_v49  ;;  %28142 = vst [vmem:[#allocation35_spill] sm:$0xff] %v24641_v61  ;;  %15372 = vmatpush3.bf16.msra.mxu0 %v15371_v55  ;;  %v28145_v49 = vand.u32 4294901760, %v24545_v57  ;;  %v28148_v61 = vand.u32 4294901760, %v24555_v15  ;;  %v28150_v55 = vand.u32 4294901760, %v24571_v30  ;;  %15414 = vmatprep.subr.bf16.mxu1 %v24259_v18 }
 0x5b0   :  { %v24663_v53 = vsub.f32 %v24550_v37, %v28147_v5  ;;  %v24673_v3 = vsub.f32 %v24566_v40, %v28149_v60  ;;  %15374 = vmatprep.subr.bf16.mxu0 %v15373_v21  ;;  %v28152_v5 = vand.u32 4294901760, %v24576_v25  ;;  %v12561_v60 = vpop.f32.mrb[48].mxu0  ;;  %v28155_v21 = vld [vmem:[#allocation11_spill] sm:$0xff] }
 0x5b1   :  { %28139 = vst [vmem:[#allocation33_spill] sm:$0xff] %v24635_v9  ;;  %v24658_v32 = vsub.f32 %v24545_v57, %v28145_v49  ;;  %v24668_v46 = vsub.f32 %v24555_v15, %v28148_v61  ;;  %v24679_v49 = vsub.f32 %v24571_v30, %v28150_v55  ;;  %v28153_v61 = vand.u32 4294901760, %v24586_v8  ;;  %v28156_v15 = vld [vmem:[#allocation65_spill] sm:$0xff]  ;;  %v28157_v37 = vld [vmem:[#allocation15_spill] sm:$0xff] }
 0x5b2   :  { %v24684_v31 = vsub.f32 %v24576_v25, %v28152_v5  ;;  %v15379_v40 = vpack.c.bf16 %v28155_v21, %v23866_v63  ;;  %v15381_v55 = vpack.c.bf16 %v28157_v37, %v28156_v15  ;;  %v7381_v5 = vld [vmem:[%s25148_s4] sm:$0xff]  ;;  %v12562_v25 = vpop.f32.mrb[49].mxu0  ;;  %v28160_v63 = vand.u32 4294901760, %v24605_v62  ;;  %15416 = vmatpush3.bf16.msra.mxu1 %v24267_v17 }
 0x5b3   :  { %28146 = vst [vmem:[#allocation58_spill] sm:$0xff] %v24658_v32  ;;  %28151 = vst [vmem:[#allocation17_spill] sm:$0xff] %v24679_v49  ;;  %v24689_v0 = vsub.f32 %v24586_v8, %v28153_v61  ;;  %v28158_v8 = vand.u32 4294901760, %v24600_v7  ;;  %v12563_v15 = vadd.f32 %v12562_v25, %v12561_v60  ;;  %15376 = vmatpush3.bf16.msra.mxu0 %v15375_v52  ;;  %v25955_v21 = vand.u32 4294901760, %v24658_v32 }
 0x5b4   :  { %v24710_v37 = vsub.f32 %v24605_v62, %v28160_v63  ;;  %v25956_v30 = vand.u32 4294901760, %v24663_v53  ;;  %15378 = vmatprep.subr.bf16.mxu0 %v15377_v12  ;;  %15450 = vmatprep.subr.bf16.mxu1 %v24044_v43  ;;  %v28161_v25 = vand.u32 4294901760, %v24635_v9  ;;  %v28162_v52 = vand.u32 4294901760, %v24646_v1  ;;  %v28169_v43 = vld [vmem:[#allocation63_spill] sm:$0xff] }
 0x5b5   :  { %28154 = vst [vmem:[#allocation45_spill] sm:$0xff] %v24689_v0  ;;  %v24705_v38 = vsub.f32 %v24600_v7, %v28158_v8  ;;  %v7491_v62 = vadd.f32 %v12563_v15, %v7381_v5  ;;  %v28164_v57 = vand.u32 4294901760, %v24651_v2  ;;  %v28166_v7 = vand.u32 4294901760, %v24668_v46  ;;  %v28168_v5 = vld [vmem:[#allocation16_spill] sm:$0xff] }
 0x5b6   :  { %v24725_v60 = vpack.c.bf16 %v28162_v52, %v28161_v25  ;;  %v15383_v15 = vpack.c.bf16 %v28169_v43, %v28168_v5  ;;  %v28170_v52 = vld [vmem:[#allocation81_spill] sm:$0xff]  ;;  %v28176_v5 = vand.u32 4294901760, %v24689_v0  ;;  %v28178_v25 = vld [vmem:[#allocation72_spill] sm:$0xff] }
 0x5b7   :  { %28159 = vst [vmem:[#allocation70_spill] sm:$0xff] %v24705_v38  ;;  %v24731_v12 = vpack.c.bf16 %v25955_v21, %v28164_v57  ;;  %v24737_v63 = vpack.c.bf16 %v28166_v7, %v25956_v30  ;;  %v25957_v8 = vand.u32 4294901760, %v24705_v38  ;;  %v28171_v61 = vand.u32 4294901760, %v28170_v52  ;;  %15380 = vmatpush3.bf16.msra.mxu0 %v15379_v40 }
 0x5b8   :  { %28163 = vst [vmem:[#allocation53_spill] sm:$0xff] %v24725_v60  ;;  %v24746_v57 = vadd.f32 %v24592_v59, %v7491_v62  ;;  %v28172_v21 = vand.u32 4294901760, %v24673_v3  ;;  %v28175_v30 = vand.u32 4294901760, %v24684_v31  ;;  %v28179_v62 = vand.u32 4294901760, %v24710_v37  ;;  %15382 = vmatprep.subr.bf16.mxu0 %v15381_v55  ;;  %v28181_v59 = vld [vmem:[#allocation5_spill] sm:$0xff]  ;;  %v28186_v55 = vld [vmem:[#allocation55_spill] sm:$0xff] }
 0x5b9   :  { %28165 = vst [vmem:[#allocation57_spill] sm:$0xff] %v24731_v12  ;;  %28167 = vst [vmem:[#allocation7_spill] sm:$0xff] %v24737_v63  ;;  %9691 = vmatmul.mubr.f32.vlgmr.msra.gmra.mrb[62].mxu1 %v28171_v61  ;;  %v28173_v12 = vand.u32 4294901760, %v24679_v49  ;;  %v28184_v61 = vld [vmem:[#allocation52_spill] sm:$0xff] }
 0x5ba   :  { %v24758_v43 = vpack.c.bf16 %v28176_v5, %v28175_v30  ;;  %15452 = vmatpush3.bf16.msra.mxu1 %v24064_v56  ;;  %9961 = vmatprep.mubr.f32.mxu1 %v28178_v25  ;;  %v24766_v40 = vpack.c.bf16 %v28179_v62, %v25957_v8  ;;  %v28182_v30 = vld [vmem:[#allocation74_spill] sm:$0xff]  ;;  %v28183_v56 = vld [vmem:[#allocation64_spill] sm:$0xff] }
 0x5bb   :  { %v24752_v7 = vpack.c.bf16 %v28173_v12, %v28172_v21  ;;  %15454 = vmatprep.subr.bf16.mxu1 %v24071_v47  ;;  %15384 = vmatpush3.bf16.msra.mxu0 %v15383_v15  ;;  %v28185_v47 = vld [vmem:[#allocation54_spill] sm:$0xff]  ;;  %v28187_v21 = vld [vmem:[#allocation32_spill] sm:$0xff] }
 0x5bc   :  { %28177 = vst [vmem:[#allocation44_spill] sm:$0xff] %v24758_v43  ;;  %28180 = vst [vmem:[#allocation37_spill] sm:$0xff] %v24766_v40  ;;  %15418 = vmatprep.subr.bf16.mxu0 %v28181_v59  ;;  %v28188_v15 = vld [vmem:[#allocation76_spill] sm:$0xff] }
 0x5bd   :  { %28174 = vst [vmem:[#allocation56_spill] sm:$0xff] %v24752_v7  ;;  %v28208_v60 = vld [vmem:[#allocation12_spill] sm:$0xff] }
 0x5be   :  { %15456 = vmatpush3.bf16.msra.mxu1 %v24091_v41  ;;  %9583 = vmatmul.mubr.f32.vlgmr.msra.gmra.mrb[62].mxu0 %v28170_v52  ;;  %v7244_v41 = vld [vmem:[%s25147_s3 + $0x38] sm:$0xff] }
 0x5bf   :  { %15458 = vmatprep.subr.bf16.mxu1 %v28182_v30  ;;  %15420 = vmatpush3.bf16.msra.mxu0 %v28183_v56  ;;  %v7252_v12 = vmul.f32 %v7244_v41, %v28187_v21  ;;  %v28194_v56 = vld [vmem:[#allocation20_spill] sm:$0xff] }
 0x5c0   :  { %9857 = vmatprep.mubr.f32.mxu0 %v28178_v25  ;;  %15422 = vmatprep.subr.bf16.mxu0 %v28184_v61  ;;  %v28190_v25 = vld [vmem:[#allocation46_spill] sm:$0xff] }
 0x5c1   :  { %v28191_v52 = vand.u32 4294901760, %v28190_v25  ;;  %v24796_v59 = vand.u32 4294901760, %v7252_v12 }
 0x5c2   :  { %15460 = vmatpush3.bf16.msra.mxu1 %v24120_v26  ;;  %v28189_v26 = vld [vmem:[#allocation71_spill] sm:$0xff] }
 0x5c3   :  { %15462 = vmatprep.subr.bf16.mxu1 %v24128_v44  ;;  %15424 = vmatpush3.bf16.msra.mxu0 %v28185_v47  ;;  %v10196_v5 = vsub.f32 %v28190_v25, %v28191_v52  ;;  %28193 = vst [vmem:[#allocation36_spill] sm:$0xff] %v24796_v59  ;;  %v28197_v47 = vand.u32 4294901760, %v24314_v13 }
 0x5c4   :  { %15426 = vmatprep.subr.bf16.mxu0 %v28186_v55 }
 0x5c5   :  { %v10091_v41 = vsub.f32 %v24314_v13, %v28197_v47  ;;  %v10197_v55 = vand.u32 4294901760, %v10196_v5 }
 0x5c6   :  { %15464 = vmatpush3.bf16.msra.mxu1 %v24148_v27  ;;  %v12666_v44 = vpop.f32.mrb[50].mxu1  ;;  %v28192_v27 = vand.u32 4294901760, %v24291_v10 }
 0x5c7   :  { %15466 = vmatprep.subr.bf16.mxu1 %v24154_v16  ;;  %15428 = vmatpush3.bf16.msra.mxu0 %v28188_v15  ;;  %v12667_v16 = vpop.f32.mrb[51].mxu1  ;;  %v10092_v47 = vand.u32 4294901760, %v10091_v41  ;;  %v28206_v41 = vld [vmem:[#allocation78_spill] sm:$0xff] }
 0x5c8   :  { %15430 = vmatprep.subr.bf16.mxu0 %v28189_v26  ;;  %v10203_v62 = vsub.f32 %v24291_v10, %v28192_v27  ;;  %v12668_v30 = vadd.f32 %v12667_v16, %v12666_v44  ;;  %v28198_v26 = vand.u32 4294901760, %v24319_v51  ;;  %v28200_v27 = vand.u32 4294901760, %v24331_v4 }
 0x5ca   :  { %15468 = vmatpush3.bf16.msra.mxu1 %v24170_v29  ;;  %v28195_v29 = vld [vmem:[#allocation60_spill] sm:$0xff]  ;;  %v10204_v15 = vand.u32 4294901760, %v10203_v62  ;;  %v10210_v44 = vsub.f32 %v24319_v51, %v28198_v26  ;;  %v10098_v16 = vsub.f32 %v24331_v4, %v28200_v27  ;;  %v28203_v62 = vld [vmem:[#allocation77_spill] sm:$0xff]  ;;  %v28204_v26 = vand.u32 4294901760, %v24384_v34 }
 0x5cb   :  { %15470 = vmatprep.subr.bf16.mxu1 %v24180_v58  ;;  %15432 = vmatpush3.bf16.msra.mxu0 %v28194_v56  ;;  %v28196_v58 = vand.u32 4294901760, %v24296_v45  ;;  %v24818_v56 = vsub.f32 %v7252_v12, %v24796_v59  ;;  %v28205_v27 = vand.u32 4294901760, %v24389_v33 }
 0x5cc   :  { %15434 = vmatprep.subr.bf16.mxu0 %v28195_v29  ;;  %v28201_v29 = vld [vmem:[#allocation42_spill] sm:$0xff]  ;;  %v10211_v40 = vand.u32 4294901760, %v10210_v44 }
 0x5cd   :  { %v10084_v61 = vsub.f32 %v24296_v45, %v28196_v58  ;;  %v10231_v12 = vsub.f32 %v24389_v33, %v28205_v27  ;;  %v28209_v27 = vand.u32 4294901760, %v28208_v60 }
 0x5ce   :  { %15472 = vmatpush3.bf16.msra.mxu1 %v24187_v54  ;;  %v28199_v54 = vand.u32 4294901760, %v24324_v50 }
 0x5cf   :  { %15474 = vmatprep.subr.bf16.mxu1 %v24194_v23  ;;  %15436 = vmatpush3.bf16.msra.mxu0 %v28201_v29  ;;  %v28202_v23 = vand.u32 4294901760, %v24336_v11  ;;  %v10085_v58 = vand.u32 4294901760, %v10084_v61  ;;  %v15513_v29 = vpack.c.bf16 %v10204_v15, %v10197_v55  ;;  %v10119_v33 = vsub.f32 %v28208_v60, %v28209_v27 }
 0x5d0   :  { %v10217_v52 = vsub.f32 %v24324_v50, %v28199_v54  ;;  %15438 = vmatprep.subr.bf16.mxu0 %v28203_v62  ;;  %v10224_v54 = vsub.f32 %v24384_v34, %v28204_v26  ;;  %v28207_v26 = vand.u32 4294901760, %v24404_v24  ;;  %v10232_v44 = vand.u32 4294901760, %v10231_v12 }
 0x5d1   :  { %v10105_v5 = vsub.f32 %v24336_v11, %v28202_v23  ;;  %v12631_v8 = vpop.f32.mrb[50].mxu0  ;;  %v15515_v55 = vpack.c.bf16 %v10092_v47, %v10085_v58  ;;  %v28217_v58 = vand.u32 4294901760, %v24818_v56  ;;  %v28218_v47 = vld [vmem:[#allocation75_spill] sm:$0xff] }
 0x5d2   :  { %15476 = vmatpush3.bf16.msra.mxu1 %v24242_v39  ;;  %v10218_v23 = vand.u32 4294901760, %v10217_v52  ;;  %v12632_v43 = vpop.f32.mrb[51].mxu0  ;;  %v10099_v39 = vand.u32 4294901760, %v10098_v16  ;;  %v10112_v63 = vsub.f32 %v24404_v24, %v28207_v26  ;;  %v10225_v15 = vand.u32 4294901760, %v10224_v54  ;;  %v28213_v26 = vld [vmem:[#allocation82_spill] sm:$0xff] }
 0x5d3   :  { %15478 = vmatprep.subr.bf16.mxu1 %v24259_v18  ;;  %v12633_v61 = vadd.f32 %v12632_v43, %v12631_v8  ;;  %15440 = vmatpush3.bf16.msra.mxu0 %v28206_v41  ;;  %v10106_v7 = vand.u32 4294901760, %v10105_v5  ;;  %v28210_v18 = vld [vmem:[#allocation79_spill] sm:$0xff]  ;;  %v28211_v52 = vand.u32 4294901760, %v24467_v28  ;;  %v28212_v5 = vand.u32 4294901760, %v24472_v19 }
 0x5d4   :  { %15442 = vmatprep.subr.bf16.mxu0 %v28210_v18  ;;  %v15517_v43 = vpack.c.bf16 %v10218_v23, %v10211_v40  ;;  %v28214_v27 = vand.u32 4294901760, %v28213_v26  ;;  %v28219_v40 = vld [vmem:[#allocation51_spill] sm:$0xff]  ;;  %v10113_v12 = vand.u32 4294901760, %v10112_v63 }
 0x5d5   :  { %v7861_v8 = vadd.f32 %v12633_v61, %v24746_v57  ;;  %v10238_v16 = vsub.f32 %v24467_v28, %v28211_v52  ;;  %v10245_v41 = vsub.f32 %v24472_v19, %v28212_v5  ;;  %v10067_v57 = vsub.f32 %v24818_v56, %v28217_v58 }
 0x5d6   :  { %15480 = vmatpush3.bf16.msra.mxu1 %v24267_v17  ;;  %v28215_v17 = vld [vmem:[#allocation69_spill] sm:$0xff]  ;;  %v15519_v54 = vpack.c.bf16 %v10106_v7, %v10099_v39  ;;  %v15521_v61 = vpack.c.bf16 %v10232_v44, %v10225_v15  ;;  %v28221_v5 = vand.u32 4294901760, %v24482_v36  ;;  %v28224_v39 = vand.u32 4294901760, %v24493_v42  ;;  %v28225_v15 = vld [vmem:[#allocation43_spill] sm:$0xff] }
 0x5d7   :  { %15514 = vmatprep.subr.bf16.mxu1 %v15513_v29  ;;  %v28216_v62 = vand.u32 4294901760, %v28215_v17  ;;  %15444 = vmatpush3.bf16.msra.mxu0 %v28219_v40  ;;  %v10120_v29 = vand.u32 4294901760, %v10119_v33  ;;  %v24861_v23 = vadd.f32 %v12668_v30, %v7861_v8  ;;  %v10239_v7 = vand.u32 4294901760, %v10238_v16  ;;  %v28227_v8 = vld [vmem:[#allocation38_spill] sm:$0xff]  ;;  %v28229_v40 = vld [vmem:[#allocation23_spill] sm:$0xff] }
 0x5d8   :  { %v10133_v26 = vsub.f32 %v24482_v36, %v28221_v5  ;;  %v10246_v63 = vand.u32 4294901760, %v10245_v41  ;;  %v28223_v33 = vand.u32 4294901760, %v24488_v35  ;;  %v28226_v44 = vand.u32 4294901760, %v28225_v15  ;;  %v28232_v41 = vld [vmem:[#allocation86_spill] sm:$0xff] }
 0x5d9   :  { %v24854_v18 = vpack.c.bf16 %v28216_v62, %v28214_v27  ;;  %9963 = vmatmul.mubr.f32.vlgmr.msra.gmra.mrb[64].mxu1 %v28218_v47  ;;  %v28220_v62 = vand.u32 4294901760, %v24477_v20  ;;  %v28222_v27 = vld [vmem:[#allocation47_spill] sm:$0xff]  ;;  %v28228_v17 = vand.u32 4294901760, %v28227_v8  ;;  %v28233_v5 = vand.u32 4294901760, %v28232_v41 }
 0x5da   :  { %15516 = vmatpush3.bf16.msra.mxu1 %v15515_v55  ;;  %10305 = vmatprep.mubr.f32.mxu1 %v24796_v59  ;;  %v10252_v30 = vsub.f32 %v24488_v35, %v28223_v33  ;;  %v10259_v55 = vsub.f32 %v24493_v42, %v28224_v39  ;;  %v28234_v33 = vand.u32 4294901760, %v24505_v6  ;;  %v28235_v39 = vand.u32 4294901760, %v24510_v14 }
 0x5db   :  { %v10126_v52 = vsub.f32 %v24477_v20, %v28220_v62  ;;  %15446 = vmatprep.subr.bf16.mxu0 %v28222_v27  ;;  %15518 = vmatprep.subr.bf16.mxu1 %v15517_v43  ;;  %v24881_v58 = vpack.c.bf16 %v28228_v17, %v28226_v44  ;;  %v15523_v62 = vpack.c.bf16 %v10120_v29, %v10113_v12  ;;  %v28230_v43 = vld [vmem:[#allocation85_spill] sm:$0xff]  ;;  %v10134_v8 = vand.u32 4294901760, %v10133_v26 }
 0x5dc   :  { %15448 = vmatpush3.bf16.msra.mxu0 %v28229_v40  ;;  %v28231_v16 = vand.u32 4294901760, %v28230_v43  ;;  %v10140_v59 = vsub.f32 %v24505_v6, %v28234_v33  ;;  %v10147_v15 = vsub.f32 %v24510_v14, %v28235_v39  ;;  %v28236_v12 = vand.u32 4294901760, %v24635_v9  ;;  %v28240_v39 = vld [vmem:[#allocation24_spill] sm:$0xff] }
 0x5dd   :  { %15482 = vmatprep.subr.bf16.mxu0 %v24854_v18  ;;  %v10127_v44 = vand.u32 4294901760, %v10126_v52  ;;  %v28237_v17 = vand.u32 4294901760, %v24646_v1  ;;  %v10068_v43 = vand.u32 4294901760, %v10067_v57  ;;  %v10253_v41 = vand.u32 4294901760, %v10252_v30 }
 0x5de   :  { %v24888_v27 = vpack.c.bf16 %v28233_v5, %v28231_v16  ;;  %15520 = vmatpush3.bf16.msra.mxu1 %v15519_v54  ;;  %v10266_v29 = vsub.f32 %v24635_v9, %v28236_v12  ;;  %v15525_v16 = vpack.c.bf16 %v10246_v63, %v10239_v7  ;;  %v10260_v5 = vand.u32 4294901760, %v10259_v55  ;;  %v28238_v54 = vld [vmem:[#allocation13_spill] sm:$0xff]  ;;  %v28244_v63 = vld [vmem:[#allocation6_spill] sm:$0xff] }
 0x5df   :  { %v10273_v40 = vsub.f32 %v24646_v1, %v28237_v17  ;;  %15522 = vmatprep.subr.bf16.mxu1 %v15521_v61  ;;  %9859 = vmatmul.mubr.f32.vlgmr.msra.gmra.mrb[64].mxu0 %v28218_v47  ;;  %v28239_v33 = vand.u32 4294901760, %v28238_v54  ;;  %v28241_v52 = vand.u32 4294901760, %v28240_v39  ;;  %v10141_v12 = vand.u32 4294901760, %v10140_v59  ;;  %v28246_v55 = vld [vmem:[#allocation34_spill] sm:$0xff] }
 0x5e0   :  { %15484 = vmatpush3.bf16.msra.mxu0 %v24881_v58  ;;  %10069 = vmatprep.mubr.f32.mxu0 %v10068_v43  ;;  %v10148_v9 = vand.u32 4294901760, %v10147_v15  ;;  %v28242_v17 = vand.u32 4294901760, %v24651_v2  ;;  %v28243_v61 = vand.u32 4294901760, %v24658_v32  ;;  %v15527_v47 = vpack.c.bf16 %v10134_v8, %v10127_v44  ;;  %v28252_v8 = vld [vmem:[#allocation66_spill] sm:$0xff] }
 0x5e1   :  { %v24908_v26 = vpack.c.bf16 %v28241_v52, %v28239_v33  ;;  %15486 = vmatprep.subr.bf16.mxu0 %v24888_v27  ;;  %v28245_v30 = vand.u32 4294901760, %v28244_v63  ;;  %v28247_v54 = vand.u32 4294901760, %v28246_v55  ;;  %v10267_v59 = vand.u32 4294901760, %v10266_v29 }
 0x5e2   :  { %v10154_v57 = vsub.f32 %v24651_v2, %v28242_v17  ;;  %v10161_v7 = vsub.f32 %v24658_v32, %v28243_v61  ;;  %15524 = vmatpush3.bf16.msra.mxu1 %v15523_v62  ;;  %v10274_v15 = vand.u32 4294901760, %v10273_v40  ;;  %v15529_v43 = vpack.c.bf16 %v10260_v5, %v10253_v41  ;;  %v28250_v61 = vld [vmem:[#allocation48_spill] sm:$0xff]  ;;  %v28256_v41 = vld [vmem:[#allocation39_spill] sm:$0xff] }
 0x5e3   :  { %v24922_v33 = vpack.c.bf16 %v28247_v54, %v28245_v30  ;;  %15526 = vmatprep.subr.bf16.mxu1 %v15525_v16  ;;  %v28248_v39 = vand.u32 4294901760, %v24663_v53  ;;  %v28249_v17 = vand.u32 4294901760, %v24668_v46  ;;  %v28251_v44 = vand.u32 4294901760, %v28250_v61  ;;  %v28254_v40 = vld [vmem:[#allocation80_spill] sm:$0xff] }
 0x5e4   :  { %v28253_v63 = vand.u32 4294901760, %v28252_v8  ;;  %15488 = vmatpush3.bf16.msra.mxu0 %v24908_v26  ;;  %v15531_v29 = vpack.c.bf16 %v10148_v9, %v10141_v12  ;;  %v28255_v16 = vand.u32 4294901760, %v28254_v40  ;;  %v28257_v5 = vand.u32 4294901760, %v28256_v41  ;;  %v7243_v12 = vld [vmem:[%s25147_s3 + $0x30] sm:$0xff]  ;;  %s15704_s3 = smov [#allocation2]  }
 0x5e5   :  { %v10280_v52 = vsub.f32 %v24663_v53, %v28248_v39  ;;  %v10287_v62 = vsub.f32 %v24668_v46, %v28249_v17  ;;  %v10155_v55 = vand.u32 4294901760, %v10154_v57  ;;  %v10162_v54 = vand.u32 4294901760, %v10161_v7  ;;  %15490 = vmatprep.subr.bf16.mxu0 %v24922_v33  ;;  %s10841_s0 = sshll.u32 %s15704_s3, 4  ;;  %s10842_s0 = int_to_ptr.vmem [resolvable:$true] %s10841_s0 }
 0x5e6   :  { %v24934_v32 = vpack.c.bf16 %v28253_v63, %v28251_v44  ;;  %v24941_v30 = vpack.c.bf16 %v28257_v5, %v28255_v16  ;;  %15528 = vmatpush3.bf16.msra.mxu1 %v15527_v47  ;;  %v15533_v39 = vpack.c.bf16 %v10274_v15, %v10267_v59  ;;  %v28258_v17 = vand.u32 4294901760, %v24673_v3  ;;  %v28262_v63 = vld [vmem:[#allocation8_spill] sm:$0xff]  ;;  %v28264_v16 = vld [vmem:[#allocation31_spill] sm:$0xff]  ;;  %s15677_s10 = scalar_lea.vmem %s10842_s0, 128  ;;  %p15682_p1 = scmp.lt.s32.totalorder %s10842_s0, %s10842_s0 }
 0x5e7   :  { %v28259_v44 = vand.u32 4294901760, %v24679_v49  ;;  %15530 = vmatprep.subr.bf16.mxu1 %v15529_v43  ;;  %v10281_v8 = vand.u32 4294901760, %v10280_v52  ;;  %v10288_v57 = vand.u32 4294901760, %v10287_v62  ;;  %v28260_v7 = vand.u32 4294901760, %v24684_v31  ;;  %v28266_v43 = vld [vmem:[#allocation83_spill] sm:$0xff]  ;;  %v28268_v62 = vld [vmem:[#allocation68_spill] sm:$0xff]  ;;  %p15678_p0 = scmp.ne.s32.totalorder %s10842_s0, %s15677_s10  ;;  %p15683_p2 = scmp.lt.s32.totalorder %s15677_s10, %s15677_s10 }
 0x5e8   :  { %v10168_v61 = vsub.f32 %v24673_v3, %v28258_v17  ;;  %v28261_v59 = vand.u32 4294901760, %v24689_v0  ;;  %15492 = vmatpush3.bf16.msra.mxu0 %v24934_v32  ;;  %v28263_v40 = vand.u32 4294901760, %v28262_v63  ;;  %v28265_v41 = vand.u32 4294901760, %v28264_v16 }
 0x5e9   :  { %v10175_v9 = vsub.f32 %v24679_v49, %v28259_v44  ;;  %v10294_v47 = vsub.f32 %v24684_v31, %v28260_v7  ;;  %v15535_v17 = vpack.c.bf16 %v10162_v54, %v10155_v55  ;;  %v28267_v52 = vand.u32 4294901760, %v28266_v43  ;;  %15494 = vmatprep.subr.bf16.mxu0 %v24941_v30  ;;  %p15684_p3 = por %p15683_p2, %p15682_p1 }
 0x5ea   :  { %v10301_v15 = vsub.f32 %v24689_v0, %v28261_v59  ;;  %v24964_v5 = vpack.c.bf16 %v28265_v41, %v28263_v40  ;;  %v28269_v44 = vand.u32 4294901760, %v28268_v62  ;;  %v7251_v7 = vmul.f32 %v7243_v12, %v28187_v21  ;;  %15532 = vmatpush3.bf16.msra.mxu1 %v15531_v29  ;;  %v28272_v21 = vld [vmem:[#allocation84_spill] sm:$0xff] }
 0x5eb   :  { %v10169_v59 = vand.u32 4294901760, %v10168_v61  ;;  %v10176_v0 = vand.u32 4294901760, %v10175_v9  ;;  %v28270_v63 = vand.u32 4294901760, %v24705_v38  ;;  %v28271_v40 = vand.u32 4294901760, %v24710_v37  ;;  %15534 = vmatprep.subr.bf16.mxu1 %v15533_v39  ;;  %v28274_v61 = vld [vmem:[#allocation87_spill] sm:$0xff]  ;;  %p15685_p4 = pnand %p15684_p3, %p15678_p0 }
 0x5ec   :  { %v24970_v49 = vpack.c.bf16 %v28269_v44, %v28267_v52  ;;  %v15537_v54 = vpack.c.bf16 %v10288_v57, %v10281_v8  ;;  %v10295_v41 = vand.u32 4294901760, %v10294_v47  ;;  %v10302_v43 = vand.u32 4294901760, %v10301_v15  ;;  %v12736_v52 = vpop.f32.mrb[52].mxu1  ;;  %15496 = vmatpush3.bf16.msra.mxu0 %v24964_v5 }
 0x5ed   :  { %v10182_v16 = vsub.f32 %v24705_v38, %v28270_v63  ;;  %v10189_v55 = vsub.f32 %v24710_v37, %v28271_v40  ;;  %v12737_v62 = vpop.f32.mrb[53].mxu1  ;;  %v28273_v29 = vand.u32 4294901760, %v28272_v21  ;;  %v28275_v9 = vand.u32 4294901760, %v28274_v61  ;;  %v28278_v21 = vld [vmem:[#allocation10_spill] sm:$0xff] }
 0x5ee   :  { %v28276_v44 = vand.u32 4294901760, %v24525_v48  ;;  %v28277_v63 = vand.u32 4294901760, %v24530_v22  ;;  %v24993_v39 = vand.u32 4294901760, %v7251_v7  ;;  %v12738_v8 = vadd.f32 %v12737_v62, %v12736_v52  ;;  %15536 = vmatpush3.bf16.msra.mxu1 %v15535_v17  ;;  %15498 = vmatprep.subr.bf16.mxu0 %v24970_v49  ;;  %v28280_v48 = vld [vmem:[#allocation14_spill] sm:$0xff]  ;;  %v28282_v17 = vld [vmem:[#allocation25_spill] sm:$0xff] }
 0x5ef   :  { %v24985_v12 = vpack.c.bf16 %v28275_v9, %v28273_v29  ;;  %v15539_v57 = vpack.c.bf16 %v10176_v0, %v10169_v59  ;;  %v10183_v47 = vand.u32 4294901760, %v10182_v16  ;;  %v10190_v15 = vand.u32 4294901760, %v10189_v55  ;;  %15538 = vmatprep.subr.bf16.mxu1 %v15537_v54  ;;  %v28284_v9 = vld [vmem:[#allocation27_spill] sm:$0xff] }
 0x5f0   :  { %v24991_v38 = vpack.c.bf16 %v28277_v63, %v28276_v44  ;;  %v15541_v40 = vpack.c.bf16 %v10302_v43, %v10295_v41  ;;  %v28279_v29 = vand.u32 4294901760, %v28278_v21  ;;  %v28281_v61 = vand.u32 4294901760, %v28280_v48  ;;  %v28286_v43 = vld [vmem:[#allocation50_spill] sm:$0xff] }
 0x5f1   :  { %15500 = vmatpush3.bf16.msra.mxu0 %v24985_v12  ;;  %v15543_v52 = vpack.c.bf16 %v10190_v15, %v10183_v47  ;;  %v28283_v62 = vand.u32 4294901760, %v28282_v17  ;;  %v28285_v0 = vand.u32 4294901760, %v28284_v9  ;;  %v25011_v16 = vsub.f32 %v7251_v7, %v24993_v39  ;;  %v12701_v55 = vpop.f32.mrb[52].mxu0  ;;  %v28288_v63 = vld [vmem:[#allocation22_spill] sm:$0xff]  ;;  %v28294_v17 = vld [vmem:[#allocation19_spill] sm:$0xff] }
 0x5f2   :  { %v25001_v22 = vpack.c.bf16 %v28281_v61, %v28279_v29  ;;  %15540 = vmatpush3.bf16.msra.mxu1 %v15539_v57  ;;  %15502 = vmatprep.subr.bf16.mxu0 %v24991_v38  ;;  %v12702_v54 = vpop.f32.mrb[53].mxu0  ;;  %v28287_v44 = vand.u32 4294901760, %v28286_v43  ;;  %v28289_v57 = vand.u32 4294901760, %v28288_v63  ;;  %v28292_v29 = vld [vmem:[#allocation49_spill] sm:$0xff] }
 0x5f3   :  { %v25008_v59 = vpack.c.bf16 %v28285_v0, %v28283_v62  ;;  %15542 = vmatprep.subr.bf16.mxu1 %v15541_v40  ;;  %v12703_v41 = vadd.f32 %v12702_v54, %v12701_v55  ;;  %v10072_v15 = vand.u32 4294901760, %v25011_v16  ;;  %v28290_v40 = vld [vmem:[#allocation67_spill] sm:$0xff]  ;;  %v28293_v48 = vand.u32 4294901760, %v28292_v29  ;;  %v28296_v62 = vld [vmem:[#allocation18_spill] sm:$0xff]  ;;  %v28317_v29 = vld [vmem:[#allocation57_spill] sm:$0xff] }
 0x5f4   :  { %v25018_v47 = vpack.c.bf16 %v28289_v57, %v28287_v44  ;;  %v28291_v21 = vand.u32 4294901760, %v28290_v40  ;;  %v28297_v9 = vand.u32 4294901760, %v28296_v62  ;;  %v15549_v44 = vpack.c.bf16 %v24324_v50, %v24319_v51 }
 0x5f5   :  { %15504 = vmatpush3.bf16.msra.mxu0 %v25001_v22  ;;  %v8137_v7 = vadd.f32 %v12703_v41, %v24861_v23  ;;  %v28298_v23 = vand.u32 4294901760, %v24818_v56  ;;  %v10073_v54 = vsub.f32 %v25011_v16, %v10072_v15  ;;  %v15545_v41 = vpack.c.bf16 %v24291_v10, %v28190_v25 }
 0x5f6   :  { %15544 = vmatpush3.bf16.msra.mxu1 %v15543_v52  ;;  %15506 = vmatprep.subr.bf16.mxu0 %v25008_v59  ;;  %v25028_v61 = vpack.c.bf16 %v28293_v48, %v28291_v21  ;;  %v28295_v52 = vand.u32 4294901760, %v28294_v17  ;;  %v15551_v10 = vpack.c.bf16 %v24336_v11, %v24331_v4  ;;  %v15555_v50 = vpack.c.bf16 %v28208_v60, %v24404_v24  ;;  %v28300_v60 = vld [vmem:[#allocation33_spill] sm:$0xff] }
 0x5f7   :  { %15578 = vmatprep.subr.bf16.mxu1 %v24854_v18  ;;  %v8241_v55 = vadd.f32 %v12738_v8, %v8137_v7  ;;  %v15547_v8 = vpack.c.bf16 %v24314_v13, %v24296_v45  ;;  %v10074_v43 = vand.u32 4294901760, %v10073_v54  ;;  %v28299_v45 = vld [vmem:[#allocation61_spill] sm:$0xff]  ;;  %v15557_v51 = vpack.c.bf16 %v24472_v19, %v24467_v28 }
 0x5f8   :  { %v25036_v0 = vpack.c.bf16 %v28297_v9, %v28295_v52  ;;  %v15553_v13 = vpack.c.bf16 %v28299_v45, %v24384_v34  ;;  %v15559_v11 = vpack.c.bf16 %v24482_v36, %v24477_v20  ;;  %v15561_v4 = vpack.c.bf16 %v24493_v42, %v24488_v35  ;;  %v28301_v35 = vld [vmem:[#allocation58_spill] sm:$0xff]  ;;  %v28321_v52 = vld [vmem:[#allocation37_spill] sm:$0xff] }
 0x5f9   :  { %10307 = vmatmul.mubr.f32.vlgmr.msra.gmra.mrb[66].mxu1 %v24993_v39  ;;  %15508 = vmatpush3.bf16.msra.mxu0 %v25018_v47  ;;  %v15563_v19 = vpack.c.bf16 %v24510_v14, %v24505_v6  ;;  %v15565_v36 = vpack.c.bf16 %v24646_v1, %v28300_v60  ;;  %v15567_v42 = vpack.c.bf16 %v28301_v35, %v24651_v2  ;;  %v28302_v1 = vld [vmem:[#allocation17_spill] sm:$0xff] }
 0x5fa   :  { %15580 = vmatpush3.bf16.msra.mxu1 %v24881_v58  ;;  %10549 = vmatprep.mubr.f32.mxu1 %v28298_v23  ;;  %v15569_v20 = vpack.c.bf16 %v24668_v46, %v24663_v53  ;;  %v28303_v2 = vld [vmem:[#allocation45_spill] sm:$0xff]  ;;  %v28304_v53 = vld [vmem:[#allocation70_spill] sm:$0xff] }
 0x5fb   :  { %15510 = vmatprep.subr.bf16.mxu0 %v25028_v61  ;;  %15582 = vmatprep.subr.bf16.mxu1 %v24888_v27  ;;  %v15573_v57 = vpack.c.bf16 %v28303_v2, %v24684_v31  ;;  %v15575_v46 = vpack.c.bf16 %v24710_v37, %v28304_v53  ;;  %v28307_v31 = vld [vmem:[#allocation88_spill] sm:$0xff]  ;;  %v28308_v37 = vld [vmem:[#allocation26_spill] sm:$0xff] }
 0x5fd   :  { %15512 = vmatpush3.bf16.msra.mxu0 %v25036_v0 }
 0x5fe   :  { %15584 = vmatpush3.bf16.msra.mxu1 %v24908_v26  ;;  %15546 = vmatprep.subr.bf16.mxu0 %v15545_v41 }
 0x5ff   :  { %15586 = vmatprep.subr.bf16.mxu1 %v24922_v33 }
 0x600   :  { %10075 = vmatmul.mubr.f32.vlgmr.msra.gmra.mrb[66].mxu0 %v10074_v43 }
 0x601   :  { %15548 = vmatpush3.bf16.msra.mxu0 %v15547_v8  ;;  %10442 = vmatprep.mubr.f32.mxu0 %v24818_v56  ;;  %v15571_v56 = vpack.c.bf16 %v28302_v1, %v24673_v3  ;;  %v28305_v3 = vld [vmem:[#allocation36_spill] sm:$0xff] }
 0x602   :  { %15588 = vmatpush3.bf16.msra.mxu1 %v24934_v32  ;;  %15550 = vmatprep.subr.bf16.mxu0 %v15549_v44 }
 0x603   :  { %15590 = vmatprep.subr.bf16.mxu1 %v24941_v30 }
 0x605   :  { %15552 = vmatpush3.bf16.msra.mxu0 %v15551_v10 }
 0x606   :  { %15592 = vmatpush3.bf16.msra.mxu1 %v24964_v5  ;;  %15554 = vmatprep.subr.bf16.mxu0 %v15553_v13  ;;  %v12806_v34 = vpop.f32.mrb[54].mxu1 }
 0x607   :  { %15594 = vmatprep.subr.bf16.mxu1 %v24970_v49  ;;  %v12807_v24 = vpop.f32.mrb[55].mxu1 }
 0x608   :  { %v12808_v28 = vadd.f32 %v12807_v24, %v12806_v34 }
 0x609   :  { %15556 = vmatpush3.bf16.msra.mxu0 %v15555_v50 }
 0x60a   :  { %15596 = vmatpush3.bf16.msra.mxu1 %v24985_v12  ;;  %15558 = vmatprep.subr.bf16.mxu0 %v15557_v51 }
 0x60b   :  { %15598 = vmatprep.subr.bf16.mxu1 %v24991_v38 }
 0x60d   :  { %15560 = vmatpush3.bf16.msra.mxu0 %v15559_v11 }
 0x60e   :  { %15600 = vmatpush3.bf16.msra.mxu1 %v25001_v22  ;;  %15562 = vmatprep.subr.bf16.mxu0 %v15561_v4 }
 0x60f   :  { %15602 = vmatprep.subr.bf16.mxu1 %v25008_v59 }
 0x611   :  { %15564 = vmatpush3.bf16.msra.mxu0 %v15563_v19  ;;  %v12771_v14 = vpop.f32.mrb[54].mxu0 }
 0x612   :  { %15604 = vmatpush3.bf16.msra.mxu1 %v25018_v47  ;;  %15566 = vmatprep.subr.bf16.mxu0 %v15565_v36  ;;  %v12772_v6 = vpop.f32.mrb[55].mxu0 }
 0x613   :  { %15606 = vmatprep.subr.bf16.mxu1 %v25028_v61  ;;  %v12773_v25 = vadd.f32 %v12772_v6, %v12771_v14 }
 0x615   :  { %15568 = vmatpush3.bf16.msra.mxu0 %v15567_v42  ;;  %v8353_v63 = vadd.f32 %v12773_v25, %v8241_v55 }
 0x616   :  { %15608 = vmatpush3.bf16.msra.mxu1 %v25036_v0  ;;  %15570 = vmatprep.subr.bf16.mxu0 %v15569_v20 }
 0x617   :  { %15642 = vmatprep.subr.bf16.mxu1 %v24854_v18  ;;  %v8585_v7 = vadd.f32 %v12808_v28, %v8353_v63  ;;  %v28306_v18 = vld [vmem:[#allocation29_spill] sm:$0xff] }
 0x619   :  { %10553 = vmatmul.mubr.f32.vlgmr.msra.gmra.mrb[68].mxu1 %v10072_v15  ;;  %15572 = vmatpush3.bf16.msra.mxu0 %v15571_v56  ;;  %v28313_v15 = vld [vmem:[#allocation9_spill] sm:$0xff] }
 0x61a   :  { %15644 = vmatpush3.bf16.msra.mxu1 %v24881_v58  ;;  %10823 = vmatprep.mubr.f32.mxu1 %v28305_v3  ;;  %v28309_v58 = vld [vmem:[#allocation41_spill] sm:$0xff] }
 0x61b   :  { %15574 = vmatprep.subr.bf16.mxu0 %v15573_v57  ;;  %15646 = vmatprep.subr.bf16.mxu1 %v24888_v27  ;;  %v28310_v27 = vld [vmem:[#allocation30_spill] sm:$0xff] }
 0x61d   :  { %15576 = vmatpush3.bf16.msra.mxu0 %v15575_v46 }
 0x61e   :  { %15648 = vmatpush3.bf16.msra.mxu1 %v24908_v26  ;;  %15610 = vmatprep.subr.bf16.mxu0 %v28306_v18  ;;  %v28311_v26 = vld [vmem:[#allocation21_spill] sm:$0xff] }
 0x61f   :  { %15650 = vmatprep.subr.bf16.mxu1 %v24922_v33  ;;  %v28312_v33 = vld [vmem:[#allocation40_spill] sm:$0xff] }
 0x620   :  { %10445 = vmatmul.mubr.f32.vlgmr.msra.gmra.mrb[68].mxu0 %v25011_v16 }
 0x621   :  { %15612 = vmatpush3.bf16.msra.mxu0 %v28307_v31  ;;  %10719 = vmatprep.mubr.f32.mxu0 %v28305_v3 }
 0x622   :  { %15652 = vmatpush3.bf16.msra.mxu1 %v24934_v32  ;;  %15614 = vmatprep.subr.bf16.mxu0 %v28308_v37 }
 0x623   :  { %15654 = vmatprep.subr.bf16.mxu1 %v24941_v30 }
 0x625   :  { %15616 = vmatpush3.bf16.msra.mxu0 %v28309_v58 }
 0x626   :  { %15656 = vmatpush3.bf16.msra.mxu1 %v24964_v5  ;;  %15618 = vmatprep.subr.bf16.mxu0 %v28310_v27  ;;  %v12876_v32 = vpop.f32.mrb[56].mxu1  ;;  %v28314_v5 = vld [vmem:[#allocation28_spill] sm:$0xff] }
 0x627   :  { %15658 = vmatprep.subr.bf16.mxu1 %v24970_v49  ;;  %v12877_v16 = vpop.f32.mrb[57].mxu1  ;;  %v28315_v49 = vld [vmem:[#allocation35_spill] sm:$0xff] }
 0x628   :  { %v12878_v30 = vadd.f32 %v12877_v16, %v12876_v32 }
 0x629   :  { %15620 = vmatpush3.bf16.msra.mxu0 %v28311_v26 }
 0x62a   :  { %15660 = vmatpush3.bf16.msra.mxu1 %v24985_v12  ;;  %15622 = vmatprep.subr.bf16.mxu0 %v28312_v33  ;;  %v28316_v12 = vld [vmem:[#allocation53_spill] sm:$0xff] }
 0x62b   :  { %15662 = vmatprep.subr.bf16.mxu1 %v24991_v38 }
 0x62d   :  { %15624 = vmatpush3.bf16.msra.mxu0 %v28313_v15 }
 0x62e   :  { %15664 = vmatpush3.bf16.msra.mxu1 %v25001_v22  ;;  %15626 = vmatprep.subr.bf16.mxu0 %v28314_v5  ;;  %v28318_v22 = vld [vmem:[#allocation7_spill] sm:$0xff] }
 0x62f   :  { %15666 = vmatprep.subr.bf16.mxu1 %v25008_v59  ;;  %v28319_v59 = vld [vmem:[#allocation56_spill] sm:$0xff] }
 0x631   :  { %15628 = vmatpush3.bf16.msra.mxu0 %v28315_v49  ;;  %v12841_v40 = vpop.f32.mrb[56].mxu0 }
 0x632   :  { %15668 = vmatpush3.bf16.msra.mxu1 %v25018_v47  ;;  %15630 = vmatprep.subr.bf16.mxu0 %v28316_v12  ;;  %v12842_v38 = vpop.f32.mrb[57].mxu0  ;;  %v28320_v47 = vld [vmem:[#allocation44_spill] sm:$0xff] }
 0x633   :  { %15670 = vmatprep.subr.bf16.mxu1 %v25028_v61  ;;  %v12843_v21 = vadd.f32 %v12842_v38, %v12841_v40 }
 0x635   :  { %15632 = vmatpush3.bf16.msra.mxu0 %v28317_v29  ;;  %v8723_v48 = vadd.f32 %v12843_v21, %v8585_v7 }
 0x636   :  { %15672 = vmatpush3.bf16.msra.mxu1 %v25036_v0  ;;  %15634 = vmatprep.subr.bf16.mxu0 %v28318_v22 }
 0x637   :  { %v8831_v17 = vadd.f32 %v12878_v30, %v8723_v48 }
 0x639   :  { %10825 = vmatmul.mubr.f32.vlgmr.msra.gmra.mrb[70].mxu1 %v24993_v39  ;;  %15636 = vmatpush3.bf16.msra.mxu0 %v28319_v59 }
 0x63a   :  { %15638 = vmatprep.subr.bf16.mxu0 %v28320_v47 }
 0x63d   :  { %15640 = vmatpush3.bf16.msra.mxu0 %v28321_v52 }
 0x640   :  { %10721 = vmatmul.mubr.f32.vlgmr.msra.gmra.mrb[70].mxu0 %v24993_v39 }
 0x646   :  { %v12946_v61 = vpop.f32.mrb[58].mxu1 }
 0x647   :  { %v12947_v62 = vpop.f32.mrb[59].mxu1 }
 0x648   :  { %v12948_v9 = vadd.f32 %v12947_v62, %v12946_v61 }
 0x651   :  { %v12911_v55 = vpop.f32.mrb[58].mxu0 }
 0x652   :  { %v12912_v23 = vpop.f32.mrb[59].mxu0 }
 0x653   :  { %v12913_v0 = vadd.f32 %v12912_v23, %v12911_v55 }
 0x655   :  { %v8999_v54 = vadd.f32 %v12913_v0, %v8831_v17 }
 0x657   :  { %v9103_v41 = vadd.f32 %v12948_v9, %v8999_v54 }
 0x667   :  { %v13016_v8 = vpop.f32.mrb[60].mxu1 }
 0x668   :  { %v13017_v43 = vpop.f32.mrb[61].mxu1 }
 0x669   :  { %v13018_v44 = vadd.f32 %v13017_v43, %v13016_v8 }
 0x671   :  { %v12981_v10 = vpop.f32.mrb[60].mxu0 }
 0x672   :  { %v12982_v45 = vpop.f32.mrb[61].mxu0 }
 0x673   :  { %v12983_v13 = vadd.f32 %v12982_v45, %v12981_v10 }
 0x675   :  { %v9215_v50 = vadd.f32 %v12983_v13, %v9103_v41 }
 0x677   :  { %v9447_v51 = vadd.f32 %v13018_v44, %v9215_v50 }
 0x68c   :  { %v13086_v11 = vpop.f32.mrb[62].mxu1 }
 0x68d   :  { %v13087_v4 = vpop.f32.mrb[63].mxu1 }
 0x68e   :  { %v13088_v34 = vadd.f32 %v13087_v4, %v13086_v11 }
 0x691   :  { %v13051_v39 = vpop.f32.mrb[62].mxu0 }
 0x692   :  { %v13052_v24 = vpop.f32.mrb[63].mxu0 }
 0x693   :  { %v13053_v19 = vadd.f32 %v13052_v24, %v13051_v39 }
 0x695   :  { %v9585_v28 = vadd.f32 %v13053_v19, %v9447_v51 }
 0x697   :  { %v9693_v60 = vadd.f32 %v13088_v34, %v9585_v28 }
 0x6ac   :  { %v13156_v36 = vpop.f32.mrb[64].mxu1 }
 0x6ad   :  { %v13157_v35 = vpop.f32.mrb[65].mxu1 }
 0x6ae   :  { %v13158_v42 = vadd.f32 %v13157_v35, %v13156_v36 }
 0x6b2   :  { %v13121_v20 = vpop.f32.mrb[64].mxu0 }
 0x6b3   :  { %v13122_v14 = vpop.f32.mrb[65].mxu0 }
 0x6b4   :  { %v13123_v6 = vadd.f32 %v13122_v14, %v13121_v20 }
 0x6b6   :  { %v9861_v25 = vadd.f32 %v13123_v6, %v9693_v60 }
 0x6b8   :  { %v9965_v1 = vadd.f32 %v13158_v42, %v9861_v25 }
 0x6cc   :  { %v13226_v56 = vpop.f32.mrb[66].mxu1 }
 0x6cd   :  { %v13227_v63 = vpop.f32.mrb[67].mxu1 }
 0x6ce   :  { %v13228_v2 = vadd.f32 %v13227_v63, %v13226_v56 }
 0x6d3   :  { %v13191_v57 = vpop.f32.mrb[66].mxu0 }
 0x6d4   :  { %v13192_v53 = vpop.f32.mrb[67].mxu0 }
 0x6d5   :  { %v13193_v46 = vadd.f32 %v13192_v53, %v13191_v57 }
 0x6d7   :  { %v10077_v7 = vadd.f32 %v13193_v46, %v9965_v1 }
 0x6d9   :  { %v10309_v3 = vadd.f32 %v13228_v2, %v10077_v7 }
 0x6ec   :  { %v13296_v18 = vpop.f32.mrb[68].mxu1 }
 0x6ed   :  { %v13297_v31 = vpop.f32.mrb[69].mxu1 }
 0x6ee   :  { %v13298_v37 = vadd.f32 %v13297_v31, %v13296_v18 }
 0x6f3   :  { %v13261_v58 = vpop.f32.mrb[68].mxu0 }
 0x6f4   :  { %v13262_v27 = vpop.f32.mrb[69].mxu0 }
 0x6f5   :  { %v13263_v26 = vadd.f32 %v13262_v27, %v13261_v58 }
 0x6f7   :  { %v10447_v33 = vadd.f32 %v13263_v26, %v10309_v3 }
 0x6f9   :  { %v10555_v32 = vadd.f32 %v13298_v37, %v10447_v33 }
 0x70c   :  { %v13366_v16 = vpop.f32.mrb[70].mxu1 }
 0x70d   :  { %v13367_v15 = vpop.f32.mrb[71].mxu1 }
 0x70e   :  { %v13368_v30 = vadd.f32 %v13367_v15, %v13366_v16 }
 0x713   :  { %v13331_v5 = vpop.f32.mrb[70].mxu0 }
 0x714   :  { %v13332_v49 = vpop.f32.mrb[71].mxu0 }
 0x715   :  { %v13333_v12 = vadd.f32 %v13332_v49, %v13331_v5 }
 0x717   :  { %v10723_v40 = vadd.f32 %v13333_v12, %v10555_v32 }
 0x719   :  { %v10827_v38 = vadd.f32 %v13368_v30, %v10723_v40 }
 0x71b   :  { %vm10830_vm4 = vcmp.ge.f32.partialorder %v10827_v38, 0.0  ;;  %v10831_v21 = vmul.f32 0.01, %v10827_v38 }
 0x71d   :  { %v10832_v29 = vsel %vm10830_vm4, %v10827_v38, %v10831_v21 }
 0x71e   :  { %10834 = vst.msk [vmem:[#allocation2] sm:$0xff] %vm10833_vm5, %v10832_v29 }
 0x71f   :  { %15688 = shalt.err (!%p15685_p4)
}
 0x720   :  { %s15689_s13 = scalar_lea.hbm %s25151_s7, 128 }
 0x721   :  { %p15690_p5 = scmp.ne.s32.totalorder %s25151_s7, %s15689_s13  ;;  %p15693_p6 = scmp.lt.u32.totalorder %s15689_s13, %s25151_s7 }
 0x723   :  { %p15695_p7 = pnand %p15693_p6, %p15690_p5 }
 0x725   :  { %15698 = shalt.err (!%p15695_p7)
}
 0x726   :  { %10844 = dma.vmem_to_hbm [thread:$0]  %s10842_s0, 128, %s25151_s7, [#allocation3]  }
 0x727   :  { %15699 = dma.done.wait [#allocation3], 128  }
 0x728   :  { %15700 = vsyncadd [#allocation3], 4294967168 }
 0x729   :  { %10848 = vsyncpa [#allocation3], 1 }

</bundles_post_ra>
